<compile_context>
chip_gen: v5e
topology: v5e:2x2
jax: 0.10.0
libtpu: 0.0.40
codegen_flags: <defaults>
</compile_context>

<pallas_src>
import jax
import jax.numpy as jnp
from jax.experimental import pallas as pl
from jax.experimental.pallas import tpu as pltpu

SEQ_LEN = 30
INPUT_DIM = 88
D_PAD = 128  # layer-0 input feature dim padded to a full lane width

_VMEM = pl.BlockSpec(memory_space=pltpu.MemorySpace.VMEM)


# ----------------------------------------------------------------------------
# Fused kernel: LSTM stack + MLP head + softmax
# ----------------------------------------------------------------------------
def make_fused_kernel(num_layers, T, B, H):
    """Build the fused kernel for a fixed (static) configuration.

    Kernel ref order:
      x_ref (T*B, D_PAD) bf16                time-major rows (t*B + b)
      per layer: wih (Dpad_or_H, 4H) bf16, whh (H, 4H) bf16, bias (1, 4H) f32
      fc1 w (H,H) bf16, b (1,H) f32; fc2 w,b; fc3 w (H,O) bf16, b (1,O) f32
      o_ref (B, O) f32
      scratch: gx2d (T*B, 4H) f32  -- current layer's hoisted input projection
               h_seq (T*B, H) bf16 -- per-step hidden states, consumed by the
                                      batched next-layer projection between loops
    """
    f32 = jnp.float32
    bf16 = jnp.bfloat16

    def kernel(*refs):
        x_ref = refs[0]
        lstm = []
        idx = 1
        for _ in range(num_layers):
            lstm.append((refs[idx], refs[idx + 1], refs[idx + 2]))
            idx += 3
        fc = [(refs[idx + 2 * i], refs[idx + 2 * i + 1]) for i in range(3)]
        idx += 6
        o_ref = refs[idx]
        gx2d = refs[idx + 1]      # (T*B, 4H) f32
        h_seq = refs[idx + 2]     # (T*B, H)  bf16 (dead if num_layers == 1; tiny)

        # ---- layer-0 input projection: one matmul, off the recurrent path ----
        wih0, _, b0 = lstm[0]
        gx2d[...] = (
            jnp.dot(x_ref[...], wih0[...], preferred_element_type=f32) + b0[...]
        )

        h = jnp.zeros((B, H), f32)
        for layer in range(num_layers):
            whh = lstm[layer][1][...]
            has_next = layer + 1 < num_layers

            h = jnp.zeros((B, H), f32)
            c = jnp.zeros((B, H), f32)
            # Fully unrolled recurrence (T static & small) -> concrete indices,
            # cross-iteration scheduler visibility.  Per-step critical path is
            # matmul -> add -> sigmoid/tanh -> 3 VPU ops -> tanh, nothing else.
            for t in range(T):
                gx = gx2d[pl.ds(t * B, B)]
                # TODO(synk): weight-stationary Whh (pltpu.matmul_push_rhs /
                #             matmul_acc_lhs / matmul_pop on v5e/v6e, MRB accumulate
                #             on v7x) would shave per-step MXU turnaround further;
                #             kept as jnp.dot for portability across generations.
                gates = gx + jnp.dot(h.astype(bf16), whh, preferred_element_type=f32)
                sig = jax.nn.sigmoid(gates)              # one full-width (B,4H) EUP push
                g = jnp.tanh(gates[:, 2 * H:3 * H])
                c = sig[:, H:2 * H] * c + sig[:, 0:H] * g
                h = sig[:, 3 * H:4 * H] * jnp.tanh(c)
                if has_next:
                    # Only a cheap VMEM store on the serial chain; the next layer's
                    # input projection is batched into one matmul after the loop.
                    h_seq[pl.ds(t * B, B)] = h.astype(bf16)

            if has_next:
                wih_next = lstm[layer + 1][0][...]
                b_next = lstm[layer + 1][2][...]
                # One batched (T*B, H) @ (H, 4H) projection for the whole next layer.
                gx2d[...] = (
                    jnp.dot(h_seq[...], wih_next, preferred_element_type=f32) + b_next
                )

        # ---- MLP head + softmax (only the last hidden state is needed) ----
        (w1, fb1), (w2, fb2), (w3, fb3) = fc
        z = jnp.dot(h.astype(bf16), w1[...], preferred_element_type=f32) + fb1[...]
        z = jnp.maximum(z, 0.0)
        z = jnp.dot(z.astype(bf16), w2[...], preferred_element_type=f32) + fb2[...]
        z = jnp.maximum(z, 0.0)
        logits = jnp.dot(z.astype(bf16), w3[...], preferred_element_type=f32) + fb3[...]
        m = jnp.max(logits, axis=1, keepdims=True)
        e = jnp.exp(logits - m)
        inv = pl.reciprocal(jnp.sum(e, axis=1, keepdims=True), approx=True)  # EUP slot
        o_ref[...] = (e * inv).astype(o_ref.dtype)

    return kernel


# ----------------------------------------------------------------------------
# Wrapper
# ----------------------------------------------------------------------------
@jax.jit
def model_forward(x, params):
    # x.view([-1, 30, 88])
    x = x.reshape(-1, SEQ_LEN, INPUT_DIM)                    # (B, T, D)
    B = x.shape[0]
    T, D = SEQ_LEN, INPUT_DIM
    H = params["lstm"][0]["whh_t"].shape[0]
    O = params["fc"][2]["w_t"].shape[1]
    L = len(params["lstm"])

    # Time-major flattened input: row index = t*B + b.  Cast to bf16 and zero-pad
    # the feature dim to 128 lanes in the wrapper (halves the x DMA, lane-dense
    # layer-0 matmul LHS); wih0's rows are zero-padded to match, so no effect on math.
    x_tm = jnp.transpose(x, (1, 0, 2)).reshape(T * B, D)
    x_tm = jnp.pad(x_tm, ((0, 0), (0, D_PAD - D))).astype(jnp.bfloat16)

    args = [x_tm]
    for li, lp in enumerate(params["lstm"]):
        wih = lp["wih_t"]
        if li == 0:
            wih = jnp.pad(wih, ((0, D_PAD - D), (0, 0)))
        args += [wih.astype(jnp.bfloat16),
                 lp["whh_t"].astype(jnp.bfloat16),
                 lp["bias"]]
    for fp in params["fc"]:
        args += [fp["w_t"].astype(jnp.bfloat16), fp["b"]]

    kernel = make_fused_kernel(L, T, B, H)
    # TODO(synk): for large batches (esp. v7x: 2 TCs, 64 MiB VMEM) add a batch grid
    #             axis with dimension_semantics=("parallel",) and size gx2d per tile.
    return pl.pallas_call(
        kernel,
        out_shape=jax.ShapeDtypeStruct((B, O), jnp.float32),
        in_specs=[_VMEM] * len(args),
        out_specs=_VMEM,
        scratch_shapes=[
            pltpu.VMEM((T * B, 4 * H), jnp.float32),   # gx2d
            pltpu.VMEM((T * B, H), jnp.bfloat16),      # h_seq
        ],
    )(*args)


# ----------------------------------------------------------------------------
# Parameter init (PyTorch-style uniform(-1/sqrt(H), 1/sqrt(H)), kept f32)
# ----------------------------------------------------------------------------
def init_params(key, input_dim, hidden_dim, output_dim, layers):
    params = {"lstm": [], "fc": []}
    stdv = 1.0 / jnp.sqrt(jnp.float32(hidden_dim))

    def u(key, shape):
        return jax.random.uniform(key, shape, jnp.float32, -stdv, stdv)

    for layer in range(layers):
        d_in = input_dim if layer == 0 else hidden_dim
        key, k1, k2, k3, k4 = jax.random.split(key, 5)
        w_ih = u(k1, (4 * hidden_dim, d_in))        # PyTorch layout (4H, Din)
        w_hh = u(k2, (4 * hidden_dim, hidden_dim))
        b_ih = u(k3, (4 * hidden_dim,))
        b_hh = u(k4, (4 * hidden_dim,))
        params["lstm"].append(
            dict(
                wih_t=w_ih.T,                                   # (Din, 4H)
                whh_t=w_hh.T,                                   # (H, 4H)
                bias=(b_ih + b_hh).reshape(1, 4 * hidden_dim),  # combined bias
            )
        )

    dims = [(hidden_dim, hidden_dim), (hidden_dim, hidden_dim), (hidden_dim, output_dim)]
    for (d_in, d_out) in dims:
        key, kw, kb = jax.random.split(key, 3)
        bound = 1.0 / jnp.sqrt(jnp.float32(d_in))
        w = jax.random.uniform(kw, (d_out, d_in), jnp.float32, -bound, bound)
        b = jax.random.uniform(kb, (d_out,), jnp.float32, -bound, bound)
        params["fc"].append(dict(w_t=w.T, b=b.reshape(1, d_out)))
    return params


# ----------------------------------------------------------------------------
# Pure-JAX f32 reference (correctness check)
# ----------------------------------------------------------------------------
def reference_forward(x, params):
    x = x.reshape(-1, SEQ_LEN, INPUT_DIM)
    seq = jnp.transpose(x, (1, 0, 2))
    for lp in params["lstm"]:
        H = lp["whh_t"].shape[0]
        B = seq.shape[1]
        h = jnp.zeros((B, H), jnp.float32)
        c = jnp.zeros((B, H), jnp.float32)
        outs = []
        for t in range(seq.shape[0]):
            gates = seq[t] @ lp["wih_t"] + h @ lp["whh_t"] + lp["bias"]
            i_g = jax.nn.sigmoid(gates[:, 0:H])
            f_g = jax.nn.sigmoid(gates[:, H:2 * H])
            g_g = jnp.tanh(gates[:, 2 * H:3 * H])
            o_g = jax.nn.sigmoid(gates[:, 3 * H:4 * H])
            c = f_g * c + i_g * g_g
            h = o_g * jnp.tanh(c)
            outs.append(h)
        seq = jnp.stack(outs, axis=0)
    h_last = seq[-1]
    fc1, fc2, fc3 = params["fc"]
    z = jnp.maximum(h_last @ fc1["w_t"] + fc1["b"], 0.0)
    z = jnp.maximum(z @ fc2["w_t"] + fc2["b"], 0.0)
    logits = z @ fc3["w_t"] + fc3["b"]
    return jax.nn.softmax(logits, axis=1)


if __name__ == "__main__":
    hidden_dim = 32
    output_dim = 8
    layers = 2
    batch = 2

    key = jax.random.PRNGKey(0)
    key, kx, kp = jax.random.split(key, 3)
    # Input is anything that views to (-1, 30, 88); use the flattened form.
    x = jax.random.normal(kx, (batch, SEQ_LEN * INPUT_DIM), jnp.float32)
    params = init_params(kp, INPUT_DIM, hidden_dim, output_dim, layers)

    out = jax.block_until_ready(model_forward(x, params))
    ref = reference_forward(x, params)

    assert out.shape == (batch, output_dim)
    # approx reciprocal in the softmax -> rows sum to 1 only approximately.
    assert jnp.allclose(jnp.sum(out, axis=1), 1.0, atol=1e-2)
    # bf16 MXU operands with f32 accumulation + approx reciprocal -> relaxed tolerance
    # vs the pure-f32 reference.
    assert jnp.allclose(out, ref, atol=1e-2, rtol=1e-2), float(jnp.max(jnp.abs(out - ref)))

    print("KERNEL_OK")
</pallas_src>

<mosaic_0001>
module attributes {stable_mosaic.version = 11 : i64} {
  func.func @kernel(%arg0: memref<60x128xbf16, #tpu.memory_space<vmem>>, %arg1: memref<128x128xbf16, #tpu.memory_space<vmem>>, %arg2: memref<32x128xbf16, #tpu.memory_space<vmem>>, %arg3: memref<1x128xf32, #tpu.memory_space<vmem>>, %arg4: memref<32x128xbf16, #tpu.memory_space<vmem>>, %arg5: memref<32x128xbf16, #tpu.memory_space<vmem>>, %arg6: memref<1x128xf32, #tpu.memory_space<vmem>>, %arg7: memref<32x32xbf16, #tpu.memory_space<vmem>>, %arg8: memref<1x32xf32, #tpu.memory_space<vmem>>, %arg9: memref<32x32xbf16, #tpu.memory_space<vmem>>, %arg10: memref<1x32xf32, #tpu.memory_space<vmem>>, %arg11: memref<32x8xbf16, #tpu.memory_space<vmem>>, %arg12: memref<1x8xf32, #tpu.memory_space<vmem>>, %arg13: memref<2x8xf32, #tpu.memory_space<vmem>>, %arg14: memref<60x128xf32, #tpu.memory_space<vmem>>, %arg15: memref<60x32xbf16, #tpu.memory_space<vmem>>) attributes {dimension_semantics = [], scalar_prefetch = 0 : i64, scratch_operands = 2 : i64, tpu.core_type = #tpu.core_type<tc>} {
    %c0 = arith.constant 0 : index
    %c0_0 = arith.constant 0 : index
    %0 = vector.load %arg0[%c0, %c0_0] : memref<60x128xbf16, #tpu.memory_space<vmem>>, vector<60x128xbf16>
    %c0_1 = arith.constant 0 : index
    %c0_2 = arith.constant 0 : index
    %1 = vector.load %arg1[%c0_1, %c0_2] : memref<128x128xbf16, #tpu.memory_space<vmem>>, vector<128x128xbf16>
    %cst = arith.constant dense<0.000000e+00> : vector<60x128xf32>
    %2 = tpu.matmul %0, %1, %cst {dimension_numbers = #tpu.dot_dimension_numbers<[1], [0], [0], [1], [0, 0, 1, 1], [], []>} : vector<60x128xbf16>, vector<128x128xbf16>, vector<60x128xf32> -> vector<60x128xf32>
    %c0_3 = arith.constant 0 : index
    %c0_4 = arith.constant 0 : index
    %3 = vector.load %arg3[%c0_3, %c0_4] : memref<1x128xf32, #tpu.memory_space<vmem>>, vector<1x128xf32>
    %4 = vector.broadcast %3 : vector<1x128xf32> to vector<60x128xf32>
    %5 = arith.addf %2, %4 : vector<60x128xf32>
    %c0_5 = arith.constant 0 : index
    %c0_6 = arith.constant 0 : index
    %6 = vector.load %arg14[%c0_5, %c0_6] : memref<60x128xf32, #tpu.memory_space<vmem>>, vector<60x128xf32>
    tpu.vector_store %arg14[%c0_5, %c0_6], %5 {strides = array<i32>} : memref<60x128xf32, #tpu.memory_space<vmem>>, vector<60x128xf32>,
    %c0_7 = arith.constant 0 : index
    %c0_8 = arith.constant 0 : index
    %7 = vector.load %arg2[%c0_7, %c0_8] : memref<32x128xbf16, #tpu.memory_space<vmem>>, vector<32x128xbf16>
    %cst_9 = arith.constant 0.000000e+00 : f32
    %8 = vector.broadcast %cst_9 : f32 to vector<2x32xf32>
    %cst_10 = arith.constant 0.000000e+00 : f32
    %9 = vector.broadcast %cst_10 : f32 to vector<2x32xf32>
    %c0_11 = arith.constant 0 : index
    %c0_12 = arith.constant 0 : index
    %10 = vector.load %arg14[%c0_11, %c0_12] : memref<60x128xf32, #tpu.memory_space<vmem>>, vector<2x128xf32>
    %11 = arith.truncf %8 : vector<2x32xf32> to vector<2x32xbf16>
    %cst_13 = arith.constant dense<0.000000e+00> : vector<2x128xf32>
    %12 = tpu.matmul %11, %7, %cst_13 {dimension_numbers = #tpu.dot_dimension_numbers<[1], [0], [0], [1], [0, 0, 1, 1], [], []>} : vector<2x32xbf16>, vector<32x128xbf16>, vector<2x128xf32> -> vector<2x128xf32>
    %13 = arith.addf %10, %12 : vector<2x128xf32>
    %14 = arith.negf %13 : vector<2x128xf32>
    %15 = math.exp %14 : vector<2x128xf32>
    %cst_14 = arith.constant 1.000000e+00 : f32
    %16 = vector.broadcast %cst_14 : f32 to vector<2x128xf32>
    %17 = arith.addf %16, %15 : vector<2x128xf32>
    %18 = arith.divf %16, %17 : vector<2x128xf32>
    %19 = vector.extract_strided_slice %13 {offsets = [0, 64], sizes = [2, 32], strides = [1, 1]} : vector<2x128xf32> to vector<2x32xf32>
    %20 = math.tanh %19 : vector<2x32xf32>
    %21 = vector.extract_strided_slice %18 {offsets = [0, 32], sizes = [2, 32], strides = [1, 1]} : vector<2x128xf32> to vector<2x32xf32>
    %22 = arith.mulf %21, %9 : vector<2x32xf32>
    %23 = vector.extract_strided_slice %18 {offsets = [0, 0], sizes = [2, 32], strides = [1, 1]} : vector<2x128xf32> to vector<2x32xf32>
    %24 = arith.mulf %23, %20 : vector<2x32xf32>
    %25 = arith.addf %22, %24 : vector<2x32xf32>
    %26 = vector.extract_strided_slice %18 {offsets = [0, 96], sizes = [2, 32], strides = [1, 1]} : vector<2x128xf32> to vector<2x32xf32>
    %27 = math.tanh %25 : vector<2x32xf32>
    %28 = arith.mulf %26, %27 : vector<2x32xf32>
    %29 = arith.truncf %28 : vector<2x32xf32> to vector<2x32xbf16>
    %c0_15 = arith.constant 0 : index
    %c0_16 = arith.constant 0 : index
    %30 = vector.load %arg15[%c0_15, %c0_16] : memref<60x32xbf16, #tpu.memory_space<vmem>>, vector<2x32xbf16>
    tpu.vector_store %arg15[%c0_15, %c0_16], %29 {strides = array<i32>} : memref<60x32xbf16, #tpu.memory_space<vmem>>, vector<2x32xbf16>,
    %c2 = arith.constant 2 : index
    %c0_17 = arith.constant 0 : index
    %31 = vector.load %arg14[%c2, %c0_17] : memref<60x128xf32, #tpu.memory_space<vmem>>, vector<2x128xf32>
    %32 = arith.truncf %28 : vector<2x32xf32> to vector<2x32xbf16>
    %cst_18 = arith.constant dense<0.000000e+00> : vector<2x128xf32>
    %33 = tpu.matmul %32, %7, %cst_18 {dimension_numbers = #tpu.dot_dimension_numbers<[1], [0], [0], [1], [0, 0, 1, 1], [], []>} : vector<2x32xbf16>, vector<32x128xbf16>, vector<2x128xf32> -> vector<2x128xf32>
    %34 = arith.addf %31, %33 : vector<2x128xf32>
    %35 = arith.negf %34 : vector<2x128xf32>
    %36 = math.exp %35 : vector<2x128xf32>
    %cst_19 = arith.constant 1.000000e+00 : f32
    %37 = vector.broadcast %cst_19 : f32 to vector<2x128xf32>
    %38 = arith.addf %37, %36 : vector<2x128xf32>
    %39 = arith.divf %37, %38 : vector<2x128xf32>
    %40 = vector.extract_strided_slice %34 {offsets = [0, 64], sizes = [2, 32], strides = [1, 1]} : vector<2x128xf32> to vector<2x32xf32>
    %41 = math.tanh %40 : vector<2x32xf32>
    %42 = vector.extract_strided_slice %39 {offsets = [0, 32], sizes = [2, 32], strides = [1, 1]} : vector<2x128xf32> to vector<2x32xf32>
    %43 = arith.mulf %42, %25 : vector<2x32xf32>
    %44 = vector.extract_strided_slice %39 {offsets = [0, 0], sizes = [2, 32], strides = [1, 1]} : vector<2x128xf32> to vector<2x32xf32>
    %45 = arith.mulf %44, %41 : vector<2x32xf32>
    %46 = arith.addf %43, %45 : vector<2x32xf32>
    %47 = vector.extract_strided_slice %39 {offsets = [0, 96], sizes = [2, 32], strides = [1, 1]} : vector<2x128xf32> to vector<2x32xf32>
    %48 = math.tanh %46 : vector<2x32xf32>
    %49 = arith.mulf %47, %48 : vector<2x32xf32>
    %50 = arith.truncf %49 : vector<2x32xf32> to vector<2x32xbf16>
    %c2_20 = arith.constant 2 : index
    %c0_21 = arith.constant 0 : index
    %51 = vector.load %arg15[%c2_20, %c0_21] : memref<60x32xbf16, #tpu.memory_space<vmem>>, vector<2x32xbf16>
    tpu.vector_store %arg15[%c2_20, %c0_21], %50 {strides = array<i32>} : memref<60x32xbf16, #tpu.memory_space<vmem>>, vector<2x32xbf16>,
    %c4 = arith.constant 4 : index
    %c0_22 = arith.constant 0 : index
    %52 = vector.load %arg14[%c4, %c0_22] : memref<60x128xf32, #tpu.memory_space<vmem>>, vector<2x128xf32>
    %53 = arith.truncf %49 : vector<2x32xf32> to vector<2x32xbf16>
    %cst_23 = arith.constant dense<0.000000e+00> : vector<2x128xf32>
    %54 = tpu.matmul %53, %7, %cst_23 {dimension_numbers = #tpu.dot_dimension_numbers<[1], [0], [0], [1], [0, 0, 1, 1], [], []>} : vector<2x32xbf16>, vector<32x128xbf16>, vector<2x128xf32> -> vector<2x128xf32>
    %55 = arith.addf %52, %54 : vector<2x128xf32>
    %56 = arith.negf %55 : vector<2x128xf32>
    %57 = math.exp %56 : vector<2x128xf32>
    %cst_24 = arith.constant 1.000000e+00 : f32
    %58 = vector.broadcast %cst_24 : f32 to vector<2x128xf32>
    %59 = arith.addf %58, %57 : vector<2x128xf32>
    %60 = arith.divf %58, %59 : vector<2x128xf32>
    %61 = vector.extract_strided_slice %55 {offsets = [0, 64], sizes = [2, 32], strides = [1, 1]} : vector<2x128xf32> to vector<2x32xf32>
    %62 = math.tanh %61 : vector<2x32xf32>
    %63 = vector.extract_strided_slice %60 {offsets = [0, 32], sizes = [2, 32], strides = [1, 1]} : vector<2x128xf32> to vector<2x32xf32>
    %64 = arith.mulf %63, %46 : vector<2x32xf32>
    %65 = vector.extract_strided_slice %60 {offsets = [0, 0], sizes = [2, 32], strides = [1, 1]} : vector<2x128xf32> to vector<2x32xf32>
    %66 = arith.mulf %65, %62 : vector<2x32xf32>
    %67 = arith.addf %64, %66 : vector<2x32xf32>
    %68 = vector.extract_strided_slice %60 {offsets = [0, 96], sizes = [2, 32], strides = [1, 1]} : vector<2x128xf32> to vector<2x32xf32>
    %69 = math.tanh %67 : vector<2x32xf32>
    %70 = arith.mulf %68, %69 : vector<2x32xf32>
    %71 = arith.truncf %70 : vector<2x32xf32> to vector<2x32xbf16>
    %c4_25 = arith.constant 4 : index
    %c0_26 = arith.constant 0 : index
    %72 = vector.load %arg15[%c4_25, %c0_26] : memref<60x32xbf16, #tpu.memory_space<vmem>>, vector<2x32xbf16>
    tpu.vector_store %arg15[%c4_25, %c0_26], %71 {strides = array<i32>} : memref<60x32xbf16, #tpu.memory_space<vmem>>, vector<2x32xbf16>,
    %c6 = arith.constant 6 : index
    %c0_27 = arith.constant 0 : index
    %73 = vector.load %arg14[%c6, %c0_27] : memref<60x128xf32, #tpu.memory_space<vmem>>, vector<2x128xf32>
    %74 = arith.truncf %70 : vector<2x32xf32> to vector<2x32xbf16>
    %cst_28 = arith.constant dense<0.000000e+00> : vector<2x128xf32>
    %75 = tpu.matmul %74, %7, %cst_28 {dimension_numbers = #tpu.dot_dimension_numbers<[1], [0], [0], [1], [0, 0, 1, 1], [], []>} : vector<2x32xbf16>, vector<32x128xbf16>, vector<2x128xf32> -> vector<2x128xf32>
    %76 = arith.addf %73, %75 : vector<2x128xf32>
    %77 = arith.negf %76 : vector<2x128xf32>
    %78 = math.exp %77 : vector<2x128xf32>
    %cst_29 = arith.constant 1.000000e+00 : f32
    %79 = vector.broadcast %cst_29 : f32 to vector<2x128xf32>
    %80 = arith.addf %79, %78 : vector<2x128xf32>
    %81 = arith.divf %79, %80 : vector<2x128xf32>
    %82 = vector.extract_strided_slice %76 {offsets = [0, 64], sizes = [2, 32], strides = [1, 1]} : vector<2x128xf32> to vector<2x32xf32>
    %83 = math.tanh %82 : vector<2x32xf32>
    %84 = vector.extract_strided_slice %81 {offsets = [0, 32], sizes = [2, 32], strides = [1, 1]} : vector<2x128xf32> to vector<2x32xf32>
    %85 = arith.mulf %84, %67 : vector<2x32xf32>
    %86 = vector.extract_strided_slice %81 {offsets = [0, 0], sizes = [2, 32], strides = [1, 1]} : vector<2x128xf32> to vector<2x32xf32>
    %87 = arith.mulf %86, %83 : vector<2x32xf32>
    %88 = arith.addf %85, %87 : vector<2x32xf32>
    %89 = vector.extract_strided_slice %81 {offsets = [0, 96], sizes = [2, 32], strides = [1, 1]} : vector<2x128xf32> to vector<2x32xf32>
    %90 = math.tanh %88 : vector<2x32xf32>
    %91 = arith.mulf %89, %90 : vector<2x32xf32>
    %92 = arith.truncf %91 : vector<2x32xf32> to vector<2x32xbf16>
    %c6_30 = arith.constant 6 : index
    %c0_31 = arith.constant 0 : index
    %93 = vector.load %arg15[%c6_30, %c0_31] : memref<60x32xbf16, #tpu.memory_space<vmem>>, vector<2x32xbf16>
    tpu.vector_store %arg15[%c6_30, %c0_31], %92 {strides = array<i32>} : memref<60x32xbf16, #tpu.memory_space<vmem>>, vector<2x32xbf16>,
    %c8 = arith.constant 8 : index
    %c0_32 = arith.constant 0 : index
    %94 = vector.load %arg14[%c8, %c0_32] : memref<60x128xf32, #tpu.memory_space<vmem>>, vector<2x128xf32>
    %95 = arith.truncf %91 : vector<2x32xf32> to vector<2x32xbf16>
    %cst_33 = arith.constant dense<0.000000e+00> : vector<2x128xf32>
    %96 = tpu.matmul %95, %7, %cst_33 {dimension_numbers = #tpu.dot_dimension_numbers<[1], [0], [0], [1], [0, 0, 1, 1], [], []>} : vector<2x32xbf16>, vector<32x128xbf16>, vector<2x128xf32> -> vector<2x128xf32>
    %97 = arith.addf %94, %96 : vector<2x128xf32>
    %98 = arith.negf %97 : vector<2x128xf32>
    %99 = math.exp %98 : vector<2x128xf32>
    %cst_34 = arith.constant 1.000000e+00 : f32
    %100 = vector.broadcast %cst_34 : f32 to vector<2x128xf32>
    %101 = arith.addf %100, %99 : vector<2x128xf32>
    %102 = arith.divf %100, %101 : vector<2x128xf32>
    %103 = vector.extract_strided_slice %97 {offsets = [0, 64], sizes = [2, 32], strides = [1, 1]} : vector<2x128xf32> to vector<2x32xf32>
    %104 = math.tanh %103 : vector<2x32xf32>
    %105 = vector.extract_strided_slice %102 {offsets = [0, 32], sizes = [2, 32], strides = [1, 1]} : vector<2x128xf32> to vector<2x32xf32>
    %106 = arith.mulf %105, %88 : vector<2x32xf32>
    %107 = vector.extract_strided_slice %102 {offsets = [0, 0], sizes = [2, 32], strides = [1, 1]} : vector<2x128xf32> to vector<2x32xf32>
    %108 = arith.mulf %107, %104 : vector<2x32xf32>
    %109 = arith.addf %106, %108 : vector<2x32xf32>
    %110 = vector.extract_strided_slice %102 {offsets = [0, 96], sizes = [2, 32], strides = [1, 1]} : vector<2x128xf32> to vector<2x32xf32>
    %111 = math.tanh %109 : vector<2x32xf32>
    %112 = arith.mulf %110, %111 : vector<2x32xf32>
    %113 = arith.truncf %112 : vector<2x32xf32> to vector<2x32xbf16>
    %c8_35 = arith.constant 8 : index
    %c0_36 = arith.constant 0 : index
    %114 = vector.load %arg15[%c8_35, %c0_36] : memref<60x32xbf16, #tpu.memory_space<vmem>>, vector<2x32xbf16>
    tpu.vector_store %arg15[%c8_35, %c0_36], %113 {strides = array<i32>} : memref<60x32xbf16, #tpu.memory_space<vmem>>, vector<2x32xbf16>,
    %c10 = arith.constant 10 : index
    %c0_37 = arith.constant 0 : index
    %115 = vector.load %arg14[%c10, %c0_37] : memref<60x128xf32, #tpu.memory_space<vmem>>, vector<2x128xf32>
    %116 = arith.truncf %112 : vector<2x32xf32> to vector<2x32xbf16>
    %cst_38 = arith.constant dense<0.000000e+00> : vector<2x128xf32>
    %117 = tpu.matmul %116, %7, %cst_38 {dimension_numbers = #tpu.dot_dimension_numbers<[1], [0], [0], [1], [0, 0, 1, 1], [], []>} : vector<2x32xbf16>, vector<32x128xbf16>, vector<2x128xf32> -> vector<2x128xf32>
    %118 = arith.addf %115, %117 : vector<2x128xf32>
    %119 = arith.negf %118 : vector<2x128xf32>
    %120 = math.exp %119 : vector<2x128xf32>
    %cst_39 = arith.constant 1.000000e+00 : f32
    %121 = vector.broadcast %cst_39 : f32 to vector<2x128xf32>
    %122 = arith.addf %121, %120 : vector<2x128xf32>
    %123 = arith.divf %121, %122 : vector<2x128xf32>
    %124 = vector.extract_strided_slice %118 {offsets = [0, 64], sizes = [2, 32], strides = [1, 1]} : vector<2x128xf32> to vector<2x32xf32>
    %125 = math.tanh %124 : vector<2x32xf32>
    %126 = vector.extract_strided_slice %123 {offsets = [0, 32], sizes = [2, 32], strides = [1, 1]} : vector<2x128xf32> to vector<2x32xf32>
    %127 = arith.mulf %126, %109 : vector<2x32xf32>
    %128 = vector.extract_strided_slice %123 {offsets = [0, 0], sizes = [2, 32], strides = [1, 1]} : vector<2x128xf32> to vector<2x32xf32>
    %129 = arith.mulf %128, %125 : vector<2x32xf32>
    %130 = arith.addf %127, %129 : vector<2x32xf32>
    %131 = vector.extract_strided_slice %123 {offsets = [0, 96], sizes = [2, 32], strides = [1, 1]} : vector<2x128xf32> to vector<2x32xf32>
    %132 = math.tanh %130 : vector<2x32xf32>
    %133 = arith.mulf %131, %132 : vector<2x32xf32>
    %134 = arith.truncf %133 : vector<2x32xf32> to vector<2x32xbf16>
    %c10_40 = arith.constant 10 : index
    %c0_41 = arith.constant 0 : index
    %135 = vector.load %arg15[%c10_40, %c0_41] : memref<60x32xbf16, #tpu.memory_space<vmem>>, vector<2x32xbf16>
    tpu.vector_store %arg15[%c10_40, %c0_41], %134 {strides = array<i32>} : memref<60x32xbf16, #tpu.memory_space<vmem>>, vector<2x32xbf16>,
    %c12 = arith.constant 12 : index
    %c0_42 = arith.constant 0 : index
    %136 = vector.load %arg14[%c12, %c0_42] : memref<60x128xf32, #tpu.memory_space<vmem>>, vector<2x128xf32>
    %137 = arith.truncf %133 : vector<2x32xf32> to vector<2x32xbf16>
    %cst_43 = arith.constant dense<0.000000e+00> : vector<2x128xf32>
    %138 = tpu.matmul %137, %7, %cst_43 {dimension_numbers = #tpu.dot_dimension_numbers<[1], [0], [0], [1], [0, 0, 1, 1], [], []>} : vector<2x32xbf16>, vector<32x128xbf16>, vector<2x128xf32> -> vector<2x128xf32>
    %139 = arith.addf %136, %138 : vector<2x128xf32>
    %140 = arith.negf %139 : vector<2x128xf32>
    %141 = math.exp %140 : vector<2x128xf32>
    %cst_44 = arith.constant 1.000000e+00 : f32
    %142 = vector.broadcast %cst_44 : f32 to vector<2x128xf32>
    %143 = arith.addf %142, %141 : vector<2x128xf32>
    %144 = arith.divf %142, %143 : vector<2x128xf32>
    %145 = vector.extract_strided_slice %139 {offsets = [0, 64], sizes = [2, 32], strides = [1, 1]} : vector<2x128xf32> to vector<2x32xf32>
    %146 = math.tanh %145 : vector<2x32xf32>
    %147 = vector.extract_strided_slice %144 {offsets = [0, 32], sizes = [2, 32], strides = [1, 1]} : vector<2x128xf32> to vector<2x32xf32>
    %148 = arith.mulf %147, %130 : vector<2x32xf32>
    %149 = vector.extract_strided_slice %144 {offsets = [0, 0], sizes = [2, 32], strides = [1, 1]} : vector<2x128xf32> to vector<2x32xf32>
    %150 = arith.mulf %149, %146 : vector<2x32xf32>
    %151 = arith.addf %148, %150 : vector<2x32xf32>
    %152 = vector.extract_strided_slice %144 {offsets = [0, 96], sizes = [2, 32], strides = [1, 1]} : vector<2x128xf32> to vector<2x32xf32>
    %153 = math.tanh %151 : vector<2x32xf32>
    %154 = arith.mulf %152, %153 : vector<2x32xf32>
    %155 = arith.truncf %154 : vector<2x32xf32> to vector<2x32xbf16>
    %c12_45 = arith.constant 12 : index
    %c0_46 = arith.constant 0 : index
    %156 = vector.load %arg15[%c12_45, %c0_46] : memref<60x32xbf16, #tpu.memory_space<vmem>>, vector<2x32xbf16>
    tpu.vector_store %arg15[%c12_45, %c0_46], %155 {strides = array<i32>} : memref<60x32xbf16, #tpu.memory_space<vmem>>, vector<2x32xbf16>,
    %c14 = arith.constant 14 : index
    %c0_47 = arith.constant 0 : index
    %157 = vector.load %arg14[%c14, %c0_47] : memref<60x128xf32, #tpu.memory_space<vmem>>, vector<2x128xf32>
    %158 = arith.truncf %154 : vector<2x32xf32> to vector<2x32xbf16>
    %cst_48 = arith.constant dense<0.000000e+00> : vector<2x128xf32>
    %159 = tpu.matmul %158, %7, %cst_48 {dimension_numbers = #tpu.dot_dimension_numbers<[1], [0], [0], [1], [0, 0, 1, 1], [], []>} : vector<2x32xbf16>, vector<32x128xbf16>, vector<2x128xf32> -> vector<2x128xf32>
    %160 = arith.addf %157, %159 : vector<2x128xf32>
    %161 = arith.negf %160 : vector<2x128xf32>
    %162 = math.exp %161 : vector<2x128xf32>
    %cst_49 = arith.constant 1.000000e+00 : f32
    %163 = vector.broadcast %cst_49 : f32 to vector<2x128xf32>
    %164 = arith.addf %163, %162 : vector<2x128xf32>
    %165 = arith.divf %163, %164 : vector<2x128xf32>
    %166 = vector.extract_strided_slice %160 {offsets = [0, 64], sizes = [2, 32], strides = [1, 1]} : vector<2x128xf32> to vector<2x32xf32>
    %167 = math.tanh %166 : vector<2x32xf32>
    %168 = vector.extract_strided_slice %165 {offsets = [0, 32], sizes = [2, 32], strides = [1, 1]} : vector<2x128xf32> to vector<2x32xf32>
    %169 = arith.mulf %168, %151 : vector<2x32xf32>
    %170 = vector.extract_strided_slice %165 {offsets = [0, 0], sizes = [2, 32], strides = [1, 1]} : vector<2x128xf32> to vector<2x32xf32>
    %171 = arith.mulf %170, %167 : vector<2x32xf32>
    %172 = arith.addf %169, %171 : vector<2x32xf32>
    %173 = vector.extract_strided_slice %165 {offsets = [0, 96], sizes = [2, 32], strides = [1, 1]} : vector<2x128xf32> to vector<2x32xf32>
    %174 = math.tanh %172 : vector<2x32xf32>
    %175 = arith.mulf %173, %174 : vector<2x32xf32>
    %176 = arith.truncf %175 : vector<2x32xf32> to vector<2x32xbf16>
    %c14_50 = arith.constant 14 : index
    %c0_51 = arith.constant 0 : index
    %177 = vector.load %arg15[%c14_50, %c0_51] : memref<60x32xbf16, #tpu.memory_space<vmem>>, vector<2x32xbf16>
    tpu.vector_store %arg15[%c14_50, %c0_51], %176 {strides = array<i32>} : memref<60x32xbf16, #tpu.memory_space<vmem>>, vector<2x32xbf16>,
    %c16 = arith.constant 16 : index
    %c0_52 = arith.constant 0 : index
    %178 = vector.load %arg14[%c16, %c0_52] : memref<60x128xf32, #tpu.memory_space<vmem>>, vector<2x128xf32>
    %179 = arith.truncf %175 : vector<2x32xf32> to vector<2x32xbf16>
    %cst_53 = arith.constant dense<0.000000e+00> : vector<2x128xf32>
    %180 = tpu.matmul %179, %7, %cst_53 {dimension_numbers = #tpu.dot_dimension_numbers<[1], [0], [0], [1], [0, 0, 1, 1], [], []>} : vector<2x32xbf16>, vector<32x128xbf16>, vector<2x128xf32> -> vector<2x128xf32>
    %181 = arith.addf %178, %180 : vector<2x128xf32>
    %182 = arith.negf %181 : vector<2x128xf32>
    %183 = math.exp %182 : vector<2x128xf32>
    %cst_54 = arith.constant 1.000000e+00 : f32
    %184 = vector.broadcast %cst_54 : f32 to vector<2x128xf32>
    %185 = arith.addf %184, %183 : vector<2x128xf32>
    %186 = arith.divf %184, %185 : vector<2x128xf32>
    %187 = vector.extract_strided_slice %181 {offsets = [0, 64], sizes = [2, 32], strides = [1, 1]} : vector<2x128xf32> to vector<2x32xf32>
    %188 = math.tanh %187 : vector<2x32xf32>
    %189 = vector.extract_strided_slice %186 {offsets = [0, 32], sizes = [2, 32], strides = [1, 1]} : vector<2x128xf32> to vector<2x32xf32>
    %190 = arith.mulf %189, %172 : vector<2x32xf32>
    %191 = vector.extract_strided_slice %186 {offsets = [0, 0], sizes = [2, 32], strides = [1, 1]} : vector<2x128xf32> to vector<2x32xf32>
    %192 = arith.mulf %191, %188 : vector<2x32xf32>
    %193 = arith.addf %190, %192 : vector<2x32xf32>
    %194 = vector.extract_strided_slice %186 {offsets = [0, 96], sizes = [2, 32], strides = [1, 1]} : vector<2x128xf32> to vector<2x32xf32>
    %195 = math.tanh %193 : vector<2x32xf32>
    %196 = arith.mulf %194, %195 : vector<2x32xf32>
    %197 = arith.truncf %196 : vector<2x32xf32> to vector<2x32xbf16>
    %c16_55 = arith.constant 16 : index
    %c0_56 = arith.constant 0 : index
    %198 = vector.load %arg15[%c16_55, %c0_56] : memref<60x32xbf16, #tpu.memory_space<vmem>>, vector<2x32xbf16>
    tpu.vector_store %arg15[%c16_55, %c0_56], %197 {strides = array<i32>} : memref<60x32xbf16, #tpu.memory_space<vmem>>, vector<2x32xbf16>,
    %c18 = arith.constant 18 : index
    %c0_57 = arith.constant 0 : index
    %199 = vector.load %arg14[%c18, %c0_57] : memref<60x128xf32, #tpu.memory_space<vmem>>, vector<2x128xf32>
    %200 = arith.truncf %196 : vector<2x32xf32> to vector<2x32xbf16>
    %cst_58 = arith.constant dense<0.000000e+00> : vector<2x128xf32>
    %201 = tpu.matmul %200, %7, %cst_58 {dimension_numbers = #tpu.dot_dimension_numbers<[1], [0], [0], [1], [0, 0, 1, 1], [], []>} : vector<2x32xbf16>, vector<32x128xbf16>, vector<2x128xf32> -> vector<2x128xf32>
    %202 = arith.addf %199, %201 : vector<2x128xf32>
    %203 = arith.negf %202 : vector<2x128xf32>
    %204 = math.exp %203 : vector<2x128xf32>
    %cst_59 = arith.constant 1.000000e+00 : f32
    %205 = vector.broadcast %cst_59 : f32 to vector<2x128xf32>
    %206 = arith.addf %205, %204 : vector<2x128xf32>
    %207 = arith.divf %205, %206 : vector<2x128xf32>
    %208 = vector.extract_strided_slice %202 {offsets = [0, 64], sizes = [2, 32], strides = [1, 1]} : vector<2x128xf32> to vector<2x32xf32>
    %209 = math.tanh %208 : vector<2x32xf32>
    %210 = vector.extract_strided_slice %207 {offsets = [0, 32], sizes = [2, 32], strides = [1, 1]} : vector<2x128xf32> to vector<2x32xf32>
    %211 = arith.mulf %210, %193 : vector<2x32xf32>
    %212 = vector.extract_strided_slice %207 {offsets = [0, 0], sizes = [2, 32], strides = [1, 1]} : vector<2x128xf32> to vector<2x32xf32>
    %213 = arith.mulf %212, %209 : vector<2x32xf32>
    %214 = arith.addf %211, %213 : vector<2x32xf32>
    %215 = vector.extract_strided_slice %207 {offsets = [0, 96], sizes = [2, 32], strides = [1, 1]} : vector<2x128xf32> to vector<2x32xf32>
    %216 = math.tanh %214 : vector<2x32xf32>
    %217 = arith.mulf %215, %216 : vector<2x32xf32>
    %218 = arith.truncf %217 : vector<2x32xf32> to vector<2x32xbf16>
    %c18_60 = arith.constant 18 : index
    %c0_61 = arith.constant 0 : index
    %219 = vector.load %arg15[%c18_60, %c0_61] : memref<60x32xbf16, #tpu.memory_space<vmem>>, vector<2x32xbf16>
    tpu.vector_store %arg15[%c18_60, %c0_61], %218 {strides = array<i32>} : memref<60x32xbf16, #tpu.memory_space<vmem>>, vector<2x32xbf16>,
    %c20 = arith.constant 20 : index
    %c0_62 = arith.constant 0 : index
    %220 = vector.load %arg14[%c20, %c0_62] : memref<60x128xf32, #tpu.memory_space<vmem>>, vector<2x128xf32>
    %221 = arith.truncf %217 : vector<2x32xf32> to vector<2x32xbf16>
    %cst_63 = arith.constant dense<0.000000e+00> : vector<2x128xf32>
    %222 = tpu.matmul %221, %7, %cst_63 {dimension_numbers = #tpu.dot_dimension_numbers<[1], [0], [0], [1], [0, 0, 1, 1], [], []>} : vector<2x32xbf16>, vector<32x128xbf16>, vector<2x128xf32> -> vector<2x128xf32>
    %223 = arith.addf %220, %222 : vector<2x128xf32>
    %224 = arith.negf %223 : vector<2x128xf32>
    %225 = math.exp %224 : vector<2x128xf32>
    %cst_64 = arith.constant 1.000000e+00 : f32
    %226 = vector.broadcast %cst_64 : f32 to vector<2x128xf32>
    %227 = arith.addf %226, %225 : vector<2x128xf32>
    %228 = arith.divf %226, %227 : vector<2x128xf32>
    %229 = vector.extract_strided_slice %223 {offsets = [0, 64], sizes = [2, 32], strides = [1, 1]} : vector<2x128xf32> to vector<2x32xf32>
    %230 = math.tanh %229 : vector<2x32xf32>
    %231 = vector.extract_strided_slice %228 {offsets = [0, 32], sizes = [2, 32], strides = [1, 1]} : vector<2x128xf32> to vector<2x32xf32>
    %232 = arith.mulf %231, %214 : vector<2x32xf32>
    %233 = vector.extract_strided_slice %228 {offsets = [0, 0], sizes = [2, 32], strides = [1, 1]} : vector<2x128xf32> to vector<2x32xf32>
    %234 = arith.mulf %233, %230 : vector<2x32xf32>
    %235 = arith.addf %232, %234 : vector<2x32xf32>
    %236 = vector.extract_strided_slice %228 {offsets = [0, 96], sizes = [2, 32], strides = [1, 1]} : vector<2x128xf32> to vector<2x32xf32>
    %237 = math.tanh %235 : vector<2x32xf32>
    %238 = arith.mulf %236, %237 : vector<2x32xf32>
    %239 = arith.truncf %238 : vector<2x32xf32> to vector<2x32xbf16>
    %c20_65 = arith.constant 20 : index
    %c0_66 = arith.constant 0 : index
    %240 = vector.load %arg15[%c20_65, %c0_66] : memref<60x32xbf16, #tpu.memory_space<vmem>>, vector<2x32xbf16>
    tpu.vector_store %arg15[%c20_65, %c0_66], %239 {strides = array<i32>} : memref<60x32xbf16, #tpu.memory_space<vmem>>, vector<2x32xbf16>,
    %c22 = arith.constant 22 : index
    %c0_67 = arith.constant 0 : index
    %241 = vector.load %arg14[%c22, %c0_67] : memref<60x128xf32, #tpu.memory_space<vmem>>, vector<2x128xf32>
    %242 = arith.truncf %238 : vector<2x32xf32> to vector<2x32xbf16>
    %cst_68 = arith.constant dense<0.000000e+00> : vector<2x128xf32>
    %243 = tpu.matmul %242, %7, %cst_68 {dimension_numbers = #tpu.dot_dimension_numbers<[1], [0], [0], [1], [0, 0, 1, 1], [], []>} : vector<2x32xbf16>, vector<32x128xbf16>, vector<2x128xf32> -> vector<2x128xf32>
    %244 = arith.addf %241, %243 : vector<2x128xf32>
    %245 = arith.negf %244 : vector<2x128xf32>
    %246 = math.exp %245 : vector<2x128xf32>
    %cst_69 = arith.constant 1.000000e+00 : f32
    %247 = vector.broadcast %cst_69 : f32 to vector<2x128xf32>
    %248 = arith.addf %247, %246 : vector<2x128xf32>
    %249 = arith.divf %247, %248 : vector<2x128xf32>
    %250 = vector.extract_strided_slice %244 {offsets = [0, 64], sizes = [2, 32], strides = [1, 1]} : vector<2x128xf32> to vector<2x32xf32>
    %251 = math.tanh %250 : vector<2x32xf32>
    %252 = vector.extract_strided_slice %249 {offsets = [0, 32], sizes = [2, 32], strides = [1, 1]} : vector<2x128xf32> to vector<2x32xf32>
    %253 = arith.mulf %252, %235 : vector<2x32xf32>
    %254 = vector.extract_strided_slice %249 {offsets = [0, 0], sizes = [2, 32], strides = [1, 1]} : vector<2x128xf32> to vector<2x32xf32>
    %255 = arith.mulf %254, %251 : vector<2x32xf32>
    %256 = arith.addf %253, %255 : vector<2x32xf32>
    %257 = vector.extract_strided_slice %249 {offsets = [0, 96], sizes = [2, 32], strides = [1, 1]} : vector<2x128xf32> to vector<2x32xf32>
    %258 = math.tanh %256 : vector<2x32xf32>
    %259 = arith.mulf %257, %258 : vector<2x32xf32>
    %260 = arith.truncf %259 : vector<2x32xf32> to vector<2x32xbf16>
    %c22_70 = arith.constant 22 : index
    %c0_71 = arith.constant 0 : index
    %261 = vector.load %arg15[%c22_70, %c0_71] : memref<60x32xbf16, #tpu.memory_space<vmem>>, vector<2x32xbf16>
    tpu.vector_store %arg15[%c22_70, %c0_71], %260 {strides = array<i32>} : memref<60x32xbf16, #tpu.memory_space<vmem>>, vector<2x32xbf16>,
    %c24 = arith.constant 24 : index
    %c0_72 = arith.constant 0 : index
    %262 = vector.load %arg14[%c24, %c0_72] : memref<60x128xf32, #tpu.memory_space<vmem>>, vector<2x128xf32>
    %263 = arith.truncf %259 : vector<2x32xf32> to vector<2x32xbf16>
    %cst_73 = arith.constant dense<0.000000e+00> : vector<2x128xf32>
    %264 = tpu.matmul %263, %7, %cst_73 {dimension_numbers = #tpu.dot_dimension_numbers<[1], [0], [0], [1], [0, 0, 1, 1], [], []>} : vector<2x32xbf16>, vector<32x128xbf16>, vector<2x128xf32> -> vector<2x128xf32>
    %265 = arith.addf %262, %264 : vector<2x128xf32>
    %266 = arith.negf %265 : vector<2x128xf32>
    %267 = math.exp %266 : vector<2x128xf32>
    %cst_74 = arith.constant 1.000000e+00 : f32
    %268 = vector.broadcast %cst_74 : f32 to vector<2x128xf32>
    %269 = arith.addf %268, %267 : vector<2x128xf32>
    %270 = arith.divf %268, %269 : vector<2x128xf32>
    %271 = vector.extract_strided_slice %265 {offsets = [0, 64], sizes = [2, 32], strides = [1, 1]} : vector<2x128xf32> to vector<2x32xf32>
    %272 = math.tanh %271 : vector<2x32xf32>
    %273 = vector.extract_strided_slice %270 {offsets = [0, 32], sizes = [2, 32], strides = [1, 1]} : vector<2x128xf32> to vector<2x32xf32>
    %274 = arith.mulf %273, %256 : vector<2x32xf32>
    %275 = vector.extract_strided_slice %270 {offsets = [0, 0], sizes = [2, 32], strides = [1, 1]} : vector<2x128xf32> to vector<2x32xf32>
    %276 = arith.mulf %275, %272 : vector<2x32xf32>
    %277 = arith.addf %274, %276 : vector<2x32xf32>
    %278 = vector.extract_strided_slice %270 {offsets = [0, 96], sizes = [2, 32], strides = [1, 1]} : vector<2x128xf32> to vector<2x32xf32>
    %279 = math.tanh %277 : vector<2x32xf32>
    %280 = arith.mulf %278, %279 : vector<2x32xf32>
    %281 = arith.truncf %280 : vector<2x32xf32> to vector<2x32xbf16>
    %c24_75 = arith.constant 24 : index
    %c0_76 = arith.constant 0 : index
    %282 = vector.load %arg15[%c24_75, %c0_76] : memref<60x32xbf16, #tpu.memory_space<vmem>>, vector<2x32xbf16>
    tpu.vector_store %arg15[%c24_75, %c0_76], %281 {strides = array<i32>} : memref<60x32xbf16, #tpu.memory_space<vmem>>, vector<2x32xbf16>,
    %c26 = arith.constant 26 : index
    %c0_77 = arith.constant 0 : index
    %283 = vector.load %arg14[%c26, %c0_77] : memref<60x128xf32, #tpu.memory_space<vmem>>, vector<2x128xf32>
    %284 = arith.truncf %280 : vector<2x32xf32> to vector<2x32xbf16>
    %cst_78 = arith.constant dense<0.000000e+00> : vector<2x128xf32>
    %285 = tpu.matmul %284, %7, %cst_78 {dimension_numbers = #tpu.dot_dimension_numbers<[1], [0], [0], [1], [0, 0, 1, 1], [], []>} : vector<2x32xbf16>, vector<32x128xbf16>, vector<2x128xf32> -> vector<2x128xf32>
    %286 = arith.addf %283, %285 : vector<2x128xf32>
    %287 = arith.negf %286 : vector<2x128xf32>
    %288 = math.exp %287 : vector<2x128xf32>
    %cst_79 = arith.constant 1.000000e+00 : f32
    %289 = vector.broadcast %cst_79 : f32 to vector<2x128xf32>
    %290 = arith.addf %289, %288 : vector<2x128xf32>
    %291 = arith.divf %289, %290 : vector<2x128xf32>
    %292 = vector.extract_strided_slice %286 {offsets = [0, 64], sizes = [2, 32], strides = [1, 1]} : vector<2x128xf32> to vector<2x32xf32>
    %293 = math.tanh %292 : vector<2x32xf32>
    %294 = vector.extract_strided_slice %291 {offsets = [0, 32], sizes = [2, 32], strides = [1, 1]} : vector<2x128xf32> to vector<2x32xf32>
    %295 = arith.mulf %294, %277 : vector<2x32xf32>
    %296 = vector.extract_strided_slice %291 {offsets = [0, 0], sizes = [2, 32], strides = [1, 1]} : vector<2x128xf32> to vector<2x32xf32>
    %297 = arith.mulf %296, %293 : vector<2x32xf32>
    %298 = arith.addf %295, %297 : vector<2x32xf32>
    %299 = vector.extract_strided_slice %291 {offsets = [0, 96], sizes = [2, 32], strides = [1, 1]} : vector<2x128xf32> to vector<2x32xf32>
    %300 = math.tanh %298 : vector<2x32xf32>
    %301 = arith.mulf %299, %300 : vector<2x32xf32>
    %302 = arith.truncf %301 : vector<2x32xf32> to vector<2x32xbf16>
    %c26_80 = arith.constant 26 : index
    %c0_81 = arith.constant 0 : index
    %303 = vector.load %arg15[%c26_80, %c0_81] : memref<60x32xbf16, #tpu.memory_space<vmem>>, vector<2x32xbf16>
    tpu.vector_store %arg15[%c26_80, %c0_81], %302 {strides = array<i32>} : memref<60x32xbf16, #tpu.memory_space<vmem>>, vector<2x32xbf16>,
    %c28 = arith.constant 28 : index
    %c0_82 = arith.constant 0 : index
    %304 = vector.load %arg14[%c28, %c0_82] : memref<60x128xf32, #tpu.memory_space<vmem>>, vector<2x128xf32>
    %305 = arith.truncf %301 : vector<2x32xf32> to vector<2x32xbf16>
    %cst_83 = arith.constant dense<0.000000e+00> : vector<2x128xf32>
    %306 = tpu.matmul %305, %7, %cst_83 {dimension_numbers = #tpu.dot_dimension_numbers<[1], [0], [0], [1], [0, 0, 1, 1], [], []>} : vector<2x32xbf16>, vector<32x128xbf16>, vector<2x128xf32> -> vector<2x128xf32>
    %307 = arith.addf %304, %306 : vector<2x128xf32>
    %308 = arith.negf %307 : vector<2x128xf32>
    %309 = math.exp %308 : vector<2x128xf32>
    %cst_84 = arith.constant 1.000000e+00 : f32
    %310 = vector.broadcast %cst_84 : f32 to vector<2x128xf32>
    %311 = arith.addf %310, %309 : vector<2x128xf32>
    %312 = arith.divf %310, %311 : vector<2x128xf32>
    %313 = vector.extract_strided_slice %307 {offsets = [0, 64], sizes = [2, 32], strides = [1, 1]} : vector<2x128xf32> to vector<2x32xf32>
    %314 = math.tanh %313 : vector<2x32xf32>
    %315 = vector.extract_strided_slice %312 {offsets = [0, 32], sizes = [2, 32], strides = [1, 1]} : vector<2x128xf32> to vector<2x32xf32>
    %316 = arith.mulf %315, %298 : vector<2x32xf32>
    %317 = vector.extract_strided_slice %312 {offsets = [0, 0], sizes = [2, 32], strides = [1, 1]} : vector<2x128xf32> to vector<2x32xf32>
    %318 = arith.mulf %317, %314 : vector<2x32xf32>
    %319 = arith.addf %316, %318 : vector<2x32xf32>
    %320 = vector.extract_strided_slice %312 {offsets = [0, 96], sizes = [2, 32], strides = [1, 1]} : vector<2x128xf32> to vector<2x32xf32>
    %321 = math.tanh %319 : vector<2x32xf32>
    %322 = arith.mulf %320, %321 : vector<2x32xf32>
    %323 = arith.truncf %322 : vector<2x32xf32> to vector<2x32xbf16>
    %c28_85 = arith.constant 28 : index
    %c0_86 = arith.constant 0 : index
    %324 = vector.load %arg15[%c28_85, %c0_86] : memref<60x32xbf16, #tpu.memory_space<vmem>>, vector<2x32xbf16>
    tpu.vector_store %arg15[%c28_85, %c0_86], %323 {strides = array<i32>} : memref<60x32xbf16, #tpu.memory_space<vmem>>, vector<2x32xbf16>,
    %c30 = arith.constant 30 : index
    %c0_87 = arith.constant 0 : index
    %325 = vector.load %arg14[%c30, %c0_87] : memref<60x128xf32, #tpu.memory_space<vmem>>, vector<2x128xf32>
    %326 = arith.truncf %322 : vector<2x32xf32> to vector<2x32xbf16>
    %cst_88 = arith.constant dense<0.000000e+00> : vector<2x128xf32>
    %327 = tpu.matmul %326, %7, %cst_88 {dimension_numbers = #tpu.dot_dimension_numbers<[1], [0], [0], [1], [0, 0, 1, 1], [], []>} : vector<2x32xbf16>, vector<32x128xbf16>, vector<2x128xf32> -> vector<2x128xf32>
    %328 = arith.addf %325, %327 : vector<2x128xf32>
    %329 = arith.negf %328 : vector<2x128xf32>
    %330 = math.exp %329 : vector<2x128xf32>
    %cst_89 = arith.constant 1.000000e+00 : f32
    %331 = vector.broadcast %cst_89 : f32 to vector<2x128xf32>
    %332 = arith.addf %331, %330 : vector<2x128xf32>
    %333 = arith.divf %331, %332 : vector<2x128xf32>
    %334 = vector.extract_strided_slice %328 {offsets = [0, 64], sizes = [2, 32], strides = [1, 1]} : vector<2x128xf32> to vector<2x32xf32>
    %335 = math.tanh %334 : vector<2x32xf32>
    %336 = vector.extract_strided_slice %333 {offsets = [0, 32], sizes = [2, 32], strides = [1, 1]} : vector<2x128xf32> to vector<2x32xf32>
    %337 = arith.mulf %336, %319 : vector<2x32xf32>
    %338 = vector.extract_strided_slice %333 {offsets = [0, 0], sizes = [2, 32], strides = [1, 1]} : vector<2x128xf32> to vector<2x32xf32>
    %339 = arith.mulf %338, %335 : vector<2x32xf32>
    %340 = arith.addf %337, %339 : vector<2x32xf32>
    %341 = vector.extract_strided_slice %333 {offsets = [0, 96], sizes = [2, 32], strides = [1, 1]} : vector<2x128xf32> to vector<2x32xf32>
    %342 = math.tanh %340 : vector<2x32xf32>
    %343 = arith.mulf %341, %342 : vector<2x32xf32>
    %344 = arith.truncf %343 : vector<2x32xf32> to vector<2x32xbf16>
    %c30_90 = arith.constant 30 : index
    %c0_91 = arith.constant 0 : index
    %345 = vector.load %arg15[%c30_90, %c0_91] : memref<60x32xbf16, #tpu.memory_space<vmem>>, vector<2x32xbf16>
    tpu.vector_store %arg15[%c30_90, %c0_91], %344 {strides = array<i32>} : memref<60x32xbf16, #tpu.memory_space<vmem>>, vector<2x32xbf16>,
    %c32 = arith.constant 32 : index
    %c0_92 = arith.constant 0 : index
    %346 = vector.load %arg14[%c32, %c0_92] : memref<60x128xf32, #tpu.memory_space<vmem>>, vector<2x128xf32>
    %347 = arith.truncf %343 : vector<2x32xf32> to vector<2x32xbf16>
    %cst_93 = arith.constant dense<0.000000e+00> : vector<2x128xf32>
    %348 = tpu.matmul %347, %7, %cst_93 {dimension_numbers = #tpu.dot_dimension_numbers<[1], [0], [0], [1], [0, 0, 1, 1], [], []>} : vector<2x32xbf16>, vector<32x128xbf16>, vector<2x128xf32> -> vector<2x128xf32>
    %349 = arith.addf %346, %348 : vector<2x128xf32>
    %350 = arith.negf %349 : vector<2x128xf32>
    %351 = math.exp %350 : vector<2x128xf32>
    %cst_94 = arith.constant 1.000000e+00 : f32
    %352 = vector.broadcast %cst_94 : f32 to vector<2x128xf32>
    %353 = arith.addf %352, %351 : vector<2x128xf32>
    %354 = arith.divf %352, %353 : vector<2x128xf32>
    %355 = vector.extract_strided_slice %349 {offsets = [0, 64], sizes = [2, 32], strides = [1, 1]} : vector<2x128xf32> to vector<2x32xf32>
    %356 = math.tanh %355 : vector<2x32xf32>
    %357 = vector.extract_strided_slice %354 {offsets = [0, 32], sizes = [2, 32], strides = [1, 1]} : vector<2x128xf32> to vector<2x32xf32>
    %358 = arith.mulf %357, %340 : vector<2x32xf32>
    %359 = vector.extract_strided_slice %354 {offsets = [0, 0], sizes = [2, 32], strides = [1, 1]} : vector<2x128xf32> to vector<2x32xf32>
    %360 = arith.mulf %359, %356 : vector<2x32xf32>
    %361 = arith.addf %358, %360 : vector<2x32xf32>
    %362 = vector.extract_strided_slice %354 {offsets = [0, 96], sizes = [2, 32], strides = [1, 1]} : vector<2x128xf32> to vector<2x32xf32>
    %363 = math.tanh %361 : vector<2x32xf32>
    %364 = arith.mulf %362, %363 : vector<2x32xf32>
    %365 = arith.truncf %364 : vector<2x32xf32> to vector<2x32xbf16>
    %c32_95 = arith.constant 32 : index
    %c0_96 = arith.constant 0 : index
    %366 = vector.load %arg15[%c32_95, %c0_96] : memref<60x32xbf16, #tpu.memory_space<vmem>>, vector<2x32xbf16>
    tpu.vector_store %arg15[%c32_95, %c0_96], %365 {strides = array<i32>} : memref<60x32xbf16, #tpu.memory_space<vmem>>, vector<2x32xbf16>,
    %c34 = arith.constant 34 : index
    %c0_97 = arith.constant 0 : index
    %367 = vector.load %arg14[%c34, %c0_97] : memref<60x128xf32, #tpu.memory_space<vmem>>, vector<2x128xf32>
    %368 = arith.truncf %364 : vector<2x32xf32> to vector<2x32xbf16>
    %cst_98 = arith.constant dense<0.000000e+00> : vector<2x128xf32>
    %369 = tpu.matmul %368, %7, %cst_98 {dimension_numbers = #tpu.dot_dimension_numbers<[1], [0], [0], [1], [0, 0, 1, 1], [], []>} : vector<2x32xbf16>, vector<32x128xbf16>, vector<2x128xf32> -> vector<2x128xf32>
    %370 = arith.addf %367, %369 : vector<2x128xf32>
    %371 = arith.negf %370 : vector<2x128xf32>
    %372 = math.exp %371 : vector<2x128xf32>
    %cst_99 = arith.constant 1.000000e+00 : f32
    %373 = vector.broadcast %cst_99 : f32 to vector<2x128xf32>
    %374 = arith.addf %373, %372 : vector<2x128xf32>
    %375 = arith.divf %373, %374 : vector<2x128xf32>
    %376 = vector.extract_strided_slice %370 {offsets = [0, 64], sizes = [2, 32], strides = [1, 1]} : vector<2x128xf32> to vector<2x32xf32>
    %377 = math.tanh %376 : vector<2x32xf32>
    %378 = vector.extract_strided_slice %375 {offsets = [0, 32], sizes = [2, 32], strides = [1, 1]} : vector<2x128xf32> to vector<2x32xf32>
    %379 = arith.mulf %378, %361 : vector<2x32xf32>
    %380 = vector.extract_strided_slice %375 {offsets = [0, 0], sizes = [2, 32], strides = [1, 1]} : vector<2x128xf32> to vector<2x32xf32>
    %381 = arith.mulf %380, %377 : vector<2x32xf32>
    %382 = arith.addf %379, %381 : vector<2x32xf32>
    %383 = vector.extract_strided_slice %375 {offsets = [0, 96], sizes = [2, 32], strides = [1, 1]} : vector<2x128xf32> to vector<2x32xf32>
    %384 = math.tanh %382 : vector<2x32xf32>
    %385 = arith.mulf %383, %384 : vector<2x32xf32>
    %386 = arith.truncf %385 : vector<2x32xf32> to vector<2x32xbf16>
    %c34_100 = arith.constant 34 : index
    %c0_101 = arith.constant 0 : index
    %387 = vector.load %arg15[%c34_100, %c0_101] : memref<60x32xbf16, #tpu.memory_space<vmem>>, vector<2x32xbf16>
    tpu.vector_store %arg15[%c34_100, %c0_101], %386 {strides = array<i32>} : memref<60x32xbf16, #tpu.memory_space<vmem>>, vector<2x32xbf16>,
    %c36 = arith.constant 36 : index
    %c0_102 = arith.constant 0 : index
    %388 = vector.load %arg14[%c36, %c0_102] : memref<60x128xf32, #tpu.memory_space<vmem>>, vector<2x128xf32>
    %389 = arith.truncf %385 : vector<2x32xf32> to vector<2x32xbf16>
    %cst_103 = arith.constant dense<0.000000e+00> : vector<2x128xf32>
    %390 = tpu.matmul %389, %7, %cst_103 {dimension_numbers = #tpu.dot_dimension_numbers<[1], [0], [0], [1], [0, 0, 1, 1], [], []>} : vector<2x32xbf16>, vector<32x128xbf16>, vector<2x128xf32> -> vector<2x128xf32>
    %391 = arith.addf %388, %390 : vector<2x128xf32>
    %392 = arith.negf %391 : vector<2x128xf32>
    %393 = math.exp %392 : vector<2x128xf32>
    %cst_104 = arith.constant 1.000000e+00 : f32
    %394 = vector.broadcast %cst_104 : f32 to vector<2x128xf32>
    %395 = arith.addf %394, %393 : vector<2x128xf32>
    %396 = arith.divf %394, %395 : vector<2x128xf32>
    %397 = vector.extract_strided_slice %391 {offsets = [0, 64], sizes = [2, 32], strides = [1, 1]} : vector<2x128xf32> to vector<2x32xf32>
    %398 = math.tanh %397 : vector<2x32xf32>
    %399 = vector.extract_strided_slice %396 {offsets = [0, 32], sizes = [2, 32], strides = [1, 1]} : vector<2x128xf32> to vector<2x32xf32>
    %400 = arith.mulf %399, %382 : vector<2x32xf32>
    %401 = vector.extract_strided_slice %396 {offsets = [0, 0], sizes = [2, 32], strides = [1, 1]} : vector<2x128xf32> to vector<2x32xf32>
    %402 = arith.mulf %401, %398 : vector<2x32xf32>
    %403 = arith.addf %400, %402 : vector<2x32xf32>
    %404 = vector.extract_strided_slice %396 {offsets = [0, 96], sizes = [2, 32], strides = [1, 1]} : vector<2x128xf32> to vector<2x32xf32>
    %405 = math.tanh %403 : vector<2x32xf32>
    %406 = arith.mulf %404, %405 : vector<2x32xf32>
    %407 = arith.truncf %406 : vector<2x32xf32> to vector<2x32xbf16>
    %c36_105 = arith.constant 36 : index
    %c0_106 = arith.constant 0 : index
    %408 = vector.load %arg15[%c36_105, %c0_106] : memref<60x32xbf16, #tpu.memory_space<vmem>>, vector<2x32xbf16>
    tpu.vector_store %arg15[%c36_105, %c0_106], %407 {strides = array<i32>} : memref<60x32xbf16, #tpu.memory_space<vmem>>, vector<2x32xbf16>,
    %c38 = arith.constant 38 : index
    %c0_107 = arith.constant 0 : index
    %409 = vector.load %arg14[%c38, %c0_107] : memref<60x128xf32, #tpu.memory_space<vmem>>, vector<2x128xf32>
    %410 = arith.truncf %406 : vector<2x32xf32> to vector<2x32xbf16>
    %cst_108 = arith.constant dense<0.000000e+00> : vector<2x128xf32>
    %411 = tpu.matmul %410, %7, %cst_108 {dimension_numbers = #tpu.dot_dimension_numbers<[1], [0], [0], [1], [0, 0, 1, 1], [], []>} : vector<2x32xbf16>, vector<32x128xbf16>, vector<2x128xf32> -> vector<2x128xf32>
    %412 = arith.addf %409, %411 : vector<2x128xf32>
    %413 = arith.negf %412 : vector<2x128xf32>
    %414 = math.exp %413 : vector<2x128xf32>
    %cst_109 = arith.constant 1.000000e+00 : f32
    %415 = vector.broadcast %cst_109 : f32 to vector<2x128xf32>
    %416 = arith.addf %415, %414 : vector<2x128xf32>
    %417 = arith.divf %415, %416 : vector<2x128xf32>
    %418 = vector.extract_strided_slice %412 {offsets = [0, 64], sizes = [2, 32], strides = [1, 1]} : vector<2x128xf32> to vector<2x32xf32>
    %419 = math.tanh %418 : vector<2x32xf32>
    %420 = vector.extract_strided_slice %417 {offsets = [0, 32], sizes = [2, 32], strides = [1, 1]} : vector<2x128xf32> to vector<2x32xf32>
    %421 = arith.mulf %420, %403 : vector<2x32xf32>
    %422 = vector.extract_strided_slice %417 {offsets = [0, 0], sizes = [2, 32], strides = [1, 1]} : vector<2x128xf32> to vector<2x32xf32>
    %423 = arith.mulf %422, %419 : vector<2x32xf32>
    %424 = arith.addf %421, %423 : vector<2x32xf32>
    %425 = vector.extract_strided_slice %417 {offsets = [0, 96], sizes = [2, 32], strides = [1, 1]} : vector<2x128xf32> to vector<2x32xf32>
    %426 = math.tanh %424 : vector<2x32xf32>
    %427 = arith.mulf %425, %426 : vector<2x32xf32>
    %428 = arith.truncf %427 : vector<2x32xf32> to vector<2x32xbf16>
    %c38_110 = arith.constant 38 : index
    %c0_111 = arith.constant 0 : index
    %429 = vector.load %arg15[%c38_110, %c0_111] : memref<60x32xbf16, #tpu.memory_space<vmem>>, vector<2x32xbf16>
    tpu.vector_store %arg15[%c38_110, %c0_111], %428 {strides = array<i32>} : memref<60x32xbf16, #tpu.memory_space<vmem>>, vector<2x32xbf16>,
    %c40 = arith.constant 40 : index
    %c0_112 = arith.constant 0 : index
    %430 = vector.load %arg14[%c40, %c0_112] : memref<60x128xf32, #tpu.memory_space<vmem>>, vector<2x128xf32>
    %431 = arith.truncf %427 : vector<2x32xf32> to vector<2x32xbf16>
    %cst_113 = arith.constant dense<0.000000e+00> : vector<2x128xf32>
    %432 = tpu.matmul %431, %7, %cst_113 {dimension_numbers = #tpu.dot_dimension_numbers<[1], [0], [0], [1], [0, 0, 1, 1], [], []>} : vector<2x32xbf16>, vector<32x128xbf16>, vector<2x128xf32> -> vector<2x128xf32>
    %433 = arith.addf %430, %432 : vector<2x128xf32>
    %434 = arith.negf %433 : vector<2x128xf32>
    %435 = math.exp %434 : vector<2x128xf32>
    %cst_114 = arith.constant 1.000000e+00 : f32
    %436 = vector.broadcast %cst_114 : f32 to vector<2x128xf32>
    %437 = arith.addf %436, %435 : vector<2x128xf32>
    %438 = arith.divf %436, %437 : vector<2x128xf32>
    %439 = vector.extract_strided_slice %433 {offsets = [0, 64], sizes = [2, 32], strides = [1, 1]} : vector<2x128xf32> to vector<2x32xf32>
    %440 = math.tanh %439 : vector<2x32xf32>
    %441 = vector.extract_strided_slice %438 {offsets = [0, 32], sizes = [2, 32], strides = [1, 1]} : vector<2x128xf32> to vector<2x32xf32>
    %442 = arith.mulf %441, %424 : vector<2x32xf32>
    %443 = vector.extract_strided_slice %438 {offsets = [0, 0], sizes = [2, 32], strides = [1, 1]} : vector<2x128xf32> to vector<2x32xf32>
    %444 = arith.mulf %443, %440 : vector<2x32xf32>
    %445 = arith.addf %442, %444 : vector<2x32xf32>
    %446 = vector.extract_strided_slice %438 {offsets = [0, 96], sizes = [2, 32], strides = [1, 1]} : vector<2x128xf32> to vector<2x32xf32>
    %447 = math.tanh %445 : vector<2x32xf32>
    %448 = arith.mulf %446, %447 : vector<2x32xf32>
    %449 = arith.truncf %448 : vector<2x32xf32> to vector<2x32xbf16>
    %c40_115 = arith.constant 40 : index
    %c0_116 = arith.constant 0 : index
    %450 = vector.load %arg15[%c40_115, %c0_116] : memref<60x32xbf16, #tpu.memory_space<vmem>>, vector<2x32xbf16>
    tpu.vector_store %arg15[%c40_115, %c0_116], %449 {strides = array<i32>} : memref<60x32xbf16, #tpu.memory_space<vmem>>, vector<2x32xbf16>,
    %c42 = arith.constant 42 : index
    %c0_117 = arith.constant 0 : index
    %451 = vector.load %arg14[%c42, %c0_117] : memref<60x128xf32, #tpu.memory_space<vmem>>, vector<2x128xf32>
    %452 = arith.truncf %448 : vector<2x32xf32> to vector<2x32xbf16>
    %cst_118 = arith.constant dense<0.000000e+00> : vector<2x128xf32>
    %453 = tpu.matmul %452, %7, %cst_118 {dimension_numbers = #tpu.dot_dimension_numbers<[1], [0], [0], [1], [0, 0, 1, 1], [], []>} : vector<2x32xbf16>, vector<32x128xbf16>, vector<2x128xf32> -> vector<2x128xf32>
    %454 = arith.addf %451, %453 : vector<2x128xf32>
    %455 = arith.negf %454 : vector<2x128xf32>
    %456 = math.exp %455 : vector<2x128xf32>
    %cst_119 = arith.constant 1.000000e+00 : f32
    %457 = vector.broadcast %cst_119 : f32 to vector<2x128xf32>
    %458 = arith.addf %457, %456 : vector<2x128xf32>
    %459 = arith.divf %457, %458 : vector<2x128xf32>
    %460 = vector.extract_strided_slice %454 {offsets = [0, 64], sizes = [2, 32], strides = [1, 1]} : vector<2x128xf32> to vector<2x32xf32>
    %461 = math.tanh %460 : vector<2x32xf32>
    %462 = vector.extract_strided_slice %459 {offsets = [0, 32], sizes = [2, 32], strides = [1, 1]} : vector<2x128xf32> to vector<2x32xf32>
    %463 = arith.mulf %462, %445 : vector<2x32xf32>
    %464 = vector.extract_strided_slice %459 {offsets = [0, 0], sizes = [2, 32], strides = [1, 1]} : vector<2x128xf32> to vector<2x32xf32>
    %465 = arith.mulf %464, %461 : vector<2x32xf32>
    %466 = arith.addf %463, %465 : vector<2x32xf32>
    %467 = vector.extract_strided_slice %459 {offsets = [0, 96], sizes = [2, 32], strides = [1, 1]} : vector<2x128xf32> to vector<2x32xf32>
    %468 = math.tanh %466 : vector<2x32xf32>
    %469 = arith.mulf %467, %468 : vector<2x32xf32>
    %470 = arith.truncf %469 : vector<2x32xf32> to vector<2x32xbf16>
    %c42_120 = arith.constant 42 : index
    %c0_121 = arith.constant 0 : index
    %471 = vector.load %arg15[%c42_120, %c0_121] : memref<60x32xbf16, #tpu.memory_space<vmem>>, vector<2x32xbf16>
    tpu.vector_store %arg15[%c42_120, %c0_121], %470 {strides = array<i32>} : memref<60x32xbf16, #tpu.memory_space<vmem>>, vector<2x32xbf16>,
    %c44 = arith.constant 44 : index
    %c0_122 = arith.constant 0 : index
    %472 = vector.load %arg14[%c44, %c0_122] : memref<60x128xf32, #tpu.memory_space<vmem>>, vector<2x128xf32>
    %473 = arith.truncf %469 : vector<2x32xf32> to vector<2x32xbf16>
    %cst_123 = arith.constant dense<0.000000e+00> : vector<2x128xf32>
    %474 = tpu.matmul %473, %7, %cst_123 {dimension_numbers = #tpu.dot_dimension_numbers<[1], [0], [0], [1], [0, 0, 1, 1], [], []>} : vector<2x32xbf16>, vector<32x128xbf16>, vector<2x128xf32> -> vector<2x128xf32>
    %475 = arith.addf %472, %474 : vector<2x128xf32>
    %476 = arith.negf %475 : vector<2x128xf32>
    %477 = math.exp %476 : vector<2x128xf32>
    %cst_124 = arith.constant 1.000000e+00 : f32
    %478 = vector.broadcast %cst_124 : f32 to vector<2x128xf32>
    %479 = arith.addf %478, %477 : vector<2x128xf32>
    %480 = arith.divf %478, %479 : vector<2x128xf32>
    %481 = vector.extract_strided_slice %475 {offsets = [0, 64], sizes = [2, 32], strides = [1, 1]} : vector<2x128xf32> to vector<2x32xf32>
    %482 = math.tanh %481 : vector<2x32xf32>
    %483 = vector.extract_strided_slice %480 {offsets = [0, 32], sizes = [2, 32], strides = [1, 1]} : vector<2x128xf32> to vector<2x32xf32>
    %484 = arith.mulf %483, %466 : vector<2x32xf32>
    %485 = vector.extract_strided_slice %480 {offsets = [0, 0], sizes = [2, 32], strides = [1, 1]} : vector<2x128xf32> to vector<2x32xf32>
    %486 = arith.mulf %485, %482 : vector<2x32xf32>
    %487 = arith.addf %484, %486 : vector<2x32xf32>
    %488 = vector.extract_strided_slice %480 {offsets = [0, 96], sizes = [2, 32], strides = [1, 1]} : vector<2x128xf32> to vector<2x32xf32>
    %489 = math.tanh %487 : vector<2x32xf32>
    %490 = arith.mulf %488, %489 : vector<2x32xf32>
    %491 = arith.truncf %490 : vector<2x32xf32> to vector<2x32xbf16>
    %c44_125 = arith.constant 44 : index
    %c0_126 = arith.constant 0 : index
    %492 = vector.load %arg15[%c44_125, %c0_126] : memref<60x32xbf16, #tpu.memory_space<vmem>>, vector<2x32xbf16>
    tpu.vector_store %arg15[%c44_125, %c0_126], %491 {strides = array<i32>} : memref<60x32xbf16, #tpu.memory_space<vmem>>, vector<2x32xbf16>,
    %c46 = arith.constant 46 : index
    %c0_127 = arith.constant 0 : index
    %493 = vector.load %arg14[%c46, %c0_127] : memref<60x128xf32, #tpu.memory_space<vmem>>, vector<2x128xf32>
    %494 = arith.truncf %490 : vector<2x32xf32> to vector<2x32xbf16>
    %cst_128 = arith.constant dense<0.000000e+00> : vector<2x128xf32>
    %495 = tpu.matmul %494, %7, %cst_128 {dimension_numbers = #tpu.dot_dimension_numbers<[1], [0], [0], [1], [0, 0, 1, 1], [], []>} : vector<2x32xbf16>, vector<32x128xbf16>, vector<2x128xf32> -> vector<2x128xf32>
    %496 = arith.addf %493, %495 : vector<2x128xf32>
    %497 = arith.negf %496 : vector<2x128xf32>
    %498 = math.exp %497 : vector<2x128xf32>
    %cst_129 = arith.constant 1.000000e+00 : f32
    %499 = vector.broadcast %cst_129 : f32 to vector<2x128xf32>
    %500 = arith.addf %499, %498 : vector<2x128xf32>
    %501 = arith.divf %499, %500 : vector<2x128xf32>
    %502 = vector.extract_strided_slice %496 {offsets = [0, 64], sizes = [2, 32], strides = [1, 1]} : vector<2x128xf32> to vector<2x32xf32>
    %503 = math.tanh %502 : vector<2x32xf32>
    %504 = vector.extract_strided_slice %501 {offsets = [0, 32], sizes = [2, 32], strides = [1, 1]} : vector<2x128xf32> to vector<2x32xf32>
    %505 = arith.mulf %504, %487 : vector<2x32xf32>
    %506 = vector.extract_strided_slice %501 {offsets = [0, 0], sizes = [2, 32], strides = [1, 1]} : vector<2x128xf32> to vector<2x32xf32>
    %507 = arith.mulf %506, %503 : vector<2x32xf32>
    %508 = arith.addf %505, %507 : vector<2x32xf32>
    %509 = vector.extract_strided_slice %501 {offsets = [0, 96], sizes = [2, 32], strides = [1, 1]} : vector<2x128xf32> to vector<2x32xf32>
    %510 = math.tanh %508 : vector<2x32xf32>
    %511 = arith.mulf %509, %510 : vector<2x32xf32>
    %512 = arith.truncf %511 : vector<2x32xf32> to vector<2x32xbf16>
    %c46_130 = arith.constant 46 : index
    %c0_131 = arith.constant 0 : index
    %513 = vector.load %arg15[%c46_130, %c0_131] : memref<60x32xbf16, #tpu.memory_space<vmem>>, vector<2x32xbf16>
    tpu.vector_store %arg15[%c46_130, %c0_131], %512 {strides = array<i32>} : memref<60x32xbf16, #tpu.memory_space<vmem>>, vector<2x32xbf16>,
    %c48 = arith.constant 48 : index
    %c0_132 = arith.constant 0 : index
    %514 = vector.load %arg14[%c48, %c0_132] : memref<60x128xf32, #tpu.memory_space<vmem>>, vector<2x128xf32>
    %515 = arith.truncf %511 : vector<2x32xf32> to vector<2x32xbf16>
    %cst_133 = arith.constant dense<0.000000e+00> : vector<2x128xf32>
    %516 = tpu.matmul %515, %7, %cst_133 {dimension_numbers = #tpu.dot_dimension_numbers<[1], [0], [0], [1], [0, 0, 1, 1], [], []>} : vector<2x32xbf16>, vector<32x128xbf16>, vector<2x128xf32> -> vector<2x128xf32>
    %517 = arith.addf %514, %516 : vector<2x128xf32>
    %518 = arith.negf %517 : vector<2x128xf32>
    %519 = math.exp %518 : vector<2x128xf32>
    %cst_134 = arith.constant 1.000000e+00 : f32
    %520 = vector.broadcast %cst_134 : f32 to vector<2x128xf32>
    %521 = arith.addf %520, %519 : vector<2x128xf32>
    %522 = arith.divf %520, %521 : vector<2x128xf32>
    %523 = vector.extract_strided_slice %517 {offsets = [0, 64], sizes = [2, 32], strides = [1, 1]} : vector<2x128xf32> to vector<2x32xf32>
    %524 = math.tanh %523 : vector<2x32xf32>
    %525 = vector.extract_strided_slice %522 {offsets = [0, 32], sizes = [2, 32], strides = [1, 1]} : vector<2x128xf32> to vector<2x32xf32>
    %526 = arith.mulf %525, %508 : vector<2x32xf32>
    %527 = vector.extract_strided_slice %522 {offsets = [0, 0], sizes = [2, 32], strides = [1, 1]} : vector<2x128xf32> to vector<2x32xf32>
    %528 = arith.mulf %527, %524 : vector<2x32xf32>
    %529 = arith.addf %526, %528 : vector<2x32xf32>
    %530 = vector.extract_strided_slice %522 {offsets = [0, 96], sizes = [2, 32], strides = [1, 1]} : vector<2x128xf32> to vector<2x32xf32>
    %531 = math.tanh %529 : vector<2x32xf32>
    %532 = arith.mulf %530, %531 : vector<2x32xf32>
    %533 = arith.truncf %532 : vector<2x32xf32> to vector<2x32xbf16>
    %c48_135 = arith.constant 48 : index
    %c0_136 = arith.constant 0 : index
    %534 = vector.load %arg15[%c48_135, %c0_136] : memref<60x32xbf16, #tpu.memory_space<vmem>>, vector<2x32xbf16>
    tpu.vector_store %arg15[%c48_135, %c0_136], %533 {strides = array<i32>} : memref<60x32xbf16, #tpu.memory_space<vmem>>, vector<2x32xbf16>,
    %c50 = arith.constant 50 : index
    %c0_137 = arith.constant 0 : index
    %535 = vector.load %arg14[%c50, %c0_137] : memref<60x128xf32, #tpu.memory_space<vmem>>, vector<2x128xf32>
    %536 = arith.truncf %532 : vector<2x32xf32> to vector<2x32xbf16>
    %cst_138 = arith.constant dense<0.000000e+00> : vector<2x128xf32>
    %537 = tpu.matmul %536, %7, %cst_138 {dimension_numbers = #tpu.dot_dimension_numbers<[1], [0], [0], [1], [0, 0, 1, 1], [], []>} : vector<2x32xbf16>, vector<32x128xbf16>, vector<2x128xf32> -> vector<2x128xf32>
    %538 = arith.addf %535, %537 : vector<2x128xf32>
    %539 = arith.negf %538 : vector<2x128xf32>
    %540 = math.exp %539 : vector<2x128xf32>
    %cst_139 = arith.constant 1.000000e+00 : f32
    %541 = vector.broadcast %cst_139 : f32 to vector<2x128xf32>
    %542 = arith.addf %541, %540 : vector<2x128xf32>
    %543 = arith.divf %541, %542 : vector<2x128xf32>
    %544 = vector.extract_strided_slice %538 {offsets = [0, 64], sizes = [2, 32], strides = [1, 1]} : vector<2x128xf32> to vector<2x32xf32>
    %545 = math.tanh %544 : vector<2x32xf32>
    %546 = vector.extract_strided_slice %543 {offsets = [0, 32], sizes = [2, 32], strides = [1, 1]} : vector<2x128xf32> to vector<2x32xf32>
    %547 = arith.mulf %546, %529 : vector<2x32xf32>
    %548 = vector.extract_strided_slice %543 {offsets = [0, 0], sizes = [2, 32], strides = [1, 1]} : vector<2x128xf32> to vector<2x32xf32>
    %549 = arith.mulf %548, %545 : vector<2x32xf32>
    %550 = arith.addf %547, %549 : vector<2x32xf32>
    %551 = vector.extract_strided_slice %543 {offsets = [0, 96], sizes = [2, 32], strides = [1, 1]} : vector<2x128xf32> to vector<2x32xf32>
    %552 = math.tanh %550 : vector<2x32xf32>
    %553 = arith.mulf %551, %552 : vector<2x32xf32>
    %554 = arith.truncf %553 : vector<2x32xf32> to vector<2x32xbf16>
    %c50_140 = arith.constant 50 : index
    %c0_141 = arith.constant 0 : index
    %555 = vector.load %arg15[%c50_140, %c0_141] : memref<60x32xbf16, #tpu.memory_space<vmem>>, vector<2x32xbf16>
    tpu.vector_store %arg15[%c50_140, %c0_141], %554 {strides = array<i32>} : memref<60x32xbf16, #tpu.memory_space<vmem>>, vector<2x32xbf16>,
    %c52 = arith.constant 52 : index
    %c0_142 = arith.constant 0 : index
    %556 = vector.load %arg14[%c52, %c0_142] : memref<60x128xf32, #tpu.memory_space<vmem>>, vector<2x128xf32>
    %557 = arith.truncf %553 : vector<2x32xf32> to vector<2x32xbf16>
    %cst_143 = arith.constant dense<0.000000e+00> : vector<2x128xf32>
    %558 = tpu.matmul %557, %7, %cst_143 {dimension_numbers = #tpu.dot_dimension_numbers<[1], [0], [0], [1], [0, 0, 1, 1], [], []>} : vector<2x32xbf16>, vector<32x128xbf16>, vector<2x128xf32> -> vector<2x128xf32>
    %559 = arith.addf %556, %558 : vector<2x128xf32>
    %560 = arith.negf %559 : vector<2x128xf32>
    %561 = math.exp %560 : vector<2x128xf32>
    %cst_144 = arith.constant 1.000000e+00 : f32
    %562 = vector.broadcast %cst_144 : f32 to vector<2x128xf32>
    %563 = arith.addf %562, %561 : vector<2x128xf32>
    %564 = arith.divf %562, %563 : vector<2x128xf32>
    %565 = vector.extract_strided_slice %559 {offsets = [0, 64], sizes = [2, 32], strides = [1, 1]} : vector<2x128xf32> to vector<2x32xf32>
    %566 = math.tanh %565 : vector<2x32xf32>
    %567 = vector.extract_strided_slice %564 {offsets = [0, 32], sizes = [2, 32], strides = [1, 1]} : vector<2x128xf32> to vector<2x32xf32>
    %568 = arith.mulf %567, %550 : vector<2x32xf32>
    %569 = vector.extract_strided_slice %564 {offsets = [0, 0], sizes = [2, 32], strides = [1, 1]} : vector<2x128xf32> to vector<2x32xf32>
    %570 = arith.mulf %569, %566 : vector<2x32xf32>
    %571 = arith.addf %568, %570 : vector<2x32xf32>
    %572 = vector.extract_strided_slice %564 {offsets = [0, 96], sizes = [2, 32], strides = [1, 1]} : vector<2x128xf32> to vector<2x32xf32>
    %573 = math.tanh %571 : vector<2x32xf32>
    %574 = arith.mulf %572, %573 : vector<2x32xf32>
    %575 = arith.truncf %574 : vector<2x32xf32> to vector<2x32xbf16>
    %c52_145 = arith.constant 52 : index
    %c0_146 = arith.constant 0 : index
    %576 = vector.load %arg15[%c52_145, %c0_146] : memref<60x32xbf16, #tpu.memory_space<vmem>>, vector<2x32xbf16>
    tpu.vector_store %arg15[%c52_145, %c0_146], %575 {strides = array<i32>} : memref<60x32xbf16, #tpu.memory_space<vmem>>, vector<2x32xbf16>,
    %c54 = arith.constant 54 : index
    %c0_147 = arith.constant 0 : index
    %577 = vector.load %arg14[%c54, %c0_147] : memref<60x128xf32, #tpu.memory_space<vmem>>, vector<2x128xf32>
    %578 = arith.truncf %574 : vector<2x32xf32> to vector<2x32xbf16>
    %cst_148 = arith.constant dense<0.000000e+00> : vector<2x128xf32>
    %579 = tpu.matmul %578, %7, %cst_148 {dimension_numbers = #tpu.dot_dimension_numbers<[1], [0], [0], [1], [0, 0, 1, 1], [], []>} : vector<2x32xbf16>, vector<32x128xbf16>, vector<2x128xf32> -> vector<2x128xf32>
    %580 = arith.addf %577, %579 : vector<2x128xf32>
    %581 = arith.negf %580 : vector<2x128xf32>
    %582 = math.exp %581 : vector<2x128xf32>
    %cst_149 = arith.constant 1.000000e+00 : f32
    %583 = vector.broadcast %cst_149 : f32 to vector<2x128xf32>
    %584 = arith.addf %583, %582 : vector<2x128xf32>
    %585 = arith.divf %583, %584 : vector<2x128xf32>
    %586 = vector.extract_strided_slice %580 {offsets = [0, 64], sizes = [2, 32], strides = [1, 1]} : vector<2x128xf32> to vector<2x32xf32>
    %587 = math.tanh %586 : vector<2x32xf32>
    %588 = vector.extract_strided_slice %585 {offsets = [0, 32], sizes = [2, 32], strides = [1, 1]} : vector<2x128xf32> to vector<2x32xf32>
    %589 = arith.mulf %588, %571 : vector<2x32xf32>
    %590 = vector.extract_strided_slice %585 {offsets = [0, 0], sizes = [2, 32], strides = [1, 1]} : vector<2x128xf32> to vector<2x32xf32>
    %591 = arith.mulf %590, %587 : vector<2x32xf32>
    %592 = arith.addf %589, %591 : vector<2x32xf32>
    %593 = vector.extract_strided_slice %585 {offsets = [0, 96], sizes = [2, 32], strides = [1, 1]} : vector<2x128xf32> to vector<2x32xf32>
    %594 = math.tanh %592 : vector<2x32xf32>
    %595 = arith.mulf %593, %594 : vector<2x32xf32>
    %596 = arith.truncf %595 : vector<2x32xf32> to vector<2x32xbf16>
    %c54_150 = arith.constant 54 : index
    %c0_151 = arith.constant 0 : index
    %597 = vector.load %arg15[%c54_150, %c0_151] : memref<60x32xbf16, #tpu.memory_space<vmem>>, vector<2x32xbf16>
    tpu.vector_store %arg15[%c54_150, %c0_151], %596 {strides = array<i32>} : memref<60x32xbf16, #tpu.memory_space<vmem>>, vector<2x32xbf16>,
    %c56 = arith.constant 56 : index
    %c0_152 = arith.constant 0 : index
    %598 = vector.load %arg14[%c56, %c0_152] : memref<60x128xf32, #tpu.memory_space<vmem>>, vector<2x128xf32>
    %599 = arith.truncf %595 : vector<2x32xf32> to vector<2x32xbf16>
    %cst_153 = arith.constant dense<0.000000e+00> : vector<2x128xf32>
    %600 = tpu.matmul %599, %7, %cst_153 {dimension_numbers = #tpu.dot_dimension_numbers<[1], [0], [0], [1], [0, 0, 1, 1], [], []>} : vector<2x32xbf16>, vector<32x128xbf16>, vector<2x128xf32> -> vector<2x128xf32>
    %601 = arith.addf %598, %600 : vector<2x128xf32>
    %602 = arith.negf %601 : vector<2x128xf32>
    %603 = math.exp %602 : vector<2x128xf32>
    %cst_154 = arith.constant 1.000000e+00 : f32
    %604 = vector.broadcast %cst_154 : f32 to vector<2x128xf32>
    %605 = arith.addf %604, %603 : vector<2x128xf32>
    %606 = arith.divf %604, %605 : vector<2x128xf32>
    %607 = vector.extract_strided_slice %601 {offsets = [0, 64], sizes = [2, 32], strides = [1, 1]} : vector<2x128xf32> to vector<2x32xf32>
    %608 = math.tanh %607 : vector<2x32xf32>
    %609 = vector.extract_strided_slice %606 {offsets = [0, 32], sizes = [2, 32], strides = [1, 1]} : vector<2x128xf32> to vector<2x32xf32>
    %610 = arith.mulf %609, %592 : vector<2x32xf32>
    %611 = vector.extract_strided_slice %606 {offsets = [0, 0], sizes = [2, 32], strides = [1, 1]} : vector<2x128xf32> to vector<2x32xf32>
    %612 = arith.mulf %611, %608 : vector<2x32xf32>
    %613 = arith.addf %610, %612 : vector<2x32xf32>
    %614 = vector.extract_strided_slice %606 {offsets = [0, 96], sizes = [2, 32], strides = [1, 1]} : vector<2x128xf32> to vector<2x32xf32>
    %615 = math.tanh %613 : vector<2x32xf32>
    %616 = arith.mulf %614, %615 : vector<2x32xf32>
    %617 = arith.truncf %616 : vector<2x32xf32> to vector<2x32xbf16>
    %c56_155 = arith.constant 56 : index
    %c0_156 = arith.constant 0 : index
    %618 = vector.load %arg15[%c56_155, %c0_156] : memref<60x32xbf16, #tpu.memory_space<vmem>>, vector<2x32xbf16>
    tpu.vector_store %arg15[%c56_155, %c0_156], %617 {strides = array<i32>} : memref<60x32xbf16, #tpu.memory_space<vmem>>, vector<2x32xbf16>,
    %c58 = arith.constant 58 : index
    %c0_157 = arith.constant 0 : index
    %619 = vector.load %arg14[%c58, %c0_157] : memref<60x128xf32, #tpu.memory_space<vmem>>, vector<2x128xf32>
    %620 = arith.truncf %616 : vector<2x32xf32> to vector<2x32xbf16>
    %cst_158 = arith.constant dense<0.000000e+00> : vector<2x128xf32>
    %621 = tpu.matmul %620, %7, %cst_158 {dimension_numbers = #tpu.dot_dimension_numbers<[1], [0], [0], [1], [0, 0, 1, 1], [], []>} : vector<2x32xbf16>, vector<32x128xbf16>, vector<2x128xf32> -> vector<2x128xf32>
    %622 = arith.addf %619, %621 : vector<2x128xf32>
    %623 = arith.negf %622 : vector<2x128xf32>
    %624 = math.exp %623 : vector<2x128xf32>
    %cst_159 = arith.constant 1.000000e+00 : f32
    %625 = vector.broadcast %cst_159 : f32 to vector<2x128xf32>
    %626 = arith.addf %625, %624 : vector<2x128xf32>
    %627 = arith.divf %625, %626 : vector<2x128xf32>
    %628 = vector.extract_strided_slice %622 {offsets = [0, 64], sizes = [2, 32], strides = [1, 1]} : vector<2x128xf32> to vector<2x32xf32>
    %629 = math.tanh %628 : vector<2x32xf32>
    %630 = vector.extract_strided_slice %627 {offsets = [0, 32], sizes = [2, 32], strides = [1, 1]} : vector<2x128xf32> to vector<2x32xf32>
    %631 = arith.mulf %630, %613 : vector<2x32xf32>
    %632 = vector.extract_strided_slice %627 {offsets = [0, 0], sizes = [2, 32], strides = [1, 1]} : vector<2x128xf32> to vector<2x32xf32>
    %633 = arith.mulf %632, %629 : vector<2x32xf32>
    %634 = arith.addf %631, %633 : vector<2x32xf32>
    %635 = vector.extract_strided_slice %627 {offsets = [0, 96], sizes = [2, 32], strides = [1, 1]} : vector<2x128xf32> to vector<2x32xf32>
    %636 = math.tanh %634 : vector<2x32xf32>
    %637 = arith.mulf %635, %636 : vector<2x32xf32>
    %638 = arith.truncf %637 : vector<2x32xf32> to vector<2x32xbf16>
    %c58_160 = arith.constant 58 : index
    %c0_161 = arith.constant 0 : index
    %639 = vector.load %arg15[%c58_160, %c0_161] : memref<60x32xbf16, #tpu.memory_space<vmem>>, vector<2x32xbf16>
    tpu.vector_store %arg15[%c58_160, %c0_161], %638 {strides = array<i32>} : memref<60x32xbf16, #tpu.memory_space<vmem>>, vector<2x32xbf16>,
    %c0_162 = arith.constant 0 : index
    %c0_163 = arith.constant 0 : index
    %640 = vector.load %arg4[%c0_162, %c0_163] : memref<32x128xbf16, #tpu.memory_space<vmem>>, vector<32x128xbf16>
    %c0_164 = arith.constant 0 : index
    %c0_165 = arith.constant 0 : index
    %641 = vector.load %arg6[%c0_164, %c0_165] : memref<1x128xf32, #tpu.memory_space<vmem>>, vector<1x128xf32>
    %c0_166 = arith.constant 0 : index
    %c0_167 = arith.constant 0 : index
    %642 = vector.load %arg15[%c0_166, %c0_167] : memref<60x32xbf16, #tpu.memory_space<vmem>>, vector<60x32xbf16>
    %cst_168 = arith.constant dense<0.000000e+00> : vector<60x128xf32>
    %643 = tpu.matmul %642, %640, %cst_168 {dimension_numbers = #tpu.dot_dimension_numbers<[1], [0], [0], [1], [0, 0, 1, 1], [], []>} : vector<60x32xbf16>, vector<32x128xbf16>, vector<60x128xf32> -> vector<60x128xf32>
    %644 = vector.broadcast %641 : vector<1x128xf32> to vector<60x128xf32>
    %645 = arith.addf %643, %644 : vector<60x128xf32>
    %c0_169 = arith.constant 0 : index
    %c0_170 = arith.constant 0 : index
    %646 = vector.load %arg14[%c0_169, %c0_170] : memref<60x128xf32, #tpu.memory_space<vmem>>, vector<60x128xf32>
    tpu.vector_store %arg14[%c0_169, %c0_170], %645 {strides = array<i32>} : memref<60x128xf32, #tpu.memory_space<vmem>>, vector<60x128xf32>,
    %c0_171 = arith.constant 0 : index
    %c0_172 = arith.constant 0 : index
    %647 = vector.load %arg5[%c0_171, %c0_172] : memref<32x128xbf16, #tpu.memory_space<vmem>>, vector<32x128xbf16>
    %cst_173 = arith.constant 0.000000e+00 : f32
    %648 = vector.broadcast %cst_173 : f32 to vector<2x32xf32>
    %cst_174 = arith.constant 0.000000e+00 : f32
    %649 = vector.broadcast %cst_174 : f32 to vector<2x32xf32>
    %c0_175 = arith.constant 0 : index
    %c0_176 = arith.constant 0 : index
    %650 = vector.load %arg14[%c0_175, %c0_176] : memref<60x128xf32, #tpu.memory_space<vmem>>, vector<2x128xf32>
    %651 = arith.truncf %648 : vector<2x32xf32> to vector<2x32xbf16>
    %cst_177 = arith.constant dense<0.000000e+00> : vector<2x128xf32>
    %652 = tpu.matmul %651, %647, %cst_177 {dimension_numbers = #tpu.dot_dimension_numbers<[1], [0], [0], [1], [0, 0, 1, 1], [], []>} : vector<2x32xbf16>, vector<32x128xbf16>, vector<2x128xf32> -> vector<2x128xf32>
    %653 = arith.addf %650, %652 : vector<2x128xf32>
    %654 = arith.negf %653 : vector<2x128xf32>
    %655 = math.exp %654 : vector<2x128xf32>
    %cst_178 = arith.constant 1.000000e+00 : f32
    %656 = vector.broadcast %cst_178 : f32 to vector<2x128xf32>
    %657 = arith.addf %656, %655 : vector<2x128xf32>
    %658 = arith.divf %656, %657 : vector<2x128xf32>
    %659 = vector.extract_strided_slice %653 {offsets = [0, 64], sizes = [2, 32], strides = [1, 1]} : vector<2x128xf32> to vector<2x32xf32>
    %660 = math.tanh %659 : vector<2x32xf32>
    %661 = vector.extract_strided_slice %658 {offsets = [0, 32], sizes = [2, 32], strides = [1, 1]} : vector<2x128xf32> to vector<2x32xf32>
    %662 = arith.mulf %661, %649 : vector<2x32xf32>
    %663 = vector.extract_strided_slice %658 {offsets = [0, 0], sizes = [2, 32], strides = [1, 1]} : vector<2x128xf32> to vector<2x32xf32>
    %664 = arith.mulf %663, %660 : vector<2x32xf32>
    %665 = arith.addf %662, %664 : vector<2x32xf32>
    %666 = vector.extract_strided_slice %658 {offsets = [0, 96], sizes = [2, 32], strides = [1, 1]} : vector<2x128xf32> to vector<2x32xf32>
    %667 = math.tanh %665 : vector<2x32xf32>
    %668 = arith.mulf %666, %667 : vector<2x32xf32>
    %c2_179 = arith.constant 2 : index
    %c0_180 = arith.constant 0 : index
    %669 = vector.load %arg14[%c2_179, %c0_180] : memref<60x128xf32, #tpu.memory_space<vmem>>, vector<2x128xf32>
    %670 = arith.truncf %668 : vector<2x32xf32> to vector<2x32xbf16>
    %cst_181 = arith.constant dense<0.000000e+00> : vector<2x128xf32>
    %671 = tpu.matmul %670, %647, %cst_181 {dimension_numbers = #tpu.dot_dimension_numbers<[1], [0], [0], [1], [0, 0, 1, 1], [], []>} : vector<2x32xbf16>, vector<32x128xbf16>, vector<2x128xf32> -> vector<2x128xf32>
    %672 = arith.addf %669, %671 : vector<2x128xf32>
    %673 = arith.negf %672 : vector<2x128xf32>
    %674 = math.exp %673 : vector<2x128xf32>
    %cst_182 = arith.constant 1.000000e+00 : f32
    %675 = vector.broadcast %cst_182 : f32 to vector<2x128xf32>
    %676 = arith.addf %675, %674 : vector<2x128xf32>
    %677 = arith.divf %675, %676 : vector<2x128xf32>
    %678 = vector.extract_strided_slice %672 {offsets = [0, 64], sizes = [2, 32], strides = [1, 1]} : vector<2x128xf32> to vector<2x32xf32>
    %679 = math.tanh %678 : vector<2x32xf32>
    %680 = vector.extract_strided_slice %677 {offsets = [0, 32], sizes = [2, 32], strides = [1, 1]} : vector<2x128xf32> to vector<2x32xf32>
    %681 = arith.mulf %680, %665 : vector<2x32xf32>
    %682 = vector.extract_strided_slice %677 {offsets = [0, 0], sizes = [2, 32], strides = [1, 1]} : vector<2x128xf32> to vector<2x32xf32>
    %683 = arith.mulf %682, %679 : vector<2x32xf32>
    %684 = arith.addf %681, %683 : vector<2x32xf32>
    %685 = vector.extract_strided_slice %677 {offsets = [0, 96], sizes = [2, 32], strides = [1, 1]} : vector<2x128xf32> to vector<2x32xf32>
    %686 = math.tanh %684 : vector<2x32xf32>
    %687 = arith.mulf %685, %686 : vector<2x32xf32>
    %c4_183 = arith.constant 4 : index
    %c0_184 = arith.constant 0 : index
    %688 = vector.load %arg14[%c4_183, %c0_184] : memref<60x128xf32, #tpu.memory_space<vmem>>, vector<2x128xf32>
    %689 = arith.truncf %687 : vector<2x32xf32> to vector<2x32xbf16>
    %cst_185 = arith.constant dense<0.000000e+00> : vector<2x128xf32>
    %690 = tpu.matmul %689, %647, %cst_185 {dimension_numbers = #tpu.dot_dimension_numbers<[1], [0], [0], [1], [0, 0, 1, 1], [], []>} : vector<2x32xbf16>, vector<32x128xbf16>, vector<2x128xf32> -> vector<2x128xf32>
    %691 = arith.addf %688, %690 : vector<2x128xf32>
    %692 = arith.negf %691 : vector<2x128xf32>
    %693 = math.exp %692 : vector<2x128xf32>
    %cst_186 = arith.constant 1.000000e+00 : f32
    %694 = vector.broadcast %cst_186 : f32 to vector<2x128xf32>
    %695 = arith.addf %694, %693 : vector<2x128xf32>
    %696 = arith.divf %694, %695 : vector<2x128xf32>
    %697 = vector.extract_strided_slice %691 {offsets = [0, 64], sizes = [2, 32], strides = [1, 1]} : vector<2x128xf32> to vector<2x32xf32>
    %698 = math.tanh %697 : vector<2x32xf32>
    %699 = vector.extract_strided_slice %696 {offsets = [0, 32], sizes = [2, 32], strides = [1, 1]} : vector<2x128xf32> to vector<2x32xf32>
    %700 = arith.mulf %699, %684 : vector<2x32xf32>
    %701 = vector.extract_strided_slice %696 {offsets = [0, 0], sizes = [2, 32], strides = [1, 1]} : vector<2x128xf32> to vector<2x32xf32>
    %702 = arith.mulf %701, %698 : vector<2x32xf32>
    %703 = arith.addf %700, %702 : vector<2x32xf32>
    %704 = vector.extract_strided_slice %696 {offsets = [0, 96], sizes = [2, 32], strides = [1, 1]} : vector<2x128xf32> to vector<2x32xf32>
    %705 = math.tanh %703 : vector<2x32xf32>
    %706 = arith.mulf %704, %705 : vector<2x32xf32>
    %c6_187 = arith.constant 6 : index
    %c0_188 = arith.constant 0 : index
    %707 = vector.load %arg14[%c6_187, %c0_188] : memref<60x128xf32, #tpu.memory_space<vmem>>, vector<2x128xf32>
    %708 = arith.truncf %706 : vector<2x32xf32> to vector<2x32xbf16>
    %cst_189 = arith.constant dense<0.000000e+00> : vector<2x128xf32>
    %709 = tpu.matmul %708, %647, %cst_189 {dimension_numbers = #tpu.dot_dimension_numbers<[1], [0], [0], [1], [0, 0, 1, 1], [], []>} : vector<2x32xbf16>, vector<32x128xbf16>, vector<2x128xf32> -> vector<2x128xf32>
    %710 = arith.addf %707, %709 : vector<2x128xf32>
    %711 = arith.negf %710 : vector<2x128xf32>
    %712 = math.exp %711 : vector<2x128xf32>
    %cst_190 = arith.constant 1.000000e+00 : f32
    %713 = vector.broadcast %cst_190 : f32 to vector<2x128xf32>
    %714 = arith.addf %713, %712 : vector<2x128xf32>
    %715 = arith.divf %713, %714 : vector<2x128xf32>
    %716 = vector.extract_strided_slice %710 {offsets = [0, 64], sizes = [2, 32], strides = [1, 1]} : vector<2x128xf32> to vector<2x32xf32>
    %717 = math.tanh %716 : vector<2x32xf32>
    %718 = vector.extract_strided_slice %715 {offsets = [0, 32], sizes = [2, 32], strides = [1, 1]} : vector<2x128xf32> to vector<2x32xf32>
    %719 = arith.mulf %718, %703 : vector<2x32xf32>
    %720 = vector.extract_strided_slice %715 {offsets = [0, 0], sizes = [2, 32], strides = [1, 1]} : vector<2x128xf32> to vector<2x32xf32>
    %721 = arith.mulf %720, %717 : vector<2x32xf32>
    %722 = arith.addf %719, %721 : vector<2x32xf32>
    %723 = vector.extract_strided_slice %715 {offsets = [0, 96], sizes = [2, 32], strides = [1, 1]} : vector<2x128xf32> to vector<2x32xf32>
    %724 = math.tanh %722 : vector<2x32xf32>
    %725 = arith.mulf %723, %724 : vector<2x32xf32>
    %c8_191 = arith.constant 8 : index
    %c0_192 = arith.constant 0 : index
    %726 = vector.load %arg14[%c8_191, %c0_192] : memref<60x128xf32, #tpu.memory_space<vmem>>, vector<2x128xf32>
    %727 = arith.truncf %725 : vector<2x32xf32> to vector<2x32xbf16>
    %cst_193 = arith.constant dense<0.000000e+00> : vector<2x128xf32>
    %728 = tpu.matmul %727, %647, %cst_193 {dimension_numbers = #tpu.dot_dimension_numbers<[1], [0], [0], [1], [0, 0, 1, 1], [], []>} : vector<2x32xbf16>, vector<32x128xbf16>, vector<2x128xf32> -> vector<2x128xf32>
    %729 = arith.addf %726, %728 : vector<2x128xf32>
    %730 = arith.negf %729 : vector<2x128xf32>
    %731 = math.exp %730 : vector<2x128xf32>
    %cst_194 = arith.constant 1.000000e+00 : f32
    %732 = vector.broadcast %cst_194 : f32 to vector<2x128xf32>
    %733 = arith.addf %732, %731 : vector<2x128xf32>
    %734 = arith.divf %732, %733 : vector<2x128xf32>
    %735 = vector.extract_strided_slice %729 {offsets = [0, 64], sizes = [2, 32], strides = [1, 1]} : vector<2x128xf32> to vector<2x32xf32>
    %736 = math.tanh %735 : vector<2x32xf32>
    %737 = vector.extract_strided_slice %734 {offsets = [0, 32], sizes = [2, 32], strides = [1, 1]} : vector<2x128xf32> to vector<2x32xf32>
    %738 = arith.mulf %737, %722 : vector<2x32xf32>
    %739 = vector.extract_strided_slice %734 {offsets = [0, 0], sizes = [2, 32], strides = [1, 1]} : vector<2x128xf32> to vector<2x32xf32>
    %740 = arith.mulf %739, %736 : vector<2x32xf32>
    %741 = arith.addf %738, %740 : vector<2x32xf32>
    %742 = vector.extract_strided_slice %734 {offsets = [0, 96], sizes = [2, 32], strides = [1, 1]} : vector<2x128xf32> to vector<2x32xf32>
    %743 = math.tanh %741 : vector<2x32xf32>
    %744 = arith.mulf %742, %743 : vector<2x32xf32>
    %c10_195 = arith.constant 10 : index
    %c0_196 = arith.constant 0 : index
    %745 = vector.load %arg14[%c10_195, %c0_196] : memref<60x128xf32, #tpu.memory_space<vmem>>, vector<2x128xf32>
    %746 = arith.truncf %744 : vector<2x32xf32> to vector<2x32xbf16>
    %cst_197 = arith.constant dense<0.000000e+00> : vector<2x128xf32>
    %747 = tpu.matmul %746, %647, %cst_197 {dimension_numbers = #tpu.dot_dimension_numbers<[1], [0], [0], [1], [0, 0, 1, 1], [], []>} : vector<2x32xbf16>, vector<32x128xbf16>, vector<2x128xf32> -> vector<2x128xf32>
    %748 = arith.addf %745, %747 : vector<2x128xf32>
    %749 = arith.negf %748 : vector<2x128xf32>
    %750 = math.exp %749 : vector<2x128xf32>
    %cst_198 = arith.constant 1.000000e+00 : f32
    %751 = vector.broadcast %cst_198 : f32 to vector<2x128xf32>
    %752 = arith.addf %751, %750 : vector<2x128xf32>
    %753 = arith.divf %751, %752 : vector<2x128xf32>
    %754 = vector.extract_strided_slice %748 {offsets = [0, 64], sizes = [2, 32], strides = [1, 1]} : vector<2x128xf32> to vector<2x32xf32>
    %755 = math.tanh %754 : vector<2x32xf32>
    %756 = vector.extract_strided_slice %753 {offsets = [0, 32], sizes = [2, 32], strides = [1, 1]} : vector<2x128xf32> to vector<2x32xf32>
    %757 = arith.mulf %756, %741 : vector<2x32xf32>
    %758 = vector.extract_strided_slice %753 {offsets = [0, 0], sizes = [2, 32], strides = [1, 1]} : vector<2x128xf32> to vector<2x32xf32>
    %759 = arith.mulf %758, %755 : vector<2x32xf32>
    %760 = arith.addf %757, %759 : vector<2x32xf32>
    %761 = vector.extract_strided_slice %753 {offsets = [0, 96], sizes = [2, 32], strides = [1, 1]} : vector<2x128xf32> to vector<2x32xf32>
    %762 = math.tanh %760 : vector<2x32xf32>
    %763 = arith.mulf %761, %762 : vector<2x32xf32>
    %c12_199 = arith.constant 12 : index
    %c0_200 = arith.constant 0 : index
    %764 = vector.load %arg14[%c12_199, %c0_200] : memref<60x128xf32, #tpu.memory_space<vmem>>, vector<2x128xf32>
    %765 = arith.truncf %763 : vector<2x32xf32> to vector<2x32xbf16>
    %cst_201 = arith.constant dense<0.000000e+00> : vector<2x128xf32>
    %766 = tpu.matmul %765, %647, %cst_201 {dimension_numbers = #tpu.dot_dimension_numbers<[1], [0], [0], [1], [0, 0, 1, 1], [], []>} : vector<2x32xbf16>, vector<32x128xbf16>, vector<2x128xf32> -> vector<2x128xf32>
    %767 = arith.addf %764, %766 : vector<2x128xf32>
    %768 = arith.negf %767 : vector<2x128xf32>
    %769 = math.exp %768 : vector<2x128xf32>
    %cst_202 = arith.constant 1.000000e+00 : f32
    %770 = vector.broadcast %cst_202 : f32 to vector<2x128xf32>
    %771 = arith.addf %770, %769 : vector<2x128xf32>
    %772 = arith.divf %770, %771 : vector<2x128xf32>
    %773 = vector.extract_strided_slice %767 {offsets = [0, 64], sizes = [2, 32], strides = [1, 1]} : vector<2x128xf32> to vector<2x32xf32>
    %774 = math.tanh %773 : vector<2x32xf32>
    %775 = vector.extract_strided_slice %772 {offsets = [0, 32], sizes = [2, 32], strides = [1, 1]} : vector<2x128xf32> to vector<2x32xf32>
    %776 = arith.mulf %775, %760 : vector<2x32xf32>
    %777 = vector.extract_strided_slice %772 {offsets = [0, 0], sizes = [2, 32], strides = [1, 1]} : vector<2x128xf32> to vector<2x32xf32>
    %778 = arith.mulf %777, %774 : vector<2x32xf32>
    %779 = arith.addf %776, %778 : vector<2x32xf32>
    %780 = vector.extract_strided_slice %772 {offsets = [0, 96], sizes = [2, 32], strides = [1, 1]} : vector<2x128xf32> to vector<2x32xf32>
    %781 = math.tanh %779 : vector<2x32xf32>
    %782 = arith.mulf %780, %781 : vector<2x32xf32>
    %c14_203 = arith.constant 14 : index
    %c0_204 = arith.constant 0 : index
    %783 = vector.load %arg14[%c14_203, %c0_204] : memref<60x128xf32, #tpu.memory_space<vmem>>, vector<2x128xf32>
    %784 = arith.truncf %782 : vector<2x32xf32> to vector<2x32xbf16>
    %cst_205 = arith.constant dense<0.000000e+00> : vector<2x128xf32>
    %785 = tpu.matmul %784, %647, %cst_205 {dimension_numbers = #tpu.dot_dimension_numbers<[1], [0], [0], [1], [0, 0, 1, 1], [], []>} : vector<2x32xbf16>, vector<32x128xbf16>, vector<2x128xf32> -> vector<2x128xf32>
    %786 = arith.addf %783, %785 : vector<2x128xf32>
    %787 = arith.negf %786 : vector<2x128xf32>
    %788 = math.exp %787 : vector<2x128xf32>
    %cst_206 = arith.constant 1.000000e+00 : f32
    %789 = vector.broadcast %cst_206 : f32 to vector<2x128xf32>
    %790 = arith.addf %789, %788 : vector<2x128xf32>
    %791 = arith.divf %789, %790 : vector<2x128xf32>
    %792 = vector.extract_strided_slice %786 {offsets = [0, 64], sizes = [2, 32], strides = [1, 1]} : vector<2x128xf32> to vector<2x32xf32>
    %793 = math.tanh %792 : vector<2x32xf32>
    %794 = vector.extract_strided_slice %791 {offsets = [0, 32], sizes = [2, 32], strides = [1, 1]} : vector<2x128xf32> to vector<2x32xf32>
    %795 = arith.mulf %794, %779 : vector<2x32xf32>
    %796 = vector.extract_strided_slice %791 {offsets = [0, 0], sizes = [2, 32], strides = [1, 1]} : vector<2x128xf32> to vector<2x32xf32>
    %797 = arith.mulf %796, %793 : vector<2x32xf32>
    %798 = arith.addf %795, %797 : vector<2x32xf32>
    %799 = vector.extract_strided_slice %791 {offsets = [0, 96], sizes = [2, 32], strides = [1, 1]} : vector<2x128xf32> to vector<2x32xf32>
    %800 = math.tanh %798 : vector<2x32xf32>
    %801 = arith.mulf %799, %800 : vector<2x32xf32>
    %c16_207 = arith.constant 16 : index
    %c0_208 = arith.constant 0 : index
    %802 = vector.load %arg14[%c16_207, %c0_208] : memref<60x128xf32, #tpu.memory_space<vmem>>, vector<2x128xf32>
    %803 = arith.truncf %801 : vector<2x32xf32> to vector<2x32xbf16>
    %cst_209 = arith.constant dense<0.000000e+00> : vector<2x128xf32>
    %804 = tpu.matmul %803, %647, %cst_209 {dimension_numbers = #tpu.dot_dimension_numbers<[1], [0], [0], [1], [0, 0, 1, 1], [], []>} : vector<2x32xbf16>, vector<32x128xbf16>, vector<2x128xf32> -> vector<2x128xf32>
    %805 = arith.addf %802, %804 : vector<2x128xf32>
    %806 = arith.negf %805 : vector<2x128xf32>
    %807 = math.exp %806 : vector<2x128xf32>
    %cst_210 = arith.constant 1.000000e+00 : f32
    %808 = vector.broadcast %cst_210 : f32 to vector<2x128xf32>
    %809 = arith.addf %808, %807 : vector<2x128xf32>
    %810 = arith.divf %808, %809 : vector<2x128xf32>
    %811 = vector.extract_strided_slice %805 {offsets = [0, 64], sizes = [2, 32], strides = [1, 1]} : vector<2x128xf32> to vector<2x32xf32>
    %812 = math.tanh %811 : vector<2x32xf32>
    %813 = vector.extract_strided_slice %810 {offsets = [0, 32], sizes = [2, 32], strides = [1, 1]} : vector<2x128xf32> to vector<2x32xf32>
    %814 = arith.mulf %813, %798 : vector<2x32xf32>
    %815 = vector.extract_strided_slice %810 {offsets = [0, 0], sizes = [2, 32], strides = [1, 1]} : vector<2x128xf32> to vector<2x32xf32>
    %816 = arith.mulf %815, %812 : vector<2x32xf32>
    %817 = arith.addf %814, %816 : vector<2x32xf32>
    %818 = vector.extract_strided_slice %810 {offsets = [0, 96], sizes = [2, 32], strides = [1, 1]} : vector<2x128xf32> to vector<2x32xf32>
    %819 = math.tanh %817 : vector<2x32xf32>
    %820 = arith.mulf %818, %819 : vector<2x32xf32>
    %c18_211 = arith.constant 18 : index
    %c0_212 = arith.constant 0 : index
    %821 = vector.load %arg14[%c18_211, %c0_212] : memref<60x128xf32, #tpu.memory_space<vmem>>, vector<2x128xf32>
    %822 = arith.truncf %820 : vector<2x32xf32> to vector<2x32xbf16>
    %cst_213 = arith.constant dense<0.000000e+00> : vector<2x128xf32>
    %823 = tpu.matmul %822, %647, %cst_213 {dimension_numbers = #tpu.dot_dimension_numbers<[1], [0], [0], [1], [0, 0, 1, 1], [], []>} : vector<2x32xbf16>, vector<32x128xbf16>, vector<2x128xf32> -> vector<2x128xf32>
    %824 = arith.addf %821, %823 : vector<2x128xf32>
    %825 = arith.negf %824 : vector<2x128xf32>
    %826 = math.exp %825 : vector<2x128xf32>
    %cst_214 = arith.constant 1.000000e+00 : f32
    %827 = vector.broadcast %cst_214 : f32 to vector<2x128xf32>
    %828 = arith.addf %827, %826 : vector<2x128xf32>
    %829 = arith.divf %827, %828 : vector<2x128xf32>
    %830 = vector.extract_strided_slice %824 {offsets = [0, 64], sizes = [2, 32], strides = [1, 1]} : vector<2x128xf32> to vector<2x32xf32>
    %831 = math.tanh %830 : vector<2x32xf32>
    %832 = vector.extract_strided_slice %829 {offsets = [0, 32], sizes = [2, 32], strides = [1, 1]} : vector<2x128xf32> to vector<2x32xf32>
    %833 = arith.mulf %832, %817 : vector<2x32xf32>
    %834 = vector.extract_strided_slice %829 {offsets = [0, 0], sizes = [2, 32], strides = [1, 1]} : vector<2x128xf32> to vector<2x32xf32>
    %835 = arith.mulf %834, %831 : vector<2x32xf32>
    %836 = arith.addf %833, %835 : vector<2x32xf32>
    %837 = vector.extract_strided_slice %829 {offsets = [0, 96], sizes = [2, 32], strides = [1, 1]} : vector<2x128xf32> to vector<2x32xf32>
    %838 = math.tanh %836 : vector<2x32xf32>
    %839 = arith.mulf %837, %838 : vector<2x32xf32>
    %c20_215 = arith.constant 20 : index
    %c0_216 = arith.constant 0 : index
    %840 = vector.load %arg14[%c20_215, %c0_216] : memref<60x128xf32, #tpu.memory_space<vmem>>, vector<2x128xf32>
    %841 = arith.truncf %839 : vector<2x32xf32> to vector<2x32xbf16>
    %cst_217 = arith.constant dense<0.000000e+00> : vector<2x128xf32>
    %842 = tpu.matmul %841, %647, %cst_217 {dimension_numbers = #tpu.dot_dimension_numbers<[1], [0], [0], [1], [0, 0, 1, 1], [], []>} : vector<2x32xbf16>, vector<32x128xbf16>, vector<2x128xf32> -> vector<2x128xf32>
    %843 = arith.addf %840, %842 : vector<2x128xf32>
    %844 = arith.negf %843 : vector<2x128xf32>
    %845 = math.exp %844 : vector<2x128xf32>
    %cst_218 = arith.constant 1.000000e+00 : f32
    %846 = vector.broadcast %cst_218 : f32 to vector<2x128xf32>
    %847 = arith.addf %846, %845 : vector<2x128xf32>
    %848 = arith.divf %846, %847 : vector<2x128xf32>
    %849 = vector.extract_strided_slice %843 {offsets = [0, 64], sizes = [2, 32], strides = [1, 1]} : vector<2x128xf32> to vector<2x32xf32>
    %850 = math.tanh %849 : vector<2x32xf32>
    %851 = vector.extract_strided_slice %848 {offsets = [0, 32], sizes = [2, 32], strides = [1, 1]} : vector<2x128xf32> to vector<2x32xf32>
    %852 = arith.mulf %851, %836 : vector<2x32xf32>
    %853 = vector.extract_strided_slice %848 {offsets = [0, 0], sizes = [2, 32], strides = [1, 1]} : vector<2x128xf32> to vector<2x32xf32>
    %854 = arith.mulf %853, %850 : vector<2x32xf32>
    %855 = arith.addf %852, %854 : vector<2x32xf32>
    %856 = vector.extract_strided_slice %848 {offsets = [0, 96], sizes = [2, 32], strides = [1, 1]} : vector<2x128xf32> to vector<2x32xf32>
    %857 = math.tanh %855 : vector<2x32xf32>
    %858 = arith.mulf %856, %857 : vector<2x32xf32>
    %c22_219 = arith.constant 22 : index
    %c0_220 = arith.constant 0 : index
    %859 = vector.load %arg14[%c22_219, %c0_220] : memref<60x128xf32, #tpu.memory_space<vmem>>, vector<2x128xf32>
    %860 = arith.truncf %858 : vector<2x32xf32> to vector<2x32xbf16>
    %cst_221 = arith.constant dense<0.000000e+00> : vector<2x128xf32>
    %861 = tpu.matmul %860, %647, %cst_221 {dimension_numbers = #tpu.dot_dimension_numbers<[1], [0], [0], [1], [0, 0, 1, 1], [], []>} : vector<2x32xbf16>, vector<32x128xbf16>, vector<2x128xf32> -> vector<2x128xf32>
    %862 = arith.addf %859, %861 : vector<2x128xf32>
    %863 = arith.negf %862 : vector<2x128xf32>
    %864 = math.exp %863 : vector<2x128xf32>
    %cst_222 = arith.constant 1.000000e+00 : f32
    %865 = vector.broadcast %cst_222 : f32 to vector<2x128xf32>
    %866 = arith.addf %865, %864 : vector<2x128xf32>
    %867 = arith.divf %865, %866 : vector<2x128xf32>
    %868 = vector.extract_strided_slice %862 {offsets = [0, 64], sizes = [2, 32], strides = [1, 1]} : vector<2x128xf32> to vector<2x32xf32>
    %869 = math.tanh %868 : vector<2x32xf32>
    %870 = vector.extract_strided_slice %867 {offsets = [0, 32], sizes = [2, 32], strides = [1, 1]} : vector<2x128xf32> to vector<2x32xf32>
    %871 = arith.mulf %870, %855 : vector<2x32xf32>
    %872 = vector.extract_strided_slice %867 {offsets = [0, 0], sizes = [2, 32], strides = [1, 1]} : vector<2x128xf32> to vector<2x32xf32>
    %873 = arith.mulf %872, %869 : vector<2x32xf32>
    %874 = arith.addf %871, %873 : vector<2x32xf32>
    %875 = vector.extract_strided_slice %867 {offsets = [0, 96], sizes = [2, 32], strides = [1, 1]} : vector<2x128xf32> to vector<2x32xf32>
    %876 = math.tanh %874 : vector<2x32xf32>
    %877 = arith.mulf %875, %876 : vector<2x32xf32>
    %c24_223 = arith.constant 24 : index
    %c0_224 = arith.constant 0 : index
    %878 = vector.load %arg14[%c24_223, %c0_224] : memref<60x128xf32, #tpu.memory_space<vmem>>, vector<2x128xf32>
    %879 = arith.truncf %877 : vector<2x32xf32> to vector<2x32xbf16>
    %cst_225 = arith.constant dense<0.000000e+00> : vector<2x128xf32>
    %880 = tpu.matmul %879, %647, %cst_225 {dimension_numbers = #tpu.dot_dimension_numbers<[1], [0], [0], [1], [0, 0, 1, 1], [], []>} : vector<2x32xbf16>, vector<32x128xbf16>, vector<2x128xf32> -> vector<2x128xf32>
    %881 = arith.addf %878, %880 : vector<2x128xf32>
    %882 = arith.negf %881 : vector<2x128xf32>
    %883 = math.exp %882 : vector<2x128xf32>
    %cst_226 = arith.constant 1.000000e+00 : f32
    %884 = vector.broadcast %cst_226 : f32 to vector<2x128xf32>
    %885 = arith.addf %884, %883 : vector<2x128xf32>
    %886 = arith.divf %884, %885 : vector<2x128xf32>
    %887 = vector.extract_strided_slice %881 {offsets = [0, 64], sizes = [2, 32], strides = [1, 1]} : vector<2x128xf32> to vector<2x32xf32>
    %888 = math.tanh %887 : vector<2x32xf32>
    %889 = vector.extract_strided_slice %886 {offsets = [0, 32], sizes = [2, 32], strides = [1, 1]} : vector<2x128xf32> to vector<2x32xf32>
    %890 = arith.mulf %889, %874 : vector<2x32xf32>
    %891 = vector.extract_strided_slice %886 {offsets = [0, 0], sizes = [2, 32], strides = [1, 1]} : vector<2x128xf32> to vector<2x32xf32>
    %892 = arith.mulf %891, %888 : vector<2x32xf32>
    %893 = arith.addf %890, %892 : vector<2x32xf32>
    %894 = vector.extract_strided_slice %886 {offsets = [0, 96], sizes = [2, 32], strides = [1, 1]} : vector<2x128xf32> to vector<2x32xf32>
    %895 = math.tanh %893 : vector<2x32xf32>
    %896 = arith.mulf %894, %895 : vector<2x32xf32>
    %c26_227 = arith.constant 26 : index
    %c0_228 = arith.constant 0 : index
    %897 = vector.load %arg14[%c26_227, %c0_228] : memref<60x128xf32, #tpu.memory_space<vmem>>, vector<2x128xf32>
    %898 = arith.truncf %896 : vector<2x32xf32> to vector<2x32xbf16>
    %cst_229 = arith.constant dense<0.000000e+00> : vector<2x128xf32>
    %899 = tpu.matmul %898, %647, %cst_229 {dimension_numbers = #tpu.dot_dimension_numbers<[1], [0], [0], [1], [0, 0, 1, 1], [], []>} : vector<2x32xbf16>, vector<32x128xbf16>, vector<2x128xf32> -> vector<2x128xf32>
    %900 = arith.addf %897, %899 : vector<2x128xf32>
    %901 = arith.negf %900 : vector<2x128xf32>
    %902 = math.exp %901 : vector<2x128xf32>
    %cst_230 = arith.constant 1.000000e+00 : f32
    %903 = vector.broadcast %cst_230 : f32 to vector<2x128xf32>
    %904 = arith.addf %903, %902 : vector<2x128xf32>
    %905 = arith.divf %903, %904 : vector<2x128xf32>
    %906 = vector.extract_strided_slice %900 {offsets = [0, 64], sizes = [2, 32], strides = [1, 1]} : vector<2x128xf32> to vector<2x32xf32>
    %907 = math.tanh %906 : vector<2x32xf32>
    %908 = vector.extract_strided_slice %905 {offsets = [0, 32], sizes = [2, 32], strides = [1, 1]} : vector<2x128xf32> to vector<2x32xf32>
    %909 = arith.mulf %908, %893 : vector<2x32xf32>
    %910 = vector.extract_strided_slice %905 {offsets = [0, 0], sizes = [2, 32], strides = [1, 1]} : vector<2x128xf32> to vector<2x32xf32>
    %911 = arith.mulf %910, %907 : vector<2x32xf32>
    %912 = arith.addf %909, %911 : vector<2x32xf32>
    %913 = vector.extract_strided_slice %905 {offsets = [0, 96], sizes = [2, 32], strides = [1, 1]} : vector<2x128xf32> to vector<2x32xf32>
    %914 = math.tanh %912 : vector<2x32xf32>
    %915 = arith.mulf %913, %914 : vector<2x32xf32>
    %c28_231 = arith.constant 28 : index
    %c0_232 = arith.constant 0 : index
    %916 = vector.load %arg14[%c28_231, %c0_232] : memref<60x128xf32, #tpu.memory_space<vmem>>, vector<2x128xf32>
    %917 = arith.truncf %915 : vector<2x32xf32> to vector<2x32xbf16>
    %cst_233 = arith.constant dense<0.000000e+00> : vector<2x128xf32>
    %918 = tpu.matmul %917, %647, %cst_233 {dimension_numbers = #tpu.dot_dimension_numbers<[1], [0], [0], [1], [0, 0, 1, 1], [], []>} : vector<2x32xbf16>, vector<32x128xbf16>, vector<2x128xf32> -> vector<2x128xf32>
    %919 = arith.addf %916, %918 : vector<2x128xf32>
    %920 = arith.negf %919 : vector<2x128xf32>
    %921 = math.exp %920 : vector<2x128xf32>
    %cst_234 = arith.constant 1.000000e+00 : f32
    %922 = vector.broadcast %cst_234 : f32 to vector<2x128xf32>
    %923 = arith.addf %922, %921 : vector<2x128xf32>
    %924 = arith.divf %922, %923 : vector<2x128xf32>
    %925 = vector.extract_strided_slice %919 {offsets = [0, 64], sizes = [2, 32], strides = [1, 1]} : vector<2x128xf32> to vector<2x32xf32>
    %926 = math.tanh %925 : vector<2x32xf32>
    %927 = vector.extract_strided_slice %924 {offsets = [0, 32], sizes = [2, 32], strides = [1, 1]} : vector<2x128xf32> to vector<2x32xf32>
    %928 = arith.mulf %927, %912 : vector<2x32xf32>
    %929 = vector.extract_strided_slice %924 {offsets = [0, 0], sizes = [2, 32], strides = [1, 1]} : vector<2x128xf32> to vector<2x32xf32>
    %930 = arith.mulf %929, %926 : vector<2x32xf32>
    %931 = arith.addf %928, %930 : vector<2x32xf32>
    %932 = vector.extract_strided_slice %924 {offsets = [0, 96], sizes = [2, 32], strides = [1, 1]} : vector<2x128xf32> to vector<2x32xf32>
    %933 = math.tanh %931 : vector<2x32xf32>
    %934 = arith.mulf %932, %933 : vector<2x32xf32>
    %c30_235 = arith.constant 30 : index
    %c0_236 = arith.constant 0 : index
    %935 = vector.load %arg14[%c30_235, %c0_236] : memref<60x128xf32, #tpu.memory_space<vmem>>, vector<2x128xf32>
    %936 = arith.truncf %934 : vector<2x32xf32> to vector<2x32xbf16>
    %cst_237 = arith.constant dense<0.000000e+00> : vector<2x128xf32>
    %937 = tpu.matmul %936, %647, %cst_237 {dimension_numbers = #tpu.dot_dimension_numbers<[1], [0], [0], [1], [0, 0, 1, 1], [], []>} : vector<2x32xbf16>, vector<32x128xbf16>, vector<2x128xf32> -> vector<2x128xf32>
    %938 = arith.addf %935, %937 : vector<2x128xf32>
    %939 = arith.negf %938 : vector<2x128xf32>
    %940 = math.exp %939 : vector<2x128xf32>
    %cst_238 = arith.constant 1.000000e+00 : f32
    %941 = vector.broadcast %cst_238 : f32 to vector<2x128xf32>
    %942 = arith.addf %941, %940 : vector<2x128xf32>
    %943 = arith.divf %941, %942 : vector<2x128xf32>
    %944 = vector.extract_strided_slice %938 {offsets = [0, 64], sizes = [2, 32], strides = [1, 1]} : vector<2x128xf32> to vector<2x32xf32>
    %945 = math.tanh %944 : vector<2x32xf32>
    %946 = vector.extract_strided_slice %943 {offsets = [0, 32], sizes = [2, 32], strides = [1, 1]} : vector<2x128xf32> to vector<2x32xf32>
    %947 = arith.mulf %946, %931 : vector<2x32xf32>
    %948 = vector.extract_strided_slice %943 {offsets = [0, 0], sizes = [2, 32], strides = [1, 1]} : vector<2x128xf32> to vector<2x32xf32>
    %949 = arith.mulf %948, %945 : vector<2x32xf32>
    %950 = arith.addf %947, %949 : vector<2x32xf32>
    %951 = vector.extract_strided_slice %943 {offsets = [0, 96], sizes = [2, 32], strides = [1, 1]} : vector<2x128xf32> to vector<2x32xf32>
    %952 = math.tanh %950 : vector<2x32xf32>
    %953 = arith.mulf %951, %952 : vector<2x32xf32>
    %c32_239 = arith.constant 32 : index
    %c0_240 = arith.constant 0 : index
    %954 = vector.load %arg14[%c32_239, %c0_240] : memref<60x128xf32, #tpu.memory_space<vmem>>, vector<2x128xf32>
    %955 = arith.truncf %953 : vector<2x32xf32> to vector<2x32xbf16>
    %cst_241 = arith.constant dense<0.000000e+00> : vector<2x128xf32>
    %956 = tpu.matmul %955, %647, %cst_241 {dimension_numbers = #tpu.dot_dimension_numbers<[1], [0], [0], [1], [0, 0, 1, 1], [], []>} : vector<2x32xbf16>, vector<32x128xbf16>, vector<2x128xf32> -> vector<2x128xf32>
    %957 = arith.addf %954, %956 : vector<2x128xf32>
    %958 = arith.negf %957 : vector<2x128xf32>
    %959 = math.exp %958 : vector<2x128xf32>
    %cst_242 = arith.constant 1.000000e+00 : f32
    %960 = vector.broadcast %cst_242 : f32 to vector<2x128xf32>
    %961 = arith.addf %960, %959 : vector<2x128xf32>
    %962 = arith.divf %960, %961 : vector<2x128xf32>
    %963 = vector.extract_strided_slice %957 {offsets = [0, 64], sizes = [2, 32], strides = [1, 1]} : vector<2x128xf32> to vector<2x32xf32>
    %964 = math.tanh %963 : vector<2x32xf32>
    %965 = vector.extract_strided_slice %962 {offsets = [0, 32], sizes = [2, 32], strides = [1, 1]} : vector<2x128xf32> to vector<2x32xf32>
    %966 = arith.mulf %965, %950 : vector<2x32xf32>
    %967 = vector.extract_strided_slice %962 {offsets = [0, 0], sizes = [2, 32], strides = [1, 1]} : vector<2x128xf32> to vector<2x32xf32>
    %968 = arith.mulf %967, %964 : vector<2x32xf32>
    %969 = arith.addf %966, %968 : vector<2x32xf32>
    %970 = vector.extract_strided_slice %962 {offsets = [0, 96], sizes = [2, 32], strides = [1, 1]} : vector<2x128xf32> to vector<2x32xf32>
    %971 = math.tanh %969 : vector<2x32xf32>
    %972 = arith.mulf %970, %971 : vector<2x32xf32>
    %c34_243 = arith.constant 34 : index
    %c0_244 = arith.constant 0 : index
    %973 = vector.load %arg14[%c34_243, %c0_244] : memref<60x128xf32, #tpu.memory_space<vmem>>, vector<2x128xf32>
    %974 = arith.truncf %972 : vector<2x32xf32> to vector<2x32xbf16>
    %cst_245 = arith.constant dense<0.000000e+00> : vector<2x128xf32>
    %975 = tpu.matmul %974, %647, %cst_245 {dimension_numbers = #tpu.dot_dimension_numbers<[1], [0], [0], [1], [0, 0, 1, 1], [], []>} : vector<2x32xbf16>, vector<32x128xbf16>, vector<2x128xf32> -> vector<2x128xf32>
    %976 = arith.addf %973, %975 : vector<2x128xf32>
    %977 = arith.negf %976 : vector<2x128xf32>
    %978 = math.exp %977 : vector<2x128xf32>
    %cst_246 = arith.constant 1.000000e+00 : f32
    %979 = vector.broadcast %cst_246 : f32 to vector<2x128xf32>
    %980 = arith.addf %979, %978 : vector<2x128xf32>
    %981 = arith.divf %979, %980 : vector<2x128xf32>
    %982 = vector.extract_strided_slice %976 {offsets = [0, 64], sizes = [2, 32], strides = [1, 1]} : vector<2x128xf32> to vector<2x32xf32>
    %983 = math.tanh %982 : vector<2x32xf32>
    %984 = vector.extract_strided_slice %981 {offsets = [0, 32], sizes = [2, 32], strides = [1, 1]} : vector<2x128xf32> to vector<2x32xf32>
    %985 = arith.mulf %984, %969 : vector<2x32xf32>
    %986 = vector.extract_strided_slice %981 {offsets = [0, 0], sizes = [2, 32], strides = [1, 1]} : vector<2x128xf32> to vector<2x32xf32>
    %987 = arith.mulf %986, %983 : vector<2x32xf32>
    %988 = arith.addf %985, %987 : vector<2x32xf32>
    %989 = vector.extract_strided_slice %981 {offsets = [0, 96], sizes = [2, 32], strides = [1, 1]} : vector<2x128xf32> to vector<2x32xf32>
    %990 = math.tanh %988 : vector<2x32xf32>
    %991 = arith.mulf %989, %990 : vector<2x32xf32>
    %c36_247 = arith.constant 36 : index
    %c0_248 = arith.constant 0 : index
    %992 = vector.load %arg14[%c36_247, %c0_248] : memref<60x128xf32, #tpu.memory_space<vmem>>, vector<2x128xf32>
    %993 = arith.truncf %991 : vector<2x32xf32> to vector<2x32xbf16>
    %cst_249 = arith.constant dense<0.000000e+00> : vector<2x128xf32>
    %994 = tpu.matmul %993, %647, %cst_249 {dimension_numbers = #tpu.dot_dimension_numbers<[1], [0], [0], [1], [0, 0, 1, 1], [], []>} : vector<2x32xbf16>, vector<32x128xbf16>, vector<2x128xf32> -> vector<2x128xf32>
    %995 = arith.addf %992, %994 : vector<2x128xf32>
    %996 = arith.negf %995 : vector<2x128xf32>
    %997 = math.exp %996 : vector<2x128xf32>
    %cst_250 = arith.constant 1.000000e+00 : f32
    %998 = vector.broadcast %cst_250 : f32 to vector<2x128xf32>
    %999 = arith.addf %998, %997 : vector<2x128xf32>
    %1000 = arith.divf %998, %999 : vector<2x128xf32>
    %1001 = vector.extract_strided_slice %995 {offsets = [0, 64], sizes = [2, 32], strides = [1, 1]} : vector<2x128xf32> to vector<2x32xf32>
    %1002 = math.tanh %1001 : vector<2x32xf32>
    %1003 = vector.extract_strided_slice %1000 {offsets = [0, 32], sizes = [2, 32], strides = [1, 1]} : vector<2x128xf32> to vector<2x32xf32>
    %1004 = arith.mulf %1003, %988 : vector<2x32xf32>
    %1005 = vector.extract_strided_slice %1000 {offsets = [0, 0], sizes = [2, 32], strides = [1, 1]} : vector<2x128xf32> to vector<2x32xf32>
    %1006 = arith.mulf %1005, %1002 : vector<2x32xf32>
    %1007 = arith.addf %1004, %1006 : vector<2x32xf32>
    %1008 = vector.extract_strided_slice %1000 {offsets = [0, 96], sizes = [2, 32], strides = [1, 1]} : vector<2x128xf32> to vector<2x32xf32>
    %1009 = math.tanh %1007 : vector<2x32xf32>
    %1010 = arith.mulf %1008, %1009 : vector<2x32xf32>
    %c38_251 = arith.constant 38 : index
    %c0_252 = arith.constant 0 : index
    %1011 = vector.load %arg14[%c38_251, %c0_252] : memref<60x128xf32, #tpu.memory_space<vmem>>, vector<2x128xf32>
    %1012 = arith.truncf %1010 : vector<2x32xf32> to vector<2x32xbf16>
    %cst_253 = arith.constant dense<0.000000e+00> : vector<2x128xf32>
    %1013 = tpu.matmul %1012, %647, %cst_253 {dimension_numbers = #tpu.dot_dimension_numbers<[1], [0], [0], [1], [0, 0, 1, 1], [], []>} : vector<2x32xbf16>, vector<32x128xbf16>, vector<2x128xf32> -> vector<2x128xf32>
    %1014 = arith.addf %1011, %1013 : vector<2x128xf32>
    %1015 = arith.negf %1014 : vector<2x128xf32>
    %1016 = math.exp %1015 : vector<2x128xf32>
    %cst_254 = arith.constant 1.000000e+00 : f32
    %1017 = vector.broadcast %cst_254 : f32 to vector<2x128xf32>
    %1018 = arith.addf %1017, %1016 : vector<2x128xf32>
    %1019 = arith.divf %1017, %1018 : vector<2x128xf32>
    %1020 = vector.extract_strided_slice %1014 {offsets = [0, 64], sizes = [2, 32], strides = [1, 1]} : vector<2x128xf32> to vector<2x32xf32>
    %1021 = math.tanh %1020 : vector<2x32xf32>
    %1022 = vector.extract_strided_slice %1019 {offsets = [0, 32], sizes = [2, 32], strides = [1, 1]} : vector<2x128xf32> to vector<2x32xf32>
    %1023 = arith.mulf %1022, %1007 : vector<2x32xf32>
    %1024 = vector.extract_strided_slice %1019 {offsets = [0, 0], sizes = [2, 32], strides = [1, 1]} : vector<2x128xf32> to vector<2x32xf32>
    %1025 = arith.mulf %1024, %1021 : vector<2x32xf32>
    %1026 = arith.addf %1023, %1025 : vector<2x32xf32>
    %1027 = vector.extract_strided_slice %1019 {offsets = [0, 96], sizes = [2, 32], strides = [1, 1]} : vector<2x128xf32> to vector<2x32xf32>
    %1028 = math.tanh %1026 : vector<2x32xf32>
    %1029 = arith.mulf %1027, %1028 : vector<2x32xf32>
    %c40_255 = arith.constant 40 : index
    %c0_256 = arith.constant 0 : index
    %1030 = vector.load %arg14[%c40_255, %c0_256] : memref<60x128xf32, #tpu.memory_space<vmem>>, vector<2x128xf32>
    %1031 = arith.truncf %1029 : vector<2x32xf32> to vector<2x32xbf16>
    %cst_257 = arith.constant dense<0.000000e+00> : vector<2x128xf32>
    %1032 = tpu.matmul %1031, %647, %cst_257 {dimension_numbers = #tpu.dot_dimension_numbers<[1], [0], [0], [1], [0, 0, 1, 1], [], []>} : vector<2x32xbf16>, vector<32x128xbf16>, vector<2x128xf32> -> vector<2x128xf32>
    %1033 = arith.addf %1030, %1032 : vector<2x128xf32>
    %1034 = arith.negf %1033 : vector<2x128xf32>
    %1035 = math.exp %1034 : vector<2x128xf32>
    %cst_258 = arith.constant 1.000000e+00 : f32
    %1036 = vector.broadcast %cst_258 : f32 to vector<2x128xf32>
    %1037 = arith.addf %1036, %1035 : vector<2x128xf32>
    %1038 = arith.divf %1036, %1037 : vector<2x128xf32>
    %1039 = vector.extract_strided_slice %1033 {offsets = [0, 64], sizes = [2, 32], strides = [1, 1]} : vector<2x128xf32> to vector<2x32xf32>
    %1040 = math.tanh %1039 : vector<2x32xf32>
    %1041 = vector.extract_strided_slice %1038 {offsets = [0, 32], sizes = [2, 32], strides = [1, 1]} : vector<2x128xf32> to vector<2x32xf32>
    %1042 = arith.mulf %1041, %1026 : vector<2x32xf32>
    %1043 = vector.extract_strided_slice %1038 {offsets = [0, 0], sizes = [2, 32], strides = [1, 1]} : vector<2x128xf32> to vector<2x32xf32>
    %1044 = arith.mulf %1043, %1040 : vector<2x32xf32>
    %1045 = arith.addf %1042, %1044 : vector<2x32xf32>
    %1046 = vector.extract_strided_slice %1038 {offsets = [0, 96], sizes = [2, 32], strides = [1, 1]} : vector<2x128xf32> to vector<2x32xf32>
    %1047 = math.tanh %1045 : vector<2x32xf32>
    %1048 = arith.mulf %1046, %1047 : vector<2x32xf32>
    %c42_259 = arith.constant 42 : index
    %c0_260 = arith.constant 0 : index
    %1049 = vector.load %arg14[%c42_259, %c0_260] : memref<60x128xf32, #tpu.memory_space<vmem>>, vector<2x128xf32>
    %1050 = arith.truncf %1048 : vector<2x32xf32> to vector<2x32xbf16>
    %cst_261 = arith.constant dense<0.000000e+00> : vector<2x128xf32>
    %1051 = tpu.matmul %1050, %647, %cst_261 {dimension_numbers = #tpu.dot_dimension_numbers<[1], [0], [0], [1], [0, 0, 1, 1], [], []>} : vector<2x32xbf16>, vector<32x128xbf16>, vector<2x128xf32> -> vector<2x128xf32>
    %1052 = arith.addf %1049, %1051 : vector<2x128xf32>
    %1053 = arith.negf %1052 : vector<2x128xf32>
    %1054 = math.exp %1053 : vector<2x128xf32>
    %cst_262 = arith.constant 1.000000e+00 : f32
    %1055 = vector.broadcast %cst_262 : f32 to vector<2x128xf32>
    %1056 = arith.addf %1055, %1054 : vector<2x128xf32>
    %1057 = arith.divf %1055, %1056 : vector<2x128xf32>
    %1058 = vector.extract_strided_slice %1052 {offsets = [0, 64], sizes = [2, 32], strides = [1, 1]} : vector<2x128xf32> to vector<2x32xf32>
    %1059 = math.tanh %1058 : vector<2x32xf32>
    %1060 = vector.extract_strided_slice %1057 {offsets = [0, 32], sizes = [2, 32], strides = [1, 1]} : vector<2x128xf32> to vector<2x32xf32>
    %1061 = arith.mulf %1060, %1045 : vector<2x32xf32>
    %1062 = vector.extract_strided_slice %1057 {offsets = [0, 0], sizes = [2, 32], strides = [1, 1]} : vector<2x128xf32> to vector<2x32xf32>
    %1063 = arith.mulf %1062, %1059 : vector<2x32xf32>
    %1064 = arith.addf %1061, %1063 : vector<2x32xf32>
    %1065 = vector.extract_strided_slice %1057 {offsets = [0, 96], sizes = [2, 32], strides = [1, 1]} : vector<2x128xf32> to vector<2x32xf32>
    %1066 = math.tanh %1064 : vector<2x32xf32>
    %1067 = arith.mulf %1065, %1066 : vector<2x32xf32>
    %c44_263 = arith.constant 44 : index
    %c0_264 = arith.constant 0 : index
    %1068 = vector.load %arg14[%c44_263, %c0_264] : memref<60x128xf32, #tpu.memory_space<vmem>>, vector<2x128xf32>
    %1069 = arith.truncf %1067 : vector<2x32xf32> to vector<2x32xbf16>
    %cst_265 = arith.constant dense<0.000000e+00> : vector<2x128xf32>
    %1070 = tpu.matmul %1069, %647, %cst_265 {dimension_numbers = #tpu.dot_dimension_numbers<[1], [0], [0], [1], [0, 0, 1, 1], [], []>} : vector<2x32xbf16>, vector<32x128xbf16>, vector<2x128xf32> -> vector<2x128xf32>
    %1071 = arith.addf %1068, %1070 : vector<2x128xf32>
    %1072 = arith.negf %1071 : vector<2x128xf32>
    %1073 = math.exp %1072 : vector<2x128xf32>
    %cst_266 = arith.constant 1.000000e+00 : f32
    %1074 = vector.broadcast %cst_266 : f32 to vector<2x128xf32>
    %1075 = arith.addf %1074, %1073 : vector<2x128xf32>
    %1076 = arith.divf %1074, %1075 : vector<2x128xf32>
    %1077 = vector.extract_strided_slice %1071 {offsets = [0, 64], sizes = [2, 32], strides = [1, 1]} : vector<2x128xf32> to vector<2x32xf32>
    %1078 = math.tanh %1077 : vector<2x32xf32>
    %1079 = vector.extract_strided_slice %1076 {offsets = [0, 32], sizes = [2, 32], strides = [1, 1]} : vector<2x128xf32> to vector<2x32xf32>
    %1080 = arith.mulf %1079, %1064 : vector<2x32xf32>
    %1081 = vector.extract_strided_slice %1076 {offsets = [0, 0], sizes = [2, 32], strides = [1, 1]} : vector<2x128xf32> to vector<2x32xf32>
    %1082 = arith.mulf %1081, %1078 : vector<2x32xf32>
    %1083 = arith.addf %1080, %1082 : vector<2x32xf32>
    %1084 = vector.extract_strided_slice %1076 {offsets = [0, 96], sizes = [2, 32], strides = [1, 1]} : vector<2x128xf32> to vector<2x32xf32>
    %1085 = math.tanh %1083 : vector<2x32xf32>
    %1086 = arith.mulf %1084, %1085 : vector<2x32xf32>
    %c46_267 = arith.constant 46 : index
    %c0_268 = arith.constant 0 : index
    %1087 = vector.load %arg14[%c46_267, %c0_268] : memref<60x128xf32, #tpu.memory_space<vmem>>, vector<2x128xf32>
    %1088 = arith.truncf %1086 : vector<2x32xf32> to vector<2x32xbf16>
    %cst_269 = arith.constant dense<0.000000e+00> : vector<2x128xf32>
    %1089 = tpu.matmul %1088, %647, %cst_269 {dimension_numbers = #tpu.dot_dimension_numbers<[1], [0], [0], [1], [0, 0, 1, 1], [], []>} : vector<2x32xbf16>, vector<32x128xbf16>, vector<2x128xf32> -> vector<2x128xf32>
    %1090 = arith.addf %1087, %1089 : vector<2x128xf32>
    %1091 = arith.negf %1090 : vector<2x128xf32>
    %1092 = math.exp %1091 : vector<2x128xf32>
    %cst_270 = arith.constant 1.000000e+00 : f32
    %1093 = vector.broadcast %cst_270 : f32 to vector<2x128xf32>
    %1094 = arith.addf %1093, %1092 : vector<2x128xf32>
    %1095 = arith.divf %1093, %1094 : vector<2x128xf32>
    %1096 = vector.extract_strided_slice %1090 {offsets = [0, 64], sizes = [2, 32], strides = [1, 1]} : vector<2x128xf32> to vector<2x32xf32>
    %1097 = math.tanh %1096 : vector<2x32xf32>
    %1098 = vector.extract_strided_slice %1095 {offsets = [0, 32], sizes = [2, 32], strides = [1, 1]} : vector<2x128xf32> to vector<2x32xf32>
    %1099 = arith.mulf %1098, %1083 : vector<2x32xf32>
    %1100 = vector.extract_strided_slice %1095 {offsets = [0, 0], sizes = [2, 32], strides = [1, 1]} : vector<2x128xf32> to vector<2x32xf32>
    %1101 = arith.mulf %1100, %1097 : vector<2x32xf32>
    %1102 = arith.addf %1099, %1101 : vector<2x32xf32>
    %1103 = vector.extract_strided_slice %1095 {offsets = [0, 96], sizes = [2, 32], strides = [1, 1]} : vector<2x128xf32> to vector<2x32xf32>
    %1104 = math.tanh %1102 : vector<2x32xf32>
    %1105 = arith.mulf %1103, %1104 : vector<2x32xf32>
    %c48_271 = arith.constant 48 : index
    %c0_272 = arith.constant 0 : index
    %1106 = vector.load %arg14[%c48_271, %c0_272] : memref<60x128xf32, #tpu.memory_space<vmem>>, vector<2x128xf32>
    %1107 = arith.truncf %1105 : vector<2x32xf32> to vector<2x32xbf16>
    %cst_273 = arith.constant dense<0.000000e+00> : vector<2x128xf32>
    %1108 = tpu.matmul %1107, %647, %cst_273 {dimension_numbers = #tpu.dot_dimension_numbers<[1], [0], [0], [1], [0, 0, 1, 1], [], []>} : vector<2x32xbf16>, vector<32x128xbf16>, vector<2x128xf32> -> vector<2x128xf32>
    %1109 = arith.addf %1106, %1108 : vector<2x128xf32>
    %1110 = arith.negf %1109 : vector<2x128xf32>
    %1111 = math.exp %1110 : vector<2x128xf32>
    %cst_274 = arith.constant 1.000000e+00 : f32
    %1112 = vector.broadcast %cst_274 : f32 to vector<2x128xf32>
    %1113 = arith.addf %1112, %1111 : vector<2x128xf32>
    %1114 = arith.divf %1112, %1113 : vector<2x128xf32>
    %1115 = vector.extract_strided_slice %1109 {offsets = [0, 64], sizes = [2, 32], strides = [1, 1]} : vector<2x128xf32> to vector<2x32xf32>
    %1116 = math.tanh %1115 : vector<2x32xf32>
    %1117 = vector.extract_strided_slice %1114 {offsets = [0, 32], sizes = [2, 32], strides = [1, 1]} : vector<2x128xf32> to vector<2x32xf32>
    %1118 = arith.mulf %1117, %1102 : vector<2x32xf32>
    %1119 = vector.extract_strided_slice %1114 {offsets = [0, 0], sizes = [2, 32], strides = [1, 1]} : vector<2x128xf32> to vector<2x32xf32>
    %1120 = arith.mulf %1119, %1116 : vector<2x32xf32>
    %1121 = arith.addf %1118, %1120 : vector<2x32xf32>
    %1122 = vector.extract_strided_slice %1114 {offsets = [0, 96], sizes = [2, 32], strides = [1, 1]} : vector<2x128xf32> to vector<2x32xf32>
    %1123 = math.tanh %1121 : vector<2x32xf32>
    %1124 = arith.mulf %1122, %1123 : vector<2x32xf32>
    %c50_275 = arith.constant 50 : index
    %c0_276 = arith.constant 0 : index
    %1125 = vector.load %arg14[%c50_275, %c0_276] : memref<60x128xf32, #tpu.memory_space<vmem>>, vector<2x128xf32>
    %1126 = arith.truncf %1124 : vector<2x32xf32> to vector<2x32xbf16>
    %cst_277 = arith.constant dense<0.000000e+00> : vector<2x128xf32>
    %1127 = tpu.matmul %1126, %647, %cst_277 {dimension_numbers = #tpu.dot_dimension_numbers<[1], [0], [0], [1], [0, 0, 1, 1], [], []>} : vector<2x32xbf16>, vector<32x128xbf16>, vector<2x128xf32> -> vector<2x128xf32>
    %1128 = arith.addf %1125, %1127 : vector<2x128xf32>
    %1129 = arith.negf %1128 : vector<2x128xf32>
    %1130 = math.exp %1129 : vector<2x128xf32>
    %cst_278 = arith.constant 1.000000e+00 : f32
    %1131 = vector.broadcast %cst_278 : f32 to vector<2x128xf32>
    %1132 = arith.addf %1131, %1130 : vector<2x128xf32>
    %1133 = arith.divf %1131, %1132 : vector<2x128xf32>
    %1134 = vector.extract_strided_slice %1128 {offsets = [0, 64], sizes = [2, 32], strides = [1, 1]} : vector<2x128xf32> to vector<2x32xf32>
    %1135 = math.tanh %1134 : vector<2x32xf32>
    %1136 = vector.extract_strided_slice %1133 {offsets = [0, 32], sizes = [2, 32], strides = [1, 1]} : vector<2x128xf32> to vector<2x32xf32>
    %1137 = arith.mulf %1136, %1121 : vector<2x32xf32>
    %1138 = vector.extract_strided_slice %1133 {offsets = [0, 0], sizes = [2, 32], strides = [1, 1]} : vector<2x128xf32> to vector<2x32xf32>
    %1139 = arith.mulf %1138, %1135 : vector<2x32xf32>
    %1140 = arith.addf %1137, %1139 : vector<2x32xf32>
    %1141 = vector.extract_strided_slice %1133 {offsets = [0, 96], sizes = [2, 32], strides = [1, 1]} : vector<2x128xf32> to vector<2x32xf32>
    %1142 = math.tanh %1140 : vector<2x32xf32>
    %1143 = arith.mulf %1141, %1142 : vector<2x32xf32>
    %c52_279 = arith.constant 52 : index
    %c0_280 = arith.constant 0 : index
    %1144 = vector.load %arg14[%c52_279, %c0_280] : memref<60x128xf32, #tpu.memory_space<vmem>>, vector<2x128xf32>
    %1145 = arith.truncf %1143 : vector<2x32xf32> to vector<2x32xbf16>
    %cst_281 = arith.constant dense<0.000000e+00> : vector<2x128xf32>
    %1146 = tpu.matmul %1145, %647, %cst_281 {dimension_numbers = #tpu.dot_dimension_numbers<[1], [0], [0], [1], [0, 0, 1, 1], [], []>} : vector<2x32xbf16>, vector<32x128xbf16>, vector<2x128xf32> -> vector<2x128xf32>
    %1147 = arith.addf %1144, %1146 : vector<2x128xf32>
    %1148 = arith.negf %1147 : vector<2x128xf32>
    %1149 = math.exp %1148 : vector<2x128xf32>
    %cst_282 = arith.constant 1.000000e+00 : f32
    %1150 = vector.broadcast %cst_282 : f32 to vector<2x128xf32>
    %1151 = arith.addf %1150, %1149 : vector<2x128xf32>
    %1152 = arith.divf %1150, %1151 : vector<2x128xf32>
    %1153 = vector.extract_strided_slice %1147 {offsets = [0, 64], sizes = [2, 32], strides = [1, 1]} : vector<2x128xf32> to vector<2x32xf32>
    %1154 = math.tanh %1153 : vector<2x32xf32>
    %1155 = vector.extract_strided_slice %1152 {offsets = [0, 32], sizes = [2, 32], strides = [1, 1]} : vector<2x128xf32> to vector<2x32xf32>
    %1156 = arith.mulf %1155, %1140 : vector<2x32xf32>
    %1157 = vector.extract_strided_slice %1152 {offsets = [0, 0], sizes = [2, 32], strides = [1, 1]} : vector<2x128xf32> to vector<2x32xf32>
    %1158 = arith.mulf %1157, %1154 : vector<2x32xf32>
    %1159 = arith.addf %1156, %1158 : vector<2x32xf32>
    %1160 = vector.extract_strided_slice %1152 {offsets = [0, 96], sizes = [2, 32], strides = [1, 1]} : vector<2x128xf32> to vector<2x32xf32>
    %1161 = math.tanh %1159 : vector<2x32xf32>
    %1162 = arith.mulf %1160, %1161 : vector<2x32xf32>
    %c54_283 = arith.constant 54 : index
    %c0_284 = arith.constant 0 : index
    %1163 = vector.load %arg14[%c54_283, %c0_284] : memref<60x128xf32, #tpu.memory_space<vmem>>, vector<2x128xf32>
    %1164 = arith.truncf %1162 : vector<2x32xf32> to vector<2x32xbf16>
    %cst_285 = arith.constant dense<0.000000e+00> : vector<2x128xf32>
    %1165 = tpu.matmul %1164, %647, %cst_285 {dimension_numbers = #tpu.dot_dimension_numbers<[1], [0], [0], [1], [0, 0, 1, 1], [], []>} : vector<2x32xbf16>, vector<32x128xbf16>, vector<2x128xf32> -> vector<2x128xf32>
    %1166 = arith.addf %1163, %1165 : vector<2x128xf32>
    %1167 = arith.negf %1166 : vector<2x128xf32>
    %1168 = math.exp %1167 : vector<2x128xf32>
    %cst_286 = arith.constant 1.000000e+00 : f32
    %1169 = vector.broadcast %cst_286 : f32 to vector<2x128xf32>
    %1170 = arith.addf %1169, %1168 : vector<2x128xf32>
    %1171 = arith.divf %1169, %1170 : vector<2x128xf32>
    %1172 = vector.extract_strided_slice %1166 {offsets = [0, 64], sizes = [2, 32], strides = [1, 1]} : vector<2x128xf32> to vector<2x32xf32>
    %1173 = math.tanh %1172 : vector<2x32xf32>
    %1174 = vector.extract_strided_slice %1171 {offsets = [0, 32], sizes = [2, 32], strides = [1, 1]} : vector<2x128xf32> to vector<2x32xf32>
    %1175 = arith.mulf %1174, %1159 : vector<2x32xf32>
    %1176 = vector.extract_strided_slice %1171 {offsets = [0, 0], sizes = [2, 32], strides = [1, 1]} : vector<2x128xf32> to vector<2x32xf32>
    %1177 = arith.mulf %1176, %1173 : vector<2x32xf32>
    %1178 = arith.addf %1175, %1177 : vector<2x32xf32>
    %1179 = vector.extract_strided_slice %1171 {offsets = [0, 96], sizes = [2, 32], strides = [1, 1]} : vector<2x128xf32> to vector<2x32xf32>
    %1180 = math.tanh %1178 : vector<2x32xf32>
    %1181 = arith.mulf %1179, %1180 : vector<2x32xf32>
    %c56_287 = arith.constant 56 : index
    %c0_288 = arith.constant 0 : index
    %1182 = vector.load %arg14[%c56_287, %c0_288] : memref<60x128xf32, #tpu.memory_space<vmem>>, vector<2x128xf32>
    %1183 = arith.truncf %1181 : vector<2x32xf32> to vector<2x32xbf16>
    %cst_289 = arith.constant dense<0.000000e+00> : vector<2x128xf32>
    %1184 = tpu.matmul %1183, %647, %cst_289 {dimension_numbers = #tpu.dot_dimension_numbers<[1], [0], [0], [1], [0, 0, 1, 1], [], []>} : vector<2x32xbf16>, vector<32x128xbf16>, vector<2x128xf32> -> vector<2x128xf32>
    %1185 = arith.addf %1182, %1184 : vector<2x128xf32>
    %1186 = arith.negf %1185 : vector<2x128xf32>
    %1187 = math.exp %1186 : vector<2x128xf32>
    %cst_290 = arith.constant 1.000000e+00 : f32
    %1188 = vector.broadcast %cst_290 : f32 to vector<2x128xf32>
    %1189 = arith.addf %1188, %1187 : vector<2x128xf32>
    %1190 = arith.divf %1188, %1189 : vector<2x128xf32>
    %1191 = vector.extract_strided_slice %1185 {offsets = [0, 64], sizes = [2, 32], strides = [1, 1]} : vector<2x128xf32> to vector<2x32xf32>
    %1192 = math.tanh %1191 : vector<2x32xf32>
    %1193 = vector.extract_strided_slice %1190 {offsets = [0, 32], sizes = [2, 32], strides = [1, 1]} : vector<2x128xf32> to vector<2x32xf32>
    %1194 = arith.mulf %1193, %1178 : vector<2x32xf32>
    %1195 = vector.extract_strided_slice %1190 {offsets = [0, 0], sizes = [2, 32], strides = [1, 1]} : vector<2x128xf32> to vector<2x32xf32>
    %1196 = arith.mulf %1195, %1192 : vector<2x32xf32>
    %1197 = arith.addf %1194, %1196 : vector<2x32xf32>
    %1198 = vector.extract_strided_slice %1190 {offsets = [0, 96], sizes = [2, 32], strides = [1, 1]} : vector<2x128xf32> to vector<2x32xf32>
    %1199 = math.tanh %1197 : vector<2x32xf32>
    %1200 = arith.mulf %1198, %1199 : vector<2x32xf32>
    %c58_291 = arith.constant 58 : index
    %c0_292 = arith.constant 0 : index
    %1201 = vector.load %arg14[%c58_291, %c0_292] : memref<60x128xf32, #tpu.memory_space<vmem>>, vector<2x128xf32>
    %1202 = arith.truncf %1200 : vector<2x32xf32> to vector<2x32xbf16>
    %cst_293 = arith.constant dense<0.000000e+00> : vector<2x128xf32>
    %1203 = tpu.matmul %1202, %647, %cst_293 {dimension_numbers = #tpu.dot_dimension_numbers<[1], [0], [0], [1], [0, 0, 1, 1], [], []>} : vector<2x32xbf16>, vector<32x128xbf16>, vector<2x128xf32> -> vector<2x128xf32>
    %1204 = arith.addf %1201, %1203 : vector<2x128xf32>
    %1205 = arith.negf %1204 : vector<2x128xf32>
    %1206 = math.exp %1205 : vector<2x128xf32>
    %cst_294 = arith.constant 1.000000e+00 : f32
    %1207 = vector.broadcast %cst_294 : f32 to vector<2x128xf32>
    %1208 = arith.addf %1207, %1206 : vector<2x128xf32>
    %1209 = arith.divf %1207, %1208 : vector<2x128xf32>
    %1210 = vector.extract_strided_slice %1204 {offsets = [0, 64], sizes = [2, 32], strides = [1, 1]} : vector<2x128xf32> to vector<2x32xf32>
    %1211 = math.tanh %1210 : vector<2x32xf32>
    %1212 = vector.extract_strided_slice %1209 {offsets = [0, 32], sizes = [2, 32], strides = [1, 1]} : vector<2x128xf32> to vector<2x32xf32>
    %1213 = arith.mulf %1212, %1197 : vector<2x32xf32>
    %1214 = vector.extract_strided_slice %1209 {offsets = [0, 0], sizes = [2, 32], strides = [1, 1]} : vector<2x128xf32> to vector<2x32xf32>
    %1215 = arith.mulf %1214, %1211 : vector<2x32xf32>
    %1216 = arith.addf %1213, %1215 : vector<2x32xf32>
    %1217 = vector.extract_strided_slice %1209 {offsets = [0, 96], sizes = [2, 32], strides = [1, 1]} : vector<2x128xf32> to vector<2x32xf32>
    %1218 = math.tanh %1216 : vector<2x32xf32>
    %1219 = arith.mulf %1217, %1218 : vector<2x32xf32>
    %1220 = arith.truncf %1219 : vector<2x32xf32> to vector<2x32xbf16>
    %c0_295 = arith.constant 0 : index
    %c0_296 = arith.constant 0 : index
    %1221 = vector.load %arg7[%c0_295, %c0_296] : memref<32x32xbf16, #tpu.memory_space<vmem>>, vector<32x32xbf16>
    %cst_297 = arith.constant dense<0.000000e+00> : vector<2x32xf32>
    %1222 = tpu.matmul %1220, %1221, %cst_297 {dimension_numbers = #tpu.dot_dimension_numbers<[1], [0], [0], [1], [0, 0, 1, 1], [], []>} : vector<2x32xbf16>, vector<32x32xbf16>, vector<2x32xf32> -> vector<2x32xf32>
    %c0_298 = arith.constant 0 : index
    %c0_299 = arith.constant 0 : index
    %1223 = vector.load %arg8[%c0_298, %c0_299] : memref<1x32xf32, #tpu.memory_space<vmem>>, vector<1x32xf32>
    %1224 = vector.broadcast %1223 : vector<1x32xf32> to vector<2x32xf32>
    %1225 = arith.addf %1222, %1224 : vector<2x32xf32>
    %cst_300 = arith.constant 0.000000e+00 : f32
    %1226 = vector.broadcast %cst_300 : f32 to vector<2x32xf32>
    %1227 = arith.maximumf %1225, %1226 : vector<2x32xf32>
    %1228 = arith.truncf %1227 : vector<2x32xf32> to vector<2x32xbf16>
    %c0_301 = arith.constant 0 : index
    %c0_302 = arith.constant 0 : index
    %1229 = vector.load %arg9[%c0_301, %c0_302] : memref<32x32xbf16, #tpu.memory_space<vmem>>, vector<32x32xbf16>
    %cst_303 = arith.constant dense<0.000000e+00> : vector<2x32xf32>
    %1230 = tpu.matmul %1228, %1229, %cst_303 {dimension_numbers = #tpu.dot_dimension_numbers<[1], [0], [0], [1], [0, 0, 1, 1], [], []>} : vector<2x32xbf16>, vector<32x32xbf16>, vector<2x32xf32> -> vector<2x32xf32>
    %c0_304 = arith.constant 0 : index
    %c0_305 = arith.constant 0 : index
    %1231 = vector.load %arg10[%c0_304, %c0_305] : memref<1x32xf32, #tpu.memory_space<vmem>>, vector<1x32xf32>
    %1232 = vector.broadcast %1231 : vector<1x32xf32> to vector<2x32xf32>
    %1233 = arith.addf %1230, %1232 : vector<2x32xf32>
    %cst_306 = arith.constant 0.000000e+00 : f32
    %1234 = vector.broadcast %cst_306 : f32 to vector<2x32xf32>
    %1235 = arith.maximumf %1233, %1234 : vector<2x32xf32>
    %1236 = arith.truncf %1235 : vector<2x32xf32> to vector<2x32xbf16>
    %c0_307 = arith.constant 0 : index
    %c0_308 = arith.constant 0 : index
    %1237 = vector.load %arg11[%c0_307, %c0_308] : memref<32x8xbf16, #tpu.memory_space<vmem>>, vector<32x8xbf16>
    %cst_309 = arith.constant dense<0.000000e+00> : vector<2x8xf32>
    %1238 = tpu.matmul %1236, %1237, %cst_309 {dimension_numbers = #tpu.dot_dimension_numbers<[1], [0], [0], [1], [0, 0, 1, 1], [], []>} : vector<2x32xbf16>, vector<32x8xbf16>, vector<2x8xf32> -> vector<2x8xf32>
    %c0_310 = arith.constant 0 : index
    %c0_311 = arith.constant 0 : index
    %1239 = vector.load %arg12[%c0_310, %c0_311] : memref<1x8xf32, #tpu.memory_space<vmem>>, vector<1x8xf32>
    %1240 = vector.broadcast %1239 : vector<1x8xf32> to vector<2x8xf32>
    %1241 = arith.addf %1238, %1240 : vector<2x8xf32>
    %cst_312 = arith.constant dense<0xFF800000> : vector<2xf32>
    %1242 = vector.multi_reduction <maximumf>, %1241, %cst_312 [1] : vector<2x8xf32> to vector<2xf32>
    %1243 = vector.shape_cast %1242 : vector<2xf32> to vector<2x1xf32>
    %1244 = vector.broadcast %1243 : vector<2x1xf32> to vector<2x8xf32>
    %1245 = arith.subf %1241, %1244 : vector<2x8xf32>
    %1246 = math.exp %1245 : vector<2x8xf32>
    %cst_313 = arith.constant dense<0.000000e+00> : vector<2xf32>
    %1247 = vector.multi_reduction <add>, %1246, %cst_313 [1] : vector<2x8xf32> to vector<2xf32>
    %1248 = vector.shape_cast %1247 : vector<2xf32> to vector<2x1xf32>
    %1249 = tpu.reciprocal %1248 {approx = true} : vector<2x1xf32> -> vector<2x1xf32>
    %1250 = vector.broadcast %1249 : vector<2x1xf32> to vector<2x8xf32>
    %1251 = arith.mulf %1246, %1250 : vector<2x8xf32>
    %c0_314 = arith.constant 0 : index
    %c0_315 = arith.constant 0 : index
    %1252 = vector.load %arg13[%c0_314, %c0_315] : memref<2x8xf32, #tpu.memory_space<vmem>>, vector<2x8xf32>
    tpu.vector_store %arg13[%c0_314, %c0_315], %1251 {strides = array<i32>} : memref<2x8xf32, #tpu.memory_space<vmem>>, vector<2x8xf32>,
    return
  }
}

</mosaic_0001>

<bundles_post_ra>
// kernel: model_forward.1
= control target key start
LH: loop header
LB: loop body
LE: loop exit
PB: predicated region body
PF: predicated region fallthrough
CT: control target
= control target key end

     0   :  { %s5850_s0 = inlined_call_operand.vmem [shape: bf16[60,128], index: 0, kind: input, shape index: {}]   ;;  %s5851_s1 = inlined_call_operand.vmem [shape: bf16[128,128], index: 1, kind: input, shape index: {}]   ;;  %s5852_s2 = inlined_call_operand.vmem [shape: bf16[32,128], index: 2, kind: input, shape index: {}]   ;;  %s5853_s3 = inlined_call_operand.vmem [shape: f32[1,128], index: 3, kind: input, shape index: {}]   ;;  %s5854_s4 = inlined_call_operand.vmem [shape: bf16[32,128], index: 4, kind: input, shape index: {}]   ;;  %s5855_s5 = inlined_call_operand.vmem [shape: bf16[32,128], index: 5, kind: input, shape index: {}]   ;;  %s5856_s6 = inlined_call_operand.vmem [shape: f32[1,128], index: 6, kind: input, shape index: {}]   ;;  %s5857_s7 = inlined_call_operand.vmem [shape: bf16[32,32], index: 7, kind: input, shape index: {}]   ;;  %s5858_s8 = inlined_call_operand.vmem [shape: f32[1,32], index: 8, kind: input, shape index: {}]   ;;  %s5859_s9 = inlined_call_operand.vmem [shape: bf16[32,32], index: 9, kind: input, shape index: {}]   ;;  %s5860_s10 = inlined_call_operand.vmem [shape: f32[1,32], index: 10, kind: input, shape index: {}]   ;;  %s5861_s11 = inlined_call_operand.vmem [shape: bf16[32,8], index: 11, kind: input, shape index: {}]   ;;  %s5862_s12 = inlined_call_operand.vmem [shape: f32[1,8], index: 12, kind: input, shape index: {}]   ;;  %s5863_s13 = inlined_call_operand.hbm [shape: f32[2,8], index: 13, kind: output, shape index: {}]  }
   0x1   :  { %v4441_v0 = vld [vmem:[%s5851_s1 + $0x38] sm:$0xff]  ;;  %v4440_v1 = vld [vmem:[%s5851_s1 + $0x30] sm:$0xff]  ;;  %v5068_v2 = vld [vmem:[%s5852_s2 + $0x8] sm:$0xff] }
   0x2   :  { %146 = vmatpush.bf16.msra.mxu0 %v4441_v0  ;;  %210 = vmatpush.bf16.msra.mxu1 %v5068_v2  ;;  %v5074_v3 = vld [vmem:[%s5852_s2] sm:$0xff] }
   0x3   :  { %276 = vmatpush.bf16.msra.mxu2 %v5068_v2  ;;  %343 = vmatpush.bf16.msra.mxu3 %v5068_v2 }
   0x4   :  { %18 = vsyncpa [#allocation5], 0  ;;  %v4439_v4 = vld [vmem:[%s5851_s1 + $0x28] sm:$0xff]  ;;  %v4438_v5 = vld [vmem:[%s5851_s1 + $0x20] sm:$0xff]  ;;  %v4985_v6 = vmov 0   ;;  %s4987_s15 = smov 32  }
   0x5   :  { %v4437_v7 = vld [vmem:[%s5851_s1 + $0x18] sm:$0xff]  ;;  %v4436_v8 = vld [vmem:[%s5851_s1 + $0x10] sm:$0xff]  ;;  %v4435_v9 = vld [vmem:[%s5851_s1 + $0x8] sm:$0xff]  ;;  %vm200_vm4 = vcmask 261120  }
   0x6   :  { %147 = vmatpush.bf16.msra.mxu0 %v4440_v1  ;;  %211 = vmatpush.bf16.msra.mxu1 %v5074_v3  ;;  %v4434_v10 = vld [vmem:[%s5851_s1] sm:$0xff]  ;;  %s4986_s1 = smov 64  }
   0x7   :  { %277 = vmatpush.bf16.msra.mxu2 %v5074_v3  ;;  %344 = vmatpush.bf16.msra.mxu3 %v5074_v3  ;;  %v4430_v11 = vld [vmem:[%s5850_s0] sm:$0xff] }
   0x8   :  { %v5118_v14 = vld [vmem:[%s5853_s3] ss:$0 sm:$0xff] }
   0x9   :  { %212 = vmatmul.bf16.vlgmr.msra.gmra.mxu1 %v4985_v6 }
   0xa   :  { %410 = vmatpush.bf16.msrb.mxu1 %v5068_v2  ;;  %148 = vmatpush.bf16.msra.mxu0 %v4439_v4 }
   0xb   :  { %477 = vmatpush.bf16.msrb.mxu2 %v5068_v2  ;;  %542 = vmatpush.bf16.msrb.mxu3 %v5068_v2 }
   0xe   :  { %411 = vmatpush.bf16.msrb.mxu1 %v5074_v3  ;;  %149 = vmatpush.bf16.msra.mxu0 %v4438_v5 }
   0xf   :  { %478 = vmatpush.bf16.msrb.mxu2 %v5074_v3  ;;  %543 = vmatpush.bf16.msrb.mxu3 %v5074_v3 }
  0x12   :  { %608 = vmatpush.bf16.msra.mxu1 %v5068_v2  ;;  %150 = vmatpush.bf16.msra.mxu0 %v4437_v7 }
  0x16   :  { %609 = vmatpush.bf16.msra.mxu1 %v5074_v3  ;;  %151 = vmatpush.bf16.msra.mxu0 %v4436_v8 }
  0x1a   :  { %152 = vmatpush.bf16.msra.mxu0 %v4435_v9 }
  0x1e   :  { %153 = vmatpush.bf16.msra.mxu0 %v4434_v10 }
  0x21   :  { %154 = vmatmul.bf16.vlgmr.msra.gmra.mxu0 %v4430_v11 }
  0x22   :  { %1397 = vmatpush.bf16.msrb.mxu0 %v5068_v2 }
  0x26   :  { %1398 = vmatpush.bf16.msrb.mxu0 %v5074_v3 }
  0x2a   :  { %1660 = vmatpush.bf16.msra.mxu0 %v5068_v2 }
  0x2e   :  { %1661 = vmatpush.bf16.msra.mxu0 %v5074_v3 }
  0x86   :  { %v213_v12 = vpop.f32.mrf.mxu1 }
  0x8e   :  { %v215_v13 = vpop.f32.mrf.mxu1 }
  0x9e   :  { %v155_v15 = vpop.f32.mrf.mxu0 }
  0x9f   :  { %v156_v16 = vadd.f32 %v5118_v14, %v155_v15 }
  0xa1   :  { %175 = vst [vmem:[#allocation2] sm:$0xff] %v156_v16 }
  0xa6   :  { %v157_v17 = vpop.f32.mrf.mxu0 }
  0xa7   :  { %v158_v18 = vadd.f32 %v5118_v14, %v157_v17 }
  0xa8   :  { %v187_v19 = vld [vmem:[#allocation2] sm:$0x3]  ;;  %v262_v47 = vld [vmem:[#allocation2 + $0x2] sm:$0x3]  ;;  %v329_v17 = vld [vmem:[#allocation2 + $0x4] sm:$0x3] }
  0xa9   :  { %v217_v20 = vadd.f32 %v213_v12, %v187_v19  ;;  %176 = vst [vmem:[#allocation2 + $0x8] sm:$0xff] %v158_v18 }
  0xab   :  { %4467 = vtanh.f32 %v217_v20  ;;  %v4249_v22 = vmul.f32 -1.442695, %v217_v20 }
  0xad   :  { %4469 = vpow2.f32 %v4249_v22 }
  0xb1   :  { %v4468_v21 = vpop.eup %4467 }
  0xb2   :  { %240 = vrot.lane.b32.xlu0 %v4468_v21, %s4986_s1 }
  0xb3   :  { %v4470_v23 = vpop.eup %4469 }
  0xb4   :  { %v221_v24 = vadd.f32 1.0, %v4470_v23 }
  0xb6   :  { %4471 = vrcp.f32 %v221_v24  ;;  %v233_v30 = vand.u32 2147483648, %v221_v24  ;;  %vm227_vm1 = vweird.f32 %v221_v24  ;;  %v231_v31 = vand.u32 2147483647, %v221_v24 }
  0xb8   :  { %v234_v33 = vor.u32 1.1754944e-38, %v233_v30  ;;  %vm232_vm3 = vcmp.eq.f32.partialorder %v231_v31, 8.507059e+37 }
  0xbc   :  { %v4472_v25 = vpop.eup %4471 }
  0xbd   :  { %v223_v26 = vmul.f32 %v4472_v25, %v221_v24  ;;  %vm228_vm0 = vweird.f32 %v4472_v25 }
  0xbe   :  { %vm229_vm2 = vmor %vm227_vm1, %vm228_vm0 }
  0xbf   :  { %v224_v27 = vsub.f32 1.0, %v223_v26 }
  0xc1   :  { %v225_v28 = vmul.f32 %v4472_v25, %v224_v27 }
  0xc3   :  { %v226_v29 = vadd.f32 %v4472_v25, %v225_v28 }
  0xc5   :  { %v230_v32 = vsel %vm229_vm2, %v4472_v25, %v226_v29 }
  0xc6   :  { %v235_v35 = vsel %vm232_vm3, %v234_v33, %v230_v32 }
  0xc7   :  { %v238_v37 = vmul.f32 0.0, %v235_v35 }
 0x124   :  { %v241_v34 = vpop.permute.xlu0 %240 }
 0x125   :  { %v243_v36 = vmul.f32 %v241_v34, %v235_v35 }
 0x127   :  { %245 = vrot.lane.b32.xlu0 %v243_v36, %s4987_s15 }
 0x199   :  { %v246_v38 = vpop.permute.xlu0 %245 }
 0x19a   :  { %v248_v39 = vadd.f32 %v246_v38, %v238_v37 }
 0x19c   :  { %4473 = vtanh.f32 %v248_v39 }
 0x1a2   :  { %v4474_v40 = vpop.eup %4473 }
 0x1a3   :  { %251 = vrot.lane.b32.xlu1 %v4474_v40, %s4986_s1 }
 0x215   :  { %v252_v41 = vpop.permute.xlu1 %251 }
 0x216   :  { %v254_v42 = vmul.f32 %v252_v41, %v235_v35 }
 0x218   :  { %v5125_v43 = vpack.c.bf16 %v254_v42, %v254_v42 }
 0x21a   :  { %v263_v44 = vunpack.c.l.b16 %v5125_v43 }
 0x21c   :  { %v264_v45 = vpack.c.b16 %v263_v44, %v263_v44 }
 0x21e   :  { %265 = vrot.lane.b32.xlu1 %v264_v45, %s4987_s15 }
 0x290   :  { %v266_v46 = vpop.permute.xlu1 %265 }
 0x291   :  { %4250 = vmatmul.msk.bf16.vlgmr.msra.gmra.mxu2 %vm200_vm4, %v266_v46 }
 0x292   :  { %674 = vmatpush.bf16.msra.mxu2 %v5068_v2 }
 0x296   :  { %675 = vmatpush.bf16.msra.mxu2 %v5074_v3 }
 0x314   :  { %v279_v48 = vpop.f32.mrf.mxu2 }
 0x315   :  { %v283_v49 = vadd.f32 %v279_v48, %v262_v47  ;;  %v396_v48 = vld [vmem:[#allocation2 + $0x6] sm:$0x3] }
 0x317   :  { %4475 = vtanh.f32 %v283_v49  ;;  %v4251_v52 = vmul.f32 -1.442695, %v283_v49 }
 0x319   :  { %4477 = vpow2.f32 %v4251_v52 }
 0x31c   :  { %v281_v50 = vpop.f32.mrf.mxu2 }
 0x31d   :  { %v4476_v51 = vpop.eup %4475 }
 0x31e   :  { %306 = vrot.lane.b32.xlu2 %v4476_v51, %s4986_s1 }
 0x31f   :  { %v4478_v53 = vpop.eup %4477 }
 0x320   :  { %v287_v54 = vadd.f32 1.0, %v4478_v53 }
 0x322   :  { %4479 = vrcp.f32 %v287_v54  ;;  %v299_v60 = vand.u32 2147483648, %v287_v54  ;;  %vm293_vm6 = vweird.f32 %v287_v54  ;;  %v297_v61 = vand.u32 2147483647, %v287_v54 }
 0x324   :  { %v300_v63 = vor.u32 1.1754944e-38, %v299_v60  ;;  %vm298_vm8 = vcmp.eq.f32.partialorder %v297_v61, 8.507059e+37 }
 0x328   :  { %v4480_v55 = vpop.eup %4479 }
 0x329   :  { %v289_v56 = vmul.f32 %v4480_v55, %v287_v54  ;;  %vm294_vm5 = vweird.f32 %v4480_v55 }
 0x32a   :  { %vm295_vm7 = vmor %vm293_vm6, %vm294_vm5 }
 0x32b   :  { %v290_v57 = vsub.f32 1.0, %v289_v56 }
 0x32d   :  { %v291_v58 = vmul.f32 %v4480_v55, %v290_v57 }
 0x32f   :  { %v292_v59 = vadd.f32 %v4480_v55, %v291_v58 }
 0x331   :  { %v296_v62 = vsel %vm295_vm7, %v4480_v55, %v292_v59 }
 0x332   :  { %v301_v1 = vsel %vm298_vm8, %v300_v63, %v296_v62 }
 0x333   :  { %v304_v5 = vmul.f32 %v301_v1, %v248_v39 }
 0x378   :  { %v307_v0 = vpop.permute.xlu2 %306 }
 0x379   :  { %v309_v4 = vmul.f32 %v307_v0, %v301_v1 }
 0x37b   :  { %311 = vrot.lane.b32.xlu2 %v309_v4, %s4987_s15 }
 0x3d5   :  { %v312_v7 = vpop.permute.xlu2 %311 }
 0x3d6   :  { %v314_v8 = vadd.f32 %v312_v7, %v304_v5 }
 0x3d8   :  { %4481 = vtanh.f32 %v314_v8 }
 0x3de   :  { %v4482_v9 = vpop.eup %4481 }
 0x3df   :  { %317 = vrot.lane.b32.xlu0 %v4482_v9, %s4986_s1 }
 0x451   :  { %v318_v10 = vpop.permute.xlu0 %317 }
 0x452   :  { %v320_v11 = vmul.f32 %v318_v10, %v301_v1 }
 0x454   :  { %v5135_v12 = vpack.c.bf16 %v320_v11, %v320_v11 }
 0x456   :  { %v330_v13 = vunpack.c.l.b16 %v5135_v12 }
 0x458   :  { %v331_v15 = vpack.c.b16 %v330_v13, %v330_v13 }
 0x45a   :  { %332 = vrot.lane.b32.xlu1 %v331_v15, %s4987_s15 }
 0x4cc   :  { %v333_v16 = vpop.permute.xlu1 %332 }
 0x4cd   :  { %4252 = vmatmul.msk.bf16.vlgmr.msra.gmra.mxu3 %vm200_vm4, %v333_v16 }
 0x4ce   :  { %740 = vmatpush.bf16.msra.mxu3 %v5068_v2 }
 0x4d2   :  { %741 = vmatpush.bf16.msra.mxu3 %v5074_v3 }
 0x550   :  { %v346_v18 = vpop.f32.mrf.mxu3 }
 0x551   :  { %v350_v19 = vadd.f32 %v346_v18, %v329_v17 }
 0x553   :  { %4483 = vtanh.f32 %v350_v19  ;;  %v4253_v22 = vmul.f32 -1.442695, %v350_v19  ;;  %v463_v19 = vld [vmem:[#allocation2 + $0x8] sm:$0x3] }
 0x555   :  { %4485 = vpow2.f32 %v4253_v22 }
 0x558   :  { %v348_v20 = vpop.f32.mrf.mxu3 }
 0x559   :  { %v4484_v21 = vpop.eup %4483 }
 0x55a   :  { %373 = vrot.lane.b32.xlu2 %v4484_v21, %s4986_s1 }
 0x55b   :  { %v4486_v23 = vpop.eup %4485 }
 0x55c   :  { %v354_v24 = vadd.f32 1.0, %v4486_v23 }
 0x55e   :  { %4487 = vrcp.f32 %v354_v24  ;;  %v366_v30 = vand.u32 2147483648, %v354_v24  ;;  %vm360_vm10 = vweird.f32 %v354_v24  ;;  %v364_v31 = vand.u32 2147483647, %v354_v24 }
 0x560   :  { %v367_v33 = vor.u32 1.1754944e-38, %v366_v30  ;;  %vm365_vm12 = vcmp.eq.f32.partialorder %v364_v31, 8.507059e+37 }
 0x564   :  { %v4488_v25 = vpop.eup %4487 }
 0x565   :  { %v356_v26 = vmul.f32 %v4488_v25, %v354_v24  ;;  %vm361_vm9 = vweird.f32 %v4488_v25 }
 0x566   :  { %vm362_vm11 = vmor %vm360_vm10, %vm361_vm9 }
 0x567   :  { %v357_v27 = vsub.f32 1.0, %v356_v26 }
 0x569   :  { %v358_v28 = vmul.f32 %v4488_v25, %v357_v27 }
 0x56b   :  { %v359_v29 = vadd.f32 %v4488_v25, %v358_v28 }
 0x56d   :  { %v363_v32 = vsel %vm362_vm11, %v4488_v25, %v359_v29 }
 0x56e   :  { %v368_v35 = vsel %vm365_vm12, %v367_v33, %v363_v32 }
 0x56f   :  { %v371_v37 = vmul.f32 %v368_v35, %v314_v8 }
 0x5b4   :  { %v374_v34 = vpop.permute.xlu2 %373 }
 0x5b5   :  { %v376_v36 = vmul.f32 %v374_v34, %v368_v35 }
 0x5b7   :  { %378 = vrot.lane.b32.xlu0 %v376_v36, %s4987_s15 }
 0x629   :  { %v379_v38 = vpop.permute.xlu0 %378 }
 0x62a   :  { %v381_v39 = vadd.f32 %v379_v38, %v371_v37 }
 0x62c   :  { %4489 = vtanh.f32 %v381_v39 }
 0x632   :  { %v4490_v40 = vpop.eup %4489 }
 0x633   :  { %384 = vrot.lane.b32.xlu1 %v4490_v40, %s4986_s1 }
 0x6a5   :  { %v385_v41 = vpop.permute.xlu1 %384 }
 0x6a6   :  { %v387_v42 = vmul.f32 %v385_v41, %v368_v35 }
 0x6a8   :  { %v5145_v44 = vpack.c.bf16 %v387_v42, %v387_v42 }
 0x6aa   :  { %v397_v45 = vunpack.c.l.b16 %v5145_v44 }
 0x6ac   :  { %v398_v46 = vpack.c.b16 %v397_v45, %v397_v45 }
 0x6ae   :  { %399 = vrot.lane.b32.xlu2 %v398_v46, %s4987_s15 }
 0x708   :  { %v400_v47 = vpop.permute.xlu2 %399 }
 0x709   :  { %4254 = vmatmul.msk.bf16.vlgmr.msrb.gmra.mxu1 %vm200_vm4, %v400_v47 }
 0x70a   :  { %805 = vmatpush.bf16.msrb.mxu1 %v5068_v2 }
 0x70e   :  { %806 = vmatpush.bf16.msrb.mxu1 %v5074_v3 }
 0x786   :  { %v413_v49 = vpop.f32.mrf.mxu1 }
 0x787   :  { %v417_v50 = vadd.f32 %v413_v49, %v396_v48 }
 0x789   :  { %4491 = vtanh.f32 %v417_v50  ;;  %v4255_v53 = vmul.f32 -1.442695, %v417_v50 }
 0x78b   :  { %4493 = vpow2.f32 %v4255_v53 }
 0x78e   :  { %v415_v51 = vpop.f32.mrf.mxu1 }
 0x78f   :  { %v4492_v52 = vpop.eup %4491  ;;  %v528_v51 = vld [vmem:[#allocation2 + $0xa] sm:$0x3] }
 0x790   :  { %440 = vrot.lane.b32.xlu0 %v4492_v52, %s4986_s1 }
 0x791   :  { %v4494_v54 = vpop.eup %4493 }
 0x792   :  { %v421_v55 = vadd.f32 1.0, %v4494_v54 }
 0x794   :  { %4495 = vrcp.f32 %v421_v55  ;;  %v433_v61 = vand.u32 2147483648, %v421_v55  ;;  %vm427_vm14 = vweird.f32 %v421_v55  ;;  %v431_v62 = vand.u32 2147483647, %v421_v55 }
 0x796   :  { %v434_v0 = vor.u32 1.1754944e-38, %v433_v61  ;;  %vm432_vm0 = vcmp.eq.f32.partialorder %v431_v62, 8.507059e+37 }
 0x79a   :  { %v4496_v56 = vpop.eup %4495 }
 0x79b   :  { %v423_v57 = vmul.f32 %v4496_v56, %v421_v55  ;;  %vm428_vm13 = vweird.f32 %v4496_v56 }
 0x79c   :  { %vm429_vm15 = vmor %vm427_vm14, %vm428_vm13 }
 0x79d   :  { %v424_v58 = vsub.f32 1.0, %v423_v57 }
 0x79f   :  { %v425_v59 = vmul.f32 %v4496_v56, %v424_v58 }
 0x7a1   :  { %v426_v60 = vadd.f32 %v4496_v56, %v425_v59 }
 0x7a3   :  { %v430_v63 = vsel %vm429_vm15, %v4496_v56, %v426_v60 }
 0x7a4   :  { %v435_v4 = vsel %vm432_vm0, %v434_v0, %v430_v63 }
 0x7a5   :  { %v438_v7 = vmul.f32 %v435_v4, %v381_v39 }
 0x802   :  { %v441_v1 = vpop.permute.xlu0 %440 }
 0x803   :  { %v443_v5 = vmul.f32 %v441_v1, %v435_v4 }
 0x805   :  { %445 = vrot.lane.b32.xlu1 %v443_v5, %s4987_s15 }
 0x877   :  { %v446_v8 = vpop.permute.xlu1 %445 }
 0x878   :  { %v448_v9 = vadd.f32 %v446_v8, %v438_v7 }
 0x87a   :  { %4497 = vtanh.f32 %v448_v9 }
 0x880   :  { %v4498_v10 = vpop.eup %4497 }
 0x881   :  { %451 = vrot.lane.b32.xlu2 %v4498_v10, %s4986_s1 }
 0x8db   :  { %v452_v11 = vpop.permute.xlu2 %451 }
 0x8dc   :  { %v454_v13 = vmul.f32 %v452_v11, %v435_v4 }
 0x8de   :  { %v5155_v15 = vpack.c.bf16 %v454_v13, %v454_v13 }
 0x8e0   :  { %v464_v16 = vunpack.c.l.b16 %v5155_v15 }
 0x8e2   :  { %v465_v17 = vpack.c.b16 %v464_v16, %v464_v16 }
 0x8e4   :  { %466 = vrot.lane.b32.xlu0 %v465_v17, %s4987_s15 }
 0x956   :  { %v467_v18 = vpop.permute.xlu0 %466 }
 0x957   :  { %4256 = vmatmul.msk.bf16.vlgmr.msrb.gmra.mxu2 %vm200_vm4, %v467_v18 }
 0x958   :  { %871 = vmatpush.bf16.msrb.mxu2 %v5068_v2 }
 0x95c   :  { %872 = vmatpush.bf16.msrb.mxu2 %v5074_v3 }
 0x9da   :  { %v480_v20 = vpop.f32.mrf.mxu2 }
 0x9db   :  { %v484_v21 = vadd.f32 %v480_v20, %v463_v19 }
 0x9dd   :  { %4499 = vtanh.f32 %v484_v21  ;;  %v4257_v24 = vmul.f32 -1.442695, %v484_v21 }
 0x9df   :  { %4501 = vpow2.f32 %v4257_v24 }
 0x9e2   :  { %v482_v22 = vpop.f32.mrf.mxu2 }
 0x9e3   :  { %v4500_v23 = vpop.eup %4499 }
 0x9e4   :  { %507 = vrot.lane.b32.xlu1 %v4500_v23, %s4986_s1  ;;  %v594_v23 = vld [vmem:[#allocation2 + $0xc] sm:$0x3] }
 0x9e5   :  { %v4502_v25 = vpop.eup %4501 }
 0x9e6   :  { %v488_v26 = vadd.f32 1.0, %v4502_v25 }
 0x9e8   :  { %4503 = vrcp.f32 %v488_v26  ;;  %v500_v32 = vand.u32 2147483648, %v488_v26  ;;  %vm494_vm2 = vweird.f32 %v488_v26  ;;  %v498_v33 = vand.u32 2147483647, %v488_v26 }
 0x9ea   :  { %v501_v35 = vor.u32 1.1754944e-38, %v500_v32  ;;  %vm499_vm5 = vcmp.eq.f32.partialorder %v498_v33, 8.507059e+37 }
 0x9ee   :  { %v4504_v27 = vpop.eup %4503 }
 0x9ef   :  { %v490_v28 = vmul.f32 %v4504_v27, %v488_v26  ;;  %vm495_vm1 = vweird.f32 %v4504_v27 }
 0x9f0   :  { %vm496_vm3 = vmor %vm494_vm2, %vm495_vm1 }
 0x9f1   :  { %v491_v29 = vsub.f32 1.0, %v490_v28 }
 0x9f3   :  { %v492_v30 = vmul.f32 %v4504_v27, %v491_v29 }
 0x9f5   :  { %v493_v31 = vadd.f32 %v4504_v27, %v492_v30 }
 0x9f7   :  { %v497_v34 = vsel %vm496_vm3, %v4504_v27, %v493_v31 }
 0x9f8   :  { %v502_v37 = vsel %vm499_vm5, %v501_v35, %v497_v34 }
 0x9f9   :  { %v505_v39 = vmul.f32 %v502_v37, %v448_v9 }
 0xa56   :  { %v508_v36 = vpop.permute.xlu1 %507 }
 0xa57   :  { %v510_v38 = vmul.f32 %v508_v36, %v502_v37 }
 0xa59   :  { %512 = vrot.lane.b32.xlu2 %v510_v38, %s4987_s15 }
 0xab3   :  { %v513_v40 = vpop.permute.xlu2 %512 }
 0xab4   :  { %v515_v41 = vadd.f32 %v513_v40, %v505_v39 }
 0xab6   :  { %4505 = vtanh.f32 %v515_v41 }
 0xabc   :  { %v4506_v42 = vpop.eup %4505 }
 0xabd   :  { %518 = vrot.lane.b32.xlu0 %v4506_v42, %s4986_s1 }
 0xb2f   :  { %v519_v45 = vpop.permute.xlu0 %518 }
 0xb30   :  { %v521_v46 = vmul.f32 %v519_v45, %v502_v37 }
 0xb32   :  { %v5165_v47 = vpack.c.bf16 %v521_v46, %v521_v46 }
 0xb34   :  { %v529_v48 = vunpack.c.l.b16 %v5165_v47 }
 0xb36   :  { %v530_v49 = vpack.c.b16 %v529_v48, %v529_v48 }
 0xb38   :  { %531 = vrot.lane.b32.xlu1 %v530_v49, %s4987_s15 }
 0xbaa   :  { %v532_v50 = vpop.permute.xlu1 %531 }
 0xbab   :  { %4258 = vmatmul.msk.bf16.vlgmr.msrb.gmra.mxu3 %vm200_vm4, %v532_v50 }
 0xbac   :  { %937 = vmatpush.bf16.msrb.mxu3 %v5068_v2 }
 0xbb0   :  { %938 = vmatpush.bf16.msrb.mxu3 %v5074_v3 }
 0xc2e   :  { %v545_v52 = vpop.f32.mrf.mxu3 }
 0xc2f   :  { %v549_v53 = vadd.f32 %v545_v52, %v528_v51 }
 0xc31   :  { %4507 = vtanh.f32 %v549_v53  ;;  %v4259_v56 = vmul.f32 -1.442695, %v549_v53 }
 0xc33   :  { %4509 = vpow2.f32 %v4259_v56  ;;  %v660_v56 = vld [vmem:[#allocation2 + $0xe] sm:$0x3] }
 0xc36   :  { %v547_v54 = vpop.f32.mrf.mxu3 }
 0xc37   :  { %v4508_v55 = vpop.eup %4507 }
 0xc38   :  { %572 = vrot.lane.b32.xlu2 %v4508_v55, %s4986_s1 }
 0xc39   :  { %v4510_v57 = vpop.eup %4509 }
 0xc3a   :  { %v553_v58 = vadd.f32 1.0, %v4510_v57 }
 0xc3c   :  { %4511 = vrcp.f32 %v553_v58  ;;  %v565_v0 = vand.u32 2147483648, %v553_v58  ;;  %vm559_vm7 = vweird.f32 %v553_v58  ;;  %v563_v1 = vand.u32 2147483647, %v553_v58 }
 0xc3e   :  { %v566_v5 = vor.u32 1.1754944e-38, %v565_v0  ;;  %vm564_vm9 = vcmp.eq.f32.partialorder %v563_v1, 8.507059e+37 }
 0xc42   :  { %v4512_v59 = vpop.eup %4511 }
 0xc43   :  { %v555_v60 = vmul.f32 %v4512_v59, %v553_v58  ;;  %vm560_vm6 = vweird.f32 %v4512_v59 }
 0xc44   :  { %vm561_vm8 = vmor %vm559_vm7, %vm560_vm6 }
 0xc45   :  { %v556_v61 = vsub.f32 1.0, %v555_v60 }
 0xc47   :  { %v557_v62 = vmul.f32 %v4512_v59, %v556_v61 }
 0xc49   :  { %v558_v63 = vadd.f32 %v4512_v59, %v557_v62 }
 0xc4b   :  { %v562_v4 = vsel %vm561_vm8, %v4512_v59, %v558_v63 }
 0xc4c   :  { %v567_v8 = vsel %vm564_vm9, %v566_v5, %v562_v4 }
 0xc4d   :  { %v570_v10 = vmul.f32 %v567_v8, %v515_v41 }
 0xc92   :  { %v573_v7 = vpop.permute.xlu2 %572 }
 0xc93   :  { %v575_v9 = vmul.f32 %v573_v7, %v567_v8 }
 0xc95   :  { %577 = vrot.lane.b32.xlu0 %v575_v9, %s4987_s15 }
 0xd07   :  { %v578_v11 = vpop.permute.xlu0 %577 }
 0xd08   :  { %v580_v13 = vadd.f32 %v578_v11, %v570_v10 }
 0xd0a   :  { %4513 = vtanh.f32 %v580_v13 }
 0xd10   :  { %v4514_v16 = vpop.eup %4513 }
 0xd11   :  { %583 = vrot.lane.b32.xlu1 %v4514_v16, %s4986_s1 }
 0xd83   :  { %v584_v17 = vpop.permute.xlu1 %583 }
 0xd84   :  { %v586_v18 = vmul.f32 %v584_v17, %v567_v8 }
 0xd86   :  { %v5175_v19 = vpack.c.bf16 %v586_v18, %v586_v18 }
 0xd88   :  { %v595_v20 = vunpack.c.l.b16 %v5175_v19 }
 0xd8a   :  { %v596_v21 = vpack.c.b16 %v595_v20, %v595_v20 }
 0xd8c   :  { %597 = vrot.lane.b32.xlu2 %v596_v21, %s4987_s15 }
 0xde6   :  { %v598_v22 = vpop.permute.xlu2 %597 }
 0xde7   :  { %4260 = vmatmul.msk.bf16.vlgmr.msra.gmra.mxu1 %vm200_vm4, %v598_v22 }
 0xde8   :  { %1003 = vmatpush.bf16.msra.mxu1 %v5068_v2 }
 0xdec   :  { %1004 = vmatpush.bf16.msra.mxu1 %v5074_v3 }
 0xe64   :  { %v611_v24 = vpop.f32.mrf.mxu1 }
 0xe65   :  { %v615_v25 = vadd.f32 %v611_v24, %v594_v23  ;;  %v4431_v23 = vld [vmem:[%s5850_s0 + $0x8] sm:$0xff] }
 0xe66   :  { %159 = vmatmul.bf16.gmra.mxu0 %v4431_v23 }
 0xe67   :  { %4515 = vtanh.f32 %v615_v25  ;;  %v4261_v28 = vmul.f32 -1.442695, %v615_v25 }
 0xe69   :  { %4517 = vpow2.f32 %v4261_v28 }
 0xe6c   :  { %v613_v26 = vpop.f32.mrf.mxu1 }
 0xe6d   :  { %v4516_v27 = vpop.eup %4515 }
 0xe6e   :  { %638 = vrot.lane.b32.xlu0 %v4516_v27, %s4986_s1 }
 0xe6f   :  { %v4518_v29 = vpop.eup %4517 }
 0xe70   :  { %v619_v30 = vadd.f32 1.0, %v4518_v29 }
 0xe72   :  { %4519 = vrcp.f32 %v619_v30  ;;  %v631_v36 = vand.u32 2147483648, %v619_v30  ;;  %vm625_vm11 = vweird.f32 %v619_v30  ;;  %v629_v37 = vand.u32 2147483647, %v619_v30 }
 0xe74   :  { %v632_v39 = vor.u32 1.1754944e-38, %v631_v36  ;;  %vm630_vm13 = vcmp.eq.f32.partialorder %v629_v37, 8.507059e+37 }
 0xe78   :  { %v4520_v31 = vpop.eup %4519 }
 0xe79   :  { %v621_v32 = vmul.f32 %v4520_v31, %v619_v30  ;;  %vm626_vm10 = vweird.f32 %v4520_v31 }
 0xe7a   :  { %vm627_vm12 = vmor %vm625_vm11, %vm626_vm10 }
 0xe7b   :  { %v622_v33 = vsub.f32 1.0, %v621_v32 }
 0xe7d   :  { %v623_v34 = vmul.f32 %v4520_v31, %v622_v33 }
 0xe7f   :  { %v624_v35 = vadd.f32 %v4520_v31, %v623_v34 }
 0xe81   :  { %v628_v38 = vsel %vm627_vm12, %v4520_v31, %v624_v35 }
 0xe82   :  { %v633_v41 = vsel %vm630_vm13, %v632_v39, %v628_v38 }
 0xe83   :  { %v636_v45 = vmul.f32 %v633_v41, %v580_v13 }
 0xee0   :  { %v639_v40 = vpop.permute.xlu0 %638 }
 0xee1   :  { %v641_v42 = vmul.f32 %v639_v40, %v633_v41 }
 0xee3   :  { %643 = vrot.lane.b32.xlu1 %v641_v42, %s4987_s15  ;;  %v160_v29 = vpop.f32.mrf.mxu0 }
 0xee4   :  { %v161_v30 = vadd.f32 %v5118_v14, %v160_v29 }
 0xee6   :  { %177 = vst [vmem:[#allocation2 + $0x10] sm:$0xff] %v161_v30 }
 0xeeb   :  { %v162_v31 = vpop.f32.mrf.mxu0 }
 0xeec   :  { %v163_v32 = vadd.f32 %v5118_v14, %v162_v31 }
 0xeed   :  { %v726_v34 = vld [vmem:[#allocation2 + $0x10] sm:$0x3] }
 0xeee   :  { %178 = vst [vmem:[#allocation2 + $0x18] sm:$0xff] %v163_v32 }
 0xf55   :  { %v644_v46 = vpop.permute.xlu1 %643 }
 0xf56   :  { %v646_v48 = vadd.f32 %v644_v46, %v636_v45 }
 0xf58   :  { %4521 = vtanh.f32 %v646_v48 }
 0xf5e   :  { %v4522_v49 = vpop.eup %4521 }
 0xf5f   :  { %649 = vrot.lane.b32.xlu2 %v4522_v49, %s4986_s1 }
 0xfb9   :  { %v650_v50 = vpop.permute.xlu2 %649 }
 0xfba   :  { %v652_v51 = vmul.f32 %v650_v50, %v633_v41 }
 0xfbc   :  { %v5185_v52 = vpack.c.bf16 %v652_v51, %v652_v51 }
 0xfbe   :  { %v661_v53 = vunpack.c.l.b16 %v5185_v52 }
 0xfc0   :  { %v662_v54 = vpack.c.b16 %v661_v53, %v661_v53 }
 0xfc2   :  { %663 = vrot.lane.b32.xlu0 %v662_v54, %s4987_s15 }
0x1034   :  { %v664_v55 = vpop.permute.xlu0 %663 }
0x1035   :  { %4262 = vmatmul.msk.bf16.vlgmr.msra.gmra.mxu2 %vm200_vm4, %v664_v55 }
0x1036   :  { %1068 = vmatpush.bf16.msra.mxu2 %v5068_v2 }
0x103a   :  { %1069 = vmatpush.bf16.msra.mxu2 %v5074_v3 }
0x10b8   :  { %v677_v57 = vpop.f32.mrf.mxu2 }
0x10b9   :  { %v681_v58 = vadd.f32 %v677_v57, %v660_v56 }
0x10bb   :  { %4523 = vtanh.f32 %v681_v58  ;;  %v4263_v61 = vmul.f32 -1.442695, %v681_v58 }
0x10bd   :  { %4525 = vpow2.f32 %v4263_v61 }
0x10c0   :  { %v679_v59 = vpop.f32.mrf.mxu2 }
0x10c1   :  { %v4524_v60 = vpop.eup %4523 }
0x10c2   :  { %704 = vrot.lane.b32.xlu1 %v4524_v60, %s4986_s1 }
0x10c3   :  { %v4526_v62 = vpop.eup %4525 }
0x10c4   :  { %v685_v63 = vadd.f32 1.0, %v4526_v62 }
0x10c6   :  { %4527 = vrcp.f32 %v685_v63  ;;  %v697_v8 = vand.u32 2147483648, %v685_v63  ;;  %vm691_vm15 = vweird.f32 %v685_v63  ;;  %v695_v9 = vand.u32 2147483647, %v685_v63 }
0x10c8   :  { %v698_v11 = vor.u32 1.1754944e-38, %v697_v8  ;;  %vm696_vm1 = vcmp.eq.f32.partialorder %v695_v9, 8.507059e+37 }
0x10cc   :  { %v4528_v0 = vpop.eup %4527 }
0x10cd   :  { %v687_v1 = vmul.f32 %v4528_v0, %v685_v63  ;;  %vm692_vm14 = vweird.f32 %v4528_v0 }
0x10ce   :  { %vm693_vm0 = vmor %vm691_vm15, %vm692_vm14 }
0x10cf   :  { %v688_v4 = vsub.f32 1.0, %v687_v1 }
0x10d1   :  { %v689_v5 = vmul.f32 %v4528_v0, %v688_v4 }
0x10d3   :  { %v690_v7 = vadd.f32 %v4528_v0, %v689_v5  ;;  %v791_v5 = vld [vmem:[#allocation2 + $0x12] sm:$0x3] }
0x10d5   :  { %v694_v10 = vsel %vm693_vm0, %v4528_v0, %v690_v7 }
0x10d6   :  { %v699_v16 = vsel %vm696_vm1, %v698_v11, %v694_v10 }
0x10d7   :  { %v702_v18 = vmul.f32 %v699_v16, %v646_v48 }
0x1134   :  { %v705_v13 = vpop.permute.xlu1 %704 }
0x1135   :  { %v707_v17 = vmul.f32 %v705_v13, %v699_v16 }
0x1137   :  { %709 = vrot.lane.b32.xlu2 %v707_v17, %s4987_s15 }
0x1191   :  { %v710_v20 = vpop.permute.xlu2 %709 }
0x1192   :  { %v712_v21 = vadd.f32 %v710_v20, %v702_v18 }
0x1194   :  { %4529 = vtanh.f32 %v712_v21 }
0x119a   :  { %v4530_v22 = vpop.eup %4529 }
0x119b   :  { %715 = vrot.lane.b32.xlu0 %v4530_v22, %s4986_s1 }
0x120d   :  { %v716_v24 = vpop.permute.xlu0 %715 }
0x120e   :  { %v718_v25 = vmul.f32 %v716_v24, %v699_v16 }
0x1210   :  { %v5198_v26 = vpack.c.bf16 %v718_v25, %v718_v25 }
0x1212   :  { %v727_v27 = vunpack.c.l.b16 %v5198_v26 }
0x1214   :  { %v728_v28 = vpack.c.b16 %v727_v27, %v727_v27 }
0x1216   :  { %729 = vrot.lane.b32.xlu1 %v728_v28, %s4987_s15 }
0x1288   :  { %v730_v33 = vpop.permute.xlu1 %729 }
0x1289   :  { %4264 = vmatmul.msk.bf16.vlgmr.msra.gmra.mxu3 %vm200_vm4, %v730_v33 }
0x128a   :  { %1134 = vmatpush.bf16.msra.mxu3 %v5068_v2 }
0x128e   :  { %1135 = vmatpush.bf16.msra.mxu3 %v5074_v3 }
0x130c   :  { %v743_v35 = vpop.f32.mrf.mxu3 }
0x130d   :  { %v747_v36 = vadd.f32 %v743_v35, %v726_v34 }
0x130f   :  { %4531 = vtanh.f32 %v747_v36  ;;  %v4265_v39 = vmul.f32 -1.442695, %v747_v36 }
0x1311   :  { %4533 = vpow2.f32 %v4265_v39 }
0x1314   :  { %v745_v37 = vpop.f32.mrf.mxu3 }
0x1315   :  { %v4532_v38 = vpop.eup %4531 }
0x1316   :  { %770 = vrot.lane.b32.xlu2 %v4532_v38, %s4986_s1 }
0x1317   :  { %v4534_v40 = vpop.eup %4533 }
0x1318   :  { %v751_v14 = vadd.f32 1.0, %v4534_v40 }
0x131a   :  { %4535 = vrcp.f32 %v751_v14  ;;  %v763_v49 = vand.u32 2147483648, %v751_v14  ;;  %vm757_vm3 = vweird.f32 %v751_v14  ;;  %v761_v50 = vand.u32 2147483647, %v751_v14 }
0x131c   :  { %v764_v53 = vor.u32 1.1754944e-38, %v763_v49  ;;  %vm762_vm6 = vcmp.eq.f32.partialorder %v761_v50, 8.507059e+37 }
0x1320   :  { %v4536_v41 = vpop.eup %4535 }
0x1321   :  { %v753_v42 = vmul.f32 %v4536_v41, %v751_v14  ;;  %vm758_vm2 = vweird.f32 %v4536_v41  ;;  %v857_v14 = vld [vmem:[#allocation2 + $0x14] sm:$0x3] }
0x1322   :  { %vm759_vm5 = vmor %vm757_vm3, %vm758_vm2 }
0x1323   :  { %v754_v45 = vsub.f32 1.0, %v753_v42 }
0x1325   :  { %v755_v46 = vmul.f32 %v4536_v41, %v754_v45 }
0x1327   :  { %v756_v48 = vadd.f32 %v4536_v41, %v755_v46 }
0x1329   :  { %v760_v51 = vsel %vm759_vm5, %v4536_v41, %v756_v48 }
0x132a   :  { %v765_v55 = vsel %vm762_vm6, %v764_v53, %v760_v51 }
0x132b   :  { %v768_v57 = vmul.f32 %v765_v55, %v712_v21 }
0x1370   :  { %v771_v54 = vpop.permute.xlu2 %770 }
0x1371   :  { %v773_v56 = vmul.f32 %v771_v54, %v765_v55 }
0x1373   :  { %775 = vrot.lane.b32.xlu0 %v773_v56, %s4987_s15 }
0x13e5   :  { %v776_v58 = vpop.permute.xlu0 %775 }
0x13e6   :  { %v778_v59 = vadd.f32 %v776_v58, %v768_v57 }
0x13e8   :  { %4537 = vtanh.f32 %v778_v59 }
0x13ee   :  { %v4538_v60 = vpop.eup %4537 }
0x13ef   :  { %781 = vrot.lane.b32.xlu1 %v4538_v60, %s4986_s1 }
0x1461   :  { %v782_v61 = vpop.permute.xlu1 %781 }
0x1462   :  { %v784_v62 = vmul.f32 %v782_v61, %v765_v55 }
0x1464   :  { %v5210_v63 = vpack.c.bf16 %v784_v62, %v784_v62 }
0x1466   :  { %v792_v0 = vunpack.c.l.b16 %v5210_v63 }
0x1468   :  { %v793_v1 = vpack.c.b16 %v792_v0, %v792_v0 }
0x146a   :  { %794 = vrot.lane.b32.xlu2 %v793_v1, %s4987_s15 }
0x14c4   :  { %v795_v4 = vpop.permute.xlu2 %794 }
0x14c5   :  { %4266 = vmatmul.msk.bf16.vlgmr.msrb.gmra.mxu1 %vm200_vm4, %v795_v4 }
0x14c6   :  { %1200 = vmatpush.bf16.msrb.mxu1 %v5068_v2 }
0x14ca   :  { %1201 = vmatpush.bf16.msrb.mxu1 %v5074_v3 }
0x1542   :  { %v808_v7 = vpop.f32.mrf.mxu1 }
0x1543   :  { %v812_v8 = vadd.f32 %v808_v7, %v791_v5 }
0x1545   :  { %4539 = vtanh.f32 %v812_v8  ;;  %v4267_v11 = vmul.f32 -1.442695, %v812_v8 }
0x1547   :  { %4541 = vpow2.f32 %v4267_v11 }
0x154a   :  { %v810_v9 = vpop.f32.mrf.mxu1 }
0x154b   :  { %v4540_v10 = vpop.eup %4539 }
0x154c   :  { %835 = vrot.lane.b32.xlu0 %v4540_v10, %s4986_s1 }
0x154d   :  { %v4542_v13 = vpop.eup %4541 }
0x154e   :  { %v816_v16 = vadd.f32 1.0, %v4542_v13  ;;  %v5238_v13 = vld [vmem:[%s5852_s2 + $0x8] sm:$0xff] }
0x1550   :  { %4543 = vrcp.f32 %v816_v16  ;;  %v828_v23 = vand.u32 2147483648, %v816_v16  ;;  %vm822_vm8 = vweird.f32 %v816_v16  ;;  %v826_v24 = vand.u32 2147483647, %v816_v16 }
0x1552   :  { %v829_v27 = vor.u32 1.1754944e-38, %v828_v23  ;;  %vm827_vm10 = vcmp.eq.f32.partialorder %v826_v24, 8.507059e+37 }
0x1556   :  { %v4544_v17 = vpop.eup %4543 }
0x1557   :  { %v818_v18 = vmul.f32 %v4544_v17, %v816_v16  ;;  %vm823_vm7 = vweird.f32 %v4544_v17  ;;  %v5244_v16 = vld [vmem:[%s5852_s2] sm:$0xff]  ;;  %s4184_s2 = sshll.u32 %s5863_s13, 4  ;;  %s4185_s2 = int_to_ptr.hbm [resolvable:$true] %s4184_s2 }
0x1558   :  { %vm824_vm9 = vmor %vm822_vm8, %vm823_vm7 }
0x1559   :  { %v819_v20 = vsub.f32 1.0, %v818_v18 }
0x155b   :  { %v820_v21 = vmul.f32 %v4544_v17, %v819_v20 }
0x155d   :  { %v821_v22 = vadd.f32 %v4544_v17, %v820_v21 }
0x155f   :  { %v825_v25 = vsel %vm824_vm9, %v4544_v17, %v821_v22  ;;  %v923_v17 = vld [vmem:[#allocation2 + $0x16] sm:$0x3] }
0x1560   :  { %v830_v29 = vsel %vm827_vm10, %v829_v27, %v825_v25 }
0x1561   :  { %v833_v31 = vmul.f32 %v830_v29, %v778_v59 }
0x15be   :  { %v836_v28 = vpop.permute.xlu0 %835 }
0x15bf   :  { %v838_v30 = vmul.f32 %v836_v28, %v830_v29 }
0x15c1   :  { %840 = vrot.lane.b32.xlu1 %v838_v30, %s4987_s15 }
0x1633   :  { %v841_v32 = vpop.permute.xlu1 %840 }
0x1634   :  { %v843_v33 = vadd.f32 %v841_v32, %v833_v31 }
0x1636   :  { %4545 = vtanh.f32 %v843_v33 }
0x163c   :  { %v4546_v34 = vpop.eup %4545 }
0x163d   :  { %846 = vrot.lane.b32.xlu2 %v4546_v34, %s4986_s1 }
0x1697   :  { %v847_v35 = vpop.permute.xlu2 %846 }
0x1698   :  { %v849_v36 = vmul.f32 %v847_v35, %v830_v29 }
0x169a   :  { %v5220_v37 = vpack.c.bf16 %v849_v36, %v849_v36 }
0x169c   :  { %v858_v38 = vunpack.c.l.b16 %v5220_v37 }
0x169e   :  { %v859_v39 = vpack.c.b16 %v858_v38, %v858_v38 }
0x16a0   :  { %860 = vrot.lane.b32.xlu0 %v859_v39, %s4987_s15 }
0x1712   :  { %v861_v40 = vpop.permute.xlu0 %860 }
0x1713   :  { %4268 = vmatmul.msk.bf16.vlgmr.msrb.gmra.mxu2 %vm200_vm4, %v861_v40 }
0x1714   :  { %1266 = vmatpush.bf16.msrb.mxu2 %v5068_v2 }
0x1718   :  { %1267 = vmatpush.bf16.msrb.mxu2 %v5074_v3 }
0x1796   :  { %v874_v41 = vpop.f32.mrf.mxu2 }
0x1797   :  { %v878_v42 = vadd.f32 %v874_v41, %v857_v14 }
0x1799   :  { %4547 = vtanh.f32 %v878_v42  ;;  %v4269_v48 = vmul.f32 -1.442695, %v878_v42 }
0x179b   :  { %4549 = vpow2.f32 %v4269_v48 }
0x179e   :  { %v876_v45 = vpop.f32.mrf.mxu2 }
0x179f   :  { %v4548_v46 = vpop.eup %4547 }
0x17a0   :  { %901 = vrot.lane.b32.xlu1 %v4548_v46, %s4986_s1 }
0x17a1   :  { %v4550_v49 = vpop.eup %4549 }
0x17a2   :  { %v882_v50 = vadd.f32 1.0, %v4550_v49 }
0x17a4   :  { %4551 = vrcp.f32 %v882_v50  ;;  %v894_v3 = vand.u32 2147483648, %v882_v50  ;;  %vm888_vm12 = vweird.f32 %v882_v50  ;;  %v892_v56 = vand.u32 2147483647, %v882_v50 }
0x17a6   :  { %v895_v58 = vor.u32 1.1754944e-38, %v894_v3  ;;  %vm893_vm14 = vcmp.eq.f32.partialorder %v892_v56, 8.507059e+37 }
0x17aa   :  { %v4552_v51 = vpop.eup %4551 }
0x17ab   :  { %v884_v53 = vmul.f32 %v4552_v51, %v882_v50  ;;  %vm889_vm11 = vweird.f32 %v4552_v51 }
0x17ac   :  { %vm890_vm13 = vmor %vm888_vm12, %vm889_vm11 }
0x17ad   :  { %v885_v54 = vsub.f32 1.0, %v884_v53  ;;  %v989_v53 = vld [vmem:[#allocation2 + $0x18] sm:$0x3] }
0x17af   :  { %v886_v55 = vmul.f32 %v4552_v51, %v885_v54 }
0x17b1   :  { %v887_v2 = vadd.f32 %v4552_v51, %v886_v55 }
0x17b3   :  { %v891_v57 = vsel %vm890_vm13, %v4552_v51, %v887_v2 }
0x17b4   :  { %v896_v60 = vsel %vm893_vm14, %v895_v58, %v891_v57 }
0x17b5   :  { %v899_v62 = vmul.f32 %v896_v60, %v843_v33 }
0x1812   :  { %v902_v59 = vpop.permute.xlu1 %901 }
0x1813   :  { %v904_v61 = vmul.f32 %v902_v59, %v896_v60 }
0x1815   :  { %906 = vrot.lane.b32.xlu2 %v904_v61, %s4987_s15 }
0x186f   :  { %v907_v0 = vpop.permute.xlu2 %906 }
0x1870   :  { %v909_v1 = vadd.f32 %v907_v0, %v899_v62 }
0x1872   :  { %4553 = vtanh.f32 %v909_v1 }
0x1878   :  { %v4554_v4 = vpop.eup %4553 }
0x1879   :  { %912 = vrot.lane.b32.xlu0 %v4554_v4, %s4986_s1 }
0x18eb   :  { %v913_v5 = vpop.permute.xlu0 %912 }
0x18ec   :  { %v915_v7 = vmul.f32 %v913_v5, %v896_v60 }
0x18ee   :  { %v5230_v8 = vpack.c.bf16 %v915_v7, %v915_v7 }
0x18f0   :  { %v924_v9 = vunpack.c.l.b16 %v5230_v8 }
0x18f2   :  { %v925_v10 = vpack.c.b16 %v924_v9, %v924_v9 }
0x18f4   :  { %926 = vrot.lane.b32.xlu1 %v925_v10, %s4987_s15 }
0x1966   :  { %v927_v11 = vpop.permute.xlu1 %926 }
0x1967   :  { %4270 = vmatmul.msk.bf16.vlgmr.msrb.gmra.mxu3 %vm200_vm4, %v927_v11 }
0x1968   :  { %1331 = vmatpush.bf16.msrb.mxu3 %v5238_v13 }
0x196c   :  { %1332 = vmatpush.bf16.msrb.mxu3 %v5244_v16 }
0x19ea   :  { %v940_v18 = vpop.f32.mrf.mxu3 }
0x19eb   :  { %v944_v20 = vadd.f32 %v940_v18, %v923_v17 }
0x19ed   :  { %4555 = vtanh.f32 %v944_v20  ;;  %v4271_v23 = vmul.f32 -1.442695, %v944_v20 }
0x19ef   :  { %4557 = vpow2.f32 %v4271_v23 }
0x19f2   :  { %v942_v21 = vpop.f32.mrf.mxu3 }
0x19f3   :  { %v4556_v22 = vpop.eup %4555 }
0x19f4   :  { %967 = vrot.lane.b32.xlu2 %v4556_v22, %s4986_s1 }
0x19f5   :  { %v4558_v24 = vpop.eup %4557 }
0x19f6   :  { %v948_v25 = vadd.f32 1.0, %v4558_v24 }
0x19f8   :  { %4559 = vrcp.f32 %v948_v25  ;;  %v960_v32 = vand.u32 2147483648, %v948_v25  ;;  %vm954_vm0 = vweird.f32 %v948_v25  ;;  %v958_v33 = vand.u32 2147483647, %v948_v25 }
0x19fa   :  { %v961_v35 = vor.u32 1.1754944e-38, %v960_v32  ;;  %vm959_vm2 = vcmp.eq.f32.partialorder %v958_v33, 8.507059e+37 }
0x19fe   :  { %v4560_v27 = vpop.eup %4559 }
0x19ff   :  { %v950_v28 = vmul.f32 %v4560_v27, %v948_v25  ;;  %vm955_vm15 = vweird.f32 %v4560_v27 }
0x1a00   :  { %vm956_vm1 = vmor %vm954_vm0, %vm955_vm15 }
0x1a01   :  { %v951_v29 = vsub.f32 1.0, %v950_v28 }
0x1a03   :  { %v952_v30 = vmul.f32 %v4560_v27, %v951_v29  ;;  %v1054_v29 = vld [vmem:[#allocation2 + $0x1a] sm:$0x3] }
0x1a05   :  { %v953_v31 = vadd.f32 %v4560_v27, %v952_v30 }
0x1a07   :  { %v957_v34 = vsel %vm956_vm1, %v4560_v27, %v953_v31 }
0x1a08   :  { %v962_v38 = vsel %vm959_vm2, %v961_v35, %v957_v34 }
0x1a09   :  { %v965_v40 = vmul.f32 %v962_v38, %v909_v1 }
0x1a4e   :  { %v968_v36 = vpop.permute.xlu2 %967 }
0x1a4f   :  { %v970_v39 = vmul.f32 %v968_v36, %v962_v38 }
0x1a51   :  { %972 = vrot.lane.b32.xlu0 %v970_v39, %s4987_s15 }
0x1ac3   :  { %v973_v14 = vpop.permute.xlu0 %972 }
0x1ac4   :  { %v975_v41 = vadd.f32 %v973_v14, %v965_v40 }
0x1ac6   :  { %4561 = vtanh.f32 %v975_v41 }
0x1acc   :  { %v4562_v42 = vpop.eup %4561 }
0x1acd   :  { %978 = vrot.lane.b32.xlu1 %v4562_v42, %s4986_s1 }
0x1b3f   :  { %v979_v45 = vpop.permute.xlu1 %978 }
0x1b40   :  { %v981_v46 = vmul.f32 %v979_v45, %v962_v38 }
0x1b42   :  { %v5250_v48 = vpack.c.bf16 %v981_v46, %v981_v46 }
0x1b44   :  { %v990_v49 = vunpack.c.l.b16 %v5250_v48 }
0x1b46   :  { %v991_v50 = vpack.c.b16 %v990_v49, %v990_v49 }
0x1b48   :  { %992 = vrot.lane.b32.xlu2 %v991_v50, %s4987_s15 }
0x1ba2   :  { %v993_v51 = vpop.permute.xlu2 %992 }
0x1ba3   :  { %4272 = vmatmul.msk.bf16.vlgmr.msra.gmra.mxu1 %vm200_vm4, %v993_v51 }
0x1ba4   :  { %1463 = vmatpush.bf16.msra.mxu1 %v5238_v13 }
0x1ba8   :  { %1464 = vmatpush.bf16.msra.mxu1 %v5244_v16 }
0x1c20   :  { %v1006_v54 = vpop.f32.mrf.mxu1 }
0x1c21   :  { %v1010_v55 = vadd.f32 %v1006_v54, %v989_v53 }
0x1c23   :  { %4563 = vtanh.f32 %v1010_v55  ;;  %v4273_v56 = vmul.f32 -1.442695, %v1010_v55 }
0x1c25   :  { %4565 = vpow2.f32 %v4273_v56 }
0x1c28   :  { %v1008_v2 = vpop.f32.mrf.mxu1 }
0x1c29   :  { %v4564_v3 = vpop.eup %4563 }
0x1c2a   :  { %1033 = vrot.lane.b32.xlu0 %v4564_v3, %s4986_s1 }
0x1c2b   :  { %v4566_v57 = vpop.eup %4565 }
0x1c2c   :  { %v1014_v58 = vadd.f32 1.0, %v4566_v57 }
0x1c2e   :  { %4567 = vrcp.f32 %v1014_v58  ;;  %v1026_v1 = vand.u32 2147483648, %v1014_v58  ;;  %vm1020_vm5 = vweird.f32 %v1014_v58  ;;  %v1024_v4 = vand.u32 2147483647, %v1014_v58 }
0x1c30   :  { %v1027_v7 = vor.u32 1.1754944e-38, %v1026_v1  ;;  %vm1025_vm7 = vcmp.eq.f32.partialorder %v1024_v4, 8.507059e+37 }
0x1c34   :  { %v4568_v59 = vpop.eup %4567 }
0x1c35   :  { %v1016_v60 = vmul.f32 %v4568_v59, %v1014_v58  ;;  %vm1021_vm3 = vweird.f32 %v4568_v59 }
0x1c36   :  { %vm1022_vm6 = vmor %vm1020_vm5, %vm1021_vm3 }
0x1c37   :  { %v1017_v61 = vsub.f32 1.0, %v1016_v60 }
0x1c39   :  { %v1018_v62 = vmul.f32 %v4568_v59, %v1017_v61 }
0x1c3b   :  { %v1019_v0 = vadd.f32 %v4568_v59, %v1018_v62  ;;  %v1120_v62 = vld [vmem:[#allocation2 + $0x1c] sm:$0x3] }
0x1c3d   :  { %v1023_v5 = vsel %vm1022_vm6, %v4568_v59, %v1019_v0 }
0x1c3e   :  { %v1028_v10 = vsel %vm1025_vm7, %v1027_v7, %v1023_v5 }
0x1c3f   :  { %v1031_v17 = vmul.f32 %v1028_v10, %v975_v41 }
0x1c9c   :  { %v1034_v9 = vpop.permute.xlu0 %1033 }
0x1c9d   :  { %v1036_v11 = vmul.f32 %v1034_v9, %v1028_v10 }
0x1c9f   :  { %1038 = vrot.lane.b32.xlu1 %v1036_v11, %s4987_s15 }
0x1d11   :  { %v1039_v18 = vpop.permute.xlu1 %1038 }
0x1d12   :  { %v1041_v20 = vadd.f32 %v1039_v18, %v1031_v17 }
0x1d14   :  { %4569 = vtanh.f32 %v1041_v20 }
0x1d1a   :  { %v4570_v21 = vpop.eup %4569 }
0x1d1b   :  { %1044 = vrot.lane.b32.xlu2 %v4570_v21, %s4986_s1 }
0x1d75   :  { %v1045_v22 = vpop.permute.xlu2 %1044 }
0x1d76   :  { %v1047_v23 = vmul.f32 %v1045_v22, %v1028_v10 }
0x1d78   :  { %v5260_v24 = vpack.c.bf16 %v1047_v23, %v1047_v23 }
0x1d7a   :  { %v1055_v25 = vunpack.c.l.b16 %v5260_v24 }
0x1d7c   :  { %v1056_v27 = vpack.c.b16 %v1055_v25, %v1055_v25 }
0x1d7e   :  { %1057 = vrot.lane.b32.xlu0 %v1056_v27, %s4987_s15 }
0x1df0   :  { %v1058_v28 = vpop.permute.xlu0 %1057 }
0x1df1   :  { %4274 = vmatmul.msk.bf16.vlgmr.msra.gmra.mxu2 %vm200_vm4, %v1058_v28 }
0x1df2   :  { %1529 = vmatpush.bf16.msra.mxu2 %v5238_v13 }
0x1df6   :  { %1530 = vmatpush.bf16.msra.mxu2 %v5244_v16 }
0x1e74   :  { %v1071_v30 = vpop.f32.mrf.mxu2 }
0x1e75   :  { %v1075_v31 = vadd.f32 %v1071_v30, %v1054_v29 }
0x1e77   :  { %4571 = vtanh.f32 %v1075_v31  ;;  %v4275_v34 = vmul.f32 -1.442695, %v1075_v31 }
0x1e79   :  { %4573 = vpow2.f32 %v4275_v34 }
0x1e7c   :  { %v1073_v32 = vpop.f32.mrf.mxu2 }
0x1e7d   :  { %v4572_v33 = vpop.eup %4571 }
0x1e7e   :  { %1098 = vrot.lane.b32.xlu1 %v4572_v33, %s4986_s1 }
0x1e7f   :  { %v4574_v35 = vpop.eup %4573 }
0x1e80   :  { %v1079_v36 = vadd.f32 1.0, %v4574_v35 }
0x1e82   :  { %4575 = vrcp.f32 %v1079_v36  ;;  %v1091_v42 = vand.u32 2147483648, %v1079_v36  ;;  %vm1085_vm9 = vweird.f32 %v1079_v36  ;;  %v1089_v45 = vand.u32 2147483647, %v1079_v36 }
0x1e84   :  { %v1092_v49 = vor.u32 1.1754944e-38, %v1091_v42  ;;  %vm1090_vm11 = vcmp.eq.f32.partialorder %v1089_v45, 8.507059e+37 }
0x1e88   :  { %v4576_v38 = vpop.eup %4575 }
0x1e89   :  { %v1081_v39 = vmul.f32 %v4576_v38, %v1079_v36  ;;  %vm1086_vm8 = vweird.f32 %v4576_v38 }
0x1e8a   :  { %vm1087_vm10 = vmor %vm1085_vm9, %vm1086_vm8 }
0x1e8b   :  { %v1082_v40 = vsub.f32 1.0, %v1081_v39 }
0x1e8d   :  { %v1083_v14 = vmul.f32 %v4576_v38, %v1082_v40 }
0x1e8f   :  { %v1084_v41 = vadd.f32 %v4576_v38, %v1083_v14 }
0x1e91   :  { %v1088_v46 = vsel %vm1087_vm10, %v4576_v38, %v1084_v41  ;;  %v1186_v41 = vld [vmem:[#allocation2 + $0x1e] sm:$0x3] }
0x1e92   :  { %v1093_v51 = vsel %vm1090_vm11, %v1092_v49, %v1088_v46 }
0x1e93   :  { %v1096_v54 = vmul.f32 %v1093_v51, %v1041_v20 }
0x1ef0   :  { %v1099_v50 = vpop.permute.xlu1 %1098 }
0x1ef1   :  { %v1101_v53 = vmul.f32 %v1099_v50, %v1093_v51 }
0x1ef3   :  { %1103 = vrot.lane.b32.xlu2 %v1101_v53, %s4987_s15 }
0x1f4d   :  { %v1104_v55 = vpop.permute.xlu2 %1103 }
0x1f4e   :  { %v1106_v2 = vadd.f32 %v1104_v55, %v1096_v54 }
0x1f50   :  { %4577 = vtanh.f32 %v1106_v2 }
0x1f56   :  { %v4578_v3 = vpop.eup %4577 }
0x1f57   :  { %1109 = vrot.lane.b32.xlu0 %v4578_v3, %s4986_s1 }
0x1fc9   :  { %v1110_v56 = vpop.permute.xlu0 %1109 }
0x1fca   :  { %v1112_v57 = vmul.f32 %v1110_v56, %v1093_v51 }
0x1fcc   :  { %v5270_v58 = vpack.c.bf16 %v1112_v57, %v1112_v57 }
0x1fce   :  { %v1121_v59 = vunpack.c.l.b16 %v5270_v58 }
0x1fd0   :  { %v1122_v60 = vpack.c.b16 %v1121_v59, %v1121_v59 }
0x1fd2   :  { %1123 = vrot.lane.b32.xlu1 %v1122_v60, %s4987_s15 }
0x2044   :  { %v1124_v61 = vpop.permute.xlu1 %1123 }
0x2045   :  { %4276 = vmatmul.msk.bf16.vlgmr.msra.gmra.mxu3 %vm200_vm4, %v1124_v61 }
0x2046   :  { %1594 = vmatpush.bf16.msra.mxu3 %v5238_v13 }
0x204a   :  { %1595 = vmatpush.bf16.msra.mxu3 %v5244_v16 }
0x20c8   :  { %v1137_v0 = vpop.f32.mrf.mxu3 }
0x20c9   :  { %v1141_v1 = vadd.f32 %v1137_v0, %v1120_v62 }
0x20cb   :  { %4579 = vtanh.f32 %v1141_v1  ;;  %v4277_v7 = vmul.f32 -1.442695, %v1141_v1 }
0x20cd   :  { %4581 = vpow2.f32 %v4277_v7 }
0x20d0   :  { %v1139_v4 = vpop.f32.mrf.mxu3 }
0x20d1   :  { %v4580_v5 = vpop.eup %4579 }
0x20d2   :  { %1164 = vrot.lane.b32.xlu2 %v4580_v5, %s4986_s1 }
0x20d3   :  { %v4582_v9 = vpop.eup %4581 }
0x20d4   :  { %v1145_v10 = vadd.f32 1.0, %v4582_v9 }
0x20d6   :  { %4583 = vrcp.f32 %v1145_v10  ;;  %v1157_v22 = vand.u32 2147483648, %v1145_v10  ;;  %vm1151_vm13 = vweird.f32 %v1145_v10  ;;  %v1155_v23 = vand.u32 2147483647, %v1145_v10 }
0x20d8   :  { %v1158_v27 = vor.u32 1.1754944e-38, %v1157_v22  ;;  %vm1156_vm15 = vcmp.eq.f32.partialorder %v1155_v23, 8.507059e+37  ;;  %v5300_v23 = vld [vmem:[%s5853_s3] ss:$0 sm:$0xff] }
0x20dc   :  { %v4584_v11 = vpop.eup %4583 }
0x20dd   :  { %v1147_v17 = vmul.f32 %v4584_v11, %v1145_v10  ;;  %vm1152_vm12 = vweird.f32 %v4584_v11  ;;  %v4432_v10 = vld [vmem:[%s5850_s0 + $0x10] sm:$0xff] }
0x20de   :  { %vm1153_vm14 = vmor %vm1151_vm13, %vm1152_vm12  ;;  %164 = vmatmul.bf16.gmra.mxu0 %v4432_v10 }
0x20df   :  { %v1148_v18 = vsub.f32 1.0, %v1147_v17 }
0x20e1   :  { %v1149_v20 = vmul.f32 %v4584_v11, %v1148_v18 }
0x20e3   :  { %v1150_v21 = vadd.f32 %v4584_v11, %v1149_v20 }
0x20e5   :  { %v1154_v25 = vsel %vm1153_vm14, %v4584_v11, %v1150_v21 }
0x20e6   :  { %v1159_v29 = vsel %vm1156_vm15, %v1158_v27, %v1154_v25 }
0x20e7   :  { %v1162_v31 = vmul.f32 %v1159_v29, %v1106_v2 }
0x212c   :  { %v1165_v28 = vpop.permute.xlu2 %1164 }
0x212d   :  { %v1167_v30 = vmul.f32 %v1165_v28, %v1159_v29 }
0x212f   :  { %1169 = vrot.lane.b32.xlu0 %v1167_v30, %s4987_s15 }
0x215b   :  { %v165_v22 = vpop.f32.mrf.mxu0 }
0x215c   :  { %v166_v25 = vadd.f32 %v5300_v23, %v165_v22 }
0x215e   :  { %179 = vst [vmem:[#allocation2 + $0x20] sm:$0xff] %v166_v25 }
0x2163   :  { %v167_v27 = vpop.f32.mrf.mxu0 }
0x2164   :  { %v168_v28 = vadd.f32 %v5300_v23, %v167_v27 }
0x2165   :  { %v1252_v30 = vld [vmem:[#allocation2 + $0x20] sm:$0x3] }
0x2166   :  { %180 = vst [vmem:[#allocation2 + $0x28] sm:$0xff] %v168_v28 }
0x21a1   :  { %v1170_v32 = vpop.permute.xlu0 %1169 }
0x21a2   :  { %v1172_v33 = vadd.f32 %v1170_v32, %v1162_v31 }
0x21a4   :  { %4585 = vtanh.f32 %v1172_v33 }
0x21aa   :  { %v4586_v34 = vpop.eup %4585 }
0x21ab   :  { %1175 = vrot.lane.b32.xlu1 %v4586_v34, %s4986_s1 }
0x221d   :  { %v1176_v35 = vpop.permute.xlu1 %1175 }
0x221e   :  { %v1178_v36 = vmul.f32 %v1176_v35, %v1159_v29 }
0x2220   :  { %v5280_v38 = vpack.c.bf16 %v1178_v36, %v1178_v36 }
0x2222   :  { %v1187_v39 = vunpack.c.l.b16 %v5280_v38 }
0x2224   :  { %v1188_v40 = vpack.c.b16 %v1187_v39, %v1187_v39 }
0x2226   :  { %1189 = vrot.lane.b32.xlu2 %v1188_v40, %s4987_s15 }
0x2280   :  { %v1190_v14 = vpop.permute.xlu2 %1189 }
0x2281   :  { %4278 = vmatmul.msk.bf16.vlgmr.msrb.gmra.mxu1 %vm200_vm4, %v1190_v14 }
0x2282   :  { %1726 = vmatpush.bf16.msrb.mxu1 %v5238_v13 }
0x2286   :  { %1727 = vmatpush.bf16.msrb.mxu1 %v5244_v16 }
0x22fe   :  { %v1203_v42 = vpop.f32.mrf.mxu1 }
0x22ff   :  { %v1207_v45 = vadd.f32 %v1203_v42, %v1186_v41 }
0x2301   :  { %4587 = vtanh.f32 %v1207_v45  ;;  %v4279_v50 = vmul.f32 -1.442695, %v1207_v45 }
0x2303   :  { %4589 = vpow2.f32 %v4279_v50 }
0x2306   :  { %v1205_v46 = vpop.f32.mrf.mxu1 }
0x2307   :  { %v4588_v49 = vpop.eup %4587 }
0x2308   :  { %1230 = vrot.lane.b32.xlu0 %v4588_v49, %s4986_s1 }
0x2309   :  { %v4590_v51 = vpop.eup %4589 }
0x230a   :  { %v1211_v53 = vadd.f32 1.0, %v4590_v51 }
0x230c   :  { %4591 = vrcp.f32 %v1211_v53  ;;  %v1223_v57 = vand.u32 2147483648, %v1211_v53  ;;  %vm1217_vm1 = vweird.f32 %v1211_v53  ;;  %v1221_v59 = vand.u32 2147483647, %v1211_v53 }
0x230e   :  { %v1224_v61 = vor.u32 1.1754944e-38, %v1223_v57  ;;  %vm1222_vm3 = vcmp.eq.f32.partialorder %v1221_v59, 8.507059e+37 }
0x2312   :  { %v4592_v54 = vpop.eup %4591 }
0x2313   :  { %v1213_v55 = vmul.f32 %v4592_v54, %v1211_v53  ;;  %vm1218_vm0 = vweird.f32 %v4592_v54 }
0x2314   :  { %vm1219_vm2 = vmor %vm1217_vm1, %vm1218_vm0 }
0x2315   :  { %v1214_v2 = vsub.f32 1.0, %v1213_v55 }
0x2317   :  { %v1215_v3 = vmul.f32 %v4592_v54, %v1214_v2 }
0x2319   :  { %v1216_v56 = vadd.f32 %v4592_v54, %v1215_v3 }
0x231b   :  { %v1220_v60 = vsel %vm1219_vm2, %v4592_v54, %v1216_v56 }
0x231c   :  { %v1225_v0 = vsel %vm1222_vm3, %v1224_v61, %v1220_v60 }
0x231d   :  { %v1228_v4 = vmul.f32 %v1225_v0, %v1172_v33 }
0x237a   :  { %v1231_v62 = vpop.permute.xlu0 %1230 }
0x237b   :  { %v1233_v1 = vmul.f32 %v1231_v62, %v1225_v0 }
0x237d   :  { %1235 = vrot.lane.b32.xlu1 %v1233_v1, %s4987_s15 }
0x23ef   :  { %v1236_v5 = vpop.permute.xlu1 %1235 }
0x23f0   :  { %v1238_v7 = vadd.f32 %v1236_v5, %v1228_v4  ;;  %v1317_v4 = vld [vmem:[#allocation2 + $0x22] sm:$0x3] }
0x23f2   :  { %4593 = vtanh.f32 %v1238_v7 }
0x23f8   :  { %v4594_v9 = vpop.eup %4593 }
0x23f9   :  { %1241 = vrot.lane.b32.xlu2 %v4594_v9, %s4986_s1 }
0x2453   :  { %v1242_v11 = vpop.permute.xlu2 %1241 }
0x2454   :  { %v1244_v17 = vmul.f32 %v1242_v11, %v1225_v0 }
0x2456   :  { %v5293_v18 = vpack.c.bf16 %v1244_v17, %v1244_v17 }
0x2458   :  { %v1253_v20 = vunpack.c.l.b16 %v5293_v18 }
0x245a   :  { %v1254_v21 = vpack.c.b16 %v1253_v20, %v1253_v20 }
0x245c   :  { %1255 = vrot.lane.b32.xlu0 %v1254_v21, %s4987_s15 }
0x24ce   :  { %v1256_v29 = vpop.permute.xlu0 %1255 }
0x24cf   :  { %4280 = vmatmul.msk.bf16.vlgmr.msrb.gmra.mxu2 %vm200_vm4, %v1256_v29 }
0x24d0   :  { %1792 = vmatpush.bf16.msrb.mxu2 %v5238_v13 }
0x24d4   :  { %1793 = vmatpush.bf16.msrb.mxu2 %v5244_v16 }
0x2552   :  { %v1269_v31 = vpop.f32.mrf.mxu2 }
0x2553   :  { %v1273_v32 = vadd.f32 %v1269_v31, %v1252_v30 }
0x2555   :  { %4595 = vtanh.f32 %v1273_v32  ;;  %v4281_v35 = vmul.f32 -1.442695, %v1273_v32 }
0x2557   :  { %4597 = vpow2.f32 %v4281_v35 }
0x255a   :  { %v1271_v33 = vpop.f32.mrf.mxu2 }
0x255b   :  { %v4596_v34 = vpop.eup %4595 }
0x255c   :  { %1296 = vrot.lane.b32.xlu1 %v4596_v34, %s4986_s1 }
0x255d   :  { %v4598_v36 = vpop.eup %4597 }
0x255e   :  { %v1277_v39 = vadd.f32 1.0, %v4598_v36 }
0x2560   :  { %4599 = vrcp.f32 %v1277_v39  ;;  %v1289_v46 = vand.u32 2147483648, %v1277_v39  ;;  %vm1283_vm6 = vweird.f32 %v1277_v39  ;;  %v1287_v49 = vand.u32 2147483647, %v1277_v39 }
0x2562   :  { %v1290_v51 = vor.u32 1.1754944e-38, %v1289_v46  ;;  %vm1288_vm8 = vcmp.eq.f32.partialorder %v1287_v49, 8.507059e+37 }
0x2566   :  { %v4600_v40 = vpop.eup %4599 }
0x2567   :  { %v1279_v14 = vmul.f32 %v4600_v40, %v1277_v39  ;;  %vm1284_vm5 = vweird.f32 %v4600_v40 }
0x2568   :  { %vm1285_vm7 = vmor %vm1283_vm6, %vm1284_vm5 }
0x2569   :  { %v1280_v41 = vsub.f32 1.0, %v1279_v14 }
0x256b   :  { %v1281_v42 = vmul.f32 %v4600_v40, %v1280_v41  ;;  %v4207_v41 = vld [vmem:[%s5850_s0 + $0x18] sm:$0xf] }
0x256d   :  { %v1282_v45 = vadd.f32 %v4600_v40, %v1281_v42  ;;  %v4433_v42 = vld [vmem:[%s5850_s0 + $0x18] sm:$0x30] }
0x256f   :  { %v1286_v50 = vsel %vm1285_vm7, %v4600_v40, %v1282_v45  ;;  %v4208_v45 = vor.u32 %v4433_v42, %v4207_v41 }
0x2570   :  { %v1291_v54 = vsel %vm1288_vm8, %v1290_v51, %v1286_v50 }
0x2571   :  { %v1294_v2 = vmul.f32 %v1291_v54, %v1238_v7  ;;  %169 = vmatmul.bf16.gmra.mxu0 %v4208_v45 }
0x25ce   :  { %v1297_v53 = vpop.permute.xlu1 %1296 }
0x25cf   :  { %v1299_v55 = vmul.f32 %v1297_v53, %v1291_v54 }
0x25d1   :  { %1301 = vrot.lane.b32.xlu2 %v1299_v55, %s4987_s15 }
0x25ee   :  { %v170_v55 = vpop.f32.mrf.mxu0 }
0x262b   :  { %v1302_v3 = vpop.permute.xlu2 %1301 }
0x262c   :  { %v1304_v56 = vadd.f32 %v1302_v3, %v1294_v2  ;;  %v171_v2 = vadd.f32 %v5300_v23, %v170_v55  ;;  %v172_v3 = vpop.f32.mrf.mxu0 }
0x262e   :  { %4601 = vtanh.f32 %v1304_v56  ;;  %181 = vst [vmem:[#allocation2 + $0x30] sm:$0xff] %v171_v2 }
0x2634   :  { %v4602_v57 = vpop.eup %4601 }
0x2635   :  { %1307 = vrot.lane.b32.xlu0 %v4602_v57, %s4986_s1  ;;  %v1383_v57 = vld [vmem:[#allocation2 + $0x24] sm:$0x3] }
0x26a7   :  { %v1308_v59 = vpop.permute.xlu0 %1307 }
0x26a8   :  { %v1310_v60 = vmul.f32 %v1308_v59, %v1291_v54 }
0x26aa   :  { %v5310_v61 = vpack.c.bf16 %v1310_v60, %v1310_v60 }
0x26ac   :  { %v1318_v62 = vunpack.c.l.b16 %v5310_v61 }
0x26ae   :  { %v1319_v0 = vpack.c.b16 %v1318_v62, %v1318_v62 }
0x26b0   :  { %1320 = vrot.lane.b32.xlu1 %v1319_v0, %s4987_s15 }
0x2722   :  { %v1321_v1 = vpop.permute.xlu1 %1320 }
0x2723   :  { %4282 = vmatmul.msk.bf16.vlgmr.msrb.gmra.mxu3 %vm200_vm4, %v1321_v1 }
0x2724   :  { %1857 = vmatpush.bf16.msrb.mxu3 %v5238_v13 }
0x2728   :  { %1858 = vmatpush.bf16.msrb.mxu3 %v5244_v16 }
0x27a6   :  { %v1334_v5 = vpop.f32.mrf.mxu3 }
0x27a7   :  { %v1338_v7 = vadd.f32 %v1334_v5, %v1317_v4 }
0x27a9   :  { %4603 = vtanh.f32 %v1338_v7  ;;  %v4283_v11 = vmul.f32 -1.442695, %v1338_v7 }
0x27ab   :  { %4605 = vpow2.f32 %v4283_v11 }
0x27ae   :  { %v1336_v9 = vpop.f32.mrf.mxu3 }
0x27af   :  { %v4604_v10 = vpop.eup %4603 }
0x27b0   :  { %1361 = vrot.lane.b32.xlu2 %v4604_v10, %s4986_s1 }
0x27b1   :  { %v4606_v17 = vpop.eup %4605 }
0x27b2   :  { %v1342_v20 = vadd.f32 1.0, %v4606_v17 }
0x27b4   :  { %4607 = vrcp.f32 %v1342_v20  ;;  %v1354_v29 = vand.u32 2147483648, %v1342_v20  ;;  %vm1348_vm10 = vweird.f32 %v1342_v20  ;;  %v1352_v30 = vand.u32 2147483647, %v1342_v20 }
0x27b6   :  { %v1355_v32 = vor.u32 1.1754944e-38, %v1354_v29  ;;  %vm1353_vm12 = vcmp.eq.f32.partialorder %v1352_v30, 8.507059e+37 }
0x27ba   :  { %v4608_v21 = vpop.eup %4607 }
0x27bb   :  { %v1344_v22 = vmul.f32 %v4608_v21, %v1342_v20  ;;  %vm1349_vm9 = vweird.f32 %v4608_v21 }
0x27bc   :  { %vm1350_vm11 = vmor %vm1348_vm10, %vm1349_vm9 }
0x27bd   :  { %v1345_v25 = vsub.f32 1.0, %v1344_v22 }
0x27bf   :  { %v1346_v27 = vmul.f32 %v4608_v21, %v1345_v25 }
0x27c1   :  { %v1347_v28 = vadd.f32 %v4608_v21, %v1346_v27 }
0x27c3   :  { %v1351_v31 = vsel %vm1350_vm11, %v4608_v21, %v1347_v28 }
0x27c4   :  { %v1356_v34 = vsel %vm1353_vm12, %v1355_v32, %v1351_v31 }
0x27c5   :  { %v1359_v36 = vmul.f32 %v1356_v34, %v1304_v56  ;;  %v173_v56 = vadd.f32 %v5300_v23, %v172_v3 }
0x27c7   :  { %182 = vst [vmem:[#allocation2 + $0x38] sm:$0xf] %v173_v56 }
0x280a   :  { %v1362_v33 = vpop.permute.xlu2 %1361 }
0x280b   :  { %v1364_v35 = vmul.f32 %v1362_v33, %v1356_v34 }
0x280d   :  { %1366 = vrot.lane.b32.xlu0 %v1364_v35, %s4987_s15 }
0x287f   :  { %v1367_v39 = vpop.permute.xlu0 %1366 }
0x2880   :  { %v1369_v40 = vadd.f32 %v1367_v39, %v1359_v36 }
0x2882   :  { %4609 = vtanh.f32 %v1369_v40 }
0x2888   :  { %v4610_v14 = vpop.eup %4609 }
0x2889   :  { %1372 = vrot.lane.b32.xlu1 %v4610_v14, %s4986_s1 }
0x28fb   :  { %v1373_v46 = vpop.permute.xlu1 %1372 }
0x28fc   :  { %v1375_v49 = vmul.f32 %v1373_v46, %v1356_v34 }
0x28fe   :  { %v5326_v50 = vpack.c.bf16 %v1375_v49, %v1375_v49 }
0x2900   :  { %v1384_v51 = vunpack.c.l.b16 %v5326_v50 }
0x2902   :  { %v1385_v53 = vpack.c.b16 %v1384_v51, %v1384_v51 }
0x2904   :  { %1386 = vrot.lane.b32.xlu2 %v1385_v53, %s4987_s15 }
0x295e   :  { %v1387_v54 = vpop.permute.xlu2 %1386 }
0x295f   :  { %4284 = vmatmul.msk.bf16.vlgmr.msrb.gmra.mxu0 %vm200_vm4, %v1387_v54 }
0x2960   :  { %1923 = vmatpush.bf16.msrb.mxu0 %v5238_v13 }
0x2964   :  { %1924 = vmatpush.bf16.msrb.mxu0 %v5244_v16 }
0x29dc   :  { %v1400_v59 = vpop.f32.mrf.mxu0 }
0x29dd   :  { %v1404_v60 = vadd.f32 %v1400_v59, %v1383_v57 }
0x29df   :  { %4611 = vtanh.f32 %v1404_v60  ;;  %v4285_v1 = vmul.f32 -1.442695, %v1404_v60 }
0x29e1   :  { %4613 = vpow2.f32 %v4285_v1 }
0x29e4   :  { %v1402_v62 = vpop.f32.mrf.mxu0 }
0x29e5   :  { %v4612_v0 = vpop.eup %4611 }
0x29e6   :  { %1427 = vrot.lane.b32.xlu0 %v4612_v0, %s4986_s1 }
0x29e7   :  { %v4614_v4 = vpop.eup %4613 }
0x29e8   :  { %v1408_v5 = vadd.f32 1.0, %v4614_v4 }
0x29ea   :  { %4615 = vrcp.f32 %v1408_v5  ;;  %v1420_v23 = vand.u32 2147483648, %v1408_v5  ;;  %vm1414_vm14 = vweird.f32 %v1408_v5  ;;  %v1418_v20 = vand.u32 2147483647, %v1408_v5 }
0x29ec   :  { %v1421_v22 = vor.u32 1.1754944e-38, %v1420_v23  ;;  %vm1419_vm0 = vcmp.eq.f32.partialorder %v1418_v20, 8.507059e+37 }
0x29f0   :  { %v4616_v7 = vpop.eup %4615 }
0x29f1   :  { %v1410_v9 = vmul.f32 %v4616_v7, %v1408_v5  ;;  %vm1415_vm13 = vweird.f32 %v4616_v7 }
0x29f2   :  { %vm1416_vm15 = vmor %vm1414_vm14, %vm1415_vm13 }
0x29f3   :  { %v1411_v10 = vsub.f32 1.0, %v1410_v9 }
0x29f5   :  { %v1412_v11 = vmul.f32 %v4616_v7, %v1411_v10 }
0x29f7   :  { %v1413_v17 = vadd.f32 %v4616_v7, %v1412_v11 }
0x29f9   :  { %v1417_v21 = vsel %vm1416_vm15, %v4616_v7, %v1413_v17 }
0x29fa   :  { %v1422_v27 = vsel %vm1419_vm0, %v1421_v22, %v1417_v21 }
0x29fb   :  { %v1425_v29 = vmul.f32 %v1422_v27, %v1369_v40  ;;  %v1449_v40 = vld [vmem:[#allocation2 + $0x26] sm:$0x3] }
0x2a58   :  { %v1428_v25 = vpop.permute.xlu0 %1427 }
0x2a59   :  { %v1430_v28 = vmul.f32 %v1428_v25, %v1422_v27  ;;  %v1515_v25 = vld [vmem:[#allocation2 + $0x28] sm:$0x3] }
0x2a5b   :  { %1432 = vrot.lane.b32.xlu1 %v1430_v28, %s4987_s15 }
0x2acd   :  { %v1433_v30 = vpop.permute.xlu1 %1432 }
0x2ace   :  { %v1435_v31 = vadd.f32 %v1433_v30, %v1425_v29 }
0x2ad0   :  { %4617 = vtanh.f32 %v1435_v31 }
0x2ad6   :  { %v4618_v32 = vpop.eup %4617 }
0x2ad7   :  { %1438 = vrot.lane.b32.xlu2 %v4618_v32, %s4986_s1 }
0x2b31   :  { %v1439_v33 = vpop.permute.xlu2 %1438 }
0x2b32   :  { %v1441_v34 = vmul.f32 %v1439_v33, %v1422_v27 }
0x2b34   :  { %v5338_v35 = vpack.c.bf16 %v1441_v34, %v1441_v34 }
0x2b36   :  { %v1450_v36 = vunpack.c.l.b16 %v5338_v35 }
0x2b38   :  { %v1451_v39 = vpack.c.b16 %v1450_v36, %v1450_v36 }
0x2b3a   :  { %1452 = vrot.lane.b32.xlu0 %v1451_v39, %s4987_s15 }
0x2bac   :  { %v1453_v14 = vpop.permute.xlu0 %1452 }
0x2bad   :  { %4286 = vmatmul.msk.bf16.vlgmr.msra.gmra.mxu1 %vm200_vm4, %v1453_v14 }
0x2bae   :  { %1989 = vmatpush.bf16.msra.mxu1 %v5238_v13 }
0x2bb2   :  { %1990 = vmatpush.bf16.msra.mxu1 %v5244_v16 }
0x2c2a   :  { %v1466_v41 = vpop.f32.mrf.mxu1 }
0x2c2b   :  { %v1470_v42 = vadd.f32 %v1466_v41, %v1449_v40 }
0x2c2d   :  { %4619 = vtanh.f32 %v1470_v42  ;;  %v4287_v49 = vmul.f32 -1.442695, %v1470_v42 }
0x2c2f   :  { %4621 = vpow2.f32 %v4287_v49 }
0x2c32   :  { %v1468_v45 = vpop.f32.mrf.mxu1 }
0x2c33   :  { %v4620_v46 = vpop.eup %4619 }
0x2c34   :  { %1493 = vrot.lane.b32.xlu1 %v4620_v46, %s4986_s1 }
0x2c35   :  { %v4622_v51 = vpop.eup %4621 }
0x2c36   :  { %v1474_v53 = vadd.f32 1.0, %v4622_v51 }
0x2c38   :  { %4623 = vrcp.f32 %v1474_v53  ;;  %v1486_v57 = vand.u32 2147483648, %v1474_v53  ;;  %vm1480_vm2 = vweird.f32 %v1474_v53  ;;  %v1484_v59 = vand.u32 2147483647, %v1474_v53 }
0x2c3a   :  { %v1487_v62 = vor.u32 1.1754944e-38, %v1486_v57  ;;  %vm1485_vm5 = vcmp.eq.f32.partialorder %v1484_v59, 8.507059e+37 }
0x2c3e   :  { %v4624_v54 = vpop.eup %4623 }
0x2c3f   :  { %v1476_v55 = vmul.f32 %v4624_v54, %v1474_v53  ;;  %vm1481_vm1 = vweird.f32 %v4624_v54 }
0x2c40   :  { %vm1482_vm3 = vmor %vm1480_vm2, %vm1481_vm1 }
0x2c41   :  { %v1477_v2 = vsub.f32 1.0, %v1476_v55 }
0x2c43   :  { %v1478_v3 = vmul.f32 %v4624_v54, %v1477_v2 }
0x2c45   :  { %v1479_v56 = vadd.f32 %v4624_v54, %v1478_v3 }
0x2c47   :  { %v1483_v60 = vsel %vm1482_vm3, %v4624_v54, %v1479_v56 }
0x2c48   :  { %v1488_v1 = vsel %vm1485_vm5, %v1487_v62, %v1483_v60 }
0x2c49   :  { %v1491_v5 = vmul.f32 %v1488_v1, %v1435_v31 }
0x2ca6   :  { %v1494_v0 = vpop.permute.xlu1 %1493 }
0x2ca7   :  { %v1496_v4 = vmul.f32 %v1494_v0, %v1488_v1 }
0x2ca9   :  { %1498 = vrot.lane.b32.xlu2 %v1496_v4, %s4987_s15 }
0x2d03   :  { %v1499_v7 = vpop.permute.xlu2 %1498 }
0x2d04   :  { %v1501_v9 = vadd.f32 %v1499_v7, %v1491_v5 }
0x2d06   :  { %4625 = vtanh.f32 %v1501_v9 }
0x2d0c   :  { %v4626_v10 = vpop.eup %4625 }
0x2d0d   :  { %1504 = vrot.lane.b32.xlu0 %v4626_v10, %s4986_s1 }
0x2d7f   :  { %v1505_v11 = vpop.permute.xlu0 %1504 }
0x2d80   :  { %v1507_v17 = vmul.f32 %v1505_v11, %v1488_v1  ;;  %v1580_v1 = vld [vmem:[#allocation2 + $0x2a] sm:$0x3] }
0x2d82   :  { %v5348_v23 = vpack.c.bf16 %v1507_v17, %v1507_v17 }
0x2d84   :  { %v1516_v20 = vunpack.c.l.b16 %v5348_v23 }
0x2d86   :  { %v1517_v21 = vpack.c.b16 %v1516_v20, %v1516_v20 }
0x2d88   :  { %1518 = vrot.lane.b32.xlu1 %v1517_v21, %s4987_s15 }
0x2dfa   :  { %v1519_v22 = vpop.permute.xlu1 %1518 }
0x2dfb   :  { %4288 = vmatmul.msk.bf16.vlgmr.msra.gmra.mxu2 %vm200_vm4, %v1519_v22 }
0x2dfc   :  { %2055 = vmatpush.bf16.msra.mxu2 %v5238_v13 }
0x2e00   :  { %2056 = vmatpush.bf16.msra.mxu2 %v5244_v16 }
0x2e7e   :  { %v1532_v27 = vpop.f32.mrf.mxu2 }
0x2e7f   :  { %v1536_v28 = vadd.f32 %v1532_v27, %v1515_v25 }
0x2e81   :  { %4627 = vtanh.f32 %v1536_v28  ;;  %v4289_v31 = vmul.f32 -1.442695, %v1536_v28 }
0x2e83   :  { %4629 = vpow2.f32 %v4289_v31 }
0x2e86   :  { %v1534_v29 = vpop.f32.mrf.mxu2 }
0x2e87   :  { %v4628_v30 = vpop.eup %4627 }
0x2e88   :  { %1559 = vrot.lane.b32.xlu2 %v4628_v30, %s4986_s1 }
0x2e89   :  { %v4630_v32 = vpop.eup %4629 }
0x2e8a   :  { %v1540_v33 = vadd.f32 1.0, %v4630_v32 }
0x2e8c   :  { %4631 = vrcp.f32 %v1540_v33  ;;  %v1552_v41 = vand.u32 2147483648, %v1540_v33  ;;  %vm1546_vm7 = vweird.f32 %v1540_v33  ;;  %v1550_v42 = vand.u32 2147483647, %v1540_v33 }
0x2e8e   :  { %v1553_v46 = vor.u32 1.1754944e-38, %v1552_v41  ;;  %vm1551_vm9 = vcmp.eq.f32.partialorder %v1550_v42, 8.507059e+37 }
0x2e92   :  { %v4632_v34 = vpop.eup %4631 }
0x2e93   :  { %v1542_v36 = vmul.f32 %v4632_v34, %v1540_v33  ;;  %vm1547_vm6 = vweird.f32 %v4632_v34 }
0x2e94   :  { %vm1548_vm8 = vmor %vm1546_vm7, %vm1547_vm6 }
0x2e95   :  { %v1543_v39 = vsub.f32 1.0, %v1542_v36 }
0x2e97   :  { %v1544_v14 = vmul.f32 %v4632_v34, %v1543_v39 }
0x2e99   :  { %v1545_v40 = vadd.f32 %v4632_v34, %v1544_v14 }
0x2e9b   :  { %v1549_v45 = vsel %vm1548_vm8, %v4632_v34, %v1545_v40 }
0x2e9c   :  { %v1554_v51 = vsel %vm1551_vm9, %v1553_v46, %v1549_v45 }
0x2e9d   :  { %v1557_v54 = vmul.f32 %v1554_v51, %v1501_v9 }
0x2ee2   :  { %v1560_v49 = vpop.permute.xlu2 %1559 }
0x2ee3   :  { %v1562_v53 = vmul.f32 %v1560_v49, %v1554_v51  ;;  %v1646_v49 = vld [vmem:[#allocation2 + $0x2c] sm:$0x3] }
0x2ee5   :  { %1564 = vrot.lane.b32.xlu0 %v1562_v53, %s4987_s15 }
0x2f57   :  { %v1565_v55 = vpop.permute.xlu0 %1564 }
0x2f58   :  { %v1567_v2 = vadd.f32 %v1565_v55, %v1557_v54 }
0x2f5a   :  { %4633 = vtanh.f32 %v1567_v2 }
0x2f60   :  { %v4634_v3 = vpop.eup %4633 }
0x2f61   :  { %1570 = vrot.lane.b32.xlu1 %v4634_v3, %s4986_s1 }
0x2fd3   :  { %v1571_v56 = vpop.permute.xlu1 %1570 }
0x2fd4   :  { %v1573_v57 = vmul.f32 %v1571_v56, %v1554_v51 }
0x2fd6   :  { %v5358_v59 = vpack.c.bf16 %v1573_v57, %v1573_v57 }
0x2fd8   :  { %v1581_v60 = vunpack.c.l.b16 %v5358_v59 }
0x2fda   :  { %v1582_v62 = vpack.c.b16 %v1581_v60, %v1581_v60 }
0x2fdc   :  { %1583 = vrot.lane.b32.xlu2 %v1582_v62, %s4987_s15 }
0x3036   :  { %v1584_v0 = vpop.permute.xlu2 %1583 }
0x3037   :  { %4290 = vmatmul.msk.bf16.vlgmr.msra.gmra.mxu3 %vm200_vm4, %v1584_v0 }
0x3038   :  { %2120 = vmatpush.bf16.msra.mxu3 %v5238_v13 }
0x303c   :  { %2121 = vmatpush.bf16.msra.mxu3 %v5244_v16 }
0x30ba   :  { %v1597_v4 = vpop.f32.mrf.mxu3 }
0x30bb   :  { %v1601_v5 = vadd.f32 %v1597_v4, %v1580_v1 }
0x30bd   :  { %4635 = vtanh.f32 %v1601_v5  ;;  %v4291_v10 = vmul.f32 -1.442695, %v1601_v5 }
0x30bf   :  { %4637 = vpow2.f32 %v4291_v10 }
0x30c2   :  { %v1599_v7 = vpop.f32.mrf.mxu3 }
0x30c3   :  { %v4636_v9 = vpop.eup %4635 }
0x30c4   :  { %1624 = vrot.lane.b32.xlu0 %v4636_v9, %s4986_s1 }
0x30c5   :  { %v4638_v11 = vpop.eup %4637 }
0x30c6   :  { %v1605_v17 = vadd.f32 1.0, %v4638_v11 }
0x30c8   :  { %4639 = vrcp.f32 %v1605_v17  ;;  %v1617_v16 = vand.u32 2147483648, %v1605_v17  ;;  %vm1611_vm11 = vweird.f32 %v1605_v17  ;;  %v1615_v27 = vand.u32 2147483647, %v1605_v17 }
0x30ca   :  { %v1618_v29 = vor.u32 1.1754944e-38, %v1617_v16  ;;  %vm1616_vm13 = vcmp.eq.f32.partialorder %v1615_v27, 8.507059e+37 }
0x30ce   :  { %v4640_v20 = vpop.eup %4639 }
0x30cf   :  { %v1607_v21 = vmul.f32 %v4640_v20, %v1605_v17  ;;  %vm1612_vm10 = vweird.f32 %v4640_v20 }
0x30d0   :  { %vm1613_vm12 = vmor %vm1611_vm11, %vm1612_vm10 }
0x30d1   :  { %v1608_v22 = vsub.f32 1.0, %v1607_v21 }
0x30d3   :  { %v1609_v25 = vmul.f32 %v4640_v20, %v1608_v22 }
0x30d5   :  { %v1610_v13 = vadd.f32 %v4640_v20, %v1609_v25 }
0x30d7   :  { %v1614_v28 = vsel %vm1613_vm12, %v4640_v20, %v1610_v13 }
0x30d8   :  { %v1619_v31 = vsel %vm1616_vm13, %v1618_v29, %v1614_v28 }
0x30d9   :  { %v1622_v33 = vmul.f32 %v1619_v31, %v1567_v2 }
0x3136   :  { %v1625_v30 = vpop.permute.xlu0 %1624 }
0x3137   :  { %v1627_v32 = vmul.f32 %v1625_v30, %v1619_v31 }
0x3139   :  { %1629 = vrot.lane.b32.xlu1 %v1627_v32, %s4987_s15 }
0x31ab   :  { %v1630_v34 = vpop.permute.xlu1 %1629 }
0x31ac   :  { %v1632_v36 = vadd.f32 %v1630_v34, %v1622_v33 }
0x31ae   :  { %4641 = vtanh.f32 %v1632_v36 }
0x31b4   :  { %v4642_v39 = vpop.eup %4641 }
0x31b5   :  { %1635 = vrot.lane.b32.xlu2 %v4642_v39, %s4986_s1 }
0x320f   :  { %v1636_v14 = vpop.permute.xlu2 %1635 }
0x3210   :  { %v1638_v40 = vmul.f32 %v1636_v14, %v1619_v31  ;;  %v1712_v31 = vld [vmem:[#allocation2 + $0x2e] sm:$0x3] }
0x3212   :  { %v5368_v41 = vpack.c.bf16 %v1638_v40, %v1638_v40 }
0x3214   :  { %v1647_v42 = vunpack.c.l.b16 %v5368_v41 }
0x3216   :  { %v1648_v45 = vpack.c.b16 %v1647_v42, %v1647_v42 }
0x3218   :  { %1649 = vrot.lane.b32.xlu0 %v1648_v45, %s4987_s15 }
0x328a   :  { %v1650_v46 = vpop.permute.xlu0 %1649 }
0x328b   :  { %4292 = vmatmul.msk.bf16.vlgmr.msra.gmra.mxu0 %vm200_vm4, %v1650_v46 }
0x3308   :  { %v1663_v51 = vpop.f32.mrf.mxu0 }
0x3309   :  { %v1667_v53 = vadd.f32 %v1663_v51, %v1646_v49 }
0x330b   :  { %4643 = vtanh.f32 %v1667_v53  ;;  %v4293_v2 = vmul.f32 -1.442695, %v1667_v53 }
0x330d   :  { %4645 = vpow2.f32 %v4293_v2 }
0x3310   :  { %v1665_v54 = vpop.f32.mrf.mxu0 }
0x3311   :  { %v4644_v55 = vpop.eup %4643 }
0x3312   :  { %1690 = vrot.lane.b32.xlu1 %v4644_v55, %s4986_s1 }
0x3313   :  { %v4646_v3 = vpop.eup %4645 }
0x3314   :  { %v1671_v56 = vadd.f32 1.0, %v4646_v3 }
0x3316   :  { %4647 = vrcp.f32 %v1671_v56  ;;  %v1683_v4 = vand.u32 2147483648, %v1671_v56  ;;  %vm1677_vm15 = vweird.f32 %v1671_v56  ;;  %v1681_v5 = vand.u32 2147483647, %v1671_v56 }
0x3318   :  { %v1684_v9 = vor.u32 1.1754944e-38, %v1683_v4  ;;  %vm1682_vm1 = vcmp.eq.f32.partialorder %v1681_v5, 8.507059e+37 }
0x331c   :  { %v4648_v57 = vpop.eup %4647 }
0x331d   :  { %v1673_v60 = vmul.f32 %v4648_v57, %v1671_v56  ;;  %vm1678_vm14 = vweird.f32 %v4648_v57 }
0x331e   :  { %vm1679_vm0 = vmor %vm1677_vm15, %vm1678_vm14 }
0x331f   :  { %v1674_v62 = vsub.f32 1.0, %v1673_v60 }
0x3321   :  { %v1675_v0 = vmul.f32 %v4648_v57, %v1674_v62 }
0x3323   :  { %v1676_v1 = vadd.f32 %v4648_v57, %v1675_v0 }
0x3325   :  { %v1680_v7 = vsel %vm1679_vm0, %v4648_v57, %v1676_v1 }
0x3326   :  { %v1685_v11 = vsel %vm1682_vm1, %v1684_v9, %v1680_v7 }
0x3327   :  { %v1688_v20 = vmul.f32 %v1685_v11, %v1632_v36 }
0x3384   :  { %v1691_v10 = vpop.permute.xlu1 %1690 }
0x3385   :  { %v1693_v17 = vmul.f32 %v1691_v10, %v1685_v11 }
0x3387   :  { %1695 = vrot.lane.b32.xlu2 %v1693_v17, %s4987_s15  ;;  %v1778_v17 = vld [vmem:[#allocation2 + $0x30] sm:$0x3] }
0x33e1   :  { %v1696_v21 = vpop.permute.xlu2 %1695 }
0x33e2   :  { %v1698_v22 = vadd.f32 %v1696_v21, %v1688_v20 }
0x33e4   :  { %4649 = vtanh.f32 %v1698_v22 }
0x33ea   :  { %v4650_v25 = vpop.eup %4649 }
0x33eb   :  { %1701 = vrot.lane.b32.xlu0 %v4650_v25, %s4986_s1 }
0x345d   :  { %v1702_v13 = vpop.permute.xlu0 %1701 }
0x345e   :  { %v1704_v16 = vmul.f32 %v1702_v13, %v1685_v11 }
0x3460   :  { %v5376_v27 = vpack.c.bf16 %v1704_v16, %v1704_v16 }
0x3462   :  { %v1713_v28 = vunpack.c.l.b16 %v5376_v27 }
0x3464   :  { %v1714_v29 = vpack.c.b16 %v1713_v28, %v1713_v28 }
0x3466   :  { %1715 = vrot.lane.b32.xlu1 %v1714_v29, %s4987_s15 }
0x34d8   :  { %v1716_v30 = vpop.permute.xlu1 %1715 }
0x34d9   :  { %4294 = vmatmul.msk.bf16.vlgmr.msrb.gmra.mxu1 %vm200_vm4, %v1716_v30 }
0x3556   :  { %v1729_v32 = vpop.f32.mrf.mxu1 }
0x3557   :  { %v1733_v33 = vadd.f32 %v1729_v32, %v1712_v31 }
0x3559   :  { %4651 = vtanh.f32 %v1733_v33  ;;  %v4295_v39 = vmul.f32 -1.442695, %v1733_v33 }
0x355b   :  { %4653 = vpow2.f32 %v4295_v39 }
0x355e   :  { %v1731_v34 = vpop.f32.mrf.mxu1 }
0x355f   :  { %v4652_v36 = vpop.eup %4651 }
0x3560   :  { %1756 = vrot.lane.b32.xlu2 %v4652_v36, %s4986_s1 }
0x3561   :  { %v4654_v14 = vpop.eup %4653 }
0x3562   :  { %v1737_v40 = vadd.f32 1.0, %v4654_v14 }
0x3564   :  { %4655 = vrcp.f32 %v1737_v40  ;;  %v1749_v53 = vand.u32 2147483648, %v1737_v40  ;;  %vm1743_vm3 = vweird.f32 %v1737_v40  ;;  %v1747_v54 = vand.u32 2147483647, %v1737_v40 }
0x3566   :  { %v1750_v2 = vor.u32 1.1754944e-38, %v1749_v53  ;;  %vm1748_vm6 = vcmp.eq.f32.partialorder %v1747_v54, 8.507059e+37 }
0x356a   :  { %v4656_v42 = vpop.eup %4655 }
0x356b   :  { %v1739_v45 = vmul.f32 %v4656_v42, %v1737_v40  ;;  %vm1744_vm2 = vweird.f32 %v4656_v42 }
0x356c   :  { %vm1745_vm5 = vmor %vm1743_vm3, %vm1744_vm2  ;;  %vm394_vm3 = vcmask 256002  }
0x356d   :  { %v1740_v46 = vsub.f32 1.0, %v1739_v45 }
0x356f   :  { %v1741_v49 = vmul.f32 %v4656_v42, %v1740_v46 }
0x3571   :  { %v1742_v51 = vadd.f32 %v4656_v42, %v1741_v49 }
0x3573   :  { %v1746_v55 = vsel %vm1745_vm5, %v4656_v42, %v1742_v51  ;;  %vm260_vm5 = vcmask 253952  }
0x3574   :  { %v1751_v56 = vsel %vm1748_vm6, %v1750_v2, %v1746_v55  ;;  %vm461_vm6 = vcmask 257027  }
0x3575   :  { %v1754_v60 = vmul.f32 %v1751_v56, %v1698_v22 }
0x35ba   :  { %v1757_v3 = vpop.permute.xlu2 %1756 }
0x35bb   :  { %v1759_v57 = vmul.f32 %v1757_v3, %v1751_v56 }
0x35bd   :  { %1761 = vrot.lane.b32.xlu0 %v1759_v57, %s4987_s15 }
0x362f   :  { %v1762_v62 = vpop.permute.xlu0 %1761 }
0x3630   :  { %v1764_v0 = vadd.f32 %v1762_v62, %v1754_v60  ;;  %v1843_v60 = vld [vmem:[#allocation2 + $0x32] sm:$0x3] }
0x3632   :  { %4657 = vtanh.f32 %v1764_v0 }
0x3638   :  { %v4658_v1 = vpop.eup %4657 }
0x3639   :  { %1767 = vrot.lane.b32.xlu1 %v4658_v1, %s4986_s1 }
0x36ab   :  { %v1768_v4 = vpop.permute.xlu1 %1767 }
0x36ac   :  { %v1770_v5 = vmul.f32 %v1768_v4, %v1751_v56 }
0x36ae   :  { %v5384_v7 = vpack.c.bf16 %v1770_v5, %v1770_v5 }
0x36b0   :  { %v1779_v9 = vunpack.c.l.b16 %v5384_v7 }
0x36b2   :  { %v1780_v10 = vpack.c.b16 %v1779_v9, %v1779_v9 }
0x36b4   :  { %1781 = vrot.lane.b32.xlu2 %v1780_v10, %s4987_s15 }
0x370e   :  { %v1782_v11 = vpop.permute.xlu2 %1781 }
0x370f   :  { %4296 = vmatmul.msk.bf16.vlgmr.msrb.gmra.mxu2 %vm200_vm4, %v1782_v11 }
0x3792   :  { %v1795_v20 = vpop.f32.mrf.mxu2 }
0x3793   :  { %v1799_v21 = vadd.f32 %v1795_v20, %v1778_v17 }
0x3795   :  { %4659 = vtanh.f32 %v1799_v21  ;;  %v4297_v13 = vmul.f32 -1.442695, %v1799_v21 }
0x3797   :  { %4661 = vpow2.f32 %v4297_v13 }
0x379a   :  { %v1797_v22 = vpop.f32.mrf.mxu2 }
0x379b   :  { %v4660_v25 = vpop.eup %4659 }
0x379c   :  { %1822 = vrot.lane.b32.xlu0 %v4660_v25, %s4986_s1 }
0x379d   :  { %v4662_v16 = vpop.eup %4661 }
0x379e   :  { %v1803_v28 = vadd.f32 1.0, %v4662_v16 }
0x37a0   :  { %4663 = vrcp.f32 %v1803_v28  ;;  %v1815_v34 = vand.u32 2147483648, %v1803_v28  ;;  %vm1809_vm8 = vweird.f32 %v1803_v28  ;;  %v1813_v36 = vand.u32 2147483647, %v1803_v28 }
0x37a2   :  { %v1816_v14 = vor.u32 1.1754944e-38, %v1815_v34  ;;  %vm1814_vm10 = vcmp.eq.f32.partialorder %v1813_v36, 8.507059e+37 }
0x37a6   :  { %v4664_v29 = vpop.eup %4663 }
0x37a7   :  { %v1805_v30 = vmul.f32 %v4664_v29, %v1803_v28  ;;  %vm1810_vm7 = vweird.f32 %v4664_v29 }
0x37a8   :  { %vm1811_vm9 = vmor %vm1809_vm8, %vm1810_vm7  ;;  %vm327_vm7 = vcmask 254977  }
0x37a9   :  { %v1806_v31 = vsub.f32 1.0, %v1805_v30 }
0x37ab   :  { %v1807_v32 = vmul.f32 %v4664_v29, %v1806_v31 }
0x37ad   :  { %v1808_v33 = vadd.f32 %v4664_v29, %v1807_v32 }
0x37af   :  { %v1812_v39 = vsel %vm1811_vm9, %v4664_v29, %v1808_v33 }
0x37b0   :  { %v1817_v42 = vsel %vm1814_vm10, %v1816_v14, %v1812_v39 }
0x37b1   :  { %v1820_v46 = vmul.f32 %v1817_v42, %v1764_v0 }
0x380e   :  { %v1823_v40 = vpop.permute.xlu0 %1822 }
0x380f   :  { %v1825_v45 = vmul.f32 %v1823_v40, %v1817_v42 }
0x3811   :  { %1827 = vrot.lane.b32.xlu1 %v1825_v45, %s4987_s15 }
0x3883   :  { %v1828_v49 = vpop.permute.xlu1 %1827 }
0x3884   :  { %v1830_v51 = vadd.f32 %v1828_v49, %v1820_v46  ;;  %v1909_v49 = vld [vmem:[#allocation2 + $0x34] sm:$0x3] }
0x3886   :  { %4665 = vtanh.f32 %v1830_v51 }
0x388c   :  { %v4666_v53 = vpop.eup %4665 }
0x388d   :  { %1833 = vrot.lane.b32.xlu2 %v4666_v53, %s4986_s1 }
0x38e7   :  { %v1834_v54 = vpop.permute.xlu2 %1833 }
0x38e8   :  { %v1836_v55 = vmul.f32 %v1834_v54, %v1817_v42 }
0x38ea   :  { %v5392_v2 = vpack.c.bf16 %v1836_v55, %v1836_v55 }
0x38ec   :  { %v1844_v3 = vunpack.c.l.b16 %v5392_v2 }
0x38ee   :  { %v1845_v56 = vpack.c.b16 %v1844_v3, %v1844_v3  ;;  %v390_v3 = vrot.slane %v5145_v44, 6 }
0x38f0   :  { %1846 = vrot.lane.b32.xlu0 %v1845_v56, %s4987_s15 }
0x3962   :  { %v1847_v57 = vpop.permute.xlu0 %1846 }
0x3963   :  { %4298 = vmatmul.msk.bf16.vlgmr.msrb.gmra.mxu3 %vm200_vm4, %v1847_v57 }
0x39e6   :  { %v1860_v62 = vpop.f32.mrf.mxu3 }
0x39e7   :  { %v1864_v0 = vadd.f32 %v1860_v62, %v1843_v60 }
0x39e9   :  { %4667 = vtanh.f32 %v1864_v0  ;;  %v4299_v5 = vmul.f32 -1.442695, %v1864_v0 }
0x39eb   :  { %4669 = vpow2.f32 %v4299_v5 }
0x39ee   :  { %v1862_v1 = vpop.f32.mrf.mxu3 }
0x39ef   :  { %v4668_v4 = vpop.eup %4667 }
0x39f0   :  { %1887 = vrot.lane.b32.xlu1 %v4668_v4, %s4986_s1 }
0x39f1   :  { %v4670_v9 = vpop.eup %4669 }
0x39f2   :  { %v1868_v10 = vadd.f32 1.0, %v4670_v9 }
0x39f4   :  { %4671 = vrcp.f32 %v1868_v10  ;;  %v1880_v25 = vand.u32 2147483648, %v1868_v10  ;;  %vm1874_vm12 = vweird.f32 %v1868_v10  ;;  %v1878_v13 = vand.u32 2147483647, %v1868_v10 }
0x39f6   :  { %v1881_v28 = vor.u32 1.1754944e-38, %v1880_v25  ;;  %vm1879_vm14 = vcmp.eq.f32.partialorder %v1878_v13, 8.507059e+37  ;;  %v457_v25 = vrot.slane %v5155_v15, 5  ;;  %v655_v13 = vrot.slane %v5185_v52, 6 }
0x39f7   :  { %v323_v15 = vrot.slane %v5135_v12, 7 }
0x39fa   :  { %v4672_v11 = vpop.eup %4671 }
0x39fb   :  { %v1870_v17 = vmul.f32 %v4672_v11, %v1868_v10  ;;  %vm1875_vm11 = vweird.f32 %v4672_v11 }
0x39fc   :  { %vm1876_vm13 = vmor %vm1874_vm12, %vm1875_vm11 }
0x39fd   :  { %v1871_v20 = vsub.f32 1.0, %v1870_v17 }
0x39ff   :  { %v1872_v21 = vmul.f32 %v4672_v11, %v1871_v20 }
0x3a01   :  { %v1873_v22 = vadd.f32 %v4672_v11, %v1872_v21 }
0x3a03   :  { %v1877_v16 = vsel %vm1876_vm13, %v4672_v11, %v1873_v22 }
0x3a04   :  { %v1882_v30 = vsel %vm1879_vm14, %v1881_v28, %v1877_v16 }
0x3a05   :  { %v1885_v32 = vmul.f32 %v1882_v30, %v1830_v51 }
0x3a62   :  { %v1888_v29 = vpop.permute.xlu1 %1887 }
0x3a63   :  { %v1890_v31 = vmul.f32 %v1888_v29, %v1882_v30 }
0x3a65   :  { %1892 = vrot.lane.b32.xlu2 %v1890_v31, %s4987_s15 }
0x3abf   :  { %v1893_v33 = vpop.permute.xlu2 %1892 }
0x3ac0   :  { %v1895_v34 = vadd.f32 %v1893_v33, %v1885_v32  ;;  %v721_v32 = vrot.slane %v5198_v26, 5 }
0x3ac2   :  { %4673 = vtanh.f32 %v1895_v34 }
0x3ac8   :  { %v4674_v36 = vpop.eup %4673 }
0x3ac9   :  { %1898 = vrot.lane.b32.xlu0 %v4674_v36, %s4986_s1 }
0x3b3b   :  { %v1899_v39 = vpop.permute.xlu0 %1898 }
0x3b3c   :  { %v1901_v14 = vmul.f32 %v1899_v39, %v1882_v30 }
0x3b3e   :  { %v5400_v40 = vpack.c.bf16 %v1901_v14, %v1901_v14 }
0x3b40   :  { %v1910_v42 = vunpack.c.l.b16 %v5400_v40 }
0x3b42   :  { %v1911_v45 = vpack.c.b16 %v1910_v42, %v1910_v42  ;;  %v589_v42 = vrot.slane %v5175_v19, 7  ;;  %v5447_v19 = vld [vmem:[%s5855_s5 + $0x8] sm:$0xff] }
0x3b43   :  { %2292 = vmatpush.bf16.msrb.mxu1 %v5447_v19  ;;  %2351 = vmatpush.bf16.msrb.mxu2 %v5447_v19 }
0x3b44   :  { %1912 = vrot.lane.b32.xlu1 %v1911_v45, %s4987_s15  ;;  %v4445_v45 = vld [vmem:[%s5854_s4 + $0x8] sm:$0xff]  ;;  %2410 = vmatpush.bf16.msrb.mxu3 %v5447_v19 }
0x3b45   :  { %2238 = vmatpush.bf16.msra.mxu0 %v4445_v45 }
0x3bb6   :  { %v1913_v46 = vpop.permute.xlu1 %1912 }
0x3bb7   :  { %4300 = vmatmul.msk.bf16.vlgmr.msrb.gmra.mxu0 %vm200_vm4, %v1913_v46  ;;  %v4444_v46 = vld [vmem:[%s5854_s4] sm:$0xff] }
0x3bb8   :  { %2239 = vmatpush.bf16.msra.mxu0 %v4444_v46 }
0x3bbc   :  { %3000 = vmatpush.bf16.msrb.mxu0 %v5447_v19 }
0x3c34   :  { %v1926_v51 = vpop.f32.mrf.mxu0 }
0x3c35   :  { %v1930_v53 = vadd.f32 %v1926_v51, %v1909_v49  ;;  %v5453_v49 = vld [vmem:[%s5855_s5] sm:$0xff] }
0x3c36   :  { %2293 = vmatpush.bf16.msrb.mxu1 %v5453_v49  ;;  %2352 = vmatpush.bf16.msrb.mxu2 %v5453_v49 }
0x3c37   :  { %4675 = vtanh.f32 %v1930_v53  ;;  %v4301_v56 = vmul.f32 -1.442695, %v1930_v53  ;;  %2411 = vmatpush.bf16.msrb.mxu3 %v5453_v49  ;;  %3001 = vmatpush.bf16.msrb.mxu0 %v5453_v49 }
0x3c39   :  { %4677 = vpow2.f32 %v4301_v56 }
0x3c3c   :  { %v1928_v54 = vpop.f32.mrf.mxu0 }
0x3c3d   :  { %v4676_v55 = vpop.eup %4675 }
0x3c3e   :  { %1953 = vrot.lane.b32.xlu2 %v4676_v55, %s4986_s1  ;;  %v1975_v55 = vld [vmem:[#allocation2 + $0x36] sm:$0x3] }
0x3c3f   :  { %v4678_v57 = vpop.eup %4677 }
0x3c40   :  { %v1934_v60 = vadd.f32 1.0, %v4678_v57 }
0x3c42   :  { %4679 = vrcp.f32 %v1934_v60  ;;  %v1946_v9 = vand.u32 2147483648, %v1934_v60  ;;  %vm1940_vm0 = vweird.f32 %v1934_v60  ;;  %v1944_v10 = vand.u32 2147483647, %v1934_v60 }
0x3c44   :  { %v1947_v17 = vor.u32 1.1754944e-38, %v1946_v9  ;;  %vm1945_vm2 = vcmp.eq.f32.partialorder %v1944_v10, 8.507059e+37 }
0x3c46   :  { %391 = vrot.lane.b32.xlu2 %v390_v3, %s4987_s15 }
0x3c48   :  { %v4680_v62 = vpop.eup %4679 }
0x3c49   :  { %v1936_v0 = vmul.f32 %v4680_v62, %v1934_v60  ;;  %vm1941_vm15 = vweird.f32 %v4680_v62 }
0x3c4a   :  { %vm1942_vm1 = vmor %vm1940_vm0, %vm1941_vm15 }
0x3c4b   :  { %v1937_v1 = vsub.f32 1.0, %v1936_v0 }
0x3c4d   :  { %v1938_v4 = vmul.f32 %v4680_v62, %v1937_v1 }
0x3c4f   :  { %v1939_v5 = vadd.f32 %v4680_v62, %v1938_v4 }
0x3c51   :  { %v1943_v11 = vsel %vm1942_vm1, %v4680_v62, %v1939_v5 }
0x3c52   :  { %v1948_v20 = vsel %vm1945_vm2, %v1947_v17, %v1943_v11 }
0x3c53   :  { %v1951_v16 = vmul.f32 %v1948_v20, %v1895_v34 }
0x3c98   :  { %v1954_v44 = vpop.permute.xlu2 %1953 }
0x3c99   :  { %v1956_v21 = vmul.f32 %v1954_v44, %v1948_v20 }
0x3c9b   :  { %1958 = vrot.lane.b32.xlu0 %v1956_v21, %s4987_s15 }
0x3ca0   :  { %v392_v22 = vpop.permute.xlu2 %391 }
0x3ca1   :  { %395 = vst.msk [vmem:[#allocation3] sm:$0x4] %vm394_vm3, %v392_v22 }
0x3ca3   :  { %257 = vrot.lane.b32.xlu0 %v5125_v43, %s4987_s15 }
0x3cab   :  { %458 = vrot.lane.b32.xlu0 %v457_v25, %s4987_s15 }
0x3cb3   :  { %656 = vrot.lane.b32.xlu0 %v655_v13, %s4987_s15 }
0x3d0d   :  { %v1959_v28 = vpop.permute.xlu0 %1958 }
0x3d0e   :  { %v5416_v29 = vadd.f32 %v1959_v28, %v1951_v16 }
0x3d10   :  { %4681 = vtanh.f32 %v5416_v29 }
0x3d15   :  { %v258_v30 = vpop.permute.xlu0 %257 }
0x3d16   :  { %v4682_v31 = vpop.eup %4681  ;;  %261 = vst.msk [vmem:[#allocation3] sm:$0x1] %vm260_vm5, %v258_v30 }
0x3d17   :  { %1964 = vrot.lane.b32.xlu1 %v4682_v31, %s4986_s1 }
0x3d1d   :  { %v459_v43 = vpop.permute.xlu0 %458 }
0x3d1e   :  { %462 = vst.msk [vmem:[#allocation3] sm:$0x8] %vm461_vm6, %v459_v43 }
0x3d1f   :  { %324 = vrot.lane.b32.xlu1 %v323_v15, %s4987_s15 }
0x3d25   :  { %v657_v52 = vpop.permute.xlu0 %656 }
0x3d26   :  { %659 = vst.msk [vmem:[#allocation3 + $0x4] sm:$0x4] %vm394_vm3, %v657_v52 }
0x3d27   :  { %524 = vrot.lane.b32.xlu1 %v5165_v47, %s4987_s15 }
0x3d2f   :  { %722 = vrot.lane.b32.xlu1 %v721_v32, %s4987_s15 }
0x3d89   :  { %v1965_v33 = vpop.permute.xlu1 %1964 }
0x3d8a   :  { %v1967_v34 = vmul.f32 %v1965_v33, %v1948_v20 }
0x3d8c   :  { %v5429_v36 = vpack.c.bf16 %v1967_v34, %v1967_v34 }
0x3d8e   :  { %v1976_v12 = vunpack.c.l.b16 %v5429_v36 }
0x3d90   :  { %v1977_v39 = vpack.c.b16 %v1976_v12, %v1976_v12 }
0x3d91   :  { %v325_v14 = vpop.permute.xlu1 %324 }
0x3d92   :  { %328 = vst.msk [vmem:[#allocation3] sm:$0x2] %vm327_vm7, %v325_v14  ;;  %1978 = vrot.lane.b32.xlu2 %v1977_v39, %s4987_s15 }
0x3d99   :  { %v525_v47 = vpop.permute.xlu1 %524 }
0x3d9a   :  { %527 = vst.msk [vmem:[#allocation3 + $0x4] sm:$0x1] %vm260_vm5, %v525_v47  ;;  %590 = vrot.lane.b32.xlu2 %v589_v42, %s4987_s15 }
0x3da1   :  { %v723_v26 = vpop.permute.xlu1 %722 }
0x3da2   :  { %725 = vst.msk [vmem:[#allocation3 + $0x4] sm:$0x8] %vm461_vm6, %v723_v26 }
0x3dec   :  { %v1979_v51 = vpop.permute.xlu2 %1978 }
0x3ded   :  { %4302 = vmatmul.msk.bf16.vlgmr.msra.gmra.mxu1 %vm200_vm4, %v1979_v51 }
0x3dee   :  { %2469 = vmatpush.bf16.msra.mxu1 %v5447_v19 }
0x3df2   :  { %2470 = vmatpush.bf16.msra.mxu1 %v5453_v49 }
0x3df4   :  { %v591_v53 = vpop.permute.xlu2 %590 }
0x3df5   :  { %593 = vst.msk [vmem:[#allocation3 + $0x4] sm:$0x2] %vm327_vm7, %v591_v53 }
0x3dfc   :  { %v4446_v54 = vld [vmem:[#allocation3] sm:$0xff] }
0x3dfd   :  { %2294 = vmatmul.bf16.vlgmr.msrb.gmra.mxu1 %v4985_v6  ;;  %4332 = vmatmul.msk.bf16.vlgmr.msra.gmra.mxu0 %vm200_vm4, %v4446_v54  ;;  %v5476_v6 = vld [vmem:[%s5856_s6] ss:$0 sm:$0xff] }
0x3dfe   :  { %2646 = vmatpush.bf16.msrb.mxu1 %v5447_v19  ;;  %3236 = vmatpush.bf16.msra.mxu0 %v5447_v19 }
0x3e02   :  { %2647 = vmatpush.bf16.msrb.mxu1 %v5453_v49  ;;  %3237 = vmatpush.bf16.msra.mxu0 %v5453_v49 }
0x3e6a   :  { %v1992_v3 = vpop.f32.mrf.mxu1 }
0x3e6b   :  { %v1996_v56 = vadd.f32 %v1992_v3, %v1975_v55 }
0x3e6d   :  { %4683 = vtanh.f32 %v1996_v56  ;;  %v4303_v44 = vmul.f32 -1.442695, %v1996_v56 }
0x3e72   :  { %v1994_v57 = vpop.f32.mrf.mxu1 }
0x3e73   :  { %v4684_v60 = vpop.eup %4683 }
0x3e74   :  { %2019 = vrot.lane.b32.xlu2 %v4684_v60, %s4986_s1 }
0x3e7a   :  { %v2295_v62 = vpop.f32.mrf.mxu1  ;;  %v2241_v0 = vpop.f32.mrf.mxu0 }
0x3e7b   :  { %v2242_v1 = vadd.f32 %v5476_v6, %v2241_v0 }
0x3e7d   :  { %2261 = vst [vmem:[#allocation2] sm:$0xff] %v2242_v1 }
0x3e82   :  { %v2297_v4 = vpop.f32.mrf.mxu1  ;;  %v2243_v5 = vpop.f32.mrf.mxu0 }
0x3e83   :  { %v2244_v9 = vadd.f32 %v5476_v6, %v2243_v5 }
0x3e84   :  { %v2273_v10 = vld [vmem:[#allocation2] sm:$0x3] }
0x3e85   :  { %v2299_v11 = vadd.f32 %v2295_v62, %v2273_v10  ;;  %2262 = vst [vmem:[#allocation2 + $0x8] sm:$0xff] %v2244_v9 }
0x3e87   :  { %4685 = vtanh.f32 %v2299_v11  ;;  %v4344_v34 = vmul.f32 -1.442695, %v2299_v11 }
0x3e88   :  { %4687 = vpow2.f32 %v4303_v44 }
0x3e8d   :  { %v4686_v17 = vpop.eup %4685 }
0x3e8e   :  { %2322 = vrot.lane.b32.xlu0 %v4686_v17, %s4986_s1  ;;  %v4688_v20 = vpop.eup %4687 }
0x3e8f   :  { %v2000_v21 = vadd.f32 1.0, %v4688_v20 }
0x3e91   :  { %4689 = vrcp.f32 %v2000_v21  ;;  %v2012_v30 = vand.u32 2147483648, %v2000_v21  ;;  %vm2006_vm9 = vweird.f32 %v2000_v21  ;;  %v2010_v31 = vand.u32 2147483647, %v2000_v21 }
0x3e92   :  { %4691 = vpow2.f32 %v4344_v34 }
0x3e93   :  { %v2013_v15 = vor.u32 1.1754944e-38, %v2012_v30  ;;  %vm2011_vm11 = vcmp.eq.f32.partialorder %v2010_v31, 8.507059e+37 }
0x3e97   :  { %v4690_v22 = vpop.eup %4689 }
0x3e98   :  { %v2002_v25 = vmul.f32 %v4690_v22, %v2000_v21  ;;  %vm2007_vm8 = vweird.f32 %v4690_v22  ;;  %v4692_v12 = vpop.eup %4691 }
0x3e99   :  { %vm2008_vm10 = vmor %vm2006_vm9, %vm2007_vm8  ;;  %v2303_v39 = vadd.f32 1.0, %v4692_v12 }
0x3e9a   :  { %v2003_v13 = vsub.f32 1.0, %v2002_v25 }
0x3e9b   :  { %4693 = vrcp.f32 %v2303_v39  ;;  %v2315_v46 = vand.u32 2147483648, %v2303_v39  ;;  %vm2309_vm13 = vweird.f32 %v2303_v39  ;;  %v2313_v51 = vand.u32 2147483647, %v2303_v39 }
0x3e9c   :  { %v2004_v16 = vmul.f32 %v4690_v22, %v2003_v13 }
0x3e9d   :  { %v2316_v54 = vor.u32 1.1754944e-38, %v2315_v46  ;;  %vm2314_vm15 = vcmp.eq.f32.partialorder %v2313_v51, 8.507059e+37 }
0x3e9e   :  { %v2005_v28 = vadd.f32 %v4690_v22, %v2004_v16  ;;  %v2041_v16 = vld [vmem:[#allocation2 + $0x38] sm:$0x3] }
0x3ea0   :  { %v2009_v43 = vsel %vm2008_vm10, %v4690_v22, %v2005_v28 }
0x3ea1   :  { %v2014_v52 = vsel %vm2011_vm11, %v2013_v15, %v2009_v43  ;;  %v4694_v14 = vpop.eup %4693  ;;  %v2337_v15 = vld [vmem:[#allocation2 + $0x2] sm:$0x3] }
0x3ea2   :  { %v2305_v42 = vmul.f32 %v4694_v14, %v2303_v39  ;;  %vm2310_vm12 = vweird.f32 %v4694_v14  ;;  %v2017_v57 = vmul.f32 %v2014_v52, %v5416_v29 }
0x3ea3   :  { %vm2311_vm14 = vmor %vm2309_vm13, %vm2310_vm12 }
0x3ea4   :  { %v2306_v47 = vsub.f32 1.0, %v2305_v42 }
0x3ea6   :  { %v2307_v26 = vmul.f32 %v4694_v14, %v2306_v47 }
0x3ea8   :  { %v2308_v45 = vadd.f32 %v4694_v14, %v2307_v26 }
0x3eaa   :  { %v2312_v53 = vsel %vm2311_vm14, %v4694_v14, %v2308_v45 }
0x3eab   :  { %v2317_v3 = vsel %vm2314_vm15, %v2316_v54, %v2312_v53 }
0x3eac   :  { %v2320_v1 = vmul.f32 0.0, %v2317_v3 }
0x3ece   :  { %v2020_v32 = vpop.permute.xlu2 %2019 }
0x3ecf   :  { %v2022_v33 = vmul.f32 %v2020_v32, %v2014_v52 }
0x3ed1   :  { %2024 = vrot.lane.b32.xlu1 %v2022_v33, %s4987_s15 }
0x3f00   :  { %v2323_v55 = vpop.permute.xlu0 %2322 }
0x3f01   :  { %v2325_v56 = vmul.f32 %v2323_v55, %v2317_v3 }
0x3f03   :  { %2327 = vrot.lane.b32.xlu2 %v2325_v56, %s4987_s15 }
0x3f43   :  { %v2025_v60 = vpop.permute.xlu1 %2024 }
0x3f44   :  { %v5484_v62 = vadd.f32 %v2025_v60, %v2017_v57 }
0x3f46   :  { %4695 = vtanh.f32 %v5484_v62 }
0x3f4c   :  { %v4696_v0 = vpop.eup %4695 }
0x3f4d   :  { %2030 = vrot.lane.b32.xlu0 %v4696_v0, %s4986_s1 }
0x3f5d   :  { %v2328_v4 = vpop.permute.xlu2 %2327 }
0x3f5e   :  { %v5488_v5 = vadd.f32 %v2328_v4, %v2320_v1 }
0x3f60   :  { %4697 = vtanh.f32 %v5488_v5 }
0x3f66   :  { %v4698_v9 = vpop.eup %4697 }
0x3f67   :  { %2333 = vrot.lane.b32.xlu1 %v4698_v9, %s4986_s1 }
0x3fbf   :  { %v2031_v10 = vpop.permute.xlu0 %2030 }
0x3fc0   :  { %v2033_v11 = vmul.f32 %v2031_v10, %v2014_v52 }
0x3fc2   :  { %v5492_v29 = vpack.c.bf16 %v2033_v11, %v2033_v11 }
0x3fc4   :  { %v2042_v17 = vunpack.c.l.b16 %v5492_v29 }
0x3fc6   :  { %v2043_v44 = vpack.c.b16 %v2042_v17, %v2042_v17 }
0x3fc8   :  { %2044 = vrot.lane.b32.xlu2 %v2043_v44, %s4987_s15 }
0x3fd9   :  { %v2334_v20 = vpop.permute.xlu1 %2333 }
0x3fda   :  { %v2336_v21 = vmul.f32 %v2334_v20, %v2317_v3 }
0x3fdc   :  { %v2338_v22 = vpack.c.bf16 %v2336_v21, %v2336_v21 }
0x3fde   :  { %2340 = vrot.lane.b32.xlu0 %v2338_v22, %s4987_s15 }
0x4022   :  { %v2045_v25 = vpop.permute.xlu2 %2044 }
0x4023   :  { %4304 = vmatmul.msk.bf16.vlgmr.msra.gmra.mxu2 %vm200_vm4, %v2045_v25 }
0x4024   :  { %2528 = vmatpush.bf16.msra.mxu2 %v5447_v19 }
0x4028   :  { %2529 = vmatpush.bf16.msra.mxu2 %v5453_v49 }
0x4050   :  { %v2341_v13 = vpop.permute.xlu0 %2340 }
0x4051   :  { %4345 = vmatmul.msk.bf16.vlgmr.msrb.gmra.mxu2 %vm200_vm4, %v2341_v13 }
0x4052   :  { %2705 = vmatpush.bf16.msrb.mxu2 %v5447_v19 }
0x4056   :  { %2706 = vmatpush.bf16.msrb.mxu2 %v5453_v49 }
0x40a6   :  { %v2058_v28 = vpop.f32.mrf.mxu2 }
0x40a7   :  { %v2062_v30 = vadd.f32 %v2058_v28, %v2041_v16 }
0x40a9   :  { %4699 = vtanh.f32 %v2062_v30  ;;  %v4305_v12 = vmul.f32 -1.442695, %v2062_v30 }
0x40ae   :  { %v2060_v31 = vpop.f32.mrf.mxu2 }
0x40af   :  { %v4700_v43 = vpop.eup %4699 }
0x40b0   :  { %2085 = vrot.lane.b32.xlu1 %v4700_v43, %s4986_s1 }
0x40d4   :  { %v2354_v52 = vpop.f32.mrf.mxu2 }
0x40d5   :  { %v2358_v32 = vadd.f32 %v2354_v52, %v2337_v15 }
0x40d7   :  { %4701 = vtanh.f32 %v2358_v32  ;;  %v4346_v47 = vmul.f32 -1.442695, %v2358_v32 }
0x40d8   :  { %4703 = vpow2.f32 %v4305_v12 }
0x40dc   :  { %v2356_v33 = vpop.f32.mrf.mxu2 }
0x40dd   :  { %v4702_v34 = vpop.eup %4701 }
0x40de   :  { %2381 = vrot.lane.b32.xlu2 %v4702_v34, %s4986_s1  ;;  %v4704_v39 = vpop.eup %4703 }
0x40df   :  { %v2066_v14 = vadd.f32 1.0, %v4704_v39 }
0x40e1   :  { %4705 = vrcp.f32 %v2066_v14  ;;  %v2078_v55 = vand.u32 2147483648, %v2066_v14  ;;  %vm2072_vm1 = vweird.f32 %v2066_v14  ;;  %v2076_v3 = vand.u32 2147483647, %v2066_v14 }
0x40e2   :  { %4707 = vpow2.f32 %v4346_v47 }
0x40e3   :  { %v2079_v57 = vor.u32 1.1754944e-38, %v2078_v55  ;;  %vm2077_vm8 = vcmp.eq.f32.partialorder %v2076_v3, 8.507059e+37 }
0x40e7   :  { %v4706_v42 = vpop.eup %4705 }
0x40e8   :  { %v2068_v26 = vmul.f32 %v4706_v42, %v2066_v14  ;;  %v4708_v46 = vpop.eup %4707  ;;  %vm2073_vm0 = vweird.f32 %v4706_v42 }
0x40e9   :  { %v2362_v53 = vadd.f32 1.0, %v4708_v46  ;;  %vm2074_vm2 = vmor %vm2072_vm1, %vm2073_vm0 }
0x40ea   :  { %v2069_v45 = vsub.f32 1.0, %v2068_v26 }
0x40eb   :  { %4709 = vrcp.f32 %v2362_v53  ;;  %v2374_v44 = vand.u32 2147483648, %v2362_v53  ;;  %vm2368_vm10 = vweird.f32 %v2362_v53  ;;  %v2372_v20 = vand.u32 2147483647, %v2362_v53 }
0x40ec   :  { %v2070_v51 = vmul.f32 %v4706_v42, %v2069_v45 }
0x40ed   :  { %v2375_v22 = vor.u32 1.1754944e-38, %v2374_v44  ;;  %vm2373_vm12 = vcmp.eq.f32.partialorder %v2372_v20, 8.507059e+37 }
0x40ee   :  { %v2071_v54 = vadd.f32 %v4706_v42, %v2070_v51 }
0x40f0   :  { %v2075_v56 = vsel %vm2074_vm2, %v4706_v42, %v2071_v54 }
0x40f1   :  { %v2080_v0 = vsel %vm2077_vm8, %v2079_v57, %v2075_v56  ;;  %v4710_v1 = vpop.eup %4709 }
0x40f2   :  { %v2364_v9 = vmul.f32 %v4710_v1, %v2362_v53  ;;  %vm2369_vm9 = vweird.f32 %v4710_v1  ;;  %v2083_v28 = vmul.f32 %v2080_v0, %v5484_v62  ;;  %v2396_v53 = vld [vmem:[#allocation2 + $0x4] sm:$0x3] }
0x40f3   :  { %vm2370_vm11 = vmor %vm2368_vm10, %vm2369_vm9 }
0x40f4   :  { %v2365_v10 = vsub.f32 1.0, %v2364_v9 }
0x40f6   :  { %v2366_v11 = vmul.f32 %v4710_v1, %v2365_v10 }
0x40f8   :  { %v2367_v17 = vadd.f32 %v4710_v1, %v2366_v11 }
0x40fa   :  { %v2371_v21 = vsel %vm2370_vm11, %v4710_v1, %v2367_v17 }
0x40fb   :  { %v2376_v13 = vsel %vm2373_vm12, %v2375_v22, %v2371_v21 }
0x40fc   :  { %v2379_v15 = vmul.f32 %v2376_v13, %v5488_v5 }
0x4122   :  { %v2086_v60 = vpop.permute.xlu1 %2085 }
0x4123   :  { %v2088_v4 = vmul.f32 %v2086_v60, %v2080_v0 }
0x4125   :  { %2090 = vrot.lane.b32.xlu0 %v2088_v4, %s4987_s15 }
0x4138   :  { %v2382_v25 = vpop.permute.xlu2 %2381 }
0x4139   :  { %v2384_v16 = vmul.f32 %v2382_v25, %v2376_v13 }
0x413b   :  { %2386 = vrot.lane.b32.xlu1 %v2384_v16, %s4987_s15 }
0x4197   :  { %v2091_v30 = vpop.permute.xlu0 %2090 }
0x4198   :  { %v5508_v31 = vadd.f32 %v2091_v30, %v2083_v28 }
0x419a   :  { %4711 = vtanh.f32 %v5508_v31 }
0x41a0   :  { %v4712_v43 = vpop.eup %4711 }
0x41a1   :  { %2096 = vrot.lane.b32.xlu2 %v4712_v43, %s4986_s1 }
0x41ad   :  { %v2387_v52 = vpop.permute.xlu1 %2386 }
0x41ae   :  { %v2389_v32 = vadd.f32 %v2387_v52, %v2379_v15 }
0x41b0   :  { %4713 = vtanh.f32 %v2389_v32 }
0x41b6   :  { %v4714_v33 = vpop.eup %4713 }
0x41b7   :  { %2392 = vrot.lane.b32.xlu0 %v4714_v33, %s4986_s1 }
0x41fb   :  { %v2097_v34 = vpop.permute.xlu2 %2096 }
0x41fc   :  { %v2099_v12 = vmul.f32 %v2097_v34, %v2080_v0 }
0x41fe   :  { %v5514_v39 = vpack.c.bf16 %v2099_v12, %v2099_v12  ;;  %v2455_v12 = vld [vmem:[#allocation2 + $0x6] sm:$0x3] }
0x4200   :  { %v2107_v62 = vunpack.c.l.b16 %v5514_v39 }
0x4202   :  { %v2108_v14 = vpack.c.b16 %v2107_v62, %v2107_v62 }
0x4204   :  { %2109 = vrot.lane.b32.xlu1 %v2108_v14, %s4987_s15 }
0x4229   :  { %v2393_v42 = vpop.permute.xlu0 %2392 }
0x422a   :  { %v2395_v47 = vmul.f32 %v2393_v42, %v2376_v13 }
0x422c   :  { %v2397_v26 = vpack.c.bf16 %v2395_v47, %v2395_v47 }
0x422e   :  { %2399 = vrot.lane.b32.xlu2 %v2397_v26, %s4987_s15 }
0x4276   :  { %v2110_v5 = vpop.permute.xlu1 %2109 }
0x4277   :  { %4306 = vmatmul.msk.bf16.vlgmr.msra.gmra.mxu3 %vm200_vm4, %v2110_v5 }
0x4278   :  { %2587 = vmatpush.bf16.msra.mxu3 %v5447_v19 }
0x427c   :  { %2588 = vmatpush.bf16.msra.mxu3 %v5453_v49 }
0x4288   :  { %v2400_v45 = vpop.permute.xlu2 %2399 }
0x4289   :  { %4347 = vmatmul.msk.bf16.vlgmr.msrb.gmra.mxu3 %vm200_vm4, %v2400_v45 }
0x428a   :  { %2764 = vmatpush.bf16.msrb.mxu3 %v5447_v19 }
0x428e   :  { %2765 = vmatpush.bf16.msrb.mxu3 %v5453_v49 }
0x42fa   :  { %v5525_v46 = vpop.f32.mrf.mxu3 }
0x4302   :  { %v2125_v51 = vpop.f32.mrf.mxu3 }
0x430c   :  { %v2413_v54 = vpop.f32.mrf.mxu3 }
0x430d   :  { %v2417_v55 = vadd.f32 %v2413_v54, %v2396_v53 }
0x430f   :  { %4715 = vtanh.f32 %v2417_v55  ;;  %v4348_v57 = vmul.f32 -1.442695, %v2417_v55 }
0x4311   :  { %4717 = vpow2.f32 %v4348_v57 }
0x4314   :  { %v2415_v3 = vpop.f32.mrf.mxu3 }
0x4315   :  { %v4716_v56 = vpop.eup %4715 }
0x4316   :  { %2440 = vrot.lane.b32.xlu0 %v4716_v56, %s4986_s1 }
0x4317   :  { %v4718_v60 = vpop.eup %4717 }
0x4318   :  { %v2421_v0 = vadd.f32 1.0, %v4718_v60 }
0x431a   :  { %4719 = vrcp.f32 %v2421_v0  ;;  %v2433_v17 = vand.u32 2147483648, %v2421_v0  ;;  %vm2427_vm14 = vweird.f32 %v2421_v0  ;;  %v2431_v44 = vand.u32 2147483647, %v2421_v0 }
0x431c   :  { %v2434_v21 = vor.u32 1.1754944e-38, %v2433_v17  ;;  %vm2432_vm0 = vcmp.eq.f32.partialorder %v2431_v44, 8.507059e+37 }
0x4320   :  { %v4720_v1 = vpop.eup %4719 }
0x4321   :  { %v2423_v4 = vmul.f32 %v4720_v1, %v2421_v0  ;;  %vm2428_vm13 = vweird.f32 %v4720_v1 }
0x4322   :  { %vm2429_vm15 = vmor %vm2427_vm14, %vm2428_vm13 }
0x4323   :  { %v2424_v9 = vsub.f32 1.0, %v2423_v4 }
0x4325   :  { %v2425_v10 = vmul.f32 %v4720_v1, %v2424_v9 }
0x4327   :  { %v2426_v11 = vadd.f32 %v4720_v1, %v2425_v10 }
0x4329   :  { %v2430_v20 = vsel %vm2429_vm15, %v4720_v1, %v2426_v11 }
0x432a   :  { %v2435_v25 = vsel %vm2432_vm0, %v2434_v21, %v2430_v20 }
0x432b   :  { %v2438_v16 = vmul.f32 %v2435_v25, %v2389_v32 }
0x4388   :  { %v2441_v22 = vpop.permute.xlu0 %2440 }
0x4389   :  { %v2443_v13 = vmul.f32 %v2441_v22, %v2435_v25 }
0x438b   :  { %2445 = vrot.lane.b32.xlu1 %v2443_v13, %s4987_s15 }
0x43fd   :  { %v2446_v28 = vpop.permute.xlu1 %2445 }
0x43fe   :  { %v2448_v30 = vadd.f32 %v2446_v28, %v2438_v16 }
0x4400   :  { %4721 = vtanh.f32 %v2448_v30 }
0x4406   :  { %v4722_v43 = vpop.eup %4721 }
0x4407   :  { %2451 = vrot.lane.b32.xlu2 %v4722_v43, %s4986_s1 }
0x4461   :  { %v2452_v15 = vpop.permute.xlu2 %2451 }
0x4462   :  { %v2454_v52 = vmul.f32 %v2452_v15, %v2435_v25  ;;  %v2514_v25 = vld [vmem:[#allocation2 + $0x8] sm:$0x3] }
0x4464   :  { %v2456_v33 = vpack.c.bf16 %v2454_v52, %v2454_v52 }
0x4466   :  { %2458 = vrot.lane.b32.xlu0 %v2456_v33, %s4987_s15 }
0x44d8   :  { %v2459_v34 = vpop.permute.xlu0 %2458 }
0x44d9   :  { %4349 = vmatmul.msk.bf16.vlgmr.msra.gmra.mxu1 %vm200_vm4, %v2459_v34 }
0x44da   :  { %2823 = vmatpush.bf16.msra.mxu1 %v5447_v19 }
0x44de   :  { %2824 = vmatpush.bf16.msra.mxu1 %v5453_v49 }
0x4556   :  { %v2472_v32 = vpop.f32.mrf.mxu1 }
0x4557   :  { %v2476_v62 = vadd.f32 %v2472_v32, %v2455_v12 }
0x4559   :  { %4723 = vtanh.f32 %v2476_v62  ;;  %v4350_v47 = vmul.f32 -1.442695, %v2476_v62 }
0x455b   :  { %4725 = vpow2.f32 %v4350_v47 }
0x455e   :  { %v2474_v14 = vpop.f32.mrf.mxu1 }
0x455f   :  { %v4724_v42 = vpop.eup %4723 }
0x4560   :  { %2499 = vrot.lane.b32.xlu1 %v4724_v42, %s4986_s1 }
0x4561   :  { %v4726_v26 = vpop.eup %4725 }
0x4562   :  { %v2480_v5 = vadd.f32 1.0, %v4726_v26 }
0x4564   :  { %4727 = vrcp.f32 %v2480_v5  ;;  %v2492_v3 = vand.u32 2147483648, %v2480_v5  ;;  %vm2486_vm2 = vweird.f32 %v2480_v5  ;;  %v2490_v56 = vand.u32 2147483647, %v2480_v5 }
0x4566   :  { %v2493_v60 = vor.u32 1.1754944e-38, %v2492_v3  ;;  %vm2491_vm9 = vcmp.eq.f32.partialorder %v2490_v56, 8.507059e+37 }
0x456a   :  { %v4728_v45 = vpop.eup %4727 }
0x456b   :  { %v2482_v51 = vmul.f32 %v4728_v45, %v2480_v5  ;;  %vm2487_vm1 = vweird.f32 %v4728_v45 }
0x456c   :  { %vm2488_vm8 = vmor %vm2486_vm2, %vm2487_vm1 }
0x456d   :  { %v2483_v53 = vsub.f32 1.0, %v2482_v51 }
0x456f   :  { %v2484_v54 = vmul.f32 %v4728_v45, %v2483_v53 }
0x4571   :  { %v2485_v55 = vadd.f32 %v4728_v45, %v2484_v54 }
0x4573   :  { %v2489_v57 = vsel %vm2488_vm8, %v4728_v45, %v2485_v55 }
0x4574   :  { %v2494_v1 = vsel %vm2491_vm9, %v2493_v60, %v2489_v57 }
0x4575   :  { %v2497_v9 = vmul.f32 %v2494_v1, %v2448_v30 }
0x45d2   :  { %v2500_v0 = vpop.permute.xlu1 %2499 }
0x45d3   :  { %v2502_v4 = vmul.f32 %v2500_v0, %v2494_v1 }
0x45d5   :  { %2504 = vrot.lane.b32.xlu2 %v2502_v4, %s4987_s15 }
0x462f   :  { %v2505_v10 = vpop.permute.xlu2 %2504 }
0x4630   :  { %v2507_v11 = vadd.f32 %v2505_v10, %v2497_v9 }
0x4632   :  { %4729 = vtanh.f32 %v2507_v11 }
0x4638   :  { %v4730_v17 = vpop.eup %4729 }
0x4639   :  { %2510 = vrot.lane.b32.xlu0 %v4730_v17, %s4986_s1 }
0x46ab   :  { %v2511_v44 = vpop.permute.xlu0 %2510 }
0x46ac   :  { %v2513_v20 = vmul.f32 %v2511_v44, %v2494_v1  ;;  %v2573_v1 = vld [vmem:[#allocation2 + $0xa] sm:$0x3] }
0x46ae   :  { %v2515_v21 = vpack.c.bf16 %v2513_v20, %v2513_v20 }
0x46b0   :  { %2517 = vrot.lane.b32.xlu1 %v2515_v21, %s4987_s15 }
0x4722   :  { %v2518_v22 = vpop.permute.xlu1 %2517 }
0x4723   :  { %4351 = vmatmul.msk.bf16.vlgmr.msra.gmra.mxu2 %vm200_vm4, %v2518_v22 }
0x4724   :  { %2882 = vmatpush.bf16.msra.mxu2 %v5447_v19 }
0x4728   :  { %2883 = vmatpush.bf16.msra.mxu2 %v5453_v49 }
0x47a6   :  { %v2531_v13 = vpop.f32.mrf.mxu2 }
0x47a7   :  { %v2535_v16 = vadd.f32 %v2531_v13, %v2514_v25 }
0x47a9   :  { %4731 = vtanh.f32 %v2535_v16  ;;  %v4352_v43 = vmul.f32 -1.442695, %v2535_v16 }
0x47ab   :  { %4733 = vpow2.f32 %v4352_v43 }
0x47ae   :  { %v2533_v28 = vpop.f32.mrf.mxu2 }
0x47af   :  { %v4732_v30 = vpop.eup %4731 }
0x47b0   :  { %2558 = vrot.lane.b32.xlu2 %v4732_v30, %s4986_s1 }
0x47b1   :  { %v4734_v15 = vpop.eup %4733 }
0x47b2   :  { %v2539_v52 = vadd.f32 1.0, %v4734_v15 }
0x47b4   :  { %4735 = vrcp.f32 %v2539_v52  ;;  %v2551_v14 = vand.u32 2147483648, %v2539_v52  ;;  %vm2545_vm11 = vweird.f32 %v2539_v52  ;;  %v2549_v42 = vand.u32 2147483647, %v2539_v52 }
0x47b6   :  { %v2552_v26 = vor.u32 1.1754944e-38, %v2551_v14  ;;  %vm2550_vm13 = vcmp.eq.f32.partialorder %v2549_v42, 8.507059e+37 }
0x47ba   :  { %v4736_v33 = vpop.eup %4735 }
0x47bb   :  { %v2541_v34 = vmul.f32 %v4736_v33, %v2539_v52  ;;  %vm2546_vm10 = vweird.f32 %v4736_v33 }
0x47bc   :  { %vm2547_vm12 = vmor %vm2545_vm11, %vm2546_vm10 }
0x47bd   :  { %v2542_v12 = vsub.f32 1.0, %v2541_v34 }
0x47bf   :  { %v2543_v32 = vmul.f32 %v4736_v33, %v2542_v12 }
0x47c1   :  { %v2544_v62 = vadd.f32 %v4736_v33, %v2543_v32 }
0x47c3   :  { %v2548_v47 = vsel %vm2547_vm12, %v4736_v33, %v2544_v62 }
0x47c4   :  { %v2553_v45 = vsel %vm2550_vm13, %v2552_v26, %v2548_v47 }
0x47c5   :  { %v2556_v53 = vmul.f32 %v2553_v45, %v2507_v11 }
0x480a   :  { %v2559_v5 = vpop.permute.xlu2 %2558 }
0x480b   :  { %v2561_v51 = vmul.f32 %v2559_v5, %v2553_v45 }
0x480d   :  { %2563 = vrot.lane.b32.xlu0 %v2561_v51, %s4987_s15 }
0x487f   :  { %v2564_v54 = vpop.permute.xlu0 %2563 }
0x4880   :  { %v2566_v55 = vadd.f32 %v2564_v54, %v2556_v53 }
0x4882   :  { %4737 = vtanh.f32 %v2566_v55 }
0x4888   :  { %v4738_v3 = vpop.eup %4737 }
0x4889   :  { %2569 = vrot.lane.b32.xlu1 %v4738_v3, %s4986_s1 }
0x48fb   :  { %v2570_v56 = vpop.permute.xlu1 %2569 }
0x48fc   :  { %v2572_v57 = vmul.f32 %v2570_v56, %v2553_v45  ;;  %v2632_v45 = vld [vmem:[#allocation2 + $0xc] sm:$0x3] }
0x48fe   :  { %v2574_v60 = vpack.c.bf16 %v2572_v57, %v2572_v57 }
0x4900   :  { %2576 = vrot.lane.b32.xlu2 %v2574_v60, %s4987_s15 }
0x495a   :  { %v2577_v0 = vpop.permute.xlu2 %2576 }
0x495b   :  { %4353 = vmatmul.msk.bf16.vlgmr.msra.gmra.mxu3 %vm200_vm4, %v2577_v0 }
0x495c   :  { %2941 = vmatpush.bf16.msra.mxu3 %v5447_v19 }
0x4960   :  { %2942 = vmatpush.bf16.msra.mxu3 %v5453_v49 }
0x49de   :  { %v2590_v4 = vpop.f32.mrf.mxu3 }
0x49df   :  { %v2594_v9 = vadd.f32 %v2590_v4, %v2573_v1 }
0x49e1   :  { %4739 = vtanh.f32 %v2594_v9  ;;  %v4354_v17 = vmul.f32 -1.442695, %v2594_v9 }
0x49e3   :  { %4741 = vpow2.f32 %v4354_v17 }
0x49e6   :  { %v2592_v10 = vpop.f32.mrf.mxu3 }
0x49e7   :  { %v4740_v11 = vpop.eup %4739 }
0x49e8   :  { %2617 = vrot.lane.b32.xlu0 %v4740_v11, %s4986_s1 }
0x49e9   :  { %v4742_v44 = vpop.eup %4741 }
0x49ea   :  { %v2598_v20 = vadd.f32 1.0, %v4742_v44 }
0x49ec   :  { %4743 = vrcp.f32 %v2598_v20  ;;  %v2610_v28 = vand.u32 2147483648, %v2598_v20  ;;  %vm2604_vm15 = vweird.f32 %v2598_v20  ;;  %v2608_v30 = vand.u32 2147483647, %v2598_v20 }
0x49ee   :  { %v2611_v15 = vor.u32 1.1754944e-38, %v2610_v28  ;;  %vm2609_vm1 = vcmp.eq.f32.partialorder %v2608_v30, 8.507059e+37 }
0x49f2   :  { %v4744_v21 = vpop.eup %4743 }
0x49f3   :  { %v2600_v22 = vmul.f32 %v4744_v21, %v2598_v20  ;;  %vm2605_vm14 = vweird.f32 %v4744_v21 }
0x49f4   :  { %vm2606_vm0 = vmor %vm2604_vm15, %vm2605_vm14 }
0x49f5   :  { %v2601_v25 = vsub.f32 1.0, %v2600_v22 }
0x49f7   :  { %v2602_v13 = vmul.f32 %v4744_v21, %v2601_v25 }
0x49f9   :  { %v2603_v16 = vadd.f32 %v4744_v21, %v2602_v13 }
0x49fb   :  { %v2607_v43 = vsel %vm2606_vm0, %v4744_v21, %v2603_v16 }
0x49fc   :  { %v2612_v33 = vsel %vm2609_vm1, %v2611_v15, %v2607_v43 }
0x49fd   :  { %v2615_v12 = vmul.f32 %v2612_v33, %v2566_v55 }
0x4a5a   :  { %v2618_v52 = vpop.permute.xlu0 %2617 }
0x4a5b   :  { %v2620_v34 = vmul.f32 %v2618_v52, %v2612_v33 }
0x4a5d   :  { %2622 = vrot.lane.b32.xlu1 %v2620_v34, %s4987_s15 }
0x4acf   :  { %v2623_v32 = vpop.permute.xlu1 %2622 }
0x4ad0   :  { %v2625_v62 = vadd.f32 %v2623_v32, %v2615_v12 }
0x4ad2   :  { %4745 = vtanh.f32 %v2625_v62 }
0x4ad8   :  { %v4746_v14 = vpop.eup %4745 }
0x4ad9   :  { %2628 = vrot.lane.b32.xlu2 %v4746_v14, %s4986_s1  ;;  %v984_v14 = vrot.slane %v5250_v48, 5 }
0x4b33   :  { %v2629_v42 = vpop.permute.xlu2 %2628 }
0x4b34   :  { %v2631_v47 = vmul.f32 %v2629_v42, %v2612_v33  ;;  %v2691_v33 = vld [vmem:[#allocation2 + $0xe] sm:$0x3]  ;;  %v1181_v42 = vrot.slane %v5280_v38, 6 }
0x4b36   :  { %v2633_v26 = vpack.c.bf16 %v2631_v47, %v2631_v47 }
0x4b38   :  { %2635 = vrot.lane.b32.xlu0 %v2633_v26, %s4987_s15 }
0x4baa   :  { %v2636_v5 = vpop.permute.xlu0 %2635 }
0x4bab   :  { %4355 = vmatmul.msk.bf16.vlgmr.msrb.gmra.mxu1 %vm200_vm4, %v2636_v5 }
0x4bac   :  { %3059 = vmatpush.bf16.msrb.mxu1 %v5447_v19 }
0x4bb0   :  { %3060 = vmatpush.bf16.msrb.mxu1 %v5453_v49 }
0x4c28   :  { %v2649_v51 = vpop.f32.mrf.mxu1 }
0x4c29   :  { %v2653_v53 = vadd.f32 %v2649_v51, %v2632_v45 }
0x4c2b   :  { %4747 = vtanh.f32 %v2653_v53  ;;  %v4356_v3 = vmul.f32 -1.442695, %v2653_v53 }
0x4c2d   :  { %4749 = vpow2.f32 %v4356_v3 }
0x4c30   :  { %v2651_v54 = vpop.f32.mrf.mxu1 }
0x4c31   :  { %v4748_v55 = vpop.eup %4747 }
0x4c32   :  { %2676 = vrot.lane.b32.xlu1 %v4748_v55, %s4986_s1 }
0x4c33   :  { %v4750_v56 = vpop.eup %4749 }
0x4c34   :  { %v2657_v57 = vadd.f32 1.0, %v4750_v56 }
0x4c36   :  { %4751 = vrcp.f32 %v2657_v57  ;;  %v2669_v10 = vand.u32 2147483648, %v2657_v57  ;;  %vm2663_vm8 = vweird.f32 %v2657_v57  ;;  %v2667_v11 = vand.u32 2147483647, %v2657_v57 }
0x4c38   :  { %v2670_v44 = vor.u32 1.1754944e-38, %v2669_v10  ;;  %vm2668_vm10 = vcmp.eq.f32.partialorder %v2667_v11, 8.507059e+37  ;;  %v1247_v10 = vrot.slane %v5293_v18, 5  ;;  %v1115_v18 = vrot.slane %v5270_v58, 7 }
0x4c3c   :  { %v4752_v60 = vpop.eup %4751 }
0x4c3d   :  { %v2659_v0 = vmul.f32 %v4752_v60, %v2657_v57  ;;  %vm2664_vm2 = vweird.f32 %v4752_v60 }
0x4c3e   :  { %vm2665_vm9 = vmor %vm2663_vm8, %vm2664_vm2 }
0x4c3f   :  { %v2660_v1 = vsub.f32 1.0, %v2659_v0 }
0x4c41   :  { %v2661_v4 = vmul.f32 %v4752_v60, %v2660_v1  ;;  %v852_v1 = vrot.slane %v5220_v37, 7 }
0x4c43   :  { %v2662_v9 = vadd.f32 %v4752_v60, %v2661_v4 }
0x4c45   :  { %v2666_v17 = vsel %vm2665_vm9, %v4752_v60, %v2662_v9 }
0x4c46   :  { %v2671_v21 = vsel %vm2668_vm10, %v2670_v44, %v2666_v17 }
0x4c47   :  { %v2674_v25 = vmul.f32 %v2671_v21, %v2625_v62 }
0x4ca4   :  { %v2677_v20 = vpop.permute.xlu1 %2676 }
0x4ca5   :  { %v2679_v22 = vmul.f32 %v2677_v20, %v2671_v21 }
0x4ca7   :  { %2681 = vrot.lane.b32.xlu2 %v2679_v22, %s4987_s15 }
0x4d01   :  { %v2682_v13 = vpop.permute.xlu2 %2681 }
0x4d02   :  { %v2684_v16 = vadd.f32 %v2682_v13, %v2674_v25 }
0x4d04   :  { %4753 = vtanh.f32 %v2684_v16 }
0x4d0a   :  { %v4754_v28 = vpop.eup %4753 }
0x4d0b   :  { %2687 = vrot.lane.b32.xlu0 %v4754_v28, %s4986_s1 }
0x4d7d   :  { %v2688_v30 = vpop.permute.xlu0 %2687 }
0x4d7e   :  { %v2690_v43 = vmul.f32 %v2688_v30, %v2671_v21 }
0x4d80   :  { %v2692_v15 = vpack.c.bf16 %v2690_v43, %v2690_v43 }
0x4d82   :  { %2694 = vrot.lane.b32.xlu1 %v2692_v15, %s4987_s15 }
0x4df4   :  { %v2695_v52 = vpop.permute.xlu1 %2694 }
0x4df5   :  { %4357 = vmatmul.msk.bf16.vlgmr.msrb.gmra.mxu2 %vm200_vm4, %v2695_v52 }
0x4df6   :  { %3118 = vmatpush.bf16.msrb.mxu2 %v5447_v19 }
0x4dfa   :  { %3119 = vmatpush.bf16.msrb.mxu2 %v5453_v49 }
0x4e78   :  { %v2708_v34 = vpop.f32.mrf.mxu2 }
0x4e79   :  { %v2712_v12 = vadd.f32 %v2708_v34, %v2691_v33 }
0x4e7b   :  { %4755 = vtanh.f32 %v2712_v12  ;;  %v4358_v47 = vmul.f32 -1.442695, %v2712_v12 }
0x4e7d   :  { %4757 = vpow2.f32 %v4358_v47 }
0x4e80   :  { %v2710_v32 = vpop.f32.mrf.mxu2 }
0x4e81   :  { %v4756_v62 = vpop.eup %4755 }
0x4e82   :  { %2735 = vrot.lane.b32.xlu2 %v4756_v62, %s4986_s1 }
0x4e83   :  { %v4758_v26 = vpop.eup %4757 }
0x4e84   :  { %v2716_v5 = vadd.f32 1.0, %v4758_v26 }
0x4e86   :  { %4759 = vrcp.f32 %v2716_v5  ;;  %vm2722_vm12 = vweird.f32 %v2716_v5  ;;  %v2726_v48 = vand.u32 2147483647, %v2716_v5 }
0x4e88   :  { %vm2727_vm14 = vcmp.eq.f32.partialorder %v2726_v48, 8.507059e+37 }
0x4e8a   :  { %787 = vrot.lane.b32.xlu2 %v5210_v63, %s4987_s15  ;;  %v2728_v63 = vand.u32 2147483648, %v2716_v5 }
0x4e8c   :  { %v4760_v45 = vpop.eup %4759  ;;  %v2729_v56 = vor.u32 1.1754944e-38, %v2728_v63 }
0x4e8d   :  { %v2718_v51 = vmul.f32 %v4760_v45, %v2716_v5  ;;  %vm2723_vm11 = vweird.f32 %v4760_v45 }
0x4e8e   :  { %vm2724_vm13 = vmor %vm2722_vm12, %vm2723_vm11 }
0x4e8f   :  { %v2719_v53 = vsub.f32 1.0, %v2718_v51 }
0x4e91   :  { %v2720_v54 = vmul.f32 %v4760_v45, %v2719_v53 }
0x4e92   :  { %985 = vrot.lane.b32.xlu2 %v984_v14, %s4987_s15 }
0x4e93   :  { %v2721_v55 = vadd.f32 %v4760_v45, %v2720_v54 }
0x4e95   :  { %v2725_v3 = vsel %vm2724_vm13, %v4760_v45, %v2721_v55 }
0x4e96   :  { %v2730_v57 = vsel %vm2727_vm14, %v2729_v56, %v2725_v3 }
0x4e97   :  { %v2733_v11 = vmul.f32 %v2730_v57, %v2684_v16 }
0x4e9a   :  { %1182 = vrot.lane.b32.xlu2 %v1181_v42, %s4987_s15 }
0x4edc   :  { %v2736_v38 = vpop.permute.xlu2 %2735 }
0x4edd   :  { %v2738_v60 = vmul.f32 %v2736_v38, %v2730_v57 }
0x4edf   :  { %2740 = vrot.lane.b32.xlu0 %v2738_v60, %s4987_s15 }
0x4ee4   :  { %v788_v0 = vpop.permute.xlu2 %787 }
0x4ee5   :  { %790 = vst.msk [vmem:[#allocation3 + $0x8] sm:$0x1] %vm260_vm5, %v788_v0 }
0x4ee7   :  { %853 = vrot.lane.b32.xlu0 %v852_v1, %s4987_s15 }
0x4eec   :  { %v986_v4 = vpop.permute.xlu2 %985 }
0x4eed   :  { %988 = vst.msk [vmem:[#allocation3 + $0x8] sm:$0x8] %vm461_vm6, %v986_v4 }
0x4eef   :  { %1050 = vrot.lane.b32.xlu0 %v5260_v24, %s4987_s15  ;;  %v918_v24 = vrot.slane %v5230_v8, 6 }
0x4ef4   :  { %v1183_v9 = vpop.permute.xlu2 %1182 }
0x4ef5   :  { %1185 = vst.msk [vmem:[#allocation3 + $0xc] sm:$0x4] %vm394_vm3, %v1183_v9 }
0x4ef7   :  { %1248 = vrot.lane.b32.xlu0 %v1247_v10, %s4987_s15  ;;  %v5608_v10 = vld [vmem:[%s5855_s5 + $0x8] sm:$0xff] }
0x4f51   :  { %v2741_v17 = vpop.permute.xlu0 %2740 }
0x4f52   :  { %v5579_v37 = vadd.f32 %v2741_v17, %v2733_v11  ;;  %v5614_v11 = vld [vmem:[%s5855_s5] sm:$0xff] }
0x4f54   :  { %4761 = vtanh.f32 %v5579_v37 }
0x4f59   :  { %v854_v44 = vpop.permute.xlu0 %853 }
0x4f5a   :  { %v4762_v20 = vpop.eup %4761  ;;  %856 = vst.msk [vmem:[#allocation3 + $0x8] sm:$0x2] %vm327_vm7, %v854_v44 }
0x4f5b   :  { %2746 = vrot.lane.b32.xlu1 %v4762_v20, %s4986_s1 }
0x4f61   :  { %v1051_v21 = vpop.permute.xlu0 %1050 }
0x4f62   :  { %1053 = vst.msk [vmem:[#allocation3 + $0xc] sm:$0x1] %vm260_vm5, %v1051_v21 }
0x4f63   :  { %919 = vrot.lane.b32.xlu1 %v918_v24, %s4987_s15 }
0x4f69   :  { %v1249_v22 = vpop.permute.xlu0 %1248 }
0x4f6a   :  { %1251 = vst.msk [vmem:[#allocation3 + $0xc] sm:$0x8] %vm461_vm6, %v1249_v22 }
0x4f6b   :  { %1116 = vrot.lane.b32.xlu1 %v1115_v18, %s4987_s15 }
0x4fcd   :  { %v2747_v25 = vpop.permute.xlu1 %2746 }
0x4fce   :  { %v2749_v13 = vmul.f32 %v2747_v25, %v2730_v57 }
0x4fd0   :  { %v2751_v16 = vpack.c.bf16 %v2749_v13, %v2749_v13 }
0x4fd2   :  { %2753 = vrot.lane.b32.xlu1 %v2751_v16, %s4987_s15 }
0x4fd5   :  { %v920_v28 = vpop.permute.xlu1 %919 }
0x4fd6   :  { %922 = vst.msk [vmem:[#allocation3 + $0x8] sm:$0x4] %vm394_vm3, %v920_v28 }
0x4fdd   :  { %v1117_v8 = vpop.permute.xlu1 %1116 }
0x4fde   :  { %1119 = vst.msk [vmem:[#allocation3 + $0xc] sm:$0x2] %vm327_vm7, %v1117_v8 }
0x4fe5   :  { %v4447_v30 = vld [vmem:[#allocation3 + $0x8] sm:$0xff] }
0x4fe6   :  { %4333 = vmatmul.msk.bf16.gmra.mxu0 %vm200_vm4, %v4447_v30 }
0x5044   :  { %v2754_v58 = vpop.permute.xlu1 %2753 }
0x5045   :  { %4359 = vmatmul.msk.bf16.vlgmr.msrb.gmra.mxu3 %vm200_vm4, %v2754_v58 }
0x5046   :  { %3177 = vmatpush.bf16.msrb.mxu3 %v5447_v19 }
0x504a   :  { %3178 = vmatpush.bf16.msrb.mxu3 %v5453_v49 }
0x5063   :  { %v2246_v43 = vpop.f32.mrf.mxu0 }
0x5064   :  { %v2247_v15 = vadd.f32 %v5476_v6, %v2246_v43 }
0x5066   :  { %2263 = vst [vmem:[#allocation2 + $0x10] sm:$0xff] %v2247_v15 }
0x506b   :  { %v2248_v52 = vpop.f32.mrf.mxu0 }
0x506c   :  { %v2249_v33 = vadd.f32 %v5476_v6, %v2248_v52 }
0x506d   :  { %v2750_v34 = vld [vmem:[#allocation2 + $0x10] sm:$0x3]  ;;  %v2809_v17 = vld [vmem:[#allocation2 + $0x12] sm:$0x3] }
0x506e   :  { %2264 = vst [vmem:[#allocation2 + $0x18] sm:$0xff] %v2249_v33 }
0x50c8   :  { %v2767_v12 = vpop.f32.mrf.mxu3 }
0x50c9   :  { %v2771_v32 = vadd.f32 %v2767_v12, %v2750_v34 }
0x50cb   :  { %4763 = vtanh.f32 %v2771_v32  ;;  %v4360_v42 = vmul.f32 -1.442695, %v2771_v32 }
0x50cd   :  { %4765 = vpow2.f32 %v4360_v42 }
0x50d0   :  { %v2769_v62 = vpop.f32.mrf.mxu3 }
0x50d1   :  { %v4764_v14 = vpop.eup %4763 }
0x50d2   :  { %2794 = vrot.lane.b32.xlu2 %v4764_v14, %s4986_s1 }
0x50d3   :  { %v4766_v19 = vpop.eup %4765 }
0x50d4   :  { %v2775_v49 = vadd.f32 1.0, %v4766_v19 }
0x50d6   :  { %4767 = vrcp.f32 %v2775_v49  ;;  %v2787_v6 = vand.u32 2147483648, %v2775_v49  ;;  %vm2781_vm0 = vweird.f32 %v2775_v49  ;;  %v2785_v53 = vand.u32 2147483647, %v2775_v49 }
0x50d8   :  { %v2788_v55 = vor.u32 1.1754944e-38, %v2787_v6  ;;  %vm2786_vm2 = vcmp.eq.f32.partialorder %v2785_v53, 8.507059e+37 }
0x50dc   :  { %v4768_v47 = vpop.eup %4767 }
0x50dd   :  { %v2777_v26 = vmul.f32 %v4768_v47, %v2775_v49  ;;  %vm2782_vm15 = vweird.f32 %v4768_v47 }
0x50de   :  { %vm2783_vm1 = vmor %vm2781_vm0, %vm2782_vm15 }
0x50df   :  { %v2778_v5 = vsub.f32 1.0, %v2777_v26  ;;  %v2868_v26 = vld [vmem:[#allocation2 + $0x14] sm:$0x3] }
0x50e1   :  { %v2779_v45 = vmul.f32 %v4768_v47, %v2778_v5 }
0x50e3   :  { %v2780_v51 = vadd.f32 %v4768_v47, %v2779_v45 }
0x50e5   :  { %v2784_v54 = vsel %vm2783_vm1, %v4768_v47, %v2780_v51 }
0x50e6   :  { %v2789_v48 = vsel %vm2786_vm2, %v2788_v55, %v2784_v54 }
0x50e7   :  { %v2792_v56 = vmul.f32 %v2789_v48, %v5579_v37 }
0x512c   :  { %v2795_v63 = vpop.permute.xlu2 %2794 }
0x512d   :  { %v2797_v3 = vmul.f32 %v2795_v63, %v2789_v48 }
0x512f   :  { %2799 = vrot.lane.b32.xlu0 %v2797_v3, %s4987_s15 }
0x51a1   :  { %v2800_v38 = vpop.permute.xlu0 %2799 }
0x51a2   :  { %v2802_v57 = vadd.f32 %v2800_v38, %v2792_v56 }
0x51a4   :  { %4769 = vtanh.f32 %v2802_v57 }
0x51aa   :  { %v4770_v60 = vpop.eup %4769 }
0x51ab   :  { %2805 = vrot.lane.b32.xlu1 %v4770_v60, %s4986_s1 }
0x521d   :  { %v2806_v0 = vpop.permute.xlu1 %2805 }
0x521e   :  { %v2808_v1 = vmul.f32 %v2806_v0, %v2789_v48 }
0x5220   :  { %v2810_v4 = vpack.c.bf16 %v2808_v1, %v2808_v1 }
0x5222   :  { %2812 = vrot.lane.b32.xlu2 %v2810_v4, %s4987_s15  ;;  %v2106_v4 = vld [vmem:[#allocation2 + $0x3a] sm:$0x3] }
0x527c   :  { %v2813_v9 = vpop.permute.xlu2 %2812 }
0x527d   :  { %4361 = vmatmul.msk.bf16.vlgmr.msra.gmra.mxu1 %vm200_vm4, %v2813_v9  ;;  %v2127_v9 = vadd.f32 %v5525_v46, %v2106_v4 }
0x527e   :  { %3295 = vmatpush.bf16.msra.mxu1 %v5608_v10 }
0x5282   :  { %3296 = vmatpush.bf16.msra.mxu1 %v5614_v11 }
0x52fa   :  { %v2826_v37 = vpop.f32.mrf.mxu1 }
0x52fb   :  { %v2830_v44 = vadd.f32 %v2826_v37, %v2809_v17 }
0x52fd   :  { %4771 = vtanh.f32 %v2830_v44  ;;  %v4362_v21 = vmul.f32 -1.442695, %v2830_v44 }
0x52ff   :  { %4773 = vpow2.f32 %v4362_v21 }
0x5302   :  { %v2828_v20 = vpop.f32.mrf.mxu1 }
0x5303   :  { %v4772_v24 = vpop.eup %4771 }
0x5304   :  { %2853 = vrot.lane.b32.xlu0 %v4772_v24, %s4986_s1 }
0x5305   :  { %v4774_v18 = vpop.eup %4773 }
0x5306   :  { %v2834_v22 = vadd.f32 1.0, %v4774_v18 }
0x5308   :  { %4775 = vrcp.f32 %v2834_v22  ;;  %v2846_v30 = vand.u32 2147483648, %v2834_v22  ;;  %vm2840_vm9 = vweird.f32 %v2834_v22  ;;  %v2844_v58 = vand.u32 2147483647, %v2834_v22 }
0x530a   :  { %v2847_v15 = vor.u32 1.1754944e-38, %v2846_v30  ;;  %vm2845_vm11 = vcmp.eq.f32.partialorder %v2844_v58, 8.507059e+37 }
0x530e   :  { %v4776_v25 = vpop.eup %4775 }
0x530f   :  { %v2836_v13 = vmul.f32 %v4776_v25, %v2834_v22  ;;  %vm2841_vm8 = vweird.f32 %v4776_v25 }
0x5310   :  { %vm2842_vm10 = vmor %vm2840_vm9, %vm2841_vm8 }
0x5311   :  { %v2837_v16 = vsub.f32 1.0, %v2836_v13 }
0x5313   :  { %v2838_v28 = vmul.f32 %v4776_v25, %v2837_v16 }
0x5315   :  { %v2839_v8 = vadd.f32 %v4776_v25, %v2838_v28 }
0x5317   :  { %v2843_v43 = vsel %vm2842_vm10, %v4776_v25, %v2839_v8  ;;  %v4307_v25 = vmul.f32 -1.442695, %v2127_v9 }
0x5318   :  { %v2848_v33 = vsel %vm2845_vm11, %v2847_v15, %v2843_v43 }
0x5319   :  { %v2851_v12 = vmul.f32 %v2848_v33, %v2802_v57 }
0x5376   :  { %v2854_v52 = vpop.permute.xlu0 %2853 }
0x5377   :  { %v2856_v34 = vmul.f32 %v2854_v52, %v2848_v33 }
0x5379   :  { %2858 = vrot.lane.b32.xlu1 %v2856_v34, %s4987_s15 }
0x53eb   :  { %v2859_v32 = vpop.permute.xlu1 %2858 }
0x53ec   :  { %v2861_v62 = vadd.f32 %v2859_v32, %v2851_v12 }
0x53ee   :  { %4777 = vtanh.f32 %v2861_v62 }
0x53f4   :  { %v4778_v14 = vpop.eup %4777 }
0x53f5   :  { %2864 = vrot.lane.b32.xlu2 %v4778_v14, %s4986_s1 }
0x544f   :  { %v2865_v42 = vpop.permute.xlu2 %2864 }
0x5450   :  { %v2867_v19 = vmul.f32 %v2865_v42, %v2848_v33 }
0x5452   :  { %v2869_v49 = vpack.c.bf16 %v2867_v19, %v2867_v19  ;;  %v1444_v19 = vrot.slane %v5338_v35, 6 }
0x5454   :  { %2871 = vrot.lane.b32.xlu0 %v2869_v49, %s4987_s15 }
0x54c6   :  { %v2872_v47 = vpop.permute.xlu0 %2871 }
0x54c7   :  { %4363 = vmatmul.msk.bf16.vlgmr.msra.gmra.mxu2 %vm200_vm4, %v2872_v47 }
0x54c8   :  { %3354 = vmatpush.bf16.msra.mxu2 %v5608_v10 }
0x54cc   :  { %3355 = vmatpush.bf16.msra.mxu2 %v5614_v11 }
0x554a   :  { %v2885_v5 = vpop.f32.mrf.mxu2 }
0x554b   :  { %v2889_v45 = vadd.f32 %v2885_v5, %v2868_v26  ;;  %v2927_v5 = vld [vmem:[#allocation2 + $0x16] sm:$0x3] }
0x554d   :  { %4779 = vtanh.f32 %v2889_v45  ;;  %v4364_v53 = vmul.f32 -1.442695, %v2889_v45 }
0x554f   :  { %4781 = vpow2.f32 %v4364_v53 }
0x5552   :  { %v2887_v51 = vpop.f32.mrf.mxu2 }
0x5553   :  { %v4780_v6 = vpop.eup %4779 }
0x5554   :  { %2912 = vrot.lane.b32.xlu1 %v4780_v6, %s4986_s1 }
0x5555   :  { %v4782_v54 = vpop.eup %4781 }
0x5556   :  { %v2893_v55 = vadd.f32 1.0, %v4782_v54 }
0x5558   :  { %4783 = vrcp.f32 %v2893_v55  ;;  %v2905_v57 = vand.u32 2147483648, %v2893_v55  ;;  %vm2899_vm13 = vweird.f32 %v2893_v55  ;;  %v2903_v60 = vand.u32 2147483647, %v2893_v55 }
0x5559   :  { %4785 = vtanh.f32 %v2127_v9 }
0x555a   :  { %v2906_v1 = vor.u32 1.1754944e-38, %v2905_v57  ;;  %vm2904_vm15 = vcmp.eq.f32.partialorder %v2903_v60, 8.507059e+37 }
0x555e   :  { %v4784_v63 = vpop.eup %4783 }
0x555f   :  { %v2895_v48 = vmul.f32 %v4784_v63, %v2893_v55  ;;  %vm2900_vm12 = vweird.f32 %v4784_v63  ;;  %v4786_v20 = vpop.eup %4785 }
0x5560   :  { %vm2901_vm14 = vmor %vm2899_vm13, %vm2900_vm12 }
0x5561   :  { %v2896_v3 = vsub.f32 1.0, %v2895_v48  ;;  %v1773_v48 = vrot.slane %v5384_v7, 5 }
0x5563   :  { %v2897_v56 = vmul.f32 %v4784_v63, %v2896_v3 }
0x5565   :  { %v2898_v38 = vadd.f32 %v4784_v63, %v2897_v56 }
0x5567   :  { %v2902_v0 = vsel %vm2901_vm14, %v4784_v63, %v2898_v38  ;;  %v1378_v63 = vrot.slane %v5326_v50, 7 }
0x5568   :  { %v2907_v37 = vsel %vm2904_vm15, %v2906_v1, %v2902_v0 }
0x5569   :  { %v2910_v24 = vmul.f32 %v2907_v37, %v2861_v62 }
0x55c6   :  { %v2913_v17 = vpop.permute.xlu1 %2912 }
0x55c7   :  { %v2915_v44 = vmul.f32 %v2913_v17, %v2907_v37 }
0x55c9   :  { %2917 = vrot.lane.b32.xlu2 %v2915_v44, %s4987_s15 }
0x55d1   :  { %2150 = vrot.lane.b32.xlu2 %v4786_v20, %s4986_s1 }
0x5623   :  { %v2918_v21 = vpop.permute.xlu2 %2917 }
0x5624   :  { %v5628_v18 = vadd.f32 %v2918_v21, %v2910_v24 }
0x5626   :  { %4787 = vtanh.f32 %v5628_v18 }
0x5627   :  { %4789 = vpow2.f32 %v4307_v25  ;;  %v1510_v25 = vrot.slane %v5348_v23, 5 }
0x562b   :  { %v2151_v62 = vpop.permute.xlu2 %2150 }
0x562c   :  { %v4788_v22 = vpop.eup %4787 }
0x562d   :  { %2923 = vrot.lane.b32.xlu0 %v4788_v22, %s4986_s1  ;;  %v4790_v46 = vpop.eup %4789 }
0x562e   :  { %v2131_v13 = vadd.f32 1.0, %v4790_v46 }
0x5630   :  { %4791 = vrcp.f32 %v2131_v13  ;;  %v2143_v33 = vand.u32 2147483648, %v2131_v13  ;;  %vm2137_vm1 = vweird.f32 %v2131_v13  ;;  %v2141_v34 = vand.u32 2147483647, %v2131_v13 }
0x5632   :  { %v2144_v32 = vor.u32 1.1754944e-38, %v2143_v33  ;;  %vm2142_vm8 = vcmp.eq.f32.partialorder %v2141_v34, 8.507059e+37 }
0x5636   :  { %v4792_v16 = vpop.eup %4791 }
0x5637   :  { %v2133_v28 = vmul.f32 %v4792_v16, %v2131_v13  ;;  %vm2138_vm0 = vweird.f32 %v4792_v16  ;;  %v1707_v13 = vrot.slane %v5376_v27, 6 }
0x5638   :  { %vm2139_vm2 = vmor %vm2137_vm1, %vm2138_vm0 }
0x5639   :  { %v2134_v8 = vsub.f32 1.0, %v2133_v28 }
0x563b   :  { %v2135_v30 = vmul.f32 %v4792_v16, %v2134_v8 }
0x563d   :  { %v2136_v15 = vadd.f32 %v4792_v16, %v2135_v30 }
0x563f   :  { %v2140_v12 = vsel %vm2139_vm2, %v4792_v16, %v2136_v15 }
0x5640   :  { %v2145_v14 = vsel %vm2142_vm8, %v2144_v32, %v2140_v12 }
0x5641   :  { %v2153_v42 = vmul.f32 %v2151_v62, %v2145_v14  ;;  %v2148_v6 = vmul.f32 %v2145_v14, %v5508_v31  ;;  %v1970_v31 = vrot.slane %v5429_v36, 6 }
0x569f   :  { %v2924_v58 = vpop.permute.xlu0 %2923 }
0x56a0   :  { %v2926_v43 = vmul.f32 %v2924_v58, %v2907_v37 }
0x56a2   :  { %v2928_v52 = vpack.c.bf16 %v2926_v43, %v2926_v43 }
0x56a4   :  { %2930 = vrot.lane.b32.xlu1 %v2928_v52, %s4987_s15 }
0x56ac   :  { %2155 = vrot.lane.b32.xlu1 %v2153_v42, %s4987_s15 }
0x56b4   :  { %1445 = vrot.lane.b32.xlu1 %v1444_v19, %s4987_s15 }
0x5716   :  { %v2931_v49 = vpop.permute.xlu1 %2930 }
0x5717   :  { %4365 = vmatmul.msk.bf16.vlgmr.msra.gmra.mxu3 %vm200_vm4, %v2931_v49 }
0x5718   :  { %3413 = vmatpush.bf16.msra.mxu3 %v5608_v10 }
0x571c   :  { %3414 = vmatpush.bf16.msra.mxu3 %v5614_v11 }
0x571e   :  { %v2156_v47 = vpop.permute.xlu1 %2155 }
0x571f   :  { %v2158_v35 = vadd.f32 %v2156_v47, %v2148_v6 }
0x5726   :  { %v1446_v26 = vpop.permute.xlu1 %1445 }
0x5727   :  { %1448 = vst.msk [vmem:[#allocation3 + $0x10] sm:$0x4] %vm394_vm3, %v1446_v26  ;;  %v4956_v26 = vld [vmem:[%s5856_s6] ss:$0 sm:$0xff] }
0x579a   :  { %v2944_v45 = vpop.f32.mrf.mxu3 }
0x579b   :  { %v2948_v51 = vadd.f32 %v2944_v45, %v2927_v5 }
0x579d   :  { %4793 = vtanh.f32 %v2948_v51  ;;  %v4366_v3 = vmul.f32 -1.442695, %v2948_v51 }
0x579e   :  { %4795 = vtanh.f32 %v2158_v35 }
0x579f   :  { %4797 = vpow2.f32 %v4366_v3 }
0x57a2   :  { %v2946_v53 = vpop.f32.mrf.mxu3 }
0x57a3   :  { %v4794_v54 = vpop.eup %4793 }
0x57a4   :  { %2971 = vrot.lane.b32.xlu0 %v4794_v54, %s4986_s1  ;;  %v4796_v55 = vpop.eup %4795 }
0x57a5   :  { %v4798_v56 = vpop.eup %4797 }
0x57a6   :  { %v2952_v38 = vadd.f32 1.0, %v4798_v56 }
0x57a8   :  { %4799 = vrcp.f32 %v2952_v38  ;;  %vm2958_vm10 = vweird.f32 %v2952_v38  ;;  %v2962_v7 = vand.u32 2147483647, %v2952_v38 }
0x57aa   :  { %vm2963_vm12 = vcmp.eq.f32.partialorder %v2962_v7, 8.507059e+37 }
0x57ac   :  { %2161 = vrot.lane.b32.xlu0 %v4796_v55, %s4986_s1  ;;  %v2986_v55 = vld [vmem:[#allocation2 + $0x18] sm:$0x3] }
0x57ae   :  { %v4800_v57 = vpop.eup %4799 }
0x57af   :  { %v2954_v50 = vmul.f32 %v4800_v57, %v2952_v38  ;;  %vm2959_vm9 = vweird.f32 %v4800_v57 }
0x57b0   :  { %vm2960_vm11 = vmor %vm2958_vm10, %vm2959_vm9 }
0x57b1   :  { %v2955_v60 = vsub.f32 1.0, %v2954_v50 }
0x57b3   :  { %v2956_v0 = vmul.f32 %v4800_v57, %v2955_v60 }
0x57b4   :  { %1379 = vrot.lane.b32.xlu0 %v1378_v63, %s4987_s15 }
0x57b5   :  { %v2957_v1 = vadd.f32 %v4800_v57, %v2956_v0 }
0x57b7   :  { %v2961_v4 = vsel %vm2960_vm11, %v4800_v57, %v2957_v1 }
0x57bc   :  { %1576 = vrot.lane.b32.xlu0 %v5358_v59, %s4987_s15  ;;  %v2964_v59 = vand.u32 2147483648, %v2952_v38 }
0x57be   :  { %v2965_v9 = vor.u32 1.1754944e-38, %v2964_v59 }
0x57c0   :  { %v2966_v17 = vsel %vm2963_vm12, %v2965_v9, %v2961_v4 }
0x57c1   :  { %v2969_v23 = vmul.f32 %v2966_v17, %v5628_v18  ;;  %v2036_v18 = vrot.slane %v5492_v29, 5 }
0x57c4   :  { %1774 = vrot.lane.b32.xlu0 %v1773_v48, %s4987_s15 }
0x57cc   :  { %1971 = vrot.lane.b32.xlu0 %v1970_v31, %s4987_s15 }
0x5816   :  { %v2972_v36 = vpop.permute.xlu0 %2971 }
0x5817   :  { %v2974_v37 = vmul.f32 %v2972_v36, %v2966_v17 }
0x5819   :  { %2976 = vrot.lane.b32.xlu2 %v2974_v37, %s4987_s15 }
0x581e   :  { %v2162_v44 = vpop.permute.xlu0 %2161 }
0x581f   :  { %v2164_v20 = vmul.f32 %v2162_v44, %v2145_v14 }
0x5821   :  { %v2165_v24 = vpack.c.bf16 %v2164_v20, %v2164_v20  ;;  %1313 = vrot.lane.b32.xlu2 %v5310_v61, %s4987_s15  ;;  %v1904_v61 = vrot.slane %v5400_v40, 7  ;;  %v1641_v40 = vrot.slane %v5368_v41, 7 }
0x5823   :  { %v2167_v21 = vrot.slane %v2165_v24, 7 }
0x5825   :  { %2168 = vrot.lane.b32.xlu0 %v2167_v21, %s4987_s15 }
0x5826   :  { %v1380_v22 = vpop.permute.xlu0 %1379 }
0x5827   :  { %1382 = vst.msk [vmem:[#allocation3 + $0x10] sm:$0x2] %vm327_vm7, %v1380_v22 }
0x5829   :  { %1511 = vrot.lane.b32.xlu2 %v1510_v25, %s4987_s15 }
0x582e   :  { %v1577_v46 = vpop.permute.xlu0 %1576 }
0x582f   :  { %1579 = vst.msk [vmem:[#allocation3 + $0x14] sm:$0x1] %vm260_vm5, %v1577_v46 }
0x5831   :  { %1708 = vrot.lane.b32.xlu2 %v1707_v13, %s4987_s15 }
0x5836   :  { %v1775_v16 = vpop.permute.xlu0 %1774 }
0x5837   :  { %1777 = vst.msk [vmem:[#allocation3 + $0x14] sm:$0x8] %vm461_vm6, %v1775_v16 }
0x5839   :  { %1905 = vrot.lane.b32.xlu2 %v1904_v61, %s4987_s15  ;;  %v3045_v61 = vld [vmem:[#allocation2 + $0x1a] sm:$0x3] }
0x583e   :  { %v1972_v28 = vpop.permute.xlu0 %1971 }
0x583f   :  { %1974 = vst.msk [vmem:[#allocation3 + $0x18] sm:$0x4] %vm394_vm3, %v1972_v28 }
0x5841   :  { %2102 = vrot.lane.b32.xlu2 %v5514_v39, %s4987_s15 }
0x5873   :  { %v2977_v27 = vpop.permute.xlu2 %2976 }
0x5874   :  { %v5668_v8 = vadd.f32 %v2977_v27, %v2969_v23 }
0x5876   :  { %4801 = vtanh.f32 %v5668_v8 }
0x587b   :  { %v1314_v30 = vpop.permute.xlu2 %1313 }
0x587c   :  { %v4802_v58 = vpop.eup %4801  ;;  %1316 = vst.msk [vmem:[#allocation3 + $0x10] sm:$0x1] %vm260_vm5, %v1314_v30 }
0x587d   :  { %2982 = vrot.lane.b32.xlu1 %v4802_v58, %s4986_s1 }
0x5883   :  { %v1512_v43 = vpop.permute.xlu2 %1511 }
0x5884   :  { %1514 = vst.msk [vmem:[#allocation3 + $0x10] sm:$0x8] %vm461_vm6, %v1512_v43 }
0x5885   :  { %1642 = vrot.lane.b32.xlu1 %v1641_v40, %s4987_s15 }
0x588b   :  { %v1709_v39 = vpop.permute.xlu2 %1708 }
0x588c   :  { %1711 = vst.msk [vmem:[#allocation3 + $0x14] sm:$0x4] %vm394_vm3, %v1709_v39 }
0x588d   :  { %1839 = vrot.lane.b32.xlu1 %v5392_v2, %s4987_s15 }
0x5893   :  { %v1906_v15 = vpop.permute.xlu2 %1905 }
0x5894   :  { %1908 = vst.msk [vmem:[#allocation3 + $0x18] sm:$0x2] %vm327_vm7, %v1906_v15 }
0x5895   :  { %2037 = vrot.lane.b32.xlu1 %v2036_v18, %s4987_s15 }
0x5897   :  { %v2169_v52 = vpop.permute.xlu0 %2168 }
0x5898   :  { %2171 = vst.msk [vmem:[#allocation3 + $0x1c] sm:$0x2] %vm327_vm7, %v2169_v52 }
0x589b   :  { %v2103_v41 = vpop.permute.xlu2 %2102 }
0x589c   :  { %2105 = vst.msk [vmem:[#allocation3 + $0x1c] sm:$0x1] %vm260_vm5, %v2103_v41 }
0x58a3   :  { %v4449_v42 = vld [vmem:[#allocation3 + $0x18] sm:$0x30] }
0x58ef   :  { %v2983_v33 = vpop.permute.xlu1 %2982 }
0x58f0   :  { %v2985_v34 = vmul.f32 %v2983_v33, %v2966_v17 }
0x58f2   :  { %v2987_v12 = vpack.c.bf16 %v2985_v34, %v2985_v34 }
0x58f4   :  { %2989 = vrot.lane.b32.xlu1 %v2987_v12, %s4987_s15 }
0x58f7   :  { %v1643_v32 = vpop.permute.xlu1 %1642 }
0x58f8   :  { %1645 = vst.msk [vmem:[#allocation3 + $0x14] sm:$0x2] %vm327_vm7, %v1643_v32 }
0x58ff   :  { %v1840_v2 = vpop.permute.xlu1 %1839  ;;  %v4448_v29 = vld [vmem:[#allocation3 + $0x10] sm:$0xff] }
0x5900   :  { %1842 = vst.msk [vmem:[#allocation3 + $0x18] sm:$0x1] %vm260_vm5, %v1840_v2  ;;  %4334 = vmatmul.msk.bf16.gmra.mxu0 %vm200_vm4, %v4448_v29 }
0x5907   :  { %v2038_v62 = vpop.permute.xlu1 %2037 }
0x5908   :  { %2040 = vst.msk [vmem:[#allocation3 + $0x18] sm:$0x8] %vm461_vm6, %v2038_v62 }
0x590f   :  { %v4322_v14 = vld [vmem:[#allocation3 + $0x18] sm:$0xf] }
0x5910   :  { %v4323_v19 = vor.u32 %v4449_v42, %v4322_v14 }
0x5912   :  { %4335 = vmatmul.msk.bf16.gmra.mxu0 %vm200_vm4, %v4323_v19 }
0x5966   :  { %v2990_v49 = vpop.permute.xlu1 %2989 }
0x5967   :  { %4367 = vmatmul.msk.bf16.vlgmr.msrb.gmra.mxu0 %vm200_vm4, %v2990_v49 }
0x5968   :  { %3472 = vmatpush.bf16.msrb.mxu0 %v5608_v10 }
0x596c   :  { %3473 = vmatpush.bf16.msrb.mxu0 %v5614_v11 }
0x597d   :  { %v2251_v47 = vpop.f32.mrf.mxu0 }
0x597e   :  { %v2252_v5 = vadd.f32 %v4956_v26, %v2251_v47 }
0x5980   :  { %2265 = vst [vmem:[#allocation2 + $0x20] sm:$0xff] %v2252_v5 }
0x5985   :  { %v2253_v45 = vpop.f32.mrf.mxu0 }
0x5986   :  { %v2254_v51 = vadd.f32 %v4956_v26, %v2253_v45  ;;  %v3104_v45 = vld [vmem:[#allocation2 + $0x1c] sm:$0x3] }
0x5988   :  { %2266 = vst [vmem:[#allocation2 + $0x28] sm:$0xff] %v2254_v51 }
0x598f   :  { %v2256_v6 = vpop.f32.mrf.mxu0 }
0x5990   :  { %v2257_v35 = vadd.f32 %v4956_v26, %v2256_v6 }
0x5992   :  { %2267 = vst [vmem:[#allocation2 + $0x30] sm:$0xff] %v2257_v35 }
0x5997   :  { %v2258_v53 = vpop.f32.mrf.mxu0 }
0x5998   :  { %v2259_v54 = vadd.f32 %v4956_v26, %v2258_v53 }
0x599a   :  { %2268 = vst [vmem:[#allocation2 + $0x38] sm:$0xf] %v2259_v54 }
0x59e4   :  { %v3003_v63 = vpop.f32.mrf.mxu0 }
0x59e5   :  { %v3007_v48 = vadd.f32 %v3003_v63, %v2986_v55 }
0x59e7   :  { %4803 = vtanh.f32 %v3007_v48  ;;  %v4368_v56 = vmul.f32 -1.442695, %v3007_v48 }
0x59e9   :  { %4805 = vpow2.f32 %v4368_v56 }
0x59ec   :  { %v3005_v31 = vpop.f32.mrf.mxu0 }
0x59ed   :  { %v4804_v3 = vpop.eup %4803 }
0x59ee   :  { %3030 = vrot.lane.b32.xlu2 %v4804_v3, %s4986_s1 }
0x59ef   :  { %v4806_v38 = vpop.eup %4805 }
0x59f0   :  { %v3011_v57 = vadd.f32 1.0, %v4806_v38 }
0x59f2   :  { %4807 = vrcp.f32 %v3011_v57  ;;  %v3023_v7 = vand.u32 2147483648, %v3011_v57  ;;  %vm3017_vm5 = vweird.f32 %v3011_v57  ;;  %v3021_v4 = vand.u32 2147483647, %v3011_v57 }
0x59f4   :  { %v3024_v36 = vor.u32 1.1754944e-38, %v3023_v7  ;;  %vm3022_vm7 = vcmp.eq.f32.partialorder %v3021_v4, 8.507059e+37 }
0x59f8   :  { %v4808_v50 = vpop.eup %4807 }
0x59f9   :  { %v3013_v60 = vmul.f32 %v4808_v50, %v3011_v57  ;;  %vm3018_vm3 = vweird.f32 %v4808_v50 }
0x59fa   :  { %vm3019_vm6 = vmor %vm3017_vm5, %vm3018_vm3 }
0x59fb   :  { %v3014_v0 = vsub.f32 1.0, %v3013_v60 }
0x59fd   :  { %v3015_v1 = vmul.f32 %v4808_v50, %v3014_v0 }
0x59ff   :  { %v3016_v59 = vadd.f32 %v4808_v50, %v3015_v1 }
0x5a01   :  { %v3020_v9 = vsel %vm3019_vm6, %v4808_v50, %v3016_v59 }
0x5a02   :  { %v3025_v37 = vsel %vm3022_vm7, %v3024_v36, %v3020_v9 }
0x5a03   :  { %v3028_v20 = vmul.f32 %v3025_v37, %v5668_v8 }
0x5a48   :  { %v3031_v17 = vpop.permute.xlu2 %3030 }
0x5a49   :  { %v3033_v44 = vmul.f32 %v3031_v17, %v3025_v37 }
0x5a4b   :  { %3035 = vrot.lane.b32.xlu0 %v3033_v44, %s4987_s15 }
0x5abd   :  { %v3036_v24 = vpop.permute.xlu0 %3035 }
0x5abe   :  { %v3038_v21 = vadd.f32 %v3036_v24, %v3028_v20 }
0x5ac0   :  { %4809 = vtanh.f32 %v3038_v21 }
0x5ac6   :  { %v4810_v22 = vpop.eup %4809 }
0x5ac7   :  { %3041 = vrot.lane.b32.xlu1 %v4810_v22, %s4986_s1 }
0x5b39   :  { %v3042_v25 = vpop.permute.xlu1 %3041 }
0x5b3a   :  { %v3044_v46 = vmul.f32 %v3042_v25, %v3025_v37 }
0x5b3c   :  { %v3046_v13 = vpack.c.bf16 %v3044_v46, %v3044_v46 }
0x5b3e   :  { %3048 = vrot.lane.b32.xlu2 %v3046_v13, %s4987_s15 }
0x5b98   :  { %v3049_v16 = vpop.permute.xlu2 %3048 }
0x5b99   :  { %4369 = vmatmul.msk.bf16.vlgmr.msrb.gmra.mxu1 %vm200_vm4, %v3049_v16 }
0x5b9a   :  { %3531 = vmatpush.bf16.msrb.mxu1 %v5608_v10 }
0x5b9e   :  { %3532 = vmatpush.bf16.msrb.mxu1 %v5614_v11 }
0x5c16   :  { %v3062_v28 = vpop.f32.mrf.mxu1 }
0x5c17   :  { %v3066_v23 = vadd.f32 %v3062_v28, %v3045_v61 }
0x5c19   :  { %4811 = vtanh.f32 %v3066_v23  ;;  %v4370_v30 = vmul.f32 -1.442695, %v3066_v23 }
0x5c1b   :  { %4813 = vpow2.f32 %v4370_v30 }
0x5c1e   :  { %v3064_v27 = vpop.f32.mrf.mxu1 }
0x5c1f   :  { %v4812_v8 = vpop.eup %4811 }
0x5c20   :  { %3089 = vrot.lane.b32.xlu0 %v4812_v8, %s4986_s1 }
0x5c21   :  { %v4814_v58 = vpop.eup %4813 }
0x5c22   :  { %v3070_v40 = vadd.f32 1.0, %v4814_v58 }
0x5c24   :  { %4815 = vrcp.f32 %v3070_v40  ;;  %v3082_v41 = vand.u32 2147483648, %v3070_v40  ;;  %vm3076_vm14 = vweird.f32 %v3070_v40  ;;  %v3080_v33 = vand.u32 2147483647, %v3070_v40 }
0x5c26   :  { %v3083_v12 = vor.u32 1.1754944e-38, %v3082_v41  ;;  %vm3081_vm0 = vcmp.eq.f32.partialorder %v3080_v33, 8.507059e+37 }
0x5c2a   :  { %v4816_v43 = vpop.eup %4815 }
0x5c2b   :  { %v3072_v39 = vmul.f32 %v4816_v43, %v3070_v40  ;;  %vm3077_vm13 = vweird.f32 %v4816_v43 }
0x5c2c   :  { %vm3078_vm15 = vmor %vm3076_vm14, %vm3077_vm13 }
0x5c2d   :  { %v3073_v18 = vsub.f32 1.0, %v3072_v39 }
0x5c2f   :  { %v3074_v15 = vmul.f32 %v4816_v43, %v3073_v18 }
0x5c31   :  { %v3075_v52 = vadd.f32 %v4816_v43, %v3074_v15 }
0x5c33   :  { %v3079_v34 = vsel %vm3078_vm15, %v4816_v43, %v3075_v52 }
0x5c34   :  { %v3084_v2 = vsel %vm3081_vm0, %v3083_v12, %v3079_v34 }
0x5c35   :  { %v3087_v62 = vmul.f32 %v3084_v2, %v3038_v21  ;;  %v3163_v21 = vld [vmem:[#allocation2 + $0x1e] sm:$0x3] }
0x5c92   :  { %v3090_v32 = vpop.permute.xlu0 %3089 }
0x5c93   :  { %v3092_v29 = vmul.f32 %v3090_v32, %v3084_v2 }
0x5c95   :  { %3094 = vrot.lane.b32.xlu1 %v3092_v29, %s4987_s15 }
0x5d07   :  { %v3095_v14 = vpop.permute.xlu1 %3094 }
0x5d08   :  { %v3097_v42 = vadd.f32 %v3095_v14, %v3087_v62 }
0x5d0a   :  { %4817 = vtanh.f32 %v3097_v42 }
0x5d10   :  { %v4818_v19 = vpop.eup %4817 }
0x5d11   :  { %3100 = vrot.lane.b32.xlu2 %v4818_v19, %s4986_s1 }
0x5d6b   :  { %v3101_v49 = vpop.permute.xlu2 %3100 }
0x5d6c   :  { %v3103_v47 = vmul.f32 %v3101_v49, %v3084_v2 }
0x5d6e   :  { %v3105_v26 = vpack.c.bf16 %v3103_v47, %v3103_v47 }
0x5d70   :  { %3107 = vrot.lane.b32.xlu0 %v3105_v26, %s4987_s15 }
0x5de2   :  { %v3108_v5 = vpop.permute.xlu0 %3107 }
0x5de3   :  { %4371 = vmatmul.msk.bf16.vlgmr.msrb.gmra.mxu2 %vm200_vm4, %v3108_v5 }
0x5de4   :  { %3590 = vmatpush.bf16.msrb.mxu2 %v5608_v10 }
0x5de8   :  { %3591 = vmatpush.bf16.msrb.mxu2 %v5614_v11 }
0x5e66   :  { %v3121_v51 = vpop.f32.mrf.mxu2 }
0x5e67   :  { %v3125_v6 = vadd.f32 %v3121_v51, %v3104_v45 }
0x5e69   :  { %4819 = vtanh.f32 %v3125_v6  ;;  %v4372_v54 = vmul.f32 -1.442695, %v3125_v6 }
0x5e6b   :  { %4821 = vpow2.f32 %v4372_v54 }
0x5e6e   :  { %v3123_v35 = vpop.f32.mrf.mxu2 }
0x5e6f   :  { %v4820_v53 = vpop.eup %4819 }
0x5e70   :  { %3148 = vrot.lane.b32.xlu1 %v4820_v53, %s4986_s1 }
0x5e71   :  { %v4822_v55 = vpop.eup %4821 }
0x5e72   :  { %v3129_v63 = vadd.f32 1.0, %v4822_v55 }
0x5e74   :  { %4823 = vrcp.f32 %v3129_v63  ;;  %v3141_v57 = vand.u32 2147483648, %v3129_v63  ;;  %vm3135_vm2 = vweird.f32 %v3129_v63  ;;  %v3139_v50 = vand.u32 2147483647, %v3129_v63 }
0x5e76   :  { %v3142_v0 = vor.u32 1.1754944e-38, %v3141_v57  ;;  %vm3140_vm9 = vcmp.eq.f32.partialorder %v3139_v50, 8.507059e+37 }
0x5e7a   :  { %v4824_v48 = vpop.eup %4823 }
0x5e7b   :  { %v3131_v31 = vmul.f32 %v4824_v48, %v3129_v63  ;;  %vm3136_vm1 = vweird.f32 %v4824_v48 }
0x5e7c   :  { %vm3137_vm8 = vmor %vm3135_vm2, %vm3136_vm1 }
0x5e7d   :  { %v3132_v3 = vsub.f32 1.0, %v3131_v31 }
0x5e7f   :  { %v3133_v56 = vmul.f32 %v4824_v48, %v3132_v3 }
0x5e81   :  { %v3134_v38 = vadd.f32 %v4824_v48, %v3133_v56 }
0x5e83   :  { %v3138_v60 = vsel %vm3137_vm8, %v4824_v48, %v3134_v38 }
0x5e84   :  { %v3143_v59 = vsel %vm3140_vm9, %v3142_v0, %v3138_v60 }
0x5e85   :  { %v3146_v4 = vmul.f32 %v3143_v59, %v3097_v42  ;;  %v3222_v42 = vld [vmem:[#allocation2 + $0x20] sm:$0x3] }
0x5ee2   :  { %v3149_v1 = vpop.permute.xlu1 %3148 }
0x5ee3   :  { %v3151_v7 = vmul.f32 %v3149_v1, %v3143_v59 }
0x5ee5   :  { %3153 = vrot.lane.b32.xlu2 %v3151_v7, %s4987_s15 }
0x5f3f   :  { %v3154_v9 = vpop.permute.xlu2 %3153 }
0x5f40   :  { %v3156_v36 = vadd.f32 %v3154_v9, %v3146_v4 }
0x5f42   :  { %4825 = vtanh.f32 %v3156_v36 }
0x5f48   :  { %v4826_v17 = vpop.eup %4825 }
0x5f49   :  { %3159 = vrot.lane.b32.xlu0 %v4826_v17, %s4986_s1 }
0x5fbb   :  { %v3160_v37 = vpop.permute.xlu0 %3159 }
0x5fbc   :  { %v3162_v44 = vmul.f32 %v3160_v37, %v3143_v59 }
0x5fbe   :  { %v3164_v20 = vpack.c.bf16 %v3162_v44, %v3162_v44 }
0x5fc0   :  { %3166 = vrot.lane.b32.xlu1 %v3164_v20, %s4987_s15 }
0x6032   :  { %v3167_v24 = vpop.permute.xlu1 %3166 }
0x6033   :  { %4373 = vmatmul.msk.bf16.vlgmr.msrb.gmra.mxu3 %vm200_vm4, %v3167_v24 }
0x6034   :  { %3649 = vmatpush.bf16.msrb.mxu3 %v5608_v10 }
0x6038   :  { %3650 = vmatpush.bf16.msrb.mxu3 %v5614_v11 }
0x60b6   :  { %v3180_v22 = vpop.f32.mrf.mxu3 }
0x60b7   :  { %v3184_v25 = vadd.f32 %v3180_v22, %v3163_v21 }
0x60b9   :  { %4827 = vtanh.f32 %v3184_v25  ;;  %v4374_v16 = vmul.f32 -1.442695, %v3184_v25 }
0x60bb   :  { %4829 = vpow2.f32 %v4374_v16 }
0x60be   :  { %v3182_v46 = vpop.f32.mrf.mxu3 }
0x60bf   :  { %v4828_v13 = vpop.eup %4827 }
0x60c0   :  { %3207 = vrot.lane.b32.xlu2 %v4828_v13, %s4986_s1 }
0x60c1   :  { %v4830_v61 = vpop.eup %4829 }
0x60c2   :  { %v3188_v28 = vadd.f32 1.0, %v4830_v61 }
0x60c4   :  { %4831 = vrcp.f32 %v3188_v28  ;;  %v3200_v40 = vand.u32 2147483648, %v3188_v28  ;;  %vm3194_vm11 = vweird.f32 %v3188_v28  ;;  %v3198_v43 = vand.u32 2147483647, %v3188_v28 }
0x60c6   :  { %v3201_v18 = vor.u32 1.1754944e-38, %v3200_v40  ;;  %vm3199_vm3 = vcmp.eq.f32.partialorder %v3198_v43, 8.507059e+37 }
0x60ca   :  { %v4832_v23 = vpop.eup %4831 }
0x60cb   :  { %v3190_v27 = vmul.f32 %v4832_v23, %v3188_v28  ;;  %vm3195_vm10 = vweird.f32 %v4832_v23 }
0x60cc   :  { %vm3196_vm12 = vmor %vm3194_vm11, %vm3195_vm10 }
0x60cd   :  { %v3191_v8 = vsub.f32 1.0, %v3190_v27 }
0x60cf   :  { %v3192_v30 = vmul.f32 %v4832_v23, %v3191_v8 }
0x60d1   :  { %v3193_v58 = vadd.f32 %v4832_v23, %v3192_v30 }
0x60d3   :  { %v3197_v39 = vsel %vm3196_vm12, %v4832_v23, %v3193_v58 }
0x60d4   :  { %v3202_v52 = vsel %vm3199_vm3, %v3201_v18, %v3197_v39 }
0x60d5   :  { %v3205_v33 = vmul.f32 %v3202_v52, %v3156_v36  ;;  %v3281_v36 = vld [vmem:[#allocation2 + $0x22] sm:$0x3] }
0x611a   :  { %v3208_v15 = vpop.permute.xlu2 %3207 }
0x611b   :  { %v3210_v41 = vmul.f32 %v3208_v15, %v3202_v52 }
0x611d   :  { %3212 = vrot.lane.b32.xlu0 %v3210_v41, %s4987_s15 }
0x618f   :  { %v3213_v34 = vpop.permute.xlu0 %3212 }
0x6190   :  { %v3215_v12 = vadd.f32 %v3213_v34, %v3205_v33 }
0x6192   :  { %4833 = vtanh.f32 %v3215_v12 }
0x6198   :  { %v4834_v32 = vpop.eup %4833 }
0x6199   :  { %3218 = vrot.lane.b32.xlu1 %v4834_v32, %s4986_s1 }
0x620b   :  { %v3219_v2 = vpop.permute.xlu1 %3218 }
0x620c   :  { %v3221_v29 = vmul.f32 %v3219_v2, %v3202_v52 }
0x620e   :  { %v3223_v62 = vpack.c.bf16 %v3221_v29, %v3221_v29 }
0x6210   :  { %3225 = vrot.lane.b32.xlu2 %v3223_v62, %s4987_s15 }
0x626a   :  { %v3226_v14 = vpop.permute.xlu2 %3225 }
0x626b   :  { %4375 = vmatmul.msk.bf16.vlgmr.msra.gmra.mxu0 %vm200_vm4, %v3226_v14 }
0x626c   :  { %3708 = vmatpush.bf16.msra.mxu0 %v5608_v10 }
0x6270   :  { %3709 = vmatpush.bf16.msra.mxu0 %v5614_v11 }
0x62e8   :  { %v3239_v19 = vpop.f32.mrf.mxu0 }
0x62e9   :  { %v3243_v49 = vadd.f32 %v3239_v19, %v3222_v42 }
0x62eb   :  { %4835 = vtanh.f32 %v3243_v49  ;;  %v4376_v5 = vmul.f32 -1.442695, %v3243_v49 }
0x62ed   :  { %4837 = vpow2.f32 %v4376_v5 }
0x62f0   :  { %v3241_v47 = vpop.f32.mrf.mxu0 }
0x62f1   :  { %v4836_v26 = vpop.eup %4835 }
0x62f2   :  { %3266 = vrot.lane.b32.xlu0 %v4836_v26, %s4986_s1 }
0x62f3   :  { %v4838_v45 = vpop.eup %4837 }
0x62f4   :  { %v3247_v51 = vadd.f32 1.0, %v4838_v45 }
0x62f6   :  { %4839 = vrcp.f32 %v3247_v51  ;;  %v3259_v63 = vand.u32 2147483648, %v3247_v51  ;;  %vm3253_vm6 = vweird.f32 %v3247_v51  ;;  %v3257_v48 = vand.u32 2147483647, %v3247_v51 }
0x62f8   :  { %v3260_v3 = vor.u32 1.1754944e-38, %v3259_v63  ;;  %vm3258_vm13 = vcmp.eq.f32.partialorder %v3257_v48, 8.507059e+37 }
0x62fc   :  { %v4840_v6 = vpop.eup %4839 }
0x62fd   :  { %v3249_v35 = vmul.f32 %v4840_v6, %v3247_v51  ;;  %vm3254_vm5 = vweird.f32 %v4840_v6 }
0x62fe   :  { %vm3255_vm7 = vmor %vm3253_vm6, %vm3254_vm5 }
0x62ff   :  { %v3250_v53 = vsub.f32 1.0, %v3249_v35 }
0x6301   :  { %v3251_v54 = vmul.f32 %v4840_v6, %v3250_v53 }
0x6303   :  { %v3252_v55 = vadd.f32 %v4840_v6, %v3251_v54 }
0x6305   :  { %v3256_v31 = vsel %vm3255_vm7, %v4840_v6, %v3252_v55 }
0x6306   :  { %v3261_v38 = vsel %vm3258_vm13, %v3260_v3, %v3256_v31 }
0x6307   :  { %v3264_v50 = vmul.f32 %v3261_v38, %v3215_v12  ;;  %v3340_v12 = vld [vmem:[#allocation2 + $0x24] sm:$0x3] }
0x6364   :  { %v3267_v56 = vpop.permute.xlu0 %3266 }
0x6365   :  { %v3269_v57 = vmul.f32 %v3267_v56, %v3261_v38 }
0x6367   :  { %3271 = vrot.lane.b32.xlu1 %v3269_v57, %s4987_s15 }
0x63d9   :  { %v3272_v60 = vpop.permute.xlu1 %3271 }
0x63da   :  { %v3274_v0 = vadd.f32 %v3272_v60, %v3264_v50  ;;  %v5747_v50 = vld [vmem:[%s5855_s5 + $0x8] sm:$0xff]  ;;  %v5753_v60 = vld [vmem:[%s5855_s5] sm:$0xff] }
0x63dc   :  { %4841 = vtanh.f32 %v3274_v0 }
0x63e2   :  { %v4842_v1 = vpop.eup %4841 }
0x63e3   :  { %3277 = vrot.lane.b32.xlu2 %v4842_v1, %s4986_s1 }
0x643d   :  { %v3278_v59 = vpop.permute.xlu2 %3277 }
0x643e   :  { %v3280_v7 = vmul.f32 %v3278_v59, %v3261_v38 }
0x6440   :  { %v3282_v4 = vpack.c.bf16 %v3280_v7, %v3280_v7 }
0x6442   :  { %3284 = vrot.lane.b32.xlu0 %v3282_v4, %s4987_s15 }
0x64b4   :  { %v3285_v9 = vpop.permute.xlu0 %3284 }
0x64b5   :  { %4377 = vmatmul.msk.bf16.vlgmr.msra.gmra.mxu1 %vm200_vm4, %v3285_v9 }
0x64b6   :  { %3767 = vmatpush.bf16.msra.mxu1 %v5608_v10 }
0x64ba   :  { %3768 = vmatpush.bf16.msra.mxu1 %v5614_v11 }
0x6532   :  { %v3298_v17 = vpop.f32.mrf.mxu1 }
0x6533   :  { %v3302_v37 = vadd.f32 %v3298_v17, %v3281_v36 }
0x6535   :  { %4843 = vtanh.f32 %v3302_v37  ;;  %v4378_v24 = vmul.f32 -1.442695, %v3302_v37 }
0x6537   :  { %4845 = vpow2.f32 %v4378_v24 }
0x653a   :  { %v3300_v44 = vpop.f32.mrf.mxu1 }
0x653b   :  { %v4844_v20 = vpop.eup %4843 }
0x653c   :  { %3325 = vrot.lane.b32.xlu1 %v4844_v20, %s4986_s1 }
0x653d   :  { %v4846_v21 = vpop.eup %4845 }
0x653e   :  { %v3306_v22 = vadd.f32 1.0, %v4846_v21 }
0x6540   :  { %4847 = vrcp.f32 %v3306_v22  ;;  %v3318_v28 = vand.u32 2147483648, %v3306_v22  ;;  %vm3312_vm15 = vweird.f32 %v3306_v22  ;;  %v3316_v23 = vand.u32 2147483647, %v3306_v22 }
0x6542   :  { %v3319_v8 = vor.u32 1.1754944e-38, %v3318_v28  ;;  %vm3317_vm1 = vcmp.eq.f32.partialorder %v3316_v23, 8.507059e+37 }
0x6546   :  { %v4848_v25 = vpop.eup %4847 }
0x6547   :  { %v3308_v46 = vmul.f32 %v4848_v25, %v3306_v22  ;;  %vm3313_vm14 = vweird.f32 %v4848_v25 }
0x6548   :  { %vm3314_vm0 = vmor %vm3312_vm15, %vm3313_vm14 }
0x6549   :  { %v3309_v13 = vsub.f32 1.0, %v3308_v46 }
0x654b   :  { %v3310_v16 = vmul.f32 %v4848_v25, %v3309_v13 }
0x654d   :  { %v3311_v61 = vadd.f32 %v4848_v25, %v3310_v16 }
0x654f   :  { %v3315_v27 = vsel %vm3314_vm0, %v4848_v25, %v3311_v61 }
0x6550   :  { %v3320_v58 = vsel %vm3317_vm1, %v3319_v8, %v3315_v27 }
0x6551   :  { %v3323_v43 = vmul.f32 %v3320_v58, %v3274_v0  ;;  %v3399_v0 = vld [vmem:[#allocation2 + $0x26] sm:$0x3] }
0x65ae   :  { %v3326_v30 = vpop.permute.xlu1 %3325 }
0x65af   :  { %v3328_v40 = vmul.f32 %v3326_v30, %v3320_v58 }
0x65b1   :  { %3330 = vrot.lane.b32.xlu2 %v3328_v40, %s4987_s15 }
0x660b   :  { %v3331_v39 = vpop.permute.xlu2 %3330 }
0x660c   :  { %v3333_v18 = vadd.f32 %v3331_v39, %v3323_v43 }
0x660e   :  { %4849 = vtanh.f32 %v3333_v18 }
0x6614   :  { %v4850_v15 = vpop.eup %4849 }
0x6615   :  { %3336 = vrot.lane.b32.xlu0 %v4850_v15, %s4986_s1 }
0x6687   :  { %v3337_v52 = vpop.permute.xlu0 %3336 }
0x6688   :  { %v3339_v41 = vmul.f32 %v3337_v52, %v3320_v58 }
0x668a   :  { %v3341_v33 = vpack.c.bf16 %v3339_v41, %v3339_v41 }
0x668c   :  { %3343 = vrot.lane.b32.xlu1 %v3341_v33, %s4987_s15 }
0x66fe   :  { %v3344_v34 = vpop.permute.xlu1 %3343 }
0x66ff   :  { %4379 = vmatmul.msk.bf16.vlgmr.msra.gmra.mxu2 %vm200_vm4, %v3344_v34 }
0x6700   :  { %3826 = vmatpush.bf16.msra.mxu2 %v5608_v10 }
0x6704   :  { %3827 = vmatpush.bf16.msra.mxu2 %v5614_v11 }
0x6782   :  { %v3357_v32 = vpop.f32.mrf.mxu2 }
0x6783   :  { %v3361_v2 = vadd.f32 %v3357_v32, %v3340_v12 }
0x6785   :  { %4851 = vtanh.f32 %v3361_v2  ;;  %v4380_v14 = vmul.f32 -1.442695, %v3361_v2 }
0x6787   :  { %4853 = vpow2.f32 %v4380_v14 }
0x678a   :  { %v3359_v29 = vpop.f32.mrf.mxu2 }
0x678b   :  { %v4852_v62 = vpop.eup %4851 }
0x678c   :  { %3384 = vrot.lane.b32.xlu2 %v4852_v62, %s4986_s1 }
0x678d   :  { %v4854_v42 = vpop.eup %4853 }
0x678e   :  { %v3365_v19 = vadd.f32 1.0, %v4854_v42 }
0x6790   :  { %4855 = vrcp.f32 %v3365_v19  ;;  %v3377_v11 = vand.u32 2147483648, %v3365_v19  ;;  %vm3371_vm8 = vweird.f32 %v3365_v19  ;;  %v3375_v45 = vand.u32 2147483647, %v3365_v19 }
0x6792   :  { %v3378_v6 = vor.u32 1.1754944e-38, %v3377_v11  ;;  %vm3376_vm10 = vcmp.eq.f32.partialorder %v3375_v45, 8.507059e+37 }
0x6796   :  { %v4856_v49 = vpop.eup %4855 }
0x6797   :  { %v3367_v47 = vmul.f32 %v4856_v49, %v3365_v19  ;;  %vm3372_vm2 = vweird.f32 %v4856_v49 }
0x6798   :  { %vm3373_vm9 = vmor %vm3371_vm8, %vm3372_vm2 }
0x6799   :  { %v3368_v26 = vsub.f32 1.0, %v3367_v47 }
0x679b   :  { %v3369_v5 = vmul.f32 %v4856_v49, %v3368_v26 }
0x679d   :  { %v3370_v10 = vadd.f32 %v4856_v49, %v3369_v5 }
0x679f   :  { %v3374_v51 = vsel %vm3373_vm9, %v4856_v49, %v3370_v10 }
0x67a0   :  { %v3379_v53 = vsel %vm3376_vm10, %v3378_v6, %v3374_v51 }
0x67a1   :  { %v3382_v55 = vmul.f32 %v3379_v53, %v3333_v18  ;;  %v3458_v18 = vld [vmem:[#allocation2 + $0x28] sm:$0x3] }
0x67e6   :  { %v3385_v35 = vpop.permute.xlu2 %3384 }
0x67e7   :  { %v3387_v54 = vmul.f32 %v3385_v35, %v3379_v53 }
0x67e9   :  { %3389 = vrot.lane.b32.xlu0 %v3387_v54, %s4987_s15 }
0x685b   :  { %v3390_v63 = vpop.permute.xlu0 %3389 }
0x685c   :  { %v3392_v48 = vadd.f32 %v3390_v63, %v3382_v55 }
0x685e   :  { %4857 = vtanh.f32 %v3392_v48 }
0x6864   :  { %v4858_v31 = vpop.eup %4857 }
0x6865   :  { %3395 = vrot.lane.b32.xlu1 %v4858_v31, %s4986_s1 }
0x68d7   :  { %v3396_v3 = vpop.permute.xlu1 %3395 }
0x68d8   :  { %v3398_v56 = vmul.f32 %v3396_v3, %v3379_v53 }
0x68da   :  { %v3400_v38 = vpack.c.bf16 %v3398_v56, %v3398_v56 }
0x68dc   :  { %3402 = vrot.lane.b32.xlu2 %v3400_v38, %s4987_s15 }
0x6936   :  { %v3403_v57 = vpop.permute.xlu2 %3402 }
0x6937   :  { %4381 = vmatmul.msk.bf16.vlgmr.msra.gmra.mxu3 %vm200_vm4, %v3403_v57 }
0x6938   :  { %3885 = vmatpush.bf16.msra.mxu3 %v5747_v50 }
0x693c   :  { %3886 = vmatpush.bf16.msra.mxu3 %v5753_v60 }
0x69ba   :  { %v3416_v1 = vpop.f32.mrf.mxu3 }
0x69bb   :  { %v3420_v59 = vadd.f32 %v3416_v1, %v3399_v0 }
0x69bd   :  { %4859 = vtanh.f32 %v3420_v59  ;;  %v4382_v9 = vmul.f32 -1.442695, %v3420_v59 }
0x69bf   :  { %4861 = vpow2.f32 %v4382_v9 }
0x69c2   :  { %v3418_v7 = vpop.f32.mrf.mxu3 }
0x69c3   :  { %v4860_v4 = vpop.eup %4859 }
0x69c4   :  { %3443 = vrot.lane.b32.xlu0 %v4860_v4, %s4986_s1 }
0x69c5   :  { %v4862_v36 = vpop.eup %4861 }
0x69c6   :  { %v3424_v17 = vadd.f32 1.0, %v4862_v36 }
0x69c8   :  { %4863 = vrcp.f32 %v3424_v17  ;;  %v3436_v22 = vand.u32 2147483648, %v3424_v17  ;;  %vm3430_vm12 = vweird.f32 %v3424_v17  ;;  %v3434_v25 = vand.u32 2147483647, %v3424_v17 }
0x69ca   :  { %v3437_v13 = vor.u32 1.1754944e-38, %v3436_v22  ;;  %vm3435_vm5 = vcmp.eq.f32.partialorder %v3434_v25, 8.507059e+37 }
0x69ce   :  { %v4864_v37 = vpop.eup %4863 }
0x69cf   :  { %v3426_v44 = vmul.f32 %v4864_v37, %v3424_v17  ;;  %vm3431_vm11 = vweird.f32 %v4864_v37 }
0x69d0   :  { %vm3432_vm3 = vmor %vm3430_vm12, %vm3431_vm11 }
0x69d1   :  { %v3427_v20 = vsub.f32 1.0, %v3426_v44 }
0x69d3   :  { %v3428_v24 = vmul.f32 %v4864_v37, %v3427_v20 }
0x69d5   :  { %v3429_v21 = vadd.f32 %v4864_v37, %v3428_v24 }
0x69d7   :  { %v3433_v46 = vsel %vm3432_vm3, %v4864_v37, %v3429_v21 }
0x69d8   :  { %v3438_v61 = vsel %vm3435_vm5, %v3437_v13, %v3433_v46 }
0x69d9   :  { %v3441_v23 = vmul.f32 %v3438_v61, %v3392_v48  ;;  %v3517_v48 = vld [vmem:[#allocation2 + $0x2a] sm:$0x3] }
0x6a36   :  { %v3444_v16 = vpop.permute.xlu0 %3443 }
0x6a37   :  { %v3446_v28 = vmul.f32 %v3444_v16, %v3438_v61 }
0x6a39   :  { %3448 = vrot.lane.b32.xlu1 %v3446_v28, %s4987_s15 }
0x6aab   :  { %v3449_v27 = vpop.permute.xlu1 %3448 }
0x6aac   :  { %v3451_v8 = vadd.f32 %v3449_v27, %v3441_v23  ;;  %v3576_v23 = vld [vmem:[#allocation2 + $0x2c] sm:$0x3] }
0x6aae   :  { %4865 = vtanh.f32 %v3451_v8 }
0x6ab4   :  { %v4866_v30 = vpop.eup %4865 }
0x6ab5   :  { %3454 = vrot.lane.b32.xlu2 %v4866_v30, %s4986_s1 }
0x6b0f   :  { %v3455_v58 = vpop.permute.xlu2 %3454 }
0x6b10   :  { %v3457_v40 = vmul.f32 %v3455_v58, %v3438_v61 }
0x6b12   :  { %v3459_v43 = vpack.c.bf16 %v3457_v40, %v3457_v40 }
0x6b14   :  { %3461 = vrot.lane.b32.xlu0 %v3459_v43, %s4987_s15 }
0x6b86   :  { %v3462_v39 = vpop.permute.xlu0 %3461 }
0x6b87   :  { %4383 = vmatmul.msk.bf16.vlgmr.msrb.gmra.mxu0 %vm200_vm4, %v3462_v39 }
0x6b88   :  { %3944 = vmatpush.bf16.msrb.mxu0 %v5747_v50 }
0x6b8c   :  { %3945 = vmatpush.bf16.msrb.mxu0 %v5753_v60 }
0x6c04   :  { %v3475_v15 = vpop.f32.mrf.mxu0 }
0x6c05   :  { %v3479_v52 = vadd.f32 %v3475_v15, %v3458_v18 }
0x6c07   :  { %4867 = vtanh.f32 %v3479_v52  ;;  %v4384_v34 = vmul.f32 -1.442695, %v3479_v52 }
0x6c09   :  { %4869 = vpow2.f32 %v4384_v34 }
0x6c0c   :  { %v3477_v41 = vpop.f32.mrf.mxu0 }
0x6c0d   :  { %v4868_v33 = vpop.eup %4867 }
0x6c0e   :  { %3502 = vrot.lane.b32.xlu1 %v4868_v33, %s4986_s1 }
0x6c0f   :  { %v4870_v12 = vpop.eup %4869 }
0x6c10   :  { %v3483_v32 = vadd.f32 1.0, %v4870_v12 }
0x6c12   :  { %4871 = vrcp.f32 %v3483_v32  ;;  %v3495_v19 = vand.u32 2147483648, %v3483_v32  ;;  %vm3489_vm7 = vweird.f32 %v3483_v32  ;;  %v3493_v49 = vand.u32 2147483647, %v3483_v32 }
0x6c14   :  { %v3496_v26 = vor.u32 1.1754944e-38, %v3495_v19  ;;  %vm3494_vm14 = vcmp.eq.f32.partialorder %v3493_v49, 8.507059e+37 }
0x6c18   :  { %v4872_v2 = vpop.eup %4871 }
0x6c19   :  { %v3485_v29 = vmul.f32 %v4872_v2, %v3483_v32  ;;  %vm3490_vm6 = vweird.f32 %v4872_v2 }
0x6c1a   :  { %vm3491_vm13 = vmor %vm3489_vm7, %vm3490_vm6 }
0x6c1b   :  { %v3486_v62 = vsub.f32 1.0, %v3485_v29 }
0x6c1d   :  { %v3487_v14 = vmul.f32 %v4872_v2, %v3486_v62 }
0x6c1f   :  { %v3488_v42 = vadd.f32 %v4872_v2, %v3487_v14 }
0x6c21   :  { %v3492_v47 = vsel %vm3491_vm13, %v4872_v2, %v3488_v42 }
0x6c22   :  { %v3497_v10 = vsel %vm3494_vm14, %v3496_v26, %v3492_v47 }
0x6c23   :  { %v3500_v45 = vmul.f32 %v3497_v10, %v3451_v8 }
0x6c80   :  { %v3503_v5 = vpop.permute.xlu1 %3502 }
0x6c81   :  { %v3505_v11 = vmul.f32 %v3503_v5, %v3497_v10 }
0x6c83   :  { %3507 = vrot.lane.b32.xlu2 %v3505_v11, %s4987_s15 }
0x6cdd   :  { %v3508_v51 = vpop.permute.xlu2 %3507 }
0x6cde   :  { %v3510_v6 = vadd.f32 %v3508_v51, %v3500_v45  ;;  %v3635_v45 = vld [vmem:[#allocation2 + $0x2e] sm:$0x3] }
0x6ce0   :  { %4873 = vtanh.f32 %v3510_v6 }
0x6ce6   :  { %v4874_v35 = vpop.eup %4873 }
0x6ce7   :  { %3513 = vrot.lane.b32.xlu0 %v4874_v35, %s4986_s1 }
0x6d59   :  { %v3514_v53 = vpop.permute.xlu0 %3513 }
0x6d5a   :  { %v3516_v54 = vmul.f32 %v3514_v53, %v3497_v10 }
0x6d5c   :  { %v3518_v55 = vpack.c.bf16 %v3516_v54, %v3516_v54 }
0x6d5e   :  { %3520 = vrot.lane.b32.xlu1 %v3518_v55, %s4987_s15 }
0x6dd0   :  { %v3521_v63 = vpop.permute.xlu1 %3520 }
0x6dd1   :  { %4385 = vmatmul.msk.bf16.vlgmr.msrb.gmra.mxu1 %vm200_vm4, %v3521_v63 }
0x6dd2   :  { %4003 = vmatpush.bf16.msrb.mxu1 %v5747_v50 }
0x6dd6   :  { %4004 = vmatpush.bf16.msrb.mxu1 %v5753_v60 }
0x6e4e   :  { %v3534_v31 = vpop.f32.mrf.mxu1 }
0x6e4f   :  { %v3538_v3 = vadd.f32 %v3534_v31, %v3517_v48 }
0x6e51   :  { %4875 = vtanh.f32 %v3538_v3  ;;  %v4386_v57 = vmul.f32 -1.442695, %v3538_v3 }
0x6e53   :  { %4877 = vpow2.f32 %v4386_v57 }
0x6e56   :  { %v3536_v56 = vpop.f32.mrf.mxu1 }
0x6e57   :  { %v4876_v38 = vpop.eup %4875 }
0x6e58   :  { %3561 = vrot.lane.b32.xlu2 %v4876_v38, %s4986_s1 }
0x6e59   :  { %v4878_v0 = vpop.eup %4877 }
0x6e5a   :  { %v3542_v1 = vadd.f32 1.0, %v4878_v0 }
0x6e5c   :  { %4879 = vrcp.f32 %v3542_v1  ;;  %v3554_v60 = vand.u32 2147483648, %v3542_v1  ;;  %vm3548_vm0 = vweird.f32 %v3542_v1  ;;  %v3552_v36 = vand.u32 2147483647, %v3542_v1 }
0x6e5e   :  { %v3555_v37 = vor.u32 1.1754944e-38, %v3554_v60  ;;  %vm3553_vm2 = vcmp.eq.f32.partialorder %v3552_v36, 8.507059e+37 }
0x6e62   :  { %v4880_v59 = vpop.eup %4879 }
0x6e63   :  { %v3544_v7 = vmul.f32 %v4880_v59, %v3542_v1  ;;  %vm3549_vm15 = vweird.f32 %v4880_v59 }
0x6e64   :  { %vm3550_vm1 = vmor %vm3548_vm0, %vm3549_vm15 }
0x6e65   :  { %v3545_v4 = vsub.f32 1.0, %v3544_v7 }
0x6e67   :  { %v3546_v9 = vmul.f32 %v4880_v59, %v3545_v4 }
0x6e69   :  { %v3547_v50 = vadd.f32 %v4880_v59, %v3546_v9 }
0x6e6b   :  { %v3551_v17 = vsel %vm3550_vm1, %v4880_v59, %v3547_v50 }
0x6e6c   :  { %v3556_v20 = vsel %vm3553_vm2, %v3555_v37, %v3551_v17 }
0x6e6d   :  { %v3559_v21 = vmul.f32 %v3556_v20, %v3510_v6 }
0x6eb2   :  { %v3562_v44 = vpop.permute.xlu2 %3561 }
0x6eb3   :  { %v3564_v24 = vmul.f32 %v3562_v44, %v3556_v20 }
0x6eb5   :  { %3566 = vrot.lane.b32.xlu0 %v3564_v24, %s4987_s15 }
0x6f27   :  { %v3567_v22 = vpop.permute.xlu0 %3566 }
0x6f28   :  { %v3569_v25 = vadd.f32 %v3567_v22, %v3559_v21  ;;  %v3694_v21 = vld [vmem:[#allocation2 + $0x30] sm:$0x3] }
0x6f2a   :  { %4881 = vtanh.f32 %v3569_v25 }
0x6f30   :  { %v4882_v46 = vpop.eup %4881 }
0x6f31   :  { %3572 = vrot.lane.b32.xlu1 %v4882_v46, %s4986_s1 }
0x6fa3   :  { %v3573_v13 = vpop.permute.xlu1 %3572 }
0x6fa4   :  { %v3575_v16 = vmul.f32 %v3573_v13, %v3556_v20 }
0x6fa6   :  { %v3577_v61 = vpack.c.bf16 %v3575_v16, %v3575_v16 }
0x6fa8   :  { %3579 = vrot.lane.b32.xlu2 %v3577_v61, %s4987_s15 }
0x7002   :  { %v3580_v28 = vpop.permute.xlu2 %3579 }
0x7003   :  { %4387 = vmatmul.msk.bf16.vlgmr.msrb.gmra.mxu2 %vm200_vm4, %v3580_v28 }
0x7086   :  { %v3593_v27 = vpop.f32.mrf.mxu2 }
0x7087   :  { %v3597_v8 = vadd.f32 %v3593_v27, %v3576_v23 }
0x7089   :  { %4883 = vtanh.f32 %v3597_v8  ;;  %v4388_v40 = vmul.f32 -1.442695, %v3597_v8 }
0x708b   :  { %4885 = vpow2.f32 %v4388_v40 }
0x708e   :  { %v3595_v30 = vpop.f32.mrf.mxu2 }
0x708f   :  { %v4884_v58 = vpop.eup %4883 }
0x7090   :  { %3620 = vrot.lane.b32.xlu0 %v4884_v58, %s4986_s1 }
0x7091   :  { %v4886_v43 = vpop.eup %4885 }
0x7092   :  { %v3601_v39 = vadd.f32 1.0, %v4886_v43 }
0x7094   :  { %4887 = vrcp.f32 %v3601_v39  ;;  %v3613_v34 = vand.u32 2147483648, %v3601_v39  ;;  %vm3607_vm9 = vweird.f32 %v3601_v39  ;;  %v3611_v12 = vand.u32 2147483647, %v3601_v39 }
0x7096   :  { %v3614_v2 = vor.u32 1.1754944e-38, %v3613_v34  ;;  %vm3612_vm11 = vcmp.eq.f32.partialorder %v3611_v12, 8.507059e+37 }
0x709a   :  { %v4888_v18 = vpop.eup %4887 }
0x709b   :  { %v3603_v15 = vmul.f32 %v4888_v18, %v3601_v39  ;;  %vm3608_vm8 = vweird.f32 %v4888_v18 }
0x709c   :  { %vm3609_vm10 = vmor %vm3607_vm9, %vm3608_vm8 }
0x709d   :  { %v3604_v52 = vsub.f32 1.0, %v3603_v15 }
0x709f   :  { %v3605_v41 = vmul.f32 %v4888_v18, %v3604_v52 }
0x70a1   :  { %v3606_v33 = vadd.f32 %v4888_v18, %v3605_v41 }
0x70a3   :  { %v3610_v32 = vsel %vm3609_vm10, %v4888_v18, %v3606_v33 }
0x70a4   :  { %v3615_v62 = vsel %vm3612_vm11, %v3614_v2, %v3610_v32 }
0x70a5   :  { %v3618_v42 = vmul.f32 %v3615_v62, %v3569_v25 }
0x7102   :  { %v3621_v29 = vpop.permute.xlu0 %3620 }
0x7103   :  { %v3623_v14 = vmul.f32 %v3621_v29, %v3615_v62 }
0x7105   :  { %3625 = vrot.lane.b32.xlu1 %v3623_v14, %s4987_s15 }
0x7177   :  { %v3626_v19 = vpop.permute.xlu1 %3625 }
0x7178   :  { %v3628_v49 = vadd.f32 %v3626_v19, %v3618_v42  ;;  %v3753_v42 = vld [vmem:[#allocation2 + $0x32] sm:$0x3] }
0x717a   :  { %4889 = vtanh.f32 %v3628_v49 }
0x7180   :  { %v4890_v47 = vpop.eup %4889 }
0x7181   :  { %3631 = vrot.lane.b32.xlu2 %v4890_v47, %s4986_s1 }
0x71db   :  { %v3632_v26 = vpop.permute.xlu2 %3631 }
0x71dc   :  { %v3634_v5 = vmul.f32 %v3632_v26, %v3615_v62 }
0x71de   :  { %v3636_v10 = vpack.c.bf16 %v3634_v5, %v3634_v5 }
0x71e0   :  { %3638 = vrot.lane.b32.xlu0 %v3636_v10, %s4987_s15 }
0x7252   :  { %v3639_v11 = vpop.permute.xlu0 %3638 }
0x7253   :  { %4389 = vmatmul.msk.bf16.vlgmr.msrb.gmra.mxu3 %vm200_vm4, %v3639_v11 }
0x72d6   :  { %v3652_v51 = vpop.f32.mrf.mxu3 }
0x72d7   :  { %v3656_v6 = vadd.f32 %v3652_v51, %v3635_v45 }
0x72d9   :  { %4891 = vtanh.f32 %v3656_v6  ;;  %v4390_v54 = vmul.f32 -1.442695, %v3656_v6 }
0x72db   :  { %4893 = vpow2.f32 %v4390_v54 }
0x72de   :  { %v3654_v35 = vpop.f32.mrf.mxu3 }
0x72df   :  { %v4892_v53 = vpop.eup %4891 }
0x72e0   :  { %3679 = vrot.lane.b32.xlu1 %v4892_v53, %s4986_s1 }
0x72e1   :  { %v4894_v55 = vpop.eup %4893 }
0x72e2   :  { %v3660_v63 = vadd.f32 1.0, %v4894_v55 }
0x72e4   :  { %4895 = vrcp.f32 %v3660_v63  ;;  %v3672_v57 = vand.u32 2147483648, %v3660_v63  ;;  %vm3666_vm3 = vweird.f32 %v3660_v63  ;;  %v3670_v0 = vand.u32 2147483647, %v3660_v63 }
0x72e6   :  { %v3673_v59 = vor.u32 1.1754944e-38, %v3672_v57  ;;  %vm3671_vm6 = vcmp.eq.f32.partialorder %v3670_v0, 8.507059e+37 }
0x72ea   :  { %v4896_v48 = vpop.eup %4895 }
0x72eb   :  { %v3662_v31 = vmul.f32 %v4896_v48, %v3660_v63  ;;  %vm3667_vm12 = vweird.f32 %v4896_v48 }
0x72ec   :  { %vm3668_vm5 = vmor %vm3666_vm3, %vm3667_vm12 }
0x72ed   :  { %v3663_v3 = vsub.f32 1.0, %v3662_v31 }
0x72ef   :  { %v3664_v56 = vmul.f32 %v4896_v48, %v3663_v3 }
0x72f1   :  { %v3665_v38 = vadd.f32 %v4896_v48, %v3664_v56 }
0x72f3   :  { %v3669_v1 = vsel %vm3668_vm5, %v4896_v48, %v3665_v38 }
0x72f4   :  { %v3674_v4 = vsel %vm3671_vm6, %v3673_v59, %v3669_v1 }
0x72f5   :  { %v3677_v50 = vmul.f32 %v3674_v4, %v3628_v49 }
0x7352   :  { %v3680_v7 = vpop.permute.xlu1 %3679 }
0x7353   :  { %v3682_v9 = vmul.f32 %v3680_v7, %v3674_v4 }
0x7355   :  { %3684 = vrot.lane.b32.xlu2 %v3682_v9, %s4987_s15 }
0x73af   :  { %v3685_v60 = vpop.permute.xlu2 %3684 }
0x73b0   :  { %v3687_v36 = vadd.f32 %v3685_v60, %v3677_v50  ;;  %v3812_v50 = vld [vmem:[#allocation2 + $0x34] sm:$0x3] }
0x73b2   :  { %4897 = vtanh.f32 %v3687_v36 }
0x73b8   :  { %v4898_v17 = vpop.eup %4897 }
0x73b9   :  { %3690 = vrot.lane.b32.xlu0 %v4898_v17, %s4986_s1 }
0x742b   :  { %v3691_v37 = vpop.permute.xlu0 %3690 }
0x742c   :  { %v3693_v44 = vmul.f32 %v3691_v37, %v3674_v4 }
0x742e   :  { %v3695_v20 = vpack.c.bf16 %v3693_v44, %v3693_v44 }
0x7430   :  { %3697 = vrot.lane.b32.xlu1 %v3695_v20, %s4987_s15 }
0x74a2   :  { %v3698_v24 = vpop.permute.xlu1 %3697 }
0x74a3   :  { %4391 = vmatmul.msk.bf16.vlgmr.msra.gmra.mxu0 %vm200_vm4, %v3698_v24 }
0x7520   :  { %v3711_v22 = vpop.f32.mrf.mxu0 }
0x7521   :  { %v3715_v25 = vadd.f32 %v3711_v22, %v3694_v21 }
0x7523   :  { %4899 = vtanh.f32 %v3715_v25  ;;  %v4392_v16 = vmul.f32 -1.442695, %v3715_v25 }
0x7525   :  { %4901 = vpow2.f32 %v4392_v16 }
0x7528   :  { %v3713_v46 = vpop.f32.mrf.mxu0 }
0x7529   :  { %v4900_v13 = vpop.eup %4899 }
0x752a   :  { %3738 = vrot.lane.b32.xlu2 %v4900_v13, %s4986_s1 }
0x752b   :  { %v4902_v61 = vpop.eup %4901 }
0x752c   :  { %v3719_v28 = vadd.f32 1.0, %v4902_v61 }
0x752e   :  { %4903 = vrcp.f32 %v3719_v28  ;;  %v3731_v40 = vand.u32 2147483648, %v3719_v28  ;;  %vm3725_vm13 = vweird.f32 %v3719_v28  ;;  %v3729_v43 = vand.u32 2147483647, %v3719_v28 }
0x7530   :  { %v3732_v18 = vor.u32 1.1754944e-38, %v3731_v40  ;;  %vm3730_vm15 = vcmp.eq.f32.partialorder %v3729_v43, 8.507059e+37 }
0x7534   :  { %v4904_v23 = vpop.eup %4903 }
0x7535   :  { %v3721_v27 = vmul.f32 %v4904_v23, %v3719_v28  ;;  %vm3726_vm7 = vweird.f32 %v4904_v23 }
0x7536   :  { %vm3727_vm14 = vmor %vm3725_vm13, %vm3726_vm7 }
0x7537   :  { %v3722_v8 = vsub.f32 1.0, %v3721_v27 }
0x7539   :  { %v3723_v30 = vmul.f32 %v4904_v23, %v3722_v8 }
0x753b   :  { %v3724_v58 = vadd.f32 %v4904_v23, %v3723_v30 }
0x753d   :  { %v3728_v39 = vsel %vm3727_vm14, %v4904_v23, %v3724_v58 }
0x753e   :  { %v3733_v52 = vsel %vm3730_vm15, %v3732_v18, %v3728_v39 }
0x753f   :  { %v3736_v33 = vmul.f32 %v3733_v52, %v3687_v36 }
0x7584   :  { %v3739_v15 = vpop.permute.xlu2 %3738 }
0x7585   :  { %v3741_v41 = vmul.f32 %v3739_v15, %v3733_v52 }
0x7587   :  { %3743 = vrot.lane.b32.xlu0 %v3741_v41, %s4987_s15 }
0x75f9   :  { %v3744_v34 = vpop.permute.xlu0 %3743 }
0x75fa   :  { %v3746_v12 = vadd.f32 %v3744_v34, %v3736_v33  ;;  %v3871_v33 = vld [vmem:[#allocation2 + $0x36] sm:$0x3] }
0x75fc   :  { %4905 = vtanh.f32 %v3746_v12 }
0x7602   :  { %v4906_v32 = vpop.eup %4905 }
0x7603   :  { %3749 = vrot.lane.b32.xlu1 %v4906_v32, %s4986_s1 }
0x7675   :  { %v3750_v2 = vpop.permute.xlu1 %3749 }
0x7676   :  { %v3752_v29 = vmul.f32 %v3750_v2, %v3733_v52 }
0x7678   :  { %v3754_v62 = vpack.c.bf16 %v3752_v29, %v3752_v29 }
0x767a   :  { %3756 = vrot.lane.b32.xlu2 %v3754_v62, %s4987_s15 }
0x76d4   :  { %v3757_v14 = vpop.permute.xlu2 %3756 }
0x76d5   :  { %4393 = vmatmul.msk.bf16.vlgmr.msra.gmra.mxu1 %vm200_vm4, %v3757_v14 }
0x7752   :  { %v3770_v19 = vpop.f32.mrf.mxu1 }
0x7753   :  { %v3774_v49 = vadd.f32 %v3770_v19, %v3753_v42 }
0x7755   :  { %4907 = vtanh.f32 %v3774_v49  ;;  %v4394_v5 = vmul.f32 -1.442695, %v3774_v49 }
0x7757   :  { %4909 = vpow2.f32 %v4394_v5 }
0x775a   :  { %v3772_v47 = vpop.f32.mrf.mxu1 }
0x775b   :  { %v4908_v26 = vpop.eup %4907 }
0x775c   :  { %3797 = vrot.lane.b32.xlu0 %v4908_v26, %s4986_s1 }
0x775d   :  { %v4910_v10 = vpop.eup %4909 }
0x775e   :  { %v3778_v11 = vadd.f32 1.0, %v4910_v10 }
0x7760   :  { %4911 = vrcp.f32 %v3778_v11  ;;  %v3790_v54 = vand.u32 2147483648, %v3778_v11  ;;  %vm3784_vm1 = vweird.f32 %v3778_v11  ;;  %v3788_v55 = vand.u32 2147483647, %v3778_v11 }
0x7762   :  { %v3791_v48 = vor.u32 1.1754944e-38, %v3790_v54  ;;  %vm3789_vm8 = vcmp.eq.f32.partialorder %v3788_v55, 8.507059e+37 }
0x7766   :  { %v4912_v45 = vpop.eup %4911 }
0x7767   :  { %v3780_v51 = vmul.f32 %v4912_v45, %v3778_v11  ;;  %vm3785_vm0 = vweird.f32 %v4912_v45 }
0x7768   :  { %vm3786_vm2 = vmor %vm3784_vm1, %vm3785_vm0 }
0x7769   :  { %v3781_v6 = vsub.f32 1.0, %v3780_v51 }
0x776b   :  { %v3782_v35 = vmul.f32 %v4912_v45, %v3781_v6 }
0x776d   :  { %v3783_v53 = vadd.f32 %v4912_v45, %v3782_v35 }
0x776f   :  { %v3787_v63 = vsel %vm3786_vm2, %v4912_v45, %v3783_v53 }
0x7770   :  { %v3792_v3 = vsel %vm3789_vm8, %v3791_v48, %v3787_v63 }
0x7771   :  { %v3795_v38 = vmul.f32 %v3792_v3, %v3746_v12 }
0x77ce   :  { %v3798_v31 = vpop.permute.xlu0 %3797 }
0x77cf   :  { %v3800_v56 = vmul.f32 %v3798_v31, %v3792_v3 }
0x77d1   :  { %3802 = vrot.lane.b32.xlu1 %v3800_v56, %s4987_s15 }
0x7843   :  { %v3803_v57 = vpop.permute.xlu1 %3802 }
0x7844   :  { %v3805_v0 = vadd.f32 %v3803_v57, %v3795_v38  ;;  %v3930_v38 = vld [vmem:[#allocation2 + $0x38] sm:$0x3] }
0x7846   :  { %4913 = vtanh.f32 %v3805_v0 }
0x784c   :  { %v4914_v1 = vpop.eup %4913 }
0x784d   :  { %3808 = vrot.lane.b32.xlu2 %v4914_v1, %s4986_s1 }
0x78a7   :  { %v3809_v59 = vpop.permute.xlu2 %3808 }
0x78a8   :  { %v3811_v7 = vmul.f32 %v3809_v59, %v3792_v3 }
0x78aa   :  { %v3813_v4 = vpack.c.bf16 %v3811_v7, %v3811_v7 }
0x78ac   :  { %3815 = vrot.lane.b32.xlu0 %v3813_v4, %s4987_s15 }
0x791e   :  { %v3816_v9 = vpop.permute.xlu0 %3815 }
0x791f   :  { %4395 = vmatmul.msk.bf16.vlgmr.msra.gmra.mxu2 %vm200_vm4, %v3816_v9 }
0x79a2   :  { %v3829_v60 = vpop.f32.mrf.mxu2 }
0x79a3   :  { %v3833_v36 = vadd.f32 %v3829_v60, %v3812_v50 }
0x79a5   :  { %4915 = vtanh.f32 %v3833_v36  ;;  %v4396_v44 = vmul.f32 -1.442695, %v3833_v36 }
0x79a7   :  { %4917 = vpow2.f32 %v4396_v44 }
0x79aa   :  { %v3831_v17 = vpop.f32.mrf.mxu2 }
0x79ab   :  { %v4916_v37 = vpop.eup %4915 }
0x79ac   :  { %3856 = vrot.lane.b32.xlu1 %v4916_v37, %s4986_s1 }
0x79ad   :  { %v4918_v20 = vpop.eup %4917 }
0x79ae   :  { %v3837_v24 = vadd.f32 1.0, %v4918_v20 }
0x79b0   :  { %4919 = vrcp.f32 %v3837_v24  ;;  %v3849_v16 = vand.u32 2147483648, %v3837_v24  ;;  %vm3843_vm10 = vweird.f32 %v3837_v24  ;;  %v3847_v61 = vand.u32 2147483647, %v3837_v24 }
0x79b2   :  { %v3850_v23 = vor.u32 1.1754944e-38, %v3849_v16  ;;  %vm3848_vm12 = vcmp.eq.f32.partialorder %v3847_v61, 8.507059e+37 }
0x79b6   :  { %v4920_v21 = vpop.eup %4919 }
0x79b7   :  { %v3839_v22 = vmul.f32 %v4920_v21, %v3837_v24  ;;  %vm3844_vm9 = vweird.f32 %v4920_v21 }
0x79b8   :  { %vm3845_vm11 = vmor %vm3843_vm10, %vm3844_vm9  ;;  %vm4164_vm10 = vcmask 58368  }
0x79b9   :  { %v3840_v25 = vsub.f32 1.0, %v3839_v22 }
0x79bb   :  { %v3841_v46 = vmul.f32 %v4920_v21, %v3840_v25 }
0x79bd   :  { %v3842_v13 = vadd.f32 %v4920_v21, %v3841_v46 }
0x79bf   :  { %v3846_v28 = vsel %vm3845_vm11, %v4920_v21, %v3842_v13 }
0x79c0   :  { %v3851_v8 = vsel %vm3848_vm12, %v3850_v23, %v3846_v28 }
0x79c1   :  { %v3854_v58 = vmul.f32 %v3851_v8, %v3805_v0 }
0x7a1e   :  { %v3857_v27 = vpop.permute.xlu1 %3856 }
0x7a1f   :  { %v3859_v30 = vmul.f32 %v3857_v27, %v3851_v8 }
0x7a21   :  { %3861 = vrot.lane.b32.xlu2 %v3859_v30, %s4987_s15 }
0x7a7b   :  { %v3862_v40 = vpop.permute.xlu2 %3861 }
0x7a7c   :  { %v3864_v43 = vadd.f32 %v3862_v40, %v3854_v58  ;;  %v3989_v58 = vld [vmem:[#allocation2 + $0x3a] sm:$0x3] }
0x7a7e   :  { %4921 = vtanh.f32 %v3864_v43 }
0x7a84   :  { %v4922_v39 = vpop.eup %4921 }
0x7a85   :  { %3867 = vrot.lane.b32.xlu0 %v4922_v39, %s4986_s1 }
0x7af7   :  { %v3868_v18 = vpop.permute.xlu0 %3867 }
0x7af8   :  { %v3870_v15 = vmul.f32 %v3868_v18, %v3851_v8 }
0x7afa   :  { %v3872_v52 = vpack.c.bf16 %v3870_v15, %v3870_v15 }
0x7afc   :  { %3874 = vrot.lane.b32.xlu1 %v3872_v52, %s4987_s15 }
0x7b6e   :  { %v3875_v41 = vpop.permute.xlu1 %3874 }
0x7b6f   :  { %4397 = vmatmul.msk.bf16.vlgmr.msra.gmra.mxu3 %vm200_vm4, %v3875_v41 }
0x7bf2   :  { %v3888_v34 = vpop.f32.mrf.mxu3 }
0x7bf3   :  { %v3892_v12 = vadd.f32 %v3888_v34, %v3871_v33 }
0x7bf5   :  { %4923 = vtanh.f32 %v3892_v12  ;;  %v4398_v29 = vmul.f32 -1.442695, %v3892_v12 }
0x7bf7   :  { %4925 = vpow2.f32 %v4398_v29 }
0x7bfa   :  { %v3890_v32 = vpop.f32.mrf.mxu3 }
0x7bfb   :  { %v4924_v2 = vpop.eup %4923 }
0x7bfc   :  { %3915 = vrot.lane.b32.xlu2 %v4924_v2, %s4986_s1 }
0x7bfd   :  { %v4926_v62 = vpop.eup %4925 }
0x7bfe   :  { %v3896_v14 = vadd.f32 1.0, %v4926_v62 }
0x7c00   :  { %4927 = vrcp.f32 %v3896_v14  ;;  %v3908_v5 = vand.u32 2147483648, %v3896_v14  ;;  %vm3902_vm5 = vweird.f32 %v3896_v14  ;;  %v3906_v10 = vand.u32 2147483647, %v3896_v14 }
0x7c02   :  { %v3909_v45 = vor.u32 1.1754944e-38, %v3908_v5  ;;  %vm3907_vm7 = vcmp.eq.f32.partialorder %v3906_v10, 8.507059e+37 }
0x7c06   :  { %v4928_v42 = vpop.eup %4927 }
0x7c07   :  { %v3898_v19 = vmul.f32 %v4928_v42, %v3896_v14  ;;  %vm3903_vm3 = vweird.f32 %v4928_v42 }
0x7c08   :  { %vm3904_vm6 = vmor %vm3902_vm5, %vm3903_vm3 }
0x7c09   :  { %v3899_v49 = vsub.f32 1.0, %v3898_v19 }
0x7c0b   :  { %v3900_v47 = vmul.f32 %v4928_v42, %v3899_v49 }
0x7c0d   :  { %v3901_v26 = vadd.f32 %v4928_v42, %v3900_v47 }
0x7c0f   :  { %v3905_v11 = vsel %vm3904_vm6, %v4928_v42, %v3901_v26 }
0x7c10   :  { %v3910_v6 = vsel %vm3907_vm7, %v3909_v45, %v3905_v11  ;;  %v4453_v45 = vld [vmem:[%s5857_s7 + $0x8] sm:$0xff] }
0x7c11   :  { %v3913_v53 = vmul.f32 %v3910_v6, %v3864_v43  ;;  %4081 = vmatpush.bf16.msrb.mxu2 %v4453_v45 }
0x7c56   :  { %v3916_v51 = vpop.permute.xlu2 %3915 }
0x7c57   :  { %v3918_v35 = vmul.f32 %v3916_v51, %v3910_v6  ;;  %v4452_v51 = vld [vmem:[%s5857_s7] sm:$0xff] }
0x7c58   :  { %4082 = vmatpush.bf16.msrb.mxu2 %v4452_v51 }
0x7c59   :  { %3920 = vrot.lane.b32.xlu0 %v3918_v35, %s4987_s15 }
0x7ccb   :  { %v3921_v54 = vpop.permute.xlu0 %3920 }
0x7ccc   :  { %v3923_v55 = vadd.f32 %v3921_v54, %v3913_v53  ;;  %v4455_v54 = vld [vmem:[%s5859_s9 + $0x8] sm:$0xff] }
0x7ccd   :  { %4119 = vmatpush.bf16.msrb.mxu3 %v4455_v54 }
0x7cce   :  { %4929 = vtanh.f32 %v3923_v55 }
0x7cd4   :  { %v4930_v63 = vpop.eup %4929 }
0x7cd5   :  { %3926 = vrot.lane.b32.xlu1 %v4930_v63, %s4986_s1 }
0x7d47   :  { %v3927_v48 = vpop.permute.xlu1 %3926 }
0x7d48   :  { %v3929_v31 = vmul.f32 %v3927_v48, %v3910_v6  ;;  %v4457_v48 = vld [vmem:[%s5861_s11 + $0x8] sm:$0xff] }
0x7d49   :  { %4157 = vmatpush.bf16.msra.mxu0 %v4457_v48 }
0x7d4a   :  { %v3931_v3 = vpack.c.bf16 %v3929_v31, %v3929_v31  ;;  %v4456_v31 = vld [vmem:[%s5861_s11] sm:$0xff] }
0x7d4c   :  { %3933 = vrot.lane.b32.xlu2 %v3931_v3, %s4987_s15  ;;  %v4464_v3 = vld [vmem:[%s5858_s8] ss:$0 sm:$0xff] }
0x7d4d   :  { %4158 = vmatpush.bf16.msra.mxu0 %v4456_v31 }
0x7da6   :  { %v3934_v56 = vpop.permute.xlu2 %3933 }
0x7da7   :  { %4399 = vmatmul.msk.bf16.vlgmr.msrb.gmra.mxu0 %vm200_vm4, %v3934_v56 }
0x7e24   :  { %v3947_v57 = vpop.f32.mrf.mxu0 }
0x7e25   :  { %v3951_v0 = vadd.f32 %v3947_v57, %v3930_v38 }
0x7e27   :  { %4931 = vtanh.f32 %v3951_v0  ;;  %v4400_v7 = vmul.f32 -1.442695, %v3951_v0 }
0x7e29   :  { %4933 = vpow2.f32 %v4400_v7 }
0x7e2c   :  { %v3949_v1 = vpop.f32.mrf.mxu0 }
0x7e2d   :  { %v4932_v59 = vpop.eup %4931 }
0x7e2e   :  { %3974 = vrot.lane.b32.xlu0 %v4932_v59, %s4986_s1  ;;  %v4465_v59 = vld [vmem:[%s5860_s10] ss:$0 sm:$0xff]  ;;  %s4988_s10 = smov [#allocation4]  }
0x7e2f   :  { %v4934_v4 = vpop.eup %4933  ;;  %s4182_s20 = sshll.u32 %s4988_s10, 4  ;;  %s4183_s20 = int_to_ptr.vmem [resolvable:$true] %s4182_s20 }
0x7e30   :  { %v3955_v9 = vadd.f32 1.0, %v4934_v4 }
0x7e32   :  { %4935 = vrcp.f32 %v3955_v9  ;;  %v3967_v44 = vand.u32 2147483648, %v3955_v9  ;;  %vm3961_vm14 = vweird.f32 %v3955_v9  ;;  %v3965_v20 = vand.u32 2147483647, %v3955_v9 }
0x7e34   :  { %v3968_v21 = vor.u32 1.1754944e-38, %v3967_v44  ;;  %vm3966_vm0 = vcmp.eq.f32.partialorder %v3965_v20, 8.507059e+37 }
0x7e38   :  { %v4936_v50 = vpop.eup %4935 }
0x7e39   :  { %v3957_v60 = vmul.f32 %v4936_v50, %v3955_v9  ;;  %vm3962_vm13 = vweird.f32 %v4936_v50 }
0x7e3a   :  { %vm3963_vm15 = vmor %vm3961_vm14, %vm3962_vm13 }
0x7e3b   :  { %v3958_v36 = vsub.f32 1.0, %v3957_v60 }
0x7e3d   :  { %v3959_v17 = vmul.f32 %v4936_v50, %v3958_v36  ;;  %v4466_v36 = vld [vmem:[%s5862_s12] ss:$0 sm:$0xff] }
0x7e3f   :  { %v3960_v37 = vadd.f32 %v4936_v50, %v3959_v17 }
0x7e41   :  { %v3964_v24 = vsel %vm3963_vm15, %v4936_v50, %v3960_v37 }
0x7e42   :  { %v3969_v25 = vsel %vm3966_vm0, %v3968_v21, %v3964_v24 }
0x7e43   :  { %v3972_v13 = vmul.f32 %v3969_v25, %v3923_v55  ;;  %v4454_v55 = vld [vmem:[%s5859_s9] sm:$0xff] }
0x7e44   :  { %4120 = vmatpush.bf16.msrb.mxu3 %v4454_v55 }
0x7ea0   :  { %v3975_v22 = vpop.permute.xlu0 %3974 }
0x7ea1   :  { %v3977_v46 = vmul.f32 %v3975_v22, %v3969_v25 }
0x7ea3   :  { %3979 = vrot.lane.b32.xlu1 %v3977_v46, %s4987_s15 }
0x7f15   :  { %v3980_v16 = vpop.permute.xlu1 %3979 }
0x7f16   :  { %v3982_v61 = vadd.f32 %v3980_v16, %v3972_v13 }
0x7f18   :  { %4937 = vtanh.f32 %v3982_v61 }
0x7f1e   :  { %v4938_v28 = vpop.eup %4937 }
0x7f1f   :  { %3985 = vrot.lane.b32.xlu2 %v4938_v28, %s4986_s1 }
0x7f79   :  { %v3986_v23 = vpop.permute.xlu2 %3985 }
0x7f7a   :  { %v3988_v27 = vmul.f32 %v3986_v23, %v3969_v25 }
0x7f7c   :  { %v3990_v8 = vpack.c.bf16 %v3988_v27, %v3988_v27 }
0x7f7e   :  { %3992 = vrot.lane.b32.xlu0 %v3990_v8, %s4987_s15 }
0x7ff0   :  { %v3993_v30 = vpop.permute.xlu0 %3992 }
0x7ff1   :  { %4401 = vmatmul.msk.bf16.vlgmr.msrb.gmra.mxu1 %vm200_vm4, %v3993_v30 }
0x806e   :  { %v4006_v40 = vpop.f32.mrf.mxu1 }
0x806f   :  { %v4010_v43 = vadd.f32 %v4006_v40, %v3989_v58 }
0x8071   :  { %4939 = vtanh.f32 %v4010_v43  ;;  %v4402_v15 = vmul.f32 -1.442695, %v4010_v43 }
0x8073   :  { %4941 = vpow2.f32 %v4402_v15 }
0x8076   :  { %v4008_v39 = vpop.f32.mrf.mxu1 }
0x8077   :  { %v4940_v18 = vpop.eup %4939 }
0x8078   :  { %4033 = vrot.lane.b32.xlu1 %v4940_v18, %s4986_s1 }
0x8079   :  { %v4942_v52 = vpop.eup %4941 }
0x807a   :  { %v4014_v41 = vadd.f32 1.0, %v4942_v52 }
0x807c   :  { %4943 = vrcp.f32 %v4014_v41  ;;  %v4026_v29 = vand.u32 2147483648, %v4014_v41  ;;  %vm4020_vm2 = vweird.f32 %v4014_v41  ;;  %v4024_v62 = vand.u32 2147483647, %v4014_v41 }
0x807e   :  { %v4027_v42 = vor.u32 1.1754944e-38, %v4026_v29  ;;  %vm4025_vm9 = vcmp.eq.f32.partialorder %v4024_v62, 8.507059e+37 }
0x8082   :  { %v4944_v33 = vpop.eup %4943 }
0x8083   :  { %v4016_v34 = vmul.f32 %v4944_v33, %v4014_v41  ;;  %vm4021_vm1 = vweird.f32 %v4944_v33 }
0x8084   :  { %vm4022_vm8 = vmor %vm4020_vm2, %vm4021_vm1 }
0x8085   :  { %v4017_v12 = vsub.f32 1.0, %v4016_v34 }
0x8087   :  { %v4018_v32 = vmul.f32 %v4944_v33, %v4017_v12 }
0x8089   :  { %v4019_v2 = vadd.f32 %v4944_v33, %v4018_v32 }
0x808b   :  { %v4023_v14 = vsel %vm4022_vm8, %v4944_v33, %v4019_v2 }
0x808c   :  { %v4028_v49 = vsel %vm4025_vm9, %v4027_v42, %v4023_v14 }
0x808d   :  { %v4031_v26 = vmul.f32 %v4028_v49, %v3982_v61 }
0x80ea   :  { %v4034_v19 = vpop.permute.xlu1 %4033 }
0x80eb   :  { %v4036_v47 = vmul.f32 %v4034_v19, %v4028_v49 }
0x80ed   :  { %4038 = vrot.lane.b32.xlu2 %v4036_v47, %s4987_s15 }
0x8147   :  { %v4039_v5 = vpop.permute.xlu2 %4038 }
0x8148   :  { %v4041_v10 = vadd.f32 %v4039_v5, %v4031_v26 }
0x814a   :  { %4945 = vtanh.f32 %v4041_v10 }
0x8150   :  { %v4946_v11 = vpop.eup %4945 }
0x8151   :  { %4044 = vrot.lane.b32.xlu0 %v4946_v11, %s4986_s1 }
0x81c3   :  { %v4045_v6 = vpop.permute.xlu0 %4044 }
0x81c4   :  { %v4047_v35 = vmul.f32 %v4045_v6, %v4028_v49 }
0x81c6   :  { %v4048_v53 = vpack.c.bf16 %v4047_v35, %v4047_v35 }
0x81c8   :  { %4058 = vrot.lane.b32.xlu1 %v4048_v53, %s4987_s15 }
0x823a   :  { %v4059_v63 = vpop.permute.xlu1 %4058 }
0x823b   :  { %4411 = vmatmul.msk.bf16.vlgmr.msrb.gmra.mxu2 %vm200_vm4, %v4059_v63 }
0x82be   :  { %v4084_v56 = vpop.f32.mrf.mxu2 }
0x82bf   :  { %v4085_v38 = vadd.f32 %v4464_v3, %v4084_v56 }
0x82c1   :  { %v4088_v57 = vmax.f32 %v4085_v38, 0.0 }
0x82c3   :  { %v4089_v0 = vpack.c.bf16 %v4088_v57, %v4088_v57 }
0x82c5   :  { %4420 = vmatmul.msk.bf16.vlgmr.msrb.gmra.mxu3 %vm200_vm4, %v4089_v0 }
0x82c6   :  { %v4086_v1 = vpop.f32.mrf.mxu2 }
0x8348   :  { %v4122_v7 = vpop.f32.mrf.mxu3 }
0x8349   :  { %v4123_v4 = vadd.f32 %v4465_v59, %v4122_v7 }
0x834b   :  { %v4126_v9 = vmax.f32 %v4123_v4, 0.0 }
0x834d   :  { %v4127_v50 = vpack.c.bf16 %v4126_v9, %v4126_v9 }
0x834f   :  { %4429 = vmatmul.msk.bf16.vlgmr.msra.gmra.mxu0 %vm200_vm4, %v4127_v50 }
0x8350   :  { %v4124_v60 = vpop.f32.mrf.mxu3 }
0x83cc   :  { %v4160_v17 = vpop.f32.mrf.mxu0 }
0x83cd   :  { %v4161_v37 = vadd.f32 %v4466_v36, %v4160_v17 }
0x83cf   :  { %v4165_v44 = vsel %vm4164_vm10, %v4161_v37, -inf }
0x83d0   :  { %4166 = vmax.xlane.f32.xlu2 %v4165_v44 }
0x83d4   :  { %v4162_v20 = vpop.f32.mrf.mxu0 }
0x8443   :  { %v4167_v24 = vpop.xlane.xlu2 %4166 }
0x8444   :  { %v4168_v21 = vsub.f32 %v4161_v37, %v4167_v24 }
0x8446   :  { %v4169_v22 = vmul.f32 1.442695, %v4168_v21 }
0x8448   :  { %4947 = vpow2.f32 %v4169_v22 }
0x844e   :  { %v4948_v25 = vpop.eup %4947 }
0x844f   :  { %v4171_v46 = vsel %vm4164_vm10, %v4948_v25, 0.0 }
0x8450   :  { %4172 = vadd.xlane.f32.xlu0 %v4171_v46 }
0x84c3   :  { %v4173_v13 = vpop.xlane.xlu0 %4172 }
0x84c4   :  { %4949 = vrcp.f32 %v4173_v13 }
0x84ca   :  { %v4950_v16 = vpop.eup %4949 }
0x84cb   :  { %v4175_v61 = vmul.f32 %v4950_v16, %v4948_v25 }
0x84cd   :  { %4176 = vst.msk [vmem:[#allocation4] sm:$0x3] %vm4164_vm10, %v4175_v61 }
0x84ce   :  { %4187 = dma.vmem_to_hbm [thread:$0]  %s4183_s20, 32, %s4185_s2, [#allocation5]  }
0x84cf   :  { %4983 = dma.done.wait [#allocation5], 32  }
0x84d0   :  { %4984 = vsyncadd [#allocation5], 4294967264 }
0x84d1   :  { %4192 = vsyncpa [#allocation5], 1 }

</bundles_post_ra>
